<compile_context>
chip_gen: v7x
topology: tpu7x:2x2x1
jax: 0.10.0
libtpu: 0.0.40
codegen_flags: <defaults>
</compile_context>

<pallas_src>
import functools

import jax
import jax.numpy as jnp
from jax.experimental import pallas as pl
from jax.experimental.pallas import tpu as pltpu


# ------------------------------------------------------------------
# Fused Pallas kernel: encoder GRU stack -> decoder GRU stack -> proj+logsoftmax
# ------------------------------------------------------------------

def fused_forward_kernel(xin_ref, xout_ref,          # (S_in*B, Din) / (S_out*B, Din) bf16
                         wih0_ref,                   # (2*3, Din, H)        bf16  layer-0 input weights [enc,dec]x[r,z,n]
                         wihr_ref,                   # (2*(L-1)*3, H, H)    bf16  layer>=1 input weights
                         whh_ref,                    # (2*L*3, H, H)        f32   recurrent weights
                         bgx_ref,                    # (2*L*3, 1, H)        f32   b_ir+b_hr / b_iz+b_hz / b_in
                         bhn_ref,                    # (2*L,   1, H)        f32   b_hn
                         pw_ref,                     # (H, V_pad)           bf16
                         pb_ref,                     # (1, V_pad)           f32   (-1e30 in padded cols)
                         score_ref,                  # (S_out*B, V_pad)     f32
                         gx_sc,                      # VMEM (3, Smax*B, H)  f32   hoisted x @ W_ih (+bias) per gate
                         seq_sc,                     # VMEM (Smax*B, H)     f32   current layer output sequence
                         *, B, H, L, S_in, S_out):

    def gru_stack(x_ref, S, s_idx, h_init):
        """One GRU stack (s_idx: 0=encoder, 1=decoder). Returns final h per layer.

        PyTorch GRU gate math (r, z, n):
            r = sigmoid(x W_ir + b_ir + h W_hr + b_hr)
            z = sigmoid(x W_iz + b_iz + h W_hz + b_hz)
            n = tanh   (x W_in + b_in + r * (h W_hn + b_hn))
            h' = (1 - z) * n + z * h
        """
        SB = S * B
        h_finals = []
        for l in range(L):
            flat = (s_idx * L + l) * 3

            # ---- hoisted input projection: one big matmul per gate (bf16->f32) ----
            if l == 0:
                x_val = x_ref[...]                                  # (SB, Din) bf16
                w_ref_, w_base = wih0_ref, s_idx * 3
            else:
                x_val = seq_sc[0:SB, :].astype(jnp.bfloat16)        # previous layer output
                w_ref_, w_base = wihr_ref, (s_idx * (L - 1) + (l - 1)) * 3
            for g in range(3):
                gx_sc[g, 0:SB, :] = (
                    jnp.dot(x_val, w_ref_[w_base + g],
                            preferred_element_type=jnp.float32)
                    + bgx_ref[flat + g])

            # ---- serial recurrence: only h @ W_hh + gate math per step ----
            w_r = whh_ref[flat + 0]
            w_z = whh_ref[flat + 1]
            w_n = whh_ref[flat + 2]
            b_n = jnp.broadcast_to(bhn_ref[s_idx * L + l], (B, H))  # hoisted broadcast

            h = jnp.zeros((B, H), jnp.float32) if h_init is None else h_init[l]
            need_seq = (s_idx == 1) or (l < L - 1)  # decoder last layer feeds projection
            for t in range(S):                      # static unroll, static offsets
                r0 = t * B
                gh_r = jnp.dot(h, w_r, preferred_element_type=jnp.float32)
                gh_z = jnp.dot(h, w_z, preferred_element_type=jnp.float32)
                gh_n = jnp.dot(h, w_n, preferred_element_type=jnp.float32) + b_n
                r = jax.nn.sigmoid(gx_sc[0, r0:r0 + B, :] + gh_r)
                z = jax.nn.sigmoid(gx_sc[1, r0:r0 + B, :] + gh_z)
                n = jnp.tanh(gx_sc[2, r0:r0 + B, :] + r * gh_n)
                h = (1.0 - z) * n + z * h
                if need_seq:
                    seq_sc[r0:r0 + B, :] = h
            h_finals.append(h)
        return h_finals

    # Encoder: only final hidden states are needed by the decoder.
    enc_h = gru_stack(xin_ref, S_in, 0, None)
    # Decoder: initialized with the encoder hidden states (per layer).
    gru_stack(xout_ref, S_out, 1, enc_h)

    # ---- vocab projection + log-softmax (lane-dense: V padded to 128) ----
    dec = seq_sc[0:S_out * B, :].astype(jnp.bfloat16)               # (S_out*B, H)
    logits = (jnp.dot(dec, pw_ref[...], preferred_element_type=jnp.float32)
              + pb_ref[...])                                        # (S_out*B, V_pad)
    m = jnp.max(logits, axis=-1, keepdims=True)
    lse = jnp.log(jnp.sum(jnp.exp(logits - m), axis=-1, keepdims=True)) + m
    score_ref[...] = logits - lse


# ------------------------------------------------------------------
# pallas_call wrapper
# ------------------------------------------------------------------

def _full_spec(shape):
    nd = len(shape)
    return pl.BlockSpec(shape, lambda i, nd=nd: (0,) * nd)


def fused_forward(xin, xout, wih0, wihr, whh, bgx, bhn, pw, pb,
                  *, B, H, L, S_in, S_out):
    V_pad = pw.shape[1]
    Smax = max(S_in, S_out)
    kernel = functools.partial(fused_forward_kernel,
                               B=B, H=H, L=L, S_in=S_in, S_out=S_out)
    args = (xin, xout, wih0, wihr, whh, bgx, bhn, pw, pb)
    return pl.pallas_call(
        kernel,
        out_shape=jax.ShapeDtypeStruct((S_out * B, V_pad), jnp.float32),
        grid=(1,),
        in_specs=[_full_spec(a.shape) for a in args],
        out_specs=_full_spec((S_out * B, V_pad)),
        scratch_shapes=[
            pltpu.VMEM((3, Smax * B, H), jnp.float32),   # hoisted GX per gate
            pltpu.VMEM((Smax * B, H), jnp.float32),      # layer output sequence
        ],
        compiler_params=pltpu.CompilerParams(
            dimension_semantics=("arbitrary",)),
    )(*args)


# ------------------------------------------------------------------
# Parameter init / packing (plain-JAX glue)
# ------------------------------------------------------------------

def init_gru_params(key, n_layers, in_dim, hidden):
    """Per-layer, per-gate (r, z, n) GRU parameters, PyTorch-style uniform init."""
    layers = []
    scale = float(hidden) ** -0.5
    for layer in range(n_layers):
        d = in_dim if layer == 0 else hidden
        key, k1, k2, k3, k4 = jax.random.split(key, 5)
        layers.append(dict(
            w_ih=jax.random.uniform(k1, (3, d, hidden), jnp.float32, -scale, scale),
            w_hh=jax.random.uniform(k2, (3, hidden, hidden), jnp.float32, -scale, scale),
            b_ih=jax.random.uniform(k3, (3, 1, hidden), jnp.float32, -scale, scale),
            b_hh=jax.random.uniform(k4, (3, 1, hidden), jnp.float32, -scale, scale),
        ))
    return layers, key


def pack_gru_params(enc_layers, dec_layers):
    """Pack [encoder, decoder] GRU stacks into flat kernel-layout arrays."""
    stacks = (enc_layers, dec_layers)
    L = len(enc_layers)
    H = enc_layers[0]['w_hh'].shape[-1]

    # Layer-0 input weights (Din differs from H): flat index = stack*3 + gate.
    wih0 = jnp.concatenate([stacks[s][0]['w_ih'] for s in range(2)],
                           axis=0).astype(jnp.bfloat16)
    # Layers >= 1 input weights: flat = (stack*(L-1) + (l-1))*3 + gate.
    if L > 1:
        wihr = jnp.concatenate(
            [stacks[s][l]['w_ih'] for s in range(2) for l in range(1, L)],
            axis=0).astype(jnp.bfloat16)
    else:
        wihr = jnp.zeros((3, H, H), jnp.bfloat16)   # dummy, never indexed

    # Recurrent weights (kept f32 on the serial path): flat = (stack*L + l)*3 + gate.
    whh = jnp.concatenate(
        [stacks[s][l]['w_hh'] for s in range(2) for l in range(L)], axis=0)

    # Biases: fold b_ir+b_hr / b_iz+b_hz / b_in into the hoisted GX bias;
    # keep b_hn separate (it sits inside r * (h W_hn + b_hn)).
    bgx_parts, bhn_parts = [], []
    for s in range(2):
        for l in range(L):
            b_ih, b_hh = stacks[s][l]['b_ih'], stacks[s][l]['b_hh']
            bgx_parts.append(jnp.concatenate(
                [b_ih[0:2] + b_hh[0:2], b_ih[2:3]], axis=0))   # (3, 1, H)
            bhn_parts.append(b_hh[2:3])                        # (1, 1, H)
    bgx = jnp.concatenate(bgx_parts, axis=0)
    bhn = jnp.concatenate(bhn_parts, axis=0)
    return wih0, wihr, whh, bgx, bhn


def build_params(emb_table, enc_layers, dec_layers, proj_w, proj_b):
    H, V = proj_w.shape
    V_pad = ((V + 127) // 128) * 128          # lane-dense output
    wih0, wihr, whh, bgx, bhn = pack_gru_params(enc_layers, dec_layers)
    proj_w_pad = jnp.pad(proj_w, ((0, 0), (0, V_pad - V))).astype(jnp.bfloat16)
    proj_b_pad = jnp.full((1, V_pad), -1e30, jnp.float32)
    proj_b_pad = proj_b_pad.at[0, :V].set(proj_b.reshape(-1))
    return dict(emb=emb_table, wih0=wih0, wihr=wihr, whh=whh, bgx=bgx, bhn=bhn,
                proj_w_pad=proj_w_pad, proj_b_pad=proj_b_pad,
                n_layers=len(enc_layers), vocab=V)


# ------------------------------------------------------------------
# Forward (embedding glue + fused kernel call)
# ------------------------------------------------------------------

def lm_assgen_cond_hyo_forward(params, batch):
    in_tokens, in_trees, out_tokens, out_trees = batch
    emb = params['emb']
    H = emb.shape[1]

    # Emb: token embedding + concat 4-dim tree features (time-major (S, B, F+4)).
    in_feats = jnp.concatenate([emb[in_tokens], in_trees], axis=-1)
    out_feats = jnp.concatenate([emb[out_tokens], out_trees], axis=-1)

    S_in, B, Din = in_feats.shape
    S_out = out_feats.shape[0]
    B_pad = ((B + 7) // 8) * 8                # fill the 8 sublanes of every vreg

    def prep(x, S):
        x = jnp.pad(x, ((0, 0), (0, B_pad - B), (0, 0)))
        return x.reshape(S * B_pad, Din).astype(jnp.bfloat16)

    xin, xout = prep(in_feats, S_in), prep(out_feats, S_out)

    score_pad = fused_forward(
        xin, xout, params['wih0'], params['wihr'], params['whh'],
        params['bgx'], params['bhn'], params['proj_w_pad'], params['proj_b_pad'],
        B=B_pad, H=H, L=params['n_layers'], S_in=S_in, S_out=S_out)

    V = params['vocab']
    V_pad = params['proj_w_pad'].shape[1]
    return score_pad.reshape(S_out, B_pad, V_pad)[:, :B, :V]   # (S_out, B, vocab)


# ------------------------------------------------------------------
# Main
# ------------------------------------------------------------------

if __name__ == "__main__":
    B = 2            # batch
    S_IN = 8         # "in" (hypotheses) sequence length
    S_OUT = 8        # "out" (statement) sequence length
    N_FEATS = 32     # args.nFeats
    TREE_DIM = 4     # tree feature dim
    GRU_DEPTH = 2    # args.gru_depth
    VOCAB = 16       # len(config.encode)

    key = jax.random.PRNGKey(0)
    key, k_emb, k_pw, k_pb, k_it, k_ot, k_itr, k_otr = jax.random.split(key, 8)

    emb_table = 0.1 * jax.random.normal(k_emb, (VOCAB, N_FEATS), jnp.float32)
    enc_layers, key = init_gru_params(key, GRU_DEPTH, N_FEATS + TREE_DIM, N_FEATS)
    dec_layers, key = init_gru_params(key, GRU_DEPTH, N_FEATS + TREE_DIM, N_FEATS)
    proj_w = 0.1 * jax.random.normal(k_pw, (N_FEATS, VOCAB), jnp.float32)
    proj_b = 0.1 * jax.random.normal(k_pb, (VOCAB,), jnp.float32)

    params = build_params(emb_table, enc_layers, dec_layers, proj_w, proj_b)

    # Deterministic example batch, time-major (S, B, ...).
    in_tokens = jax.random.randint(k_it, (S_IN, B), 0, VOCAB, jnp.int32)
    out_tokens = jax.random.randint(k_ot, (S_OUT, B), 0, VOCAB, jnp.int32)
    in_trees = jax.random.normal(k_itr, (S_IN, B, TREE_DIM), jnp.float32)
    out_trees = jax.random.normal(k_otr, (S_OUT, B, TREE_DIM), jnp.float32)

    batch = (in_tokens, in_trees, out_tokens, out_trees)

    score = lm_assgen_cond_hyo_forward(params, batch)
    score = jax.block_until_ready(score)

    assert score.shape == (S_OUT, B, VOCAB)
    assert bool(jnp.all(jnp.isfinite(score)))
    print("KERNEL_OK")
</pallas_src>

<mosaic_0001>
module attributes {stable_mosaic.version = 11 : i64} {
  func.func @fused_forward_kernel(%arg0: i32, %arg1: memref<64x36xbf16, #tpu.memory_space<vmem>>, %arg2: memref<64x36xbf16, #tpu.memory_space<vmem>>, %arg3: memref<6x36x32xbf16, #tpu.memory_space<vmem>>, %arg4: memref<6x32x32xbf16, #tpu.memory_space<vmem>>, %arg5: memref<12x32x32xf32, #tpu.memory_space<vmem>>, %arg6: memref<12x1x32xf32, #tpu.memory_space<vmem>>, %arg7: memref<4x1x32xf32, #tpu.memory_space<vmem>>, %arg8: memref<32x128xbf16, #tpu.memory_space<vmem>>, %arg9: memref<1x128xf32, #tpu.memory_space<vmem>>, %arg10: memref<64x128xf32, #tpu.memory_space<vmem>>, %arg11: memref<3x64x32xf32, #tpu.memory_space<vmem>>, %arg12: memref<64x32xf32, #tpu.memory_space<vmem>>) attributes {dimension_semantics = [#tpu.dimension_semantics<arbitrary>], iteration_bounds = array<i64: 1>, scalar_prefetch = 0 : i64, scratch_operands = 2 : i64, tpu.core_type = #tpu.core_type<tc>, window_params = [{pipeline_mode = #tpu.pipeline_mode<synchronous>, transform_indices = @transform_0, window_bounds = array<i64: 64, 36>}, {pipeline_mode = #tpu.pipeline_mode<synchronous>, transform_indices = @transform_1, window_bounds = array<i64: 64, 36>}, {pipeline_mode = #tpu.pipeline_mode<synchronous>, transform_indices = @transform_2, window_bounds = array<i64: 6, 36, 32>}, {pipeline_mode = #tpu.pipeline_mode<synchronous>, transform_indices = @transform_3, window_bounds = array<i64: 6, 32, 32>}, {pipeline_mode = #tpu.pipeline_mode<synchronous>, transform_indices = @transform_4, window_bounds = array<i64: 12, 32, 32>}, {pipeline_mode = #tpu.pipeline_mode<synchronous>, transform_indices = @transform_5, window_bounds = array<i64: 12, 1, 32>}, {pipeline_mode = #tpu.pipeline_mode<synchronous>, transform_indices = @transform_6, window_bounds = array<i64: 4, 1, 32>}, {pipeline_mode = #tpu.pipeline_mode<synchronous>, transform_indices = @transform_7, window_bounds = array<i64: 32, 128>}, {pipeline_mode = #tpu.pipeline_mode<synchronous>, transform_indices = @transform_8, window_bounds = array<i64: 1, 128>}, {pipeline_mode = #tpu.pipeline_mode<synchronous>, transform_indices = @transform_9, window_bounds = array<i64: 64, 128>}]} {
    %c0 = arith.constant 0 : index
    %c0_0 = arith.constant 0 : index
    %0 = vector.load %arg1[%c0, %c0_0] : memref<64x36xbf16, #tpu.memory_space<vmem>>, vector<64x36xbf16>
    %c0_1 = arith.constant 0 : index
    %c0_2 = arith.constant 0 : index
    %c0_3 = arith.constant 0 : index
    %1 = vector.load %arg3[%c0_1, %c0_2, %c0_3] : memref<6x36x32xbf16, #tpu.memory_space<vmem>>, vector<1x36x32xbf16>
    %2 = vector.shape_cast %1 : vector<1x36x32xbf16> to vector<36x32xbf16>
    %cst = arith.constant dense<0.000000e+00> : vector<64x32xf32>
    %3 = tpu.matmul %0, %2, %cst {dimension_numbers = #tpu.dot_dimension_numbers<[1], [0], [0], [1], [0, 0, 1, 1], [], []>} : vector<64x36xbf16>, vector<36x32xbf16>, vector<64x32xf32> -> vector<64x32xf32>
    %c0_4 = arith.constant 0 : index
    %c0_5 = arith.constant 0 : index
    %c0_6 = arith.constant 0 : index
    %4 = vector.load %arg6[%c0_4, %c0_5, %c0_6] : memref<12x1x32xf32, #tpu.memory_space<vmem>>, vector<1x1x32xf32>
    %5 = vector.shape_cast %4 : vector<1x1x32xf32> to vector<1x32xf32>
    %6 = vector.broadcast %5 : vector<1x32xf32> to vector<64x32xf32>
    %7 = arith.addf %3, %6 : vector<64x32xf32>
    %c0_7 = arith.constant 0 : index
    %c0_8 = arith.constant 0 : index
    %c0_9 = arith.constant 0 : index
    %8 = vector.load %arg11[%c0_7, %c0_8, %c0_9] : memref<3x64x32xf32, #tpu.memory_space<vmem>>, vector<1x64x32xf32>
    %9 = vector.shape_cast %8 : vector<1x64x32xf32> to vector<64x32xf32>
    %10 = vector.shape_cast %7 : vector<64x32xf32> to vector<1x64x32xf32>
    tpu.vector_store %arg11[%c0_7, %c0_8, %c0_9], %10 {strides = array<i32>} : memref<3x64x32xf32, #tpu.memory_space<vmem>>, vector<1x64x32xf32>,
    %c1 = arith.constant 1 : index
    %c0_10 = arith.constant 0 : index
    %c0_11 = arith.constant 0 : index
    %11 = vector.load %arg3[%c1, %c0_10, %c0_11] : memref<6x36x32xbf16, #tpu.memory_space<vmem>>, vector<1x36x32xbf16>
    %12 = vector.shape_cast %11 : vector<1x36x32xbf16> to vector<36x32xbf16>
    %cst_12 = arith.constant dense<0.000000e+00> : vector<64x32xf32>
    %13 = tpu.matmul %0, %12, %cst_12 {dimension_numbers = #tpu.dot_dimension_numbers<[1], [0], [0], [1], [0, 0, 1, 1], [], []>} : vector<64x36xbf16>, vector<36x32xbf16>, vector<64x32xf32> -> vector<64x32xf32>
    %c1_13 = arith.constant 1 : index
    %c0_14 = arith.constant 0 : index
    %c0_15 = arith.constant 0 : index
    %14 = vector.load %arg6[%c1_13, %c0_14, %c0_15] : memref<12x1x32xf32, #tpu.memory_space<vmem>>, vector<1x1x32xf32>
    %15 = vector.shape_cast %14 : vector<1x1x32xf32> to vector<1x32xf32>
    %16 = vector.broadcast %15 : vector<1x32xf32> to vector<64x32xf32>
    %17 = arith.addf %13, %16 : vector<64x32xf32>
    %c1_16 = arith.constant 1 : index
    %c0_17 = arith.constant 0 : index
    %c0_18 = arith.constant 0 : index
    %18 = vector.load %arg11[%c1_16, %c0_17, %c0_18] : memref<3x64x32xf32, #tpu.memory_space<vmem>>, vector<1x64x32xf32>
    %19 = vector.shape_cast %18 : vector<1x64x32xf32> to vector<64x32xf32>
    %20 = vector.shape_cast %17 : vector<64x32xf32> to vector<1x64x32xf32>
    tpu.vector_store %arg11[%c1_16, %c0_17, %c0_18], %20 {strides = array<i32>} : memref<3x64x32xf32, #tpu.memory_space<vmem>>, vector<1x64x32xf32>,
    %c2 = arith.constant 2 : index
    %c0_19 = arith.constant 0 : index
    %c0_20 = arith.constant 0 : index
    %21 = vector.load %arg3[%c2, %c0_19, %c0_20] : memref<6x36x32xbf16, #tpu.memory_space<vmem>>, vector<1x36x32xbf16>
    %22 = vector.shape_cast %21 : vector<1x36x32xbf16> to vector<36x32xbf16>
    %cst_21 = arith.constant dense<0.000000e+00> : vector<64x32xf32>
    %23 = tpu.matmul %0, %22, %cst_21 {dimension_numbers = #tpu.dot_dimension_numbers<[1], [0], [0], [1], [0, 0, 1, 1], [], []>} : vector<64x36xbf16>, vector<36x32xbf16>, vector<64x32xf32> -> vector<64x32xf32>
    %c2_22 = arith.constant 2 : index
    %c0_23 = arith.constant 0 : index
    %c0_24 = arith.constant 0 : index
    %24 = vector.load %arg6[%c2_22, %c0_23, %c0_24] : memref<12x1x32xf32, #tpu.memory_space<vmem>>, vector<1x1x32xf32>
    %25 = vector.shape_cast %24 : vector<1x1x32xf32> to vector<1x32xf32>
    %26 = vector.broadcast %25 : vector<1x32xf32> to vector<64x32xf32>
    %27 = arith.addf %23, %26 : vector<64x32xf32>
    %c2_25 = arith.constant 2 : index
    %c0_26 = arith.constant 0 : index
    %c0_27 = arith.constant 0 : index
    %28 = vector.load %arg11[%c2_25, %c0_26, %c0_27] : memref<3x64x32xf32, #tpu.memory_space<vmem>>, vector<1x64x32xf32>
    %29 = vector.shape_cast %28 : vector<1x64x32xf32> to vector<64x32xf32>
    %30 = vector.shape_cast %27 : vector<64x32xf32> to vector<1x64x32xf32>
    tpu.vector_store %arg11[%c2_25, %c0_26, %c0_27], %30 {strides = array<i32>} : memref<3x64x32xf32, #tpu.memory_space<vmem>>, vector<1x64x32xf32>,
    %c0_28 = arith.constant 0 : index
    %c0_29 = arith.constant 0 : index
    %c0_30 = arith.constant 0 : index
    %31 = vector.load %arg5[%c0_28, %c0_29, %c0_30] : memref<12x32x32xf32, #tpu.memory_space<vmem>>, vector<1x32x32xf32>
    %32 = vector.shape_cast %31 : vector<1x32x32xf32> to vector<32x32xf32>
    %c1_31 = arith.constant 1 : index
    %c0_32 = arith.constant 0 : index
    %c0_33 = arith.constant 0 : index
    %33 = vector.load %arg5[%c1_31, %c0_32, %c0_33] : memref<12x32x32xf32, #tpu.memory_space<vmem>>, vector<1x32x32xf32>
    %34 = vector.shape_cast %33 : vector<1x32x32xf32> to vector<32x32xf32>
    %c2_34 = arith.constant 2 : index
    %c0_35 = arith.constant 0 : index
    %c0_36 = arith.constant 0 : index
    %35 = vector.load %arg5[%c2_34, %c0_35, %c0_36] : memref<12x32x32xf32, #tpu.memory_space<vmem>>, vector<1x32x32xf32>
    %36 = vector.shape_cast %35 : vector<1x32x32xf32> to vector<32x32xf32>
    %c0_37 = arith.constant 0 : index
    %c0_38 = arith.constant 0 : index
    %c0_39 = arith.constant 0 : index
    %37 = vector.load %arg7[%c0_37, %c0_38, %c0_39] : memref<4x1x32xf32, #tpu.memory_space<vmem>>, vector<1x1x32xf32>
    %38 = vector.shape_cast %37 : vector<1x1x32xf32> to vector<1x32xf32>
    %39 = vector.shape_cast %38 : vector<1x32xf32> to vector<1x32xf32>
    %40 = vector.broadcast %39 : vector<1x32xf32> to vector<8x32xf32>
    %cst_40 = arith.constant 0.000000e+00 : f32
    %41 = vector.broadcast %cst_40 : f32 to vector<8x32xf32>
    %cst_41 = arith.constant dense<0.000000e+00> : vector<8x32xf32>
    %42 = tpu.matmul %41, %32, %cst_41 {dimension_numbers = #tpu.dot_dimension_numbers<[1], [0], [0], [1], [0, 0, 1, 1], [], []>} : vector<8x32xf32>, vector<32x32xf32>, vector<8x32xf32> -> vector<8x32xf32>
    %cst_42 = arith.constant dense<0.000000e+00> : vector<8x32xf32>
    %43 = tpu.matmul %41, %34, %cst_42 {dimension_numbers = #tpu.dot_dimension_numbers<[1], [0], [0], [1], [0, 0, 1, 1], [], []>} : vector<8x32xf32>, vector<32x32xf32>, vector<8x32xf32> -> vector<8x32xf32>
    %cst_43 = arith.constant dense<0.000000e+00> : vector<8x32xf32>
    %44 = tpu.matmul %41, %36, %cst_43 {dimension_numbers = #tpu.dot_dimension_numbers<[1], [0], [0], [1], [0, 0, 1, 1], [], []>} : vector<8x32xf32>, vector<32x32xf32>, vector<8x32xf32> -> vector<8x32xf32>
    %45 = arith.addf %44, %40 : vector<8x32xf32>
    %c0_44 = arith.constant 0 : index
    %c0_45 = arith.constant 0 : index
    %c0_46 = arith.constant 0 : index
    %46 = vector.load %arg11[%c0_44, %c0_45, %c0_46] : memref<3x64x32xf32, #tpu.memory_space<vmem>>, vector<1x8x32xf32>
    %47 = vector.shape_cast %46 : vector<1x8x32xf32> to vector<8x32xf32>
    %48 = arith.addf %47, %42 : vector<8x32xf32>
    %49 = arith.negf %48 : vector<8x32xf32>
    %50 = math.exp %49 : vector<8x32xf32>
    %cst_47 = arith.constant 1.000000e+00 : f32
    %51 = vector.broadcast %cst_47 : f32 to vector<8x32xf32>
    %52 = arith.addf %51, %50 : vector<8x32xf32>
    %53 = arith.divf %51, %52 : vector<8x32xf32>
    %c1_48 = arith.constant 1 : index
    %c0_49 = arith.constant 0 : index
    %c0_50 = arith.constant 0 : index
    %54 = vector.load %arg11[%c1_48, %c0_49, %c0_50] : memref<3x64x32xf32, #tpu.memory_space<vmem>>, vector<1x8x32xf32>
    %55 = vector.shape_cast %54 : vector<1x8x32xf32> to vector<8x32xf32>
    %56 = arith.addf %55, %43 : vector<8x32xf32>
    %57 = arith.negf %56 : vector<8x32xf32>
    %58 = math.exp %57 : vector<8x32xf32>
    %cst_51 = arith.constant 1.000000e+00 : f32
    %59 = vector.broadcast %cst_51 : f32 to vector<8x32xf32>
    %60 = arith.addf %59, %58 : vector<8x32xf32>
    %61 = arith.divf %59, %60 : vector<8x32xf32>
    %c2_52 = arith.constant 2 : index
    %c0_53 = arith.constant 0 : index
    %c0_54 = arith.constant 0 : index
    %62 = vector.load %arg11[%c2_52, %c0_53, %c0_54] : memref<3x64x32xf32, #tpu.memory_space<vmem>>, vector<1x8x32xf32>
    %63 = vector.shape_cast %62 : vector<1x8x32xf32> to vector<8x32xf32>
    %64 = arith.mulf %53, %45 : vector<8x32xf32>
    %65 = arith.addf %63, %64 : vector<8x32xf32>
    %66 = math.tanh %65 : vector<8x32xf32>
    %cst_55 = arith.constant 1.000000e+00 : f32
    %67 = vector.broadcast %cst_55 : f32 to vector<8x32xf32>
    %68 = arith.subf %67, %61 : vector<8x32xf32>
    %69 = arith.mulf %68, %66 : vector<8x32xf32>
    %70 = arith.mulf %61, %41 : vector<8x32xf32>
    %71 = arith.addf %69, %70 : vector<8x32xf32>
    %c0_56 = arith.constant 0 : index
    %c0_57 = arith.constant 0 : index
    %72 = vector.load %arg12[%c0_56, %c0_57] : memref<64x32xf32, #tpu.memory_space<vmem>>, vector<8x32xf32>
    tpu.vector_store %arg12[%c0_56, %c0_57], %71 {strides = array<i32>} : memref<64x32xf32, #tpu.memory_space<vmem>>, vector<8x32xf32>,
    %cst_58 = arith.constant dense<0.000000e+00> : vector<8x32xf32>
    %73 = tpu.matmul %71, %32, %cst_58 {dimension_numbers = #tpu.dot_dimension_numbers<[1], [0], [0], [1], [0, 0, 1, 1], [], []>} : vector<8x32xf32>, vector<32x32xf32>, vector<8x32xf32> -> vector<8x32xf32>
    %cst_59 = arith.constant dense<0.000000e+00> : vector<8x32xf32>
    %74 = tpu.matmul %71, %34, %cst_59 {dimension_numbers = #tpu.dot_dimension_numbers<[1], [0], [0], [1], [0, 0, 1, 1], [], []>} : vector<8x32xf32>, vector<32x32xf32>, vector<8x32xf32> -> vector<8x32xf32>
    %cst_60 = arith.constant dense<0.000000e+00> : vector<8x32xf32>
    %75 = tpu.matmul %71, %36, %cst_60 {dimension_numbers = #tpu.dot_dimension_numbers<[1], [0], [0], [1], [0, 0, 1, 1], [], []>} : vector<8x32xf32>, vector<32x32xf32>, vector<8x32xf32> -> vector<8x32xf32>
    %76 = arith.addf %75, %40 : vector<8x32xf32>
    %c0_61 = arith.constant 0 : index
    %c8 = arith.constant 8 : index
    %c0_62 = arith.constant 0 : index
    %77 = vector.load %arg11[%c0_61, %c8, %c0_62] : memref<3x64x32xf32, #tpu.memory_space<vmem>>, vector<1x8x32xf32>
    %78 = vector.shape_cast %77 : vector<1x8x32xf32> to vector<8x32xf32>
    %79 = arith.addf %78, %73 : vector<8x32xf32>
    %80 = arith.negf %79 : vector<8x32xf32>
    %81 = math.exp %80 : vector<8x32xf32>
    %cst_63 = arith.constant 1.000000e+00 : f32
    %82 = vector.broadcast %cst_63 : f32 to vector<8x32xf32>
    %83 = arith.addf %82, %81 : vector<8x32xf32>
    %84 = arith.divf %82, %83 : vector<8x32xf32>
    %c1_64 = arith.constant 1 : index
    %c8_65 = arith.constant 8 : index
    %c0_66 = arith.constant 0 : index
    %85 = vector.load %arg11[%c1_64, %c8_65, %c0_66] : memref<3x64x32xf32, #tpu.memory_space<vmem>>, vector<1x8x32xf32>
    %86 = vector.shape_cast %85 : vector<1x8x32xf32> to vector<8x32xf32>
    %87 = arith.addf %86, %74 : vector<8x32xf32>
    %88 = arith.negf %87 : vector<8x32xf32>
    %89 = math.exp %88 : vector<8x32xf32>
    %cst_67 = arith.constant 1.000000e+00 : f32
    %90 = vector.broadcast %cst_67 : f32 to vector<8x32xf32>
    %91 = arith.addf %90, %89 : vector<8x32xf32>
    %92 = arith.divf %90, %91 : vector<8x32xf32>
    %c2_68 = arith.constant 2 : index
    %c8_69 = arith.constant 8 : index
    %c0_70 = arith.constant 0 : index
    %93 = vector.load %arg11[%c2_68, %c8_69, %c0_70] : memref<3x64x32xf32, #tpu.memory_space<vmem>>, vector<1x8x32xf32>
    %94 = vector.shape_cast %93 : vector<1x8x32xf32> to vector<8x32xf32>
    %95 = arith.mulf %84, %76 : vector<8x32xf32>
    %96 = arith.addf %94, %95 : vector<8x32xf32>
    %97 = math.tanh %96 : vector<8x32xf32>
    %cst_71 = arith.constant 1.000000e+00 : f32
    %98 = vector.broadcast %cst_71 : f32 to vector<8x32xf32>
    %99 = arith.subf %98, %92 : vector<8x32xf32>
    %100 = arith.mulf %99, %97 : vector<8x32xf32>
    %101 = arith.mulf %92, %71 : vector<8x32xf32>
    %102 = arith.addf %100, %101 : vector<8x32xf32>
    %c8_72 = arith.constant 8 : index
    %c0_73 = arith.constant 0 : index
    %103 = vector.load %arg12[%c8_72, %c0_73] : memref<64x32xf32, #tpu.memory_space<vmem>>, vector<8x32xf32>
    tpu.vector_store %arg12[%c8_72, %c0_73], %102 {strides = array<i32>} : memref<64x32xf32, #tpu.memory_space<vmem>>, vector<8x32xf32>,
    %cst_74 = arith.constant dense<0.000000e+00> : vector<8x32xf32>
    %104 = tpu.matmul %102, %32, %cst_74 {dimension_numbers = #tpu.dot_dimension_numbers<[1], [0], [0], [1], [0, 0, 1, 1], [], []>} : vector<8x32xf32>, vector<32x32xf32>, vector<8x32xf32> -> vector<8x32xf32>
    %cst_75 = arith.constant dense<0.000000e+00> : vector<8x32xf32>
    %105 = tpu.matmul %102, %34, %cst_75 {dimension_numbers = #tpu.dot_dimension_numbers<[1], [0], [0], [1], [0, 0, 1, 1], [], []>} : vector<8x32xf32>, vector<32x32xf32>, vector<8x32xf32> -> vector<8x32xf32>
    %cst_76 = arith.constant dense<0.000000e+00> : vector<8x32xf32>
    %106 = tpu.matmul %102, %36, %cst_76 {dimension_numbers = #tpu.dot_dimension_numbers<[1], [0], [0], [1], [0, 0, 1, 1], [], []>} : vector<8x32xf32>, vector<32x32xf32>, vector<8x32xf32> -> vector<8x32xf32>
    %107 = arith.addf %106, %40 : vector<8x32xf32>
    %c0_77 = arith.constant 0 : index
    %c16 = arith.constant 16 : index
    %c0_78 = arith.constant 0 : index
    %108 = vector.load %arg11[%c0_77, %c16, %c0_78] : memref<3x64x32xf32, #tpu.memory_space<vmem>>, vector<1x8x32xf32>
    %109 = vector.shape_cast %108 : vector<1x8x32xf32> to vector<8x32xf32>
    %110 = arith.addf %109, %104 : vector<8x32xf32>
    %111 = arith.negf %110 : vector<8x32xf32>
    %112 = math.exp %111 : vector<8x32xf32>
    %cst_79 = arith.constant 1.000000e+00 : f32
    %113 = vector.broadcast %cst_79 : f32 to vector<8x32xf32>
    %114 = arith.addf %113, %112 : vector<8x32xf32>
    %115 = arith.divf %113, %114 : vector<8x32xf32>
    %c1_80 = arith.constant 1 : index
    %c16_81 = arith.constant 16 : index
    %c0_82 = arith.constant 0 : index
    %116 = vector.load %arg11[%c1_80, %c16_81, %c0_82] : memref<3x64x32xf32, #tpu.memory_space<vmem>>, vector<1x8x32xf32>
    %117 = vector.shape_cast %116 : vector<1x8x32xf32> to vector<8x32xf32>
    %118 = arith.addf %117, %105 : vector<8x32xf32>
    %119 = arith.negf %118 : vector<8x32xf32>
    %120 = math.exp %119 : vector<8x32xf32>
    %cst_83 = arith.constant 1.000000e+00 : f32
    %121 = vector.broadcast %cst_83 : f32 to vector<8x32xf32>
    %122 = arith.addf %121, %120 : vector<8x32xf32>
    %123 = arith.divf %121, %122 : vector<8x32xf32>
    %c2_84 = arith.constant 2 : index
    %c16_85 = arith.constant 16 : index
    %c0_86 = arith.constant 0 : index
    %124 = vector.load %arg11[%c2_84, %c16_85, %c0_86] : memref<3x64x32xf32, #tpu.memory_space<vmem>>, vector<1x8x32xf32>
    %125 = vector.shape_cast %124 : vector<1x8x32xf32> to vector<8x32xf32>
    %126 = arith.mulf %115, %107 : vector<8x32xf32>
    %127 = arith.addf %125, %126 : vector<8x32xf32>
    %128 = math.tanh %127 : vector<8x32xf32>
    %cst_87 = arith.constant 1.000000e+00 : f32
    %129 = vector.broadcast %cst_87 : f32 to vector<8x32xf32>
    %130 = arith.subf %129, %123 : vector<8x32xf32>
    %131 = arith.mulf %130, %128 : vector<8x32xf32>
    %132 = arith.mulf %123, %102 : vector<8x32xf32>
    %133 = arith.addf %131, %132 : vector<8x32xf32>
    %c16_88 = arith.constant 16 : index
    %c0_89 = arith.constant 0 : index
    %134 = vector.load %arg12[%c16_88, %c0_89] : memref<64x32xf32, #tpu.memory_space<vmem>>, vector<8x32xf32>
    tpu.vector_store %arg12[%c16_88, %c0_89], %133 {strides = array<i32>} : memref<64x32xf32, #tpu.memory_space<vmem>>, vector<8x32xf32>,
    %cst_90 = arith.constant dense<0.000000e+00> : vector<8x32xf32>
    %135 = tpu.matmul %133, %32, %cst_90 {dimension_numbers = #tpu.dot_dimension_numbers<[1], [0], [0], [1], [0, 0, 1, 1], [], []>} : vector<8x32xf32>, vector<32x32xf32>, vector<8x32xf32> -> vector<8x32xf32>
    %cst_91 = arith.constant dense<0.000000e+00> : vector<8x32xf32>
    %136 = tpu.matmul %133, %34, %cst_91 {dimension_numbers = #tpu.dot_dimension_numbers<[1], [0], [0], [1], [0, 0, 1, 1], [], []>} : vector<8x32xf32>, vector<32x32xf32>, vector<8x32xf32> -> vector<8x32xf32>
    %cst_92 = arith.constant dense<0.000000e+00> : vector<8x32xf32>
    %137 = tpu.matmul %133, %36, %cst_92 {dimension_numbers = #tpu.dot_dimension_numbers<[1], [0], [0], [1], [0, 0, 1, 1], [], []>} : vector<8x32xf32>, vector<32x32xf32>, vector<8x32xf32> -> vector<8x32xf32>
    %138 = arith.addf %137, %40 : vector<8x32xf32>
    %c0_93 = arith.constant 0 : index
    %c24 = arith.constant 24 : index
    %c0_94 = arith.constant 0 : index
    %139 = vector.load %arg11[%c0_93, %c24, %c0_94] : memref<3x64x32xf32, #tpu.memory_space<vmem>>, vector<1x8x32xf32>
    %140 = vector.shape_cast %139 : vector<1x8x32xf32> to vector<8x32xf32>
    %141 = arith.addf %140, %135 : vector<8x32xf32>
    %142 = arith.negf %141 : vector<8x32xf32>
    %143 = math.exp %142 : vector<8x32xf32>
    %cst_95 = arith.constant 1.000000e+00 : f32
    %144 = vector.broadcast %cst_95 : f32 to vector<8x32xf32>
    %145 = arith.addf %144, %143 : vector<8x32xf32>
    %146 = arith.divf %144, %145 : vector<8x32xf32>
    %c1_96 = arith.constant 1 : index
    %c24_97 = arith.constant 24 : index
    %c0_98 = arith.constant 0 : index
    %147 = vector.load %arg11[%c1_96, %c24_97, %c0_98] : memref<3x64x32xf32, #tpu.memory_space<vmem>>, vector<1x8x32xf32>
    %148 = vector.shape_cast %147 : vector<1x8x32xf32> to vector<8x32xf32>
    %149 = arith.addf %148, %136 : vector<8x32xf32>
    %150 = arith.negf %149 : vector<8x32xf32>
    %151 = math.exp %150 : vector<8x32xf32>
    %cst_99 = arith.constant 1.000000e+00 : f32
    %152 = vector.broadcast %cst_99 : f32 to vector<8x32xf32>
    %153 = arith.addf %152, %151 : vector<8x32xf32>
    %154 = arith.divf %152, %153 : vector<8x32xf32>
    %c2_100 = arith.constant 2 : index
    %c24_101 = arith.constant 24 : index
    %c0_102 = arith.constant 0 : index
    %155 = vector.load %arg11[%c2_100, %c24_101, %c0_102] : memref<3x64x32xf32, #tpu.memory_space<vmem>>, vector<1x8x32xf32>
    %156 = vector.shape_cast %155 : vector<1x8x32xf32> to vector<8x32xf32>
    %157 = arith.mulf %146, %138 : vector<8x32xf32>
    %158 = arith.addf %156, %157 : vector<8x32xf32>
    %159 = math.tanh %158 : vector<8x32xf32>
    %cst_103 = arith.constant 1.000000e+00 : f32
    %160 = vector.broadcast %cst_103 : f32 to vector<8x32xf32>
    %161 = arith.subf %160, %154 : vector<8x32xf32>
    %162 = arith.mulf %161, %159 : vector<8x32xf32>
    %163 = arith.mulf %154, %133 : vector<8x32xf32>
    %164 = arith.addf %162, %163 : vector<8x32xf32>
    %c24_104 = arith.constant 24 : index
    %c0_105 = arith.constant 0 : index
    %165 = vector.load %arg12[%c24_104, %c0_105] : memref<64x32xf32, #tpu.memory_space<vmem>>, vector<8x32xf32>
    tpu.vector_store %arg12[%c24_104, %c0_105], %164 {strides = array<i32>} : memref<64x32xf32, #tpu.memory_space<vmem>>, vector<8x32xf32>,
    %cst_106 = arith.constant dense<0.000000e+00> : vector<8x32xf32>
    %166 = tpu.matmul %164, %32, %cst_106 {dimension_numbers = #tpu.dot_dimension_numbers<[1], [0], [0], [1], [0, 0, 1, 1], [], []>} : vector<8x32xf32>, vector<32x32xf32>, vector<8x32xf32> -> vector<8x32xf32>
    %cst_107 = arith.constant dense<0.000000e+00> : vector<8x32xf32>
    %167 = tpu.matmul %164, %34, %cst_107 {dimension_numbers = #tpu.dot_dimension_numbers<[1], [0], [0], [1], [0, 0, 1, 1], [], []>} : vector<8x32xf32>, vector<32x32xf32>, vector<8x32xf32> -> vector<8x32xf32>
    %cst_108 = arith.constant dense<0.000000e+00> : vector<8x32xf32>
    %168 = tpu.matmul %164, %36, %cst_108 {dimension_numbers = #tpu.dot_dimension_numbers<[1], [0], [0], [1], [0, 0, 1, 1], [], []>} : vector<8x32xf32>, vector<32x32xf32>, vector<8x32xf32> -> vector<8x32xf32>
    %169 = arith.addf %168, %40 : vector<8x32xf32>
    %c0_109 = arith.constant 0 : index
    %c32 = arith.constant 32 : index
    %c0_110 = arith.constant 0 : index
    %170 = vector.load %arg11[%c0_109, %c32, %c0_110] : memref<3x64x32xf32, #tpu.memory_space<vmem>>, vector<1x8x32xf32>
    %171 = vector.shape_cast %170 : vector<1x8x32xf32> to vector<8x32xf32>
    %172 = arith.addf %171, %166 : vector<8x32xf32>
    %173 = arith.negf %172 : vector<8x32xf32>
    %174 = math.exp %173 : vector<8x32xf32>
    %cst_111 = arith.constant 1.000000e+00 : f32
    %175 = vector.broadcast %cst_111 : f32 to vector<8x32xf32>
    %176 = arith.addf %175, %174 : vector<8x32xf32>
    %177 = arith.divf %175, %176 : vector<8x32xf32>
    %c1_112 = arith.constant 1 : index
    %c32_113 = arith.constant 32 : index
    %c0_114 = arith.constant 0 : index
    %178 = vector.load %arg11[%c1_112, %c32_113, %c0_114] : memref<3x64x32xf32, #tpu.memory_space<vmem>>, vector<1x8x32xf32>
    %179 = vector.shape_cast %178 : vector<1x8x32xf32> to vector<8x32xf32>
    %180 = arith.addf %179, %167 : vector<8x32xf32>
    %181 = arith.negf %180 : vector<8x32xf32>
    %182 = math.exp %181 : vector<8x32xf32>
    %cst_115 = arith.constant 1.000000e+00 : f32
    %183 = vector.broadcast %cst_115 : f32 to vector<8x32xf32>
    %184 = arith.addf %183, %182 : vector<8x32xf32>
    %185 = arith.divf %183, %184 : vector<8x32xf32>
    %c2_116 = arith.constant 2 : index
    %c32_117 = arith.constant 32 : index
    %c0_118 = arith.constant 0 : index
    %186 = vector.load %arg11[%c2_116, %c32_117, %c0_118] : memref<3x64x32xf32, #tpu.memory_space<vmem>>, vector<1x8x32xf32>
    %187 = vector.shape_cast %186 : vector<1x8x32xf32> to vector<8x32xf32>
    %188 = arith.mulf %177, %169 : vector<8x32xf32>
    %189 = arith.addf %187, %188 : vector<8x32xf32>
    %190 = math.tanh %189 : vector<8x32xf32>
    %cst_119 = arith.constant 1.000000e+00 : f32
    %191 = vector.broadcast %cst_119 : f32 to vector<8x32xf32>
    %192 = arith.subf %191, %185 : vector<8x32xf32>
    %193 = arith.mulf %192, %190 : vector<8x32xf32>
    %194 = arith.mulf %185, %164 : vector<8x32xf32>
    %195 = arith.addf %193, %194 : vector<8x32xf32>
    %c32_120 = arith.constant 32 : index
    %c0_121 = arith.constant 0 : index
    %196 = vector.load %arg12[%c32_120, %c0_121] : memref<64x32xf32, #tpu.memory_space<vmem>>, vector<8x32xf32>
    tpu.vector_store %arg12[%c32_120, %c0_121], %195 {strides = array<i32>} : memref<64x32xf32, #tpu.memory_space<vmem>>, vector<8x32xf32>,
    %cst_122 = arith.constant dense<0.000000e+00> : vector<8x32xf32>
    %197 = tpu.matmul %195, %32, %cst_122 {dimension_numbers = #tpu.dot_dimension_numbers<[1], [0], [0], [1], [0, 0, 1, 1], [], []>} : vector<8x32xf32>, vector<32x32xf32>, vector<8x32xf32> -> vector<8x32xf32>
    %cst_123 = arith.constant dense<0.000000e+00> : vector<8x32xf32>
    %198 = tpu.matmul %195, %34, %cst_123 {dimension_numbers = #tpu.dot_dimension_numbers<[1], [0], [0], [1], [0, 0, 1, 1], [], []>} : vector<8x32xf32>, vector<32x32xf32>, vector<8x32xf32> -> vector<8x32xf32>
    %cst_124 = arith.constant dense<0.000000e+00> : vector<8x32xf32>
    %199 = tpu.matmul %195, %36, %cst_124 {dimension_numbers = #tpu.dot_dimension_numbers<[1], [0], [0], [1], [0, 0, 1, 1], [], []>} : vector<8x32xf32>, vector<32x32xf32>, vector<8x32xf32> -> vector<8x32xf32>
    %200 = arith.addf %199, %40 : vector<8x32xf32>
    %c0_125 = arith.constant 0 : index
    %c40 = arith.constant 40 : index
    %c0_126 = arith.constant 0 : index
    %201 = vector.load %arg11[%c0_125, %c40, %c0_126] : memref<3x64x32xf32, #tpu.memory_space<vmem>>, vector<1x8x32xf32>
    %202 = vector.shape_cast %201 : vector<1x8x32xf32> to vector<8x32xf32>
    %203 = arith.addf %202, %197 : vector<8x32xf32>
    %204 = arith.negf %203 : vector<8x32xf32>
    %205 = math.exp %204 : vector<8x32xf32>
    %cst_127 = arith.constant 1.000000e+00 : f32
    %206 = vector.broadcast %cst_127 : f32 to vector<8x32xf32>
    %207 = arith.addf %206, %205 : vector<8x32xf32>
    %208 = arith.divf %206, %207 : vector<8x32xf32>
    %c1_128 = arith.constant 1 : index
    %c40_129 = arith.constant 40 : index
    %c0_130 = arith.constant 0 : index
    %209 = vector.load %arg11[%c1_128, %c40_129, %c0_130] : memref<3x64x32xf32, #tpu.memory_space<vmem>>, vector<1x8x32xf32>
    %210 = vector.shape_cast %209 : vector<1x8x32xf32> to vector<8x32xf32>
    %211 = arith.addf %210, %198 : vector<8x32xf32>
    %212 = arith.negf %211 : vector<8x32xf32>
    %213 = math.exp %212 : vector<8x32xf32>
    %cst_131 = arith.constant 1.000000e+00 : f32
    %214 = vector.broadcast %cst_131 : f32 to vector<8x32xf32>
    %215 = arith.addf %214, %213 : vector<8x32xf32>
    %216 = arith.divf %214, %215 : vector<8x32xf32>
    %c2_132 = arith.constant 2 : index
    %c40_133 = arith.constant 40 : index
    %c0_134 = arith.constant 0 : index
    %217 = vector.load %arg11[%c2_132, %c40_133, %c0_134] : memref<3x64x32xf32, #tpu.memory_space<vmem>>, vector<1x8x32xf32>
    %218 = vector.shape_cast %217 : vector<1x8x32xf32> to vector<8x32xf32>
    %219 = arith.mulf %208, %200 : vector<8x32xf32>
    %220 = arith.addf %218, %219 : vector<8x32xf32>
    %221 = math.tanh %220 : vector<8x32xf32>
    %cst_135 = arith.constant 1.000000e+00 : f32
    %222 = vector.broadcast %cst_135 : f32 to vector<8x32xf32>
    %223 = arith.subf %222, %216 : vector<8x32xf32>
    %224 = arith.mulf %223, %221 : vector<8x32xf32>
    %225 = arith.mulf %216, %195 : vector<8x32xf32>
    %226 = arith.addf %224, %225 : vector<8x32xf32>
    %c40_136 = arith.constant 40 : index
    %c0_137 = arith.constant 0 : index
    %227 = vector.load %arg12[%c40_136, %c0_137] : memref<64x32xf32, #tpu.memory_space<vmem>>, vector<8x32xf32>
    tpu.vector_store %arg12[%c40_136, %c0_137], %226 {strides = array<i32>} : memref<64x32xf32, #tpu.memory_space<vmem>>, vector<8x32xf32>,
    %cst_138 = arith.constant dense<0.000000e+00> : vector<8x32xf32>
    %228 = tpu.matmul %226, %32, %cst_138 {dimension_numbers = #tpu.dot_dimension_numbers<[1], [0], [0], [1], [0, 0, 1, 1], [], []>} : vector<8x32xf32>, vector<32x32xf32>, vector<8x32xf32> -> vector<8x32xf32>
    %cst_139 = arith.constant dense<0.000000e+00> : vector<8x32xf32>
    %229 = tpu.matmul %226, %34, %cst_139 {dimension_numbers = #tpu.dot_dimension_numbers<[1], [0], [0], [1], [0, 0, 1, 1], [], []>} : vector<8x32xf32>, vector<32x32xf32>, vector<8x32xf32> -> vector<8x32xf32>
    %cst_140 = arith.constant dense<0.000000e+00> : vector<8x32xf32>
    %230 = tpu.matmul %226, %36, %cst_140 {dimension_numbers = #tpu.dot_dimension_numbers<[1], [0], [0], [1], [0, 0, 1, 1], [], []>} : vector<8x32xf32>, vector<32x32xf32>, vector<8x32xf32> -> vector<8x32xf32>
    %231 = arith.addf %230, %40 : vector<8x32xf32>
    %c0_141 = arith.constant 0 : index
    %c48 = arith.constant 48 : index
    %c0_142 = arith.constant 0 : index
    %232 = vector.load %arg11[%c0_141, %c48, %c0_142] : memref<3x64x32xf32, #tpu.memory_space<vmem>>, vector<1x8x32xf32>
    %233 = vector.shape_cast %232 : vector<1x8x32xf32> to vector<8x32xf32>
    %234 = arith.addf %233, %228 : vector<8x32xf32>
    %235 = arith.negf %234 : vector<8x32xf32>
    %236 = math.exp %235 : vector<8x32xf32>
    %cst_143 = arith.constant 1.000000e+00 : f32
    %237 = vector.broadcast %cst_143 : f32 to vector<8x32xf32>
    %238 = arith.addf %237, %236 : vector<8x32xf32>
    %239 = arith.divf %237, %238 : vector<8x32xf32>
    %c1_144 = arith.constant 1 : index
    %c48_145 = arith.constant 48 : index
    %c0_146 = arith.constant 0 : index
    %240 = vector.load %arg11[%c1_144, %c48_145, %c0_146] : memref<3x64x32xf32, #tpu.memory_space<vmem>>, vector<1x8x32xf32>
    %241 = vector.shape_cast %240 : vector<1x8x32xf32> to vector<8x32xf32>
    %242 = arith.addf %241, %229 : vector<8x32xf32>
    %243 = arith.negf %242 : vector<8x32xf32>
    %244 = math.exp %243 : vector<8x32xf32>
    %cst_147 = arith.constant 1.000000e+00 : f32
    %245 = vector.broadcast %cst_147 : f32 to vector<8x32xf32>
    %246 = arith.addf %245, %244 : vector<8x32xf32>
    %247 = arith.divf %245, %246 : vector<8x32xf32>
    %c2_148 = arith.constant 2 : index
    %c48_149 = arith.constant 48 : index
    %c0_150 = arith.constant 0 : index
    %248 = vector.load %arg11[%c2_148, %c48_149, %c0_150] : memref<3x64x32xf32, #tpu.memory_space<vmem>>, vector<1x8x32xf32>
    %249 = vector.shape_cast %248 : vector<1x8x32xf32> to vector<8x32xf32>
    %250 = arith.mulf %239, %231 : vector<8x32xf32>
    %251 = arith.addf %249, %250 : vector<8x32xf32>
    %252 = math.tanh %251 : vector<8x32xf32>
    %cst_151 = arith.constant 1.000000e+00 : f32
    %253 = vector.broadcast %cst_151 : f32 to vector<8x32xf32>
    %254 = arith.subf %253, %247 : vector<8x32xf32>
    %255 = arith.mulf %254, %252 : vector<8x32xf32>
    %256 = arith.mulf %247, %226 : vector<8x32xf32>
    %257 = arith.addf %255, %256 : vector<8x32xf32>
    %c48_152 = arith.constant 48 : index
    %c0_153 = arith.constant 0 : index
    %258 = vector.load %arg12[%c48_152, %c0_153] : memref<64x32xf32, #tpu.memory_space<vmem>>, vector<8x32xf32>
    tpu.vector_store %arg12[%c48_152, %c0_153], %257 {strides = array<i32>} : memref<64x32xf32, #tpu.memory_space<vmem>>, vector<8x32xf32>,
    %cst_154 = arith.constant dense<0.000000e+00> : vector<8x32xf32>
    %259 = tpu.matmul %257, %32, %cst_154 {dimension_numbers = #tpu.dot_dimension_numbers<[1], [0], [0], [1], [0, 0, 1, 1], [], []>} : vector<8x32xf32>, vector<32x32xf32>, vector<8x32xf32> -> vector<8x32xf32>
    %cst_155 = arith.constant dense<0.000000e+00> : vector<8x32xf32>
    %260 = tpu.matmul %257, %34, %cst_155 {dimension_numbers = #tpu.dot_dimension_numbers<[1], [0], [0], [1], [0, 0, 1, 1], [], []>} : vector<8x32xf32>, vector<32x32xf32>, vector<8x32xf32> -> vector<8x32xf32>
    %cst_156 = arith.constant dense<0.000000e+00> : vector<8x32xf32>
    %261 = tpu.matmul %257, %36, %cst_156 {dimension_numbers = #tpu.dot_dimension_numbers<[1], [0], [0], [1], [0, 0, 1, 1], [], []>} : vector<8x32xf32>, vector<32x32xf32>, vector<8x32xf32> -> vector<8x32xf32>
    %262 = arith.addf %261, %40 : vector<8x32xf32>
    %c0_157 = arith.constant 0 : index
    %c56 = arith.constant 56 : index
    %c0_158 = arith.constant 0 : index
    %263 = vector.load %arg11[%c0_157, %c56, %c0_158] : memref<3x64x32xf32, #tpu.memory_space<vmem>>, vector<1x8x32xf32>
    %264 = vector.shape_cast %263 : vector<1x8x32xf32> to vector<8x32xf32>
    %265 = arith.addf %264, %259 : vector<8x32xf32>
    %266 = arith.negf %265 : vector<8x32xf32>
    %267 = math.exp %266 : vector<8x32xf32>
    %cst_159 = arith.constant 1.000000e+00 : f32
    %268 = vector.broadcast %cst_159 : f32 to vector<8x32xf32>
    %269 = arith.addf %268, %267 : vector<8x32xf32>
    %270 = arith.divf %268, %269 : vector<8x32xf32>
    %c1_160 = arith.constant 1 : index
    %c56_161 = arith.constant 56 : index
    %c0_162 = arith.constant 0 : index
    %271 = vector.load %arg11[%c1_160, %c56_161, %c0_162] : memref<3x64x32xf32, #tpu.memory_space<vmem>>, vector<1x8x32xf32>
    %272 = vector.shape_cast %271 : vector<1x8x32xf32> to vector<8x32xf32>
    %273 = arith.addf %272, %260 : vector<8x32xf32>
    %274 = arith.negf %273 : vector<8x32xf32>
    %275 = math.exp %274 : vector<8x32xf32>
    %cst_163 = arith.constant 1.000000e+00 : f32
    %276 = vector.broadcast %cst_163 : f32 to vector<8x32xf32>
    %277 = arith.addf %276, %275 : vector<8x32xf32>
    %278 = arith.divf %276, %277 : vector<8x32xf32>
    %c2_164 = arith.constant 2 : index
    %c56_165 = arith.constant 56 : index
    %c0_166 = arith.constant 0 : index
    %279 = vector.load %arg11[%c2_164, %c56_165, %c0_166] : memref<3x64x32xf32, #tpu.memory_space<vmem>>, vector<1x8x32xf32>
    %280 = vector.shape_cast %279 : vector<1x8x32xf32> to vector<8x32xf32>
    %281 = arith.mulf %270, %262 : vector<8x32xf32>
    %282 = arith.addf %280, %281 : vector<8x32xf32>
    %283 = math.tanh %282 : vector<8x32xf32>
    %cst_167 = arith.constant 1.000000e+00 : f32
    %284 = vector.broadcast %cst_167 : f32 to vector<8x32xf32>
    %285 = arith.subf %284, %278 : vector<8x32xf32>
    %286 = arith.mulf %285, %283 : vector<8x32xf32>
    %287 = arith.mulf %278, %257 : vector<8x32xf32>
    %288 = arith.addf %286, %287 : vector<8x32xf32>
    %c56_168 = arith.constant 56 : index
    %c0_169 = arith.constant 0 : index
    %289 = vector.load %arg12[%c56_168, %c0_169] : memref<64x32xf32, #tpu.memory_space<vmem>>, vector<8x32xf32>
    tpu.vector_store %arg12[%c56_168, %c0_169], %288 {strides = array<i32>} : memref<64x32xf32, #tpu.memory_space<vmem>>, vector<8x32xf32>,
    %c0_170 = arith.constant 0 : index
    %c0_171 = arith.constant 0 : index
    %290 = vector.load %arg12[%c0_170, %c0_171] : memref<64x32xf32, #tpu.memory_space<vmem>>, vector<64x32xf32>
    %291 = arith.truncf %290 : vector<64x32xf32> to vector<64x32xbf16>
    %c0_172 = arith.constant 0 : index
    %c0_173 = arith.constant 0 : index
    %c0_174 = arith.constant 0 : index
    %292 = vector.load %arg4[%c0_172, %c0_173, %c0_174] : memref<6x32x32xbf16, #tpu.memory_space<vmem>>, vector<1x32x32xbf16>
    %293 = vector.shape_cast %292 : vector<1x32x32xbf16> to vector<32x32xbf16>
    %cst_175 = arith.constant dense<0.000000e+00> : vector<64x32xf32>
    %294 = tpu.matmul %291, %293, %cst_175 {dimension_numbers = #tpu.dot_dimension_numbers<[1], [0], [0], [1], [0, 0, 1, 1], [], []>} : vector<64x32xbf16>, vector<32x32xbf16>, vector<64x32xf32> -> vector<64x32xf32>
    %c3 = arith.constant 3 : index
    %c0_176 = arith.constant 0 : index
    %c0_177 = arith.constant 0 : index
    %295 = vector.load %arg6[%c3, %c0_176, %c0_177] : memref<12x1x32xf32, #tpu.memory_space<vmem>>, vector<1x1x32xf32>
    %296 = vector.shape_cast %295 : vector<1x1x32xf32> to vector<1x32xf32>
    %297 = vector.broadcast %296 : vector<1x32xf32> to vector<64x32xf32>
    %298 = arith.addf %294, %297 : vector<64x32xf32>
    %c0_178 = arith.constant 0 : index
    %c0_179 = arith.constant 0 : index
    %c0_180 = arith.constant 0 : index
    %299 = vector.load %arg11[%c0_178, %c0_179, %c0_180] : memref<3x64x32xf32, #tpu.memory_space<vmem>>, vector<1x64x32xf32>
    %300 = vector.shape_cast %299 : vector<1x64x32xf32> to vector<64x32xf32>
    %301 = vector.shape_cast %298 : vector<64x32xf32> to vector<1x64x32xf32>
    tpu.vector_store %arg11[%c0_178, %c0_179, %c0_180], %301 {strides = array<i32>} : memref<3x64x32xf32, #tpu.memory_space<vmem>>, vector<1x64x32xf32>,
    %c1_181 = arith.constant 1 : index
    %c0_182 = arith.constant 0 : index
    %c0_183 = arith.constant 0 : index
    %302 = vector.load %arg4[%c1_181, %c0_182, %c0_183] : memref<6x32x32xbf16, #tpu.memory_space<vmem>>, vector<1x32x32xbf16>
    %303 = vector.shape_cast %302 : vector<1x32x32xbf16> to vector<32x32xbf16>
    %cst_184 = arith.constant dense<0.000000e+00> : vector<64x32xf32>
    %304 = tpu.matmul %291, %303, %cst_184 {dimension_numbers = #tpu.dot_dimension_numbers<[1], [0], [0], [1], [0, 0, 1, 1], [], []>} : vector<64x32xbf16>, vector<32x32xbf16>, vector<64x32xf32> -> vector<64x32xf32>
    %c4 = arith.constant 4 : index
    %c0_185 = arith.constant 0 : index
    %c0_186 = arith.constant 0 : index
    %305 = vector.load %arg6[%c4, %c0_185, %c0_186] : memref<12x1x32xf32, #tpu.memory_space<vmem>>, vector<1x1x32xf32>
    %306 = vector.shape_cast %305 : vector<1x1x32xf32> to vector<1x32xf32>
    %307 = vector.broadcast %306 : vector<1x32xf32> to vector<64x32xf32>
    %308 = arith.addf %304, %307 : vector<64x32xf32>
    %c1_187 = arith.constant 1 : index
    %c0_188 = arith.constant 0 : index
    %c0_189 = arith.constant 0 : index
    %309 = vector.load %arg11[%c1_187, %c0_188, %c0_189] : memref<3x64x32xf32, #tpu.memory_space<vmem>>, vector<1x64x32xf32>
    %310 = vector.shape_cast %309 : vector<1x64x32xf32> to vector<64x32xf32>
    %311 = vector.shape_cast %308 : vector<64x32xf32> to vector<1x64x32xf32>
    tpu.vector_store %arg11[%c1_187, %c0_188, %c0_189], %311 {strides = array<i32>} : memref<3x64x32xf32, #tpu.memory_space<vmem>>, vector<1x64x32xf32>,
    %c2_190 = arith.constant 2 : index
    %c0_191 = arith.constant 0 : index
    %c0_192 = arith.constant 0 : index
    %312 = vector.load %arg4[%c2_190, %c0_191, %c0_192] : memref<6x32x32xbf16, #tpu.memory_space<vmem>>, vector<1x32x32xbf16>
    %313 = vector.shape_cast %312 : vector<1x32x32xbf16> to vector<32x32xbf16>
    %cst_193 = arith.constant dense<0.000000e+00> : vector<64x32xf32>
    %314 = tpu.matmul %291, %313, %cst_193 {dimension_numbers = #tpu.dot_dimension_numbers<[1], [0], [0], [1], [0, 0, 1, 1], [], []>} : vector<64x32xbf16>, vector<32x32xbf16>, vector<64x32xf32> -> vector<64x32xf32>
    %c5 = arith.constant 5 : index
    %c0_194 = arith.constant 0 : index
    %c0_195 = arith.constant 0 : index
    %315 = vector.load %arg6[%c5, %c0_194, %c0_195] : memref<12x1x32xf32, #tpu.memory_space<vmem>>, vector<1x1x32xf32>
    %316 = vector.shape_cast %315 : vector<1x1x32xf32> to vector<1x32xf32>
    %317 = vector.broadcast %316 : vector<1x32xf32> to vector<64x32xf32>
    %318 = arith.addf %314, %317 : vector<64x32xf32>
    %c2_196 = arith.constant 2 : index
    %c0_197 = arith.constant 0 : index
    %c0_198 = arith.constant 0 : index
    %319 = vector.load %arg11[%c2_196, %c0_197, %c0_198] : memref<3x64x32xf32, #tpu.memory_space<vmem>>, vector<1x64x32xf32>
    %320 = vector.shape_cast %319 : vector<1x64x32xf32> to vector<64x32xf32>
    %321 = vector.shape_cast %318 : vector<64x32xf32> to vector<1x64x32xf32>
    tpu.vector_store %arg11[%c2_196, %c0_197, %c0_198], %321 {strides = array<i32>} : memref<3x64x32xf32, #tpu.memory_space<vmem>>, vector<1x64x32xf32>,
    %c3_199 = arith.constant 3 : index
    %c0_200 = arith.constant 0 : index
    %c0_201 = arith.constant 0 : index
    %322 = vector.load %arg5[%c3_199, %c0_200, %c0_201] : memref<12x32x32xf32, #tpu.memory_space<vmem>>, vector<1x32x32xf32>
    %323 = vector.shape_cast %322 : vector<1x32x32xf32> to vector<32x32xf32>
    %c4_202 = arith.constant 4 : index
    %c0_203 = arith.constant 0 : index
    %c0_204 = arith.constant 0 : index
    %324 = vector.load %arg5[%c4_202, %c0_203, %c0_204] : memref<12x32x32xf32, #tpu.memory_space<vmem>>, vector<1x32x32xf32>
    %325 = vector.shape_cast %324 : vector<1x32x32xf32> to vector<32x32xf32>
    %c5_205 = arith.constant 5 : index
    %c0_206 = arith.constant 0 : index
    %c0_207 = arith.constant 0 : index
    %326 = vector.load %arg5[%c5_205, %c0_206, %c0_207] : memref<12x32x32xf32, #tpu.memory_space<vmem>>, vector<1x32x32xf32>
    %327 = vector.shape_cast %326 : vector<1x32x32xf32> to vector<32x32xf32>
    %c1_208 = arith.constant 1 : index
    %c0_209 = arith.constant 0 : index
    %c0_210 = arith.constant 0 : index
    %328 = vector.load %arg7[%c1_208, %c0_209, %c0_210] : memref<4x1x32xf32, #tpu.memory_space<vmem>>, vector<1x1x32xf32>
    %329 = vector.shape_cast %328 : vector<1x1x32xf32> to vector<1x32xf32>
    %330 = vector.shape_cast %329 : vector<1x32xf32> to vector<1x32xf32>
    %331 = vector.broadcast %330 : vector<1x32xf32> to vector<8x32xf32>
    %cst_211 = arith.constant 0.000000e+00 : f32
    %332 = vector.broadcast %cst_211 : f32 to vector<8x32xf32>
    %cst_212 = arith.constant dense<0.000000e+00> : vector<8x32xf32>
    %333 = tpu.matmul %332, %323, %cst_212 {dimension_numbers = #tpu.dot_dimension_numbers<[1], [0], [0], [1], [0, 0, 1, 1], [], []>} : vector<8x32xf32>, vector<32x32xf32>, vector<8x32xf32> -> vector<8x32xf32>
    %cst_213 = arith.constant dense<0.000000e+00> : vector<8x32xf32>
    %334 = tpu.matmul %332, %325, %cst_213 {dimension_numbers = #tpu.dot_dimension_numbers<[1], [0], [0], [1], [0, 0, 1, 1], [], []>} : vector<8x32xf32>, vector<32x32xf32>, vector<8x32xf32> -> vector<8x32xf32>
    %cst_214 = arith.constant dense<0.000000e+00> : vector<8x32xf32>
    %335 = tpu.matmul %332, %327, %cst_214 {dimension_numbers = #tpu.dot_dimension_numbers<[1], [0], [0], [1], [0, 0, 1, 1], [], []>} : vector<8x32xf32>, vector<32x32xf32>, vector<8x32xf32> -> vector<8x32xf32>
    %336 = arith.addf %335, %331 : vector<8x32xf32>
    %c0_215 = arith.constant 0 : index
    %c0_216 = arith.constant 0 : index
    %c0_217 = arith.constant 0 : index
    %337 = vector.load %arg11[%c0_215, %c0_216, %c0_217] : memref<3x64x32xf32, #tpu.memory_space<vmem>>, vector<1x8x32xf32>
    %338 = vector.shape_cast %337 : vector<1x8x32xf32> to vector<8x32xf32>
    %339 = arith.addf %338, %333 : vector<8x32xf32>
    %340 = arith.negf %339 : vector<8x32xf32>
    %341 = math.exp %340 : vector<8x32xf32>
    %cst_218 = arith.constant 1.000000e+00 : f32
    %342 = vector.broadcast %cst_218 : f32 to vector<8x32xf32>
    %343 = arith.addf %342, %341 : vector<8x32xf32>
    %344 = arith.divf %342, %343 : vector<8x32xf32>
    %c1_219 = arith.constant 1 : index
    %c0_220 = arith.constant 0 : index
    %c0_221 = arith.constant 0 : index
    %345 = vector.load %arg11[%c1_219, %c0_220, %c0_221] : memref<3x64x32xf32, #tpu.memory_space<vmem>>, vector<1x8x32xf32>
    %346 = vector.shape_cast %345 : vector<1x8x32xf32> to vector<8x32xf32>
    %347 = arith.addf %346, %334 : vector<8x32xf32>
    %348 = arith.negf %347 : vector<8x32xf32>
    %349 = math.exp %348 : vector<8x32xf32>
    %cst_222 = arith.constant 1.000000e+00 : f32
    %350 = vector.broadcast %cst_222 : f32 to vector<8x32xf32>
    %351 = arith.addf %350, %349 : vector<8x32xf32>
    %352 = arith.divf %350, %351 : vector<8x32xf32>
    %c2_223 = arith.constant 2 : index
    %c0_224 = arith.constant 0 : index
    %c0_225 = arith.constant 0 : index
    %353 = vector.load %arg11[%c2_223, %c0_224, %c0_225] : memref<3x64x32xf32, #tpu.memory_space<vmem>>, vector<1x8x32xf32>
    %354 = vector.shape_cast %353 : vector<1x8x32xf32> to vector<8x32xf32>
    %355 = arith.mulf %344, %336 : vector<8x32xf32>
    %356 = arith.addf %354, %355 : vector<8x32xf32>
    %357 = math.tanh %356 : vector<8x32xf32>
    %cst_226 = arith.constant 1.000000e+00 : f32
    %358 = vector.broadcast %cst_226 : f32 to vector<8x32xf32>
    %359 = arith.subf %358, %352 : vector<8x32xf32>
    %360 = arith.mulf %359, %357 : vector<8x32xf32>
    %361 = arith.mulf %352, %332 : vector<8x32xf32>
    %362 = arith.addf %360, %361 : vector<8x32xf32>
    %cst_227 = arith.constant dense<0.000000e+00> : vector<8x32xf32>
    %363 = tpu.matmul %362, %323, %cst_227 {dimension_numbers = #tpu.dot_dimension_numbers<[1], [0], [0], [1], [0, 0, 1, 1], [], []>} : vector<8x32xf32>, vector<32x32xf32>, vector<8x32xf32> -> vector<8x32xf32>
    %cst_228 = arith.constant dense<0.000000e+00> : vector<8x32xf32>
    %364 = tpu.matmul %362, %325, %cst_228 {dimension_numbers = #tpu.dot_dimension_numbers<[1], [0], [0], [1], [0, 0, 1, 1], [], []>} : vector<8x32xf32>, vector<32x32xf32>, vector<8x32xf32> -> vector<8x32xf32>
    %cst_229 = arith.constant dense<0.000000e+00> : vector<8x32xf32>
    %365 = tpu.matmul %362, %327, %cst_229 {dimension_numbers = #tpu.dot_dimension_numbers<[1], [0], [0], [1], [0, 0, 1, 1], [], []>} : vector<8x32xf32>, vector<32x32xf32>, vector<8x32xf32> -> vector<8x32xf32>
    %366 = arith.addf %365, %331 : vector<8x32xf32>
    %c0_230 = arith.constant 0 : index
    %c8_231 = arith.constant 8 : index
    %c0_232 = arith.constant 0 : index
    %367 = vector.load %arg11[%c0_230, %c8_231, %c0_232] : memref<3x64x32xf32, #tpu.memory_space<vmem>>, vector<1x8x32xf32>
    %368 = vector.shape_cast %367 : vector<1x8x32xf32> to vector<8x32xf32>
    %369 = arith.addf %368, %363 : vector<8x32xf32>
    %370 = arith.negf %369 : vector<8x32xf32>
    %371 = math.exp %370 : vector<8x32xf32>
    %cst_233 = arith.constant 1.000000e+00 : f32
    %372 = vector.broadcast %cst_233 : f32 to vector<8x32xf32>
    %373 = arith.addf %372, %371 : vector<8x32xf32>
    %374 = arith.divf %372, %373 : vector<8x32xf32>
    %c1_234 = arith.constant 1 : index
    %c8_235 = arith.constant 8 : index
    %c0_236 = arith.constant 0 : index
    %375 = vector.load %arg11[%c1_234, %c8_235, %c0_236] : memref<3x64x32xf32, #tpu.memory_space<vmem>>, vector<1x8x32xf32>
    %376 = vector.shape_cast %375 : vector<1x8x32xf32> to vector<8x32xf32>
    %377 = arith.addf %376, %364 : vector<8x32xf32>
    %378 = arith.negf %377 : vector<8x32xf32>
    %379 = math.exp %378 : vector<8x32xf32>
    %cst_237 = arith.constant 1.000000e+00 : f32
    %380 = vector.broadcast %cst_237 : f32 to vector<8x32xf32>
    %381 = arith.addf %380, %379 : vector<8x32xf32>
    %382 = arith.divf %380, %381 : vector<8x32xf32>
    %c2_238 = arith.constant 2 : index
    %c8_239 = arith.constant 8 : index
    %c0_240 = arith.constant 0 : index
    %383 = vector.load %arg11[%c2_238, %c8_239, %c0_240] : memref<3x64x32xf32, #tpu.memory_space<vmem>>, vector<1x8x32xf32>
    %384 = vector.shape_cast %383 : vector<1x8x32xf32> to vector<8x32xf32>
    %385 = arith.mulf %374, %366 : vector<8x32xf32>
    %386 = arith.addf %384, %385 : vector<8x32xf32>
    %387 = math.tanh %386 : vector<8x32xf32>
    %cst_241 = arith.constant 1.000000e+00 : f32
    %388 = vector.broadcast %cst_241 : f32 to vector<8x32xf32>
    %389 = arith.subf %388, %382 : vector<8x32xf32>
    %390 = arith.mulf %389, %387 : vector<8x32xf32>
    %391 = arith.mulf %382, %362 : vector<8x32xf32>
    %392 = arith.addf %390, %391 : vector<8x32xf32>
    %cst_242 = arith.constant dense<0.000000e+00> : vector<8x32xf32>
    %393 = tpu.matmul %392, %323, %cst_242 {dimension_numbers = #tpu.dot_dimension_numbers<[1], [0], [0], [1], [0, 0, 1, 1], [], []>} : vector<8x32xf32>, vector<32x32xf32>, vector<8x32xf32> -> vector<8x32xf32>
    %cst_243 = arith.constant dense<0.000000e+00> : vector<8x32xf32>
    %394 = tpu.matmul %392, %325, %cst_243 {dimension_numbers = #tpu.dot_dimension_numbers<[1], [0], [0], [1], [0, 0, 1, 1], [], []>} : vector<8x32xf32>, vector<32x32xf32>, vector<8x32xf32> -> vector<8x32xf32>
    %cst_244 = arith.constant dense<0.000000e+00> : vector<8x32xf32>
    %395 = tpu.matmul %392, %327, %cst_244 {dimension_numbers = #tpu.dot_dimension_numbers<[1], [0], [0], [1], [0, 0, 1, 1], [], []>} : vector<8x32xf32>, vector<32x32xf32>, vector<8x32xf32> -> vector<8x32xf32>
    %396 = arith.addf %395, %331 : vector<8x32xf32>
    %c0_245 = arith.constant 0 : index
    %c16_246 = arith.constant 16 : index
    %c0_247 = arith.constant 0 : index
    %397 = vector.load %arg11[%c0_245, %c16_246, %c0_247] : memref<3x64x32xf32, #tpu.memory_space<vmem>>, vector<1x8x32xf32>
    %398 = vector.shape_cast %397 : vector<1x8x32xf32> to vector<8x32xf32>
    %399 = arith.addf %398, %393 : vector<8x32xf32>
    %400 = arith.negf %399 : vector<8x32xf32>
    %401 = math.exp %400 : vector<8x32xf32>
    %cst_248 = arith.constant 1.000000e+00 : f32
    %402 = vector.broadcast %cst_248 : f32 to vector<8x32xf32>
    %403 = arith.addf %402, %401 : vector<8x32xf32>
    %404 = arith.divf %402, %403 : vector<8x32xf32>
    %c1_249 = arith.constant 1 : index
    %c16_250 = arith.constant 16 : index
    %c0_251 = arith.constant 0 : index
    %405 = vector.load %arg11[%c1_249, %c16_250, %c0_251] : memref<3x64x32xf32, #tpu.memory_space<vmem>>, vector<1x8x32xf32>
    %406 = vector.shape_cast %405 : vector<1x8x32xf32> to vector<8x32xf32>
    %407 = arith.addf %406, %394 : vector<8x32xf32>
    %408 = arith.negf %407 : vector<8x32xf32>
    %409 = math.exp %408 : vector<8x32xf32>
    %cst_252 = arith.constant 1.000000e+00 : f32
    %410 = vector.broadcast %cst_252 : f32 to vector<8x32xf32>
    %411 = arith.addf %410, %409 : vector<8x32xf32>
    %412 = arith.divf %410, %411 : vector<8x32xf32>
    %c2_253 = arith.constant 2 : index
    %c16_254 = arith.constant 16 : index
    %c0_255 = arith.constant 0 : index
    %413 = vector.load %arg11[%c2_253, %c16_254, %c0_255] : memref<3x64x32xf32, #tpu.memory_space<vmem>>, vector<1x8x32xf32>
    %414 = vector.shape_cast %413 : vector<1x8x32xf32> to vector<8x32xf32>
    %415 = arith.mulf %404, %396 : vector<8x32xf32>
    %416 = arith.addf %414, %415 : vector<8x32xf32>
    %417 = math.tanh %416 : vector<8x32xf32>
    %cst_256 = arith.constant 1.000000e+00 : f32
    %418 = vector.broadcast %cst_256 : f32 to vector<8x32xf32>
    %419 = arith.subf %418, %412 : vector<8x32xf32>
    %420 = arith.mulf %419, %417 : vector<8x32xf32>
    %421 = arith.mulf %412, %392 : vector<8x32xf32>
    %422 = arith.addf %420, %421 : vector<8x32xf32>
    %cst_257 = arith.constant dense<0.000000e+00> : vector<8x32xf32>
    %423 = tpu.matmul %422, %323, %cst_257 {dimension_numbers = #tpu.dot_dimension_numbers<[1], [0], [0], [1], [0, 0, 1, 1], [], []>} : vector<8x32xf32>, vector<32x32xf32>, vector<8x32xf32> -> vector<8x32xf32>
    %cst_258 = arith.constant dense<0.000000e+00> : vector<8x32xf32>
    %424 = tpu.matmul %422, %325, %cst_258 {dimension_numbers = #tpu.dot_dimension_numbers<[1], [0], [0], [1], [0, 0, 1, 1], [], []>} : vector<8x32xf32>, vector<32x32xf32>, vector<8x32xf32> -> vector<8x32xf32>
    %cst_259 = arith.constant dense<0.000000e+00> : vector<8x32xf32>
    %425 = tpu.matmul %422, %327, %cst_259 {dimension_numbers = #tpu.dot_dimension_numbers<[1], [0], [0], [1], [0, 0, 1, 1], [], []>} : vector<8x32xf32>, vector<32x32xf32>, vector<8x32xf32> -> vector<8x32xf32>
    %426 = arith.addf %425, %331 : vector<8x32xf32>
    %c0_260 = arith.constant 0 : index
    %c24_261 = arith.constant 24 : index
    %c0_262 = arith.constant 0 : index
    %427 = vector.load %arg11[%c0_260, %c24_261, %c0_262] : memref<3x64x32xf32, #tpu.memory_space<vmem>>, vector<1x8x32xf32>
    %428 = vector.shape_cast %427 : vector<1x8x32xf32> to vector<8x32xf32>
    %429 = arith.addf %428, %423 : vector<8x32xf32>
    %430 = arith.negf %429 : vector<8x32xf32>
    %431 = math.exp %430 : vector<8x32xf32>
    %cst_263 = arith.constant 1.000000e+00 : f32
    %432 = vector.broadcast %cst_263 : f32 to vector<8x32xf32>
    %433 = arith.addf %432, %431 : vector<8x32xf32>
    %434 = arith.divf %432, %433 : vector<8x32xf32>
    %c1_264 = arith.constant 1 : index
    %c24_265 = arith.constant 24 : index
    %c0_266 = arith.constant 0 : index
    %435 = vector.load %arg11[%c1_264, %c24_265, %c0_266] : memref<3x64x32xf32, #tpu.memory_space<vmem>>, vector<1x8x32xf32>
    %436 = vector.shape_cast %435 : vector<1x8x32xf32> to vector<8x32xf32>
    %437 = arith.addf %436, %424 : vector<8x32xf32>
    %438 = arith.negf %437 : vector<8x32xf32>
    %439 = math.exp %438 : vector<8x32xf32>
    %cst_267 = arith.constant 1.000000e+00 : f32
    %440 = vector.broadcast %cst_267 : f32 to vector<8x32xf32>
    %441 = arith.addf %440, %439 : vector<8x32xf32>
    %442 = arith.divf %440, %441 : vector<8x32xf32>
    %c2_268 = arith.constant 2 : index
    %c24_269 = arith.constant 24 : index
    %c0_270 = arith.constant 0 : index
    %443 = vector.load %arg11[%c2_268, %c24_269, %c0_270] : memref<3x64x32xf32, #tpu.memory_space<vmem>>, vector<1x8x32xf32>
    %444 = vector.shape_cast %443 : vector<1x8x32xf32> to vector<8x32xf32>
    %445 = arith.mulf %434, %426 : vector<8x32xf32>
    %446 = arith.addf %444, %445 : vector<8x32xf32>
    %447 = math.tanh %446 : vector<8x32xf32>
    %cst_271 = arith.constant 1.000000e+00 : f32
    %448 = vector.broadcast %cst_271 : f32 to vector<8x32xf32>
    %449 = arith.subf %448, %442 : vector<8x32xf32>
    %450 = arith.mulf %449, %447 : vector<8x32xf32>
    %451 = arith.mulf %442, %422 : vector<8x32xf32>
    %452 = arith.addf %450, %451 : vector<8x32xf32>
    %cst_272 = arith.constant dense<0.000000e+00> : vector<8x32xf32>
    %453 = tpu.matmul %452, %323, %cst_272 {dimension_numbers = #tpu.dot_dimension_numbers<[1], [0], [0], [1], [0, 0, 1, 1], [], []>} : vector<8x32xf32>, vector<32x32xf32>, vector<8x32xf32> -> vector<8x32xf32>
    %cst_273 = arith.constant dense<0.000000e+00> : vector<8x32xf32>
    %454 = tpu.matmul %452, %325, %cst_273 {dimension_numbers = #tpu.dot_dimension_numbers<[1], [0], [0], [1], [0, 0, 1, 1], [], []>} : vector<8x32xf32>, vector<32x32xf32>, vector<8x32xf32> -> vector<8x32xf32>
    %cst_274 = arith.constant dense<0.000000e+00> : vector<8x32xf32>
    %455 = tpu.matmul %452, %327, %cst_274 {dimension_numbers = #tpu.dot_dimension_numbers<[1], [0], [0], [1], [0, 0, 1, 1], [], []>} : vector<8x32xf32>, vector<32x32xf32>, vector<8x32xf32> -> vector<8x32xf32>
    %456 = arith.addf %455, %331 : vector<8x32xf32>
    %c0_275 = arith.constant 0 : index
    %c32_276 = arith.constant 32 : index
    %c0_277 = arith.constant 0 : index
    %457 = vector.load %arg11[%c0_275, %c32_276, %c0_277] : memref<3x64x32xf32, #tpu.memory_space<vmem>>, vector<1x8x32xf32>
    %458 = vector.shape_cast %457 : vector<1x8x32xf32> to vector<8x32xf32>
    %459 = arith.addf %458, %453 : vector<8x32xf32>
    %460 = arith.negf %459 : vector<8x32xf32>
    %461 = math.exp %460 : vector<8x32xf32>
    %cst_278 = arith.constant 1.000000e+00 : f32
    %462 = vector.broadcast %cst_278 : f32 to vector<8x32xf32>
    %463 = arith.addf %462, %461 : vector<8x32xf32>
    %464 = arith.divf %462, %463 : vector<8x32xf32>
    %c1_279 = arith.constant 1 : index
    %c32_280 = arith.constant 32 : index
    %c0_281 = arith.constant 0 : index
    %465 = vector.load %arg11[%c1_279, %c32_280, %c0_281] : memref<3x64x32xf32, #tpu.memory_space<vmem>>, vector<1x8x32xf32>
    %466 = vector.shape_cast %465 : vector<1x8x32xf32> to vector<8x32xf32>
    %467 = arith.addf %466, %454 : vector<8x32xf32>
    %468 = arith.negf %467 : vector<8x32xf32>
    %469 = math.exp %468 : vector<8x32xf32>
    %cst_282 = arith.constant 1.000000e+00 : f32
    %470 = vector.broadcast %cst_282 : f32 to vector<8x32xf32>
    %471 = arith.addf %470, %469 : vector<8x32xf32>
    %472 = arith.divf %470, %471 : vector<8x32xf32>
    %c2_283 = arith.constant 2 : index
    %c32_284 = arith.constant 32 : index
    %c0_285 = arith.constant 0 : index
    %473 = vector.load %arg11[%c2_283, %c32_284, %c0_285] : memref<3x64x32xf32, #tpu.memory_space<vmem>>, vector<1x8x32xf32>
    %474 = vector.shape_cast %473 : vector<1x8x32xf32> to vector<8x32xf32>
    %475 = arith.mulf %464, %456 : vector<8x32xf32>
    %476 = arith.addf %474, %475 : vector<8x32xf32>
    %477 = math.tanh %476 : vector<8x32xf32>
    %cst_286 = arith.constant 1.000000e+00 : f32
    %478 = vector.broadcast %cst_286 : f32 to vector<8x32xf32>
    %479 = arith.subf %478, %472 : vector<8x32xf32>
    %480 = arith.mulf %479, %477 : vector<8x32xf32>
    %481 = arith.mulf %472, %452 : vector<8x32xf32>
    %482 = arith.addf %480, %481 : vector<8x32xf32>
    %cst_287 = arith.constant dense<0.000000e+00> : vector<8x32xf32>
    %483 = tpu.matmul %482, %323, %cst_287 {dimension_numbers = #tpu.dot_dimension_numbers<[1], [0], [0], [1], [0, 0, 1, 1], [], []>} : vector<8x32xf32>, vector<32x32xf32>, vector<8x32xf32> -> vector<8x32xf32>
    %cst_288 = arith.constant dense<0.000000e+00> : vector<8x32xf32>
    %484 = tpu.matmul %482, %325, %cst_288 {dimension_numbers = #tpu.dot_dimension_numbers<[1], [0], [0], [1], [0, 0, 1, 1], [], []>} : vector<8x32xf32>, vector<32x32xf32>, vector<8x32xf32> -> vector<8x32xf32>
    %cst_289 = arith.constant dense<0.000000e+00> : vector<8x32xf32>
    %485 = tpu.matmul %482, %327, %cst_289 {dimension_numbers = #tpu.dot_dimension_numbers<[1], [0], [0], [1], [0, 0, 1, 1], [], []>} : vector<8x32xf32>, vector<32x32xf32>, vector<8x32xf32> -> vector<8x32xf32>
    %486 = arith.addf %485, %331 : vector<8x32xf32>
    %c0_290 = arith.constant 0 : index
    %c40_291 = arith.constant 40 : index
    %c0_292 = arith.constant 0 : index
    %487 = vector.load %arg11[%c0_290, %c40_291, %c0_292] : memref<3x64x32xf32, #tpu.memory_space<vmem>>, vector<1x8x32xf32>
    %488 = vector.shape_cast %487 : vector<1x8x32xf32> to vector<8x32xf32>
    %489 = arith.addf %488, %483 : vector<8x32xf32>
    %490 = arith.negf %489 : vector<8x32xf32>
    %491 = math.exp %490 : vector<8x32xf32>
    %cst_293 = arith.constant 1.000000e+00 : f32
    %492 = vector.broadcast %cst_293 : f32 to vector<8x32xf32>
    %493 = arith.addf %492, %491 : vector<8x32xf32>
    %494 = arith.divf %492, %493 : vector<8x32xf32>
    %c1_294 = arith.constant 1 : index
    %c40_295 = arith.constant 40 : index
    %c0_296 = arith.constant 0 : index
    %495 = vector.load %arg11[%c1_294, %c40_295, %c0_296] : memref<3x64x32xf32, #tpu.memory_space<vmem>>, vector<1x8x32xf32>
    %496 = vector.shape_cast %495 : vector<1x8x32xf32> to vector<8x32xf32>
    %497 = arith.addf %496, %484 : vector<8x32xf32>
    %498 = arith.negf %497 : vector<8x32xf32>
    %499 = math.exp %498 : vector<8x32xf32>
    %cst_297 = arith.constant 1.000000e+00 : f32
    %500 = vector.broadcast %cst_297 : f32 to vector<8x32xf32>
    %501 = arith.addf %500, %499 : vector<8x32xf32>
    %502 = arith.divf %500, %501 : vector<8x32xf32>
    %c2_298 = arith.constant 2 : index
    %c40_299 = arith.constant 40 : index
    %c0_300 = arith.constant 0 : index
    %503 = vector.load %arg11[%c2_298, %c40_299, %c0_300] : memref<3x64x32xf32, #tpu.memory_space<vmem>>, vector<1x8x32xf32>
    %504 = vector.shape_cast %503 : vector<1x8x32xf32> to vector<8x32xf32>
    %505 = arith.mulf %494, %486 : vector<8x32xf32>
    %506 = arith.addf %504, %505 : vector<8x32xf32>
    %507 = math.tanh %506 : vector<8x32xf32>
    %cst_301 = arith.constant 1.000000e+00 : f32
    %508 = vector.broadcast %cst_301 : f32 to vector<8x32xf32>
    %509 = arith.subf %508, %502 : vector<8x32xf32>
    %510 = arith.mulf %509, %507 : vector<8x32xf32>
    %511 = arith.mulf %502, %482 : vector<8x32xf32>
    %512 = arith.addf %510, %511 : vector<8x32xf32>
    %cst_302 = arith.constant dense<0.000000e+00> : vector<8x32xf32>
    %513 = tpu.matmul %512, %323, %cst_302 {dimension_numbers = #tpu.dot_dimension_numbers<[1], [0], [0], [1], [0, 0, 1, 1], [], []>} : vector<8x32xf32>, vector<32x32xf32>, vector<8x32xf32> -> vector<8x32xf32>
    %cst_303 = arith.constant dense<0.000000e+00> : vector<8x32xf32>
    %514 = tpu.matmul %512, %325, %cst_303 {dimension_numbers = #tpu.dot_dimension_numbers<[1], [0], [0], [1], [0, 0, 1, 1], [], []>} : vector<8x32xf32>, vector<32x32xf32>, vector<8x32xf32> -> vector<8x32xf32>
    %cst_304 = arith.constant dense<0.000000e+00> : vector<8x32xf32>
    %515 = tpu.matmul %512, %327, %cst_304 {dimension_numbers = #tpu.dot_dimension_numbers<[1], [0], [0], [1], [0, 0, 1, 1], [], []>} : vector<8x32xf32>, vector<32x32xf32>, vector<8x32xf32> -> vector<8x32xf32>
    %516 = arith.addf %515, %331 : vector<8x32xf32>
    %c0_305 = arith.constant 0 : index
    %c48_306 = arith.constant 48 : index
    %c0_307 = arith.constant 0 : index
    %517 = vector.load %arg11[%c0_305, %c48_306, %c0_307] : memref<3x64x32xf32, #tpu.memory_space<vmem>>, vector<1x8x32xf32>
    %518 = vector.shape_cast %517 : vector<1x8x32xf32> to vector<8x32xf32>
    %519 = arith.addf %518, %513 : vector<8x32xf32>
    %520 = arith.negf %519 : vector<8x32xf32>
    %521 = math.exp %520 : vector<8x32xf32>
    %cst_308 = arith.constant 1.000000e+00 : f32
    %522 = vector.broadcast %cst_308 : f32 to vector<8x32xf32>
    %523 = arith.addf %522, %521 : vector<8x32xf32>
    %524 = arith.divf %522, %523 : vector<8x32xf32>
    %c1_309 = arith.constant 1 : index
    %c48_310 = arith.constant 48 : index
    %c0_311 = arith.constant 0 : index
    %525 = vector.load %arg11[%c1_309, %c48_310, %c0_311] : memref<3x64x32xf32, #tpu.memory_space<vmem>>, vector<1x8x32xf32>
    %526 = vector.shape_cast %525 : vector<1x8x32xf32> to vector<8x32xf32>
    %527 = arith.addf %526, %514 : vector<8x32xf32>
    %528 = arith.negf %527 : vector<8x32xf32>
    %529 = math.exp %528 : vector<8x32xf32>
    %cst_312 = arith.constant 1.000000e+00 : f32
    %530 = vector.broadcast %cst_312 : f32 to vector<8x32xf32>
    %531 = arith.addf %530, %529 : vector<8x32xf32>
    %532 = arith.divf %530, %531 : vector<8x32xf32>
    %c2_313 = arith.constant 2 : index
    %c48_314 = arith.constant 48 : index
    %c0_315 = arith.constant 0 : index
    %533 = vector.load %arg11[%c2_313, %c48_314, %c0_315] : memref<3x64x32xf32, #tpu.memory_space<vmem>>, vector<1x8x32xf32>
    %534 = vector.shape_cast %533 : vector<1x8x32xf32> to vector<8x32xf32>
    %535 = arith.mulf %524, %516 : vector<8x32xf32>
    %536 = arith.addf %534, %535 : vector<8x32xf32>
    %537 = math.tanh %536 : vector<8x32xf32>
    %cst_316 = arith.constant 1.000000e+00 : f32
    %538 = vector.broadcast %cst_316 : f32 to vector<8x32xf32>
    %539 = arith.subf %538, %532 : vector<8x32xf32>
    %540 = arith.mulf %539, %537 : vector<8x32xf32>
    %541 = arith.mulf %532, %512 : vector<8x32xf32>
    %542 = arith.addf %540, %541 : vector<8x32xf32>
    %cst_317 = arith.constant dense<0.000000e+00> : vector<8x32xf32>
    %543 = tpu.matmul %542, %323, %cst_317 {dimension_numbers = #tpu.dot_dimension_numbers<[1], [0], [0], [1], [0, 0, 1, 1], [], []>} : vector<8x32xf32>, vector<32x32xf32>, vector<8x32xf32> -> vector<8x32xf32>
    %cst_318 = arith.constant dense<0.000000e+00> : vector<8x32xf32>
    %544 = tpu.matmul %542, %325, %cst_318 {dimension_numbers = #tpu.dot_dimension_numbers<[1], [0], [0], [1], [0, 0, 1, 1], [], []>} : vector<8x32xf32>, vector<32x32xf32>, vector<8x32xf32> -> vector<8x32xf32>
    %cst_319 = arith.constant dense<0.000000e+00> : vector<8x32xf32>
    %545 = tpu.matmul %542, %327, %cst_319 {dimension_numbers = #tpu.dot_dimension_numbers<[1], [0], [0], [1], [0, 0, 1, 1], [], []>} : vector<8x32xf32>, vector<32x32xf32>, vector<8x32xf32> -> vector<8x32xf32>
    %546 = arith.addf %545, %331 : vector<8x32xf32>
    %c0_320 = arith.constant 0 : index
    %c56_321 = arith.constant 56 : index
    %c0_322 = arith.constant 0 : index
    %547 = vector.load %arg11[%c0_320, %c56_321, %c0_322] : memref<3x64x32xf32, #tpu.memory_space<vmem>>, vector<1x8x32xf32>
    %548 = vector.shape_cast %547 : vector<1x8x32xf32> to vector<8x32xf32>
    %549 = arith.addf %548, %543 : vector<8x32xf32>
    %550 = arith.negf %549 : vector<8x32xf32>
    %551 = math.exp %550 : vector<8x32xf32>
    %cst_323 = arith.constant 1.000000e+00 : f32
    %552 = vector.broadcast %cst_323 : f32 to vector<8x32xf32>
    %553 = arith.addf %552, %551 : vector<8x32xf32>
    %554 = arith.divf %552, %553 : vector<8x32xf32>
    %c1_324 = arith.constant 1 : index
    %c56_325 = arith.constant 56 : index
    %c0_326 = arith.constant 0 : index
    %555 = vector.load %arg11[%c1_324, %c56_325, %c0_326] : memref<3x64x32xf32, #tpu.memory_space<vmem>>, vector<1x8x32xf32>
    %556 = vector.shape_cast %555 : vector<1x8x32xf32> to vector<8x32xf32>
    %557 = arith.addf %556, %544 : vector<8x32xf32>
    %558 = arith.negf %557 : vector<8x32xf32>
    %559 = math.exp %558 : vector<8x32xf32>
    %cst_327 = arith.constant 1.000000e+00 : f32
    %560 = vector.broadcast %cst_327 : f32 to vector<8x32xf32>
    %561 = arith.addf %560, %559 : vector<8x32xf32>
    %562 = arith.divf %560, %561 : vector<8x32xf32>
    %c2_328 = arith.constant 2 : index
    %c56_329 = arith.constant 56 : index
    %c0_330 = arith.constant 0 : index
    %563 = vector.load %arg11[%c2_328, %c56_329, %c0_330] : memref<3x64x32xf32, #tpu.memory_space<vmem>>, vector<1x8x32xf32>
    %564 = vector.shape_cast %563 : vector<1x8x32xf32> to vector<8x32xf32>
    %565 = arith.mulf %554, %546 : vector<8x32xf32>
    %566 = arith.addf %564, %565 : vector<8x32xf32>
    %567 = math.tanh %566 : vector<8x32xf32>
    %cst_331 = arith.constant 1.000000e+00 : f32
    %568 = vector.broadcast %cst_331 : f32 to vector<8x32xf32>
    %569 = arith.subf %568, %562 : vector<8x32xf32>
    %570 = arith.mulf %569, %567 : vector<8x32xf32>
    %571 = arith.mulf %562, %542 : vector<8x32xf32>
    %572 = arith.addf %570, %571 : vector<8x32xf32>
    %c0_332 = arith.constant 0 : index
    %c0_333 = arith.constant 0 : index
    %573 = vector.load %arg2[%c0_332, %c0_333] : memref<64x36xbf16, #tpu.memory_space<vmem>>, vector<64x36xbf16>
    %c3_334 = arith.constant 3 : index
    %c0_335 = arith.constant 0 : index
    %c0_336 = arith.constant 0 : index
    %574 = vector.load %arg3[%c3_334, %c0_335, %c0_336] : memref<6x36x32xbf16, #tpu.memory_space<vmem>>, vector<1x36x32xbf16>
    %575 = vector.shape_cast %574 : vector<1x36x32xbf16> to vector<36x32xbf16>
    %cst_337 = arith.constant dense<0.000000e+00> : vector<64x32xf32>
    %576 = tpu.matmul %573, %575, %cst_337 {dimension_numbers = #tpu.dot_dimension_numbers<[1], [0], [0], [1], [0, 0, 1, 1], [], []>} : vector<64x36xbf16>, vector<36x32xbf16>, vector<64x32xf32> -> vector<64x32xf32>
    %c6 = arith.constant 6 : index
    %c0_338 = arith.constant 0 : index
    %c0_339 = arith.constant 0 : index
    %577 = vector.load %arg6[%c6, %c0_338, %c0_339] : memref<12x1x32xf32, #tpu.memory_space<vmem>>, vector<1x1x32xf32>
    %578 = vector.shape_cast %577 : vector<1x1x32xf32> to vector<1x32xf32>
    %579 = vector.broadcast %578 : vector<1x32xf32> to vector<64x32xf32>
    %580 = arith.addf %576, %579 : vector<64x32xf32>
    %c0_340 = arith.constant 0 : index
    %c0_341 = arith.constant 0 : index
    %c0_342 = arith.constant 0 : index
    %581 = vector.load %arg11[%c0_340, %c0_341, %c0_342] : memref<3x64x32xf32, #tpu.memory_space<vmem>>, vector<1x64x32xf32>
    %582 = vector.shape_cast %581 : vector<1x64x32xf32> to vector<64x32xf32>
    %583 = vector.shape_cast %580 : vector<64x32xf32> to vector<1x64x32xf32>
    tpu.vector_store %arg11[%c0_340, %c0_341, %c0_342], %583 {strides = array<i32>} : memref<3x64x32xf32, #tpu.memory_space<vmem>>, vector<1x64x32xf32>,
    %c4_343 = arith.constant 4 : index
    %c0_344 = arith.constant 0 : index
    %c0_345 = arith.constant 0 : index
    %584 = vector.load %arg3[%c4_343, %c0_344, %c0_345] : memref<6x36x32xbf16, #tpu.memory_space<vmem>>, vector<1x36x32xbf16>
    %585 = vector.shape_cast %584 : vector<1x36x32xbf16> to vector<36x32xbf16>
    %cst_346 = arith.constant dense<0.000000e+00> : vector<64x32xf32>
    %586 = tpu.matmul %573, %585, %cst_346 {dimension_numbers = #tpu.dot_dimension_numbers<[1], [0], [0], [1], [0, 0, 1, 1], [], []>} : vector<64x36xbf16>, vector<36x32xbf16>, vector<64x32xf32> -> vector<64x32xf32>
    %c7 = arith.constant 7 : index
    %c0_347 = arith.constant 0 : index
    %c0_348 = arith.constant 0 : index
    %587 = vector.load %arg6[%c7, %c0_347, %c0_348] : memref<12x1x32xf32, #tpu.memory_space<vmem>>, vector<1x1x32xf32>
    %588 = vector.shape_cast %587 : vector<1x1x32xf32> to vector<1x32xf32>
    %589 = vector.broadcast %588 : vector<1x32xf32> to vector<64x32xf32>
    %590 = arith.addf %586, %589 : vector<64x32xf32>
    %c1_349 = arith.constant 1 : index
    %c0_350 = arith.constant 0 : index
    %c0_351 = arith.constant 0 : index
    %591 = vector.load %arg11[%c1_349, %c0_350, %c0_351] : memref<3x64x32xf32, #tpu.memory_space<vmem>>, vector<1x64x32xf32>
    %592 = vector.shape_cast %591 : vector<1x64x32xf32> to vector<64x32xf32>
    %593 = vector.shape_cast %590 : vector<64x32xf32> to vector<1x64x32xf32>
    tpu.vector_store %arg11[%c1_349, %c0_350, %c0_351], %593 {strides = array<i32>} : memref<3x64x32xf32, #tpu.memory_space<vmem>>, vector<1x64x32xf32>,
    %c5_352 = arith.constant 5 : index
    %c0_353 = arith.constant 0 : index
    %c0_354 = arith.constant 0 : index
    %594 = vector.load %arg3[%c5_352, %c0_353, %c0_354] : memref<6x36x32xbf16, #tpu.memory_space<vmem>>, vector<1x36x32xbf16>
    %595 = vector.shape_cast %594 : vector<1x36x32xbf16> to vector<36x32xbf16>
    %cst_355 = arith.constant dense<0.000000e+00> : vector<64x32xf32>
    %596 = tpu.matmul %573, %595, %cst_355 {dimension_numbers = #tpu.dot_dimension_numbers<[1], [0], [0], [1], [0, 0, 1, 1], [], []>} : vector<64x36xbf16>, vector<36x32xbf16>, vector<64x32xf32> -> vector<64x32xf32>
    %c8_356 = arith.constant 8 : index
    %c0_357 = arith.constant 0 : index
    %c0_358 = arith.constant 0 : index
    %597 = vector.load %arg6[%c8_356, %c0_357, %c0_358] : memref<12x1x32xf32, #tpu.memory_space<vmem>>, vector<1x1x32xf32>
    %598 = vector.shape_cast %597 : vector<1x1x32xf32> to vector<1x32xf32>
    %599 = vector.broadcast %598 : vector<1x32xf32> to vector<64x32xf32>
    %600 = arith.addf %596, %599 : vector<64x32xf32>
    %c2_359 = arith.constant 2 : index
    %c0_360 = arith.constant 0 : index
    %c0_361 = arith.constant 0 : index
    %601 = vector.load %arg11[%c2_359, %c0_360, %c0_361] : memref<3x64x32xf32, #tpu.memory_space<vmem>>, vector<1x64x32xf32>
    %602 = vector.shape_cast %601 : vector<1x64x32xf32> to vector<64x32xf32>
    %603 = vector.shape_cast %600 : vector<64x32xf32> to vector<1x64x32xf32>
    tpu.vector_store %arg11[%c2_359, %c0_360, %c0_361], %603 {strides = array<i32>} : memref<3x64x32xf32, #tpu.memory_space<vmem>>, vector<1x64x32xf32>,
    %c6_362 = arith.constant 6 : index
    %c0_363 = arith.constant 0 : index
    %c0_364 = arith.constant 0 : index
    %604 = vector.load %arg5[%c6_362, %c0_363, %c0_364] : memref<12x32x32xf32, #tpu.memory_space<vmem>>, vector<1x32x32xf32>
    %605 = vector.shape_cast %604 : vector<1x32x32xf32> to vector<32x32xf32>
    %c7_365 = arith.constant 7 : index
    %c0_366 = arith.constant 0 : index
    %c0_367 = arith.constant 0 : index
    %606 = vector.load %arg5[%c7_365, %c0_366, %c0_367] : memref<12x32x32xf32, #tpu.memory_space<vmem>>, vector<1x32x32xf32>
    %607 = vector.shape_cast %606 : vector<1x32x32xf32> to vector<32x32xf32>
    %c8_368 = arith.constant 8 : index
    %c0_369 = arith.constant 0 : index
    %c0_370 = arith.constant 0 : index
    %608 = vector.load %arg5[%c8_368, %c0_369, %c0_370] : memref<12x32x32xf32, #tpu.memory_space<vmem>>, vector<1x32x32xf32>
    %609 = vector.shape_cast %608 : vector<1x32x32xf32> to vector<32x32xf32>
    %c2_371 = arith.constant 2 : index
    %c0_372 = arith.constant 0 : index
    %c0_373 = arith.constant 0 : index
    %610 = vector.load %arg7[%c2_371, %c0_372, %c0_373] : memref<4x1x32xf32, #tpu.memory_space<vmem>>, vector<1x1x32xf32>
    %611 = vector.shape_cast %610 : vector<1x1x32xf32> to vector<1x32xf32>
    %612 = vector.shape_cast %611 : vector<1x32xf32> to vector<1x32xf32>
    %613 = vector.broadcast %612 : vector<1x32xf32> to vector<8x32xf32>
    %cst_374 = arith.constant dense<0.000000e+00> : vector<8x32xf32>
    %614 = tpu.matmul %288, %605, %cst_374 {dimension_numbers = #tpu.dot_dimension_numbers<[1], [0], [0], [1], [0, 0, 1, 1], [], []>} : vector<8x32xf32>, vector<32x32xf32>, vector<8x32xf32> -> vector<8x32xf32>
    %cst_375 = arith.constant dense<0.000000e+00> : vector<8x32xf32>
    %615 = tpu.matmul %288, %607, %cst_375 {dimension_numbers = #tpu.dot_dimension_numbers<[1], [0], [0], [1], [0, 0, 1, 1], [], []>} : vector<8x32xf32>, vector<32x32xf32>, vector<8x32xf32> -> vector<8x32xf32>
    %cst_376 = arith.constant dense<0.000000e+00> : vector<8x32xf32>
    %616 = tpu.matmul %288, %609, %cst_376 {dimension_numbers = #tpu.dot_dimension_numbers<[1], [0], [0], [1], [0, 0, 1, 1], [], []>} : vector<8x32xf32>, vector<32x32xf32>, vector<8x32xf32> -> vector<8x32xf32>
    %617 = arith.addf %616, %613 : vector<8x32xf32>
    %c0_377 = arith.constant 0 : index
    %c0_378 = arith.constant 0 : index
    %c0_379 = arith.constant 0 : index
    %618 = vector.load %arg11[%c0_377, %c0_378, %c0_379] : memref<3x64x32xf32, #tpu.memory_space<vmem>>, vector<1x8x32xf32>
    %619 = vector.shape_cast %618 : vector<1x8x32xf32> to vector<8x32xf32>
    %620 = arith.addf %619, %614 : vector<8x32xf32>
    %621 = arith.negf %620 : vector<8x32xf32>
    %622 = math.exp %621 : vector<8x32xf32>
    %cst_380 = arith.constant 1.000000e+00 : f32
    %623 = vector.broadcast %cst_380 : f32 to vector<8x32xf32>
    %624 = arith.addf %623, %622 : vector<8x32xf32>
    %625 = arith.divf %623, %624 : vector<8x32xf32>
    %c1_381 = arith.constant 1 : index
    %c0_382 = arith.constant 0 : index
    %c0_383 = arith.constant 0 : index
    %626 = vector.load %arg11[%c1_381, %c0_382, %c0_383] : memref<3x64x32xf32, #tpu.memory_space<vmem>>, vector<1x8x32xf32>
    %627 = vector.shape_cast %626 : vector<1x8x32xf32> to vector<8x32xf32>
    %628 = arith.addf %627, %615 : vector<8x32xf32>
    %629 = arith.negf %628 : vector<8x32xf32>
    %630 = math.exp %629 : vector<8x32xf32>
    %cst_384 = arith.constant 1.000000e+00 : f32
    %631 = vector.broadcast %cst_384 : f32 to vector<8x32xf32>
    %632 = arith.addf %631, %630 : vector<8x32xf32>
    %633 = arith.divf %631, %632 : vector<8x32xf32>
    %c2_385 = arith.constant 2 : index
    %c0_386 = arith.constant 0 : index
    %c0_387 = arith.constant 0 : index
    %634 = vector.load %arg11[%c2_385, %c0_386, %c0_387] : memref<3x64x32xf32, #tpu.memory_space<vmem>>, vector<1x8x32xf32>
    %635 = vector.shape_cast %634 : vector<1x8x32xf32> to vector<8x32xf32>
    %636 = arith.mulf %625, %617 : vector<8x32xf32>
    %637 = arith.addf %635, %636 : vector<8x32xf32>
    %638 = math.tanh %637 : vector<8x32xf32>
    %cst_388 = arith.constant 1.000000e+00 : f32
    %639 = vector.broadcast %cst_388 : f32 to vector<8x32xf32>
    %640 = arith.subf %639, %633 : vector<8x32xf32>
    %641 = arith.mulf %640, %638 : vector<8x32xf32>
    %642 = arith.mulf %633, %288 : vector<8x32xf32>
    %643 = arith.addf %641, %642 : vector<8x32xf32>
    %c0_389 = arith.constant 0 : index
    %c0_390 = arith.constant 0 : index
    %644 = vector.load %arg12[%c0_389, %c0_390] : memref<64x32xf32, #tpu.memory_space<vmem>>, vector<8x32xf32>
    tpu.vector_store %arg12[%c0_389, %c0_390], %643 {strides = array<i32>} : memref<64x32xf32, #tpu.memory_space<vmem>>, vector<8x32xf32>,
    %cst_391 = arith.constant dense<0.000000e+00> : vector<8x32xf32>
    %645 = tpu.matmul %643, %605, %cst_391 {dimension_numbers = #tpu.dot_dimension_numbers<[1], [0], [0], [1], [0, 0, 1, 1], [], []>} : vector<8x32xf32>, vector<32x32xf32>, vector<8x32xf32> -> vector<8x32xf32>
    %cst_392 = arith.constant dense<0.000000e+00> : vector<8x32xf32>
    %646 = tpu.matmul %643, %607, %cst_392 {dimension_numbers = #tpu.dot_dimension_numbers<[1], [0], [0], [1], [0, 0, 1, 1], [], []>} : vector<8x32xf32>, vector<32x32xf32>, vector<8x32xf32> -> vector<8x32xf32>
    %cst_393 = arith.constant dense<0.000000e+00> : vector<8x32xf32>
    %647 = tpu.matmul %643, %609, %cst_393 {dimension_numbers = #tpu.dot_dimension_numbers<[1], [0], [0], [1], [0, 0, 1, 1], [], []>} : vector<8x32xf32>, vector<32x32xf32>, vector<8x32xf32> -> vector<8x32xf32>
    %648 = arith.addf %647, %613 : vector<8x32xf32>
    %c0_394 = arith.constant 0 : index
    %c8_395 = arith.constant 8 : index
    %c0_396 = arith.constant 0 : index
    %649 = vector.load %arg11[%c0_394, %c8_395, %c0_396] : memref<3x64x32xf32, #tpu.memory_space<vmem>>, vector<1x8x32xf32>
    %650 = vector.shape_cast %649 : vector<1x8x32xf32> to vector<8x32xf32>
    %651 = arith.addf %650, %645 : vector<8x32xf32>
    %652 = arith.negf %651 : vector<8x32xf32>
    %653 = math.exp %652 : vector<8x32xf32>
    %cst_397 = arith.constant 1.000000e+00 : f32
    %654 = vector.broadcast %cst_397 : f32 to vector<8x32xf32>
    %655 = arith.addf %654, %653 : vector<8x32xf32>
    %656 = arith.divf %654, %655 : vector<8x32xf32>
    %c1_398 = arith.constant 1 : index
    %c8_399 = arith.constant 8 : index
    %c0_400 = arith.constant 0 : index
    %657 = vector.load %arg11[%c1_398, %c8_399, %c0_400] : memref<3x64x32xf32, #tpu.memory_space<vmem>>, vector<1x8x32xf32>
    %658 = vector.shape_cast %657 : vector<1x8x32xf32> to vector<8x32xf32>
    %659 = arith.addf %658, %646 : vector<8x32xf32>
    %660 = arith.negf %659 : vector<8x32xf32>
    %661 = math.exp %660 : vector<8x32xf32>
    %cst_401 = arith.constant 1.000000e+00 : f32
    %662 = vector.broadcast %cst_401 : f32 to vector<8x32xf32>
    %663 = arith.addf %662, %661 : vector<8x32xf32>
    %664 = arith.divf %662, %663 : vector<8x32xf32>
    %c2_402 = arith.constant 2 : index
    %c8_403 = arith.constant 8 : index
    %c0_404 = arith.constant 0 : index
    %665 = vector.load %arg11[%c2_402, %c8_403, %c0_404] : memref<3x64x32xf32, #tpu.memory_space<vmem>>, vector<1x8x32xf32>
    %666 = vector.shape_cast %665 : vector<1x8x32xf32> to vector<8x32xf32>
    %667 = arith.mulf %656, %648 : vector<8x32xf32>
    %668 = arith.addf %666, %667 : vector<8x32xf32>
    %669 = math.tanh %668 : vector<8x32xf32>
    %cst_405 = arith.constant 1.000000e+00 : f32
    %670 = vector.broadcast %cst_405 : f32 to vector<8x32xf32>
    %671 = arith.subf %670, %664 : vector<8x32xf32>
    %672 = arith.mulf %671, %669 : vector<8x32xf32>
    %673 = arith.mulf %664, %643 : vector<8x32xf32>
    %674 = arith.addf %672, %673 : vector<8x32xf32>
    %c8_406 = arith.constant 8 : index
    %c0_407 = arith.constant 0 : index
    %675 = vector.load %arg12[%c8_406, %c0_407] : memref<64x32xf32, #tpu.memory_space<vmem>>, vector<8x32xf32>
    tpu.vector_store %arg12[%c8_406, %c0_407], %674 {strides = array<i32>} : memref<64x32xf32, #tpu.memory_space<vmem>>, vector<8x32xf32>,
    %cst_408 = arith.constant dense<0.000000e+00> : vector<8x32xf32>
    %676 = tpu.matmul %674, %605, %cst_408 {dimension_numbers = #tpu.dot_dimension_numbers<[1], [0], [0], [1], [0, 0, 1, 1], [], []>} : vector<8x32xf32>, vector<32x32xf32>, vector<8x32xf32> -> vector<8x32xf32>
    %cst_409 = arith.constant dense<0.000000e+00> : vector<8x32xf32>
    %677 = tpu.matmul %674, %607, %cst_409 {dimension_numbers = #tpu.dot_dimension_numbers<[1], [0], [0], [1], [0, 0, 1, 1], [], []>} : vector<8x32xf32>, vector<32x32xf32>, vector<8x32xf32> -> vector<8x32xf32>
    %cst_410 = arith.constant dense<0.000000e+00> : vector<8x32xf32>
    %678 = tpu.matmul %674, %609, %cst_410 {dimension_numbers = #tpu.dot_dimension_numbers<[1], [0], [0], [1], [0, 0, 1, 1], [], []>} : vector<8x32xf32>, vector<32x32xf32>, vector<8x32xf32> -> vector<8x32xf32>
    %679 = arith.addf %678, %613 : vector<8x32xf32>
    %c0_411 = arith.constant 0 : index
    %c16_412 = arith.constant 16 : index
    %c0_413 = arith.constant 0 : index
    %680 = vector.load %arg11[%c0_411, %c16_412, %c0_413] : memref<3x64x32xf32, #tpu.memory_space<vmem>>, vector<1x8x32xf32>
    %681 = vector.shape_cast %680 : vector<1x8x32xf32> to vector<8x32xf32>
    %682 = arith.addf %681, %676 : vector<8x32xf32>
    %683 = arith.negf %682 : vector<8x32xf32>
    %684 = math.exp %683 : vector<8x32xf32>
    %cst_414 = arith.constant 1.000000e+00 : f32
    %685 = vector.broadcast %cst_414 : f32 to vector<8x32xf32>
    %686 = arith.addf %685, %684 : vector<8x32xf32>
    %687 = arith.divf %685, %686 : vector<8x32xf32>
    %c1_415 = arith.constant 1 : index
    %c16_416 = arith.constant 16 : index
    %c0_417 = arith.constant 0 : index
    %688 = vector.load %arg11[%c1_415, %c16_416, %c0_417] : memref<3x64x32xf32, #tpu.memory_space<vmem>>, vector<1x8x32xf32>
    %689 = vector.shape_cast %688 : vector<1x8x32xf32> to vector<8x32xf32>
    %690 = arith.addf %689, %677 : vector<8x32xf32>
    %691 = arith.negf %690 : vector<8x32xf32>
    %692 = math.exp %691 : vector<8x32xf32>
    %cst_418 = arith.constant 1.000000e+00 : f32
    %693 = vector.broadcast %cst_418 : f32 to vector<8x32xf32>
    %694 = arith.addf %693, %692 : vector<8x32xf32>
    %695 = arith.divf %693, %694 : vector<8x32xf32>
    %c2_419 = arith.constant 2 : index
    %c16_420 = arith.constant 16 : index
    %c0_421 = arith.constant 0 : index
    %696 = vector.load %arg11[%c2_419, %c16_420, %c0_421] : memref<3x64x32xf32, #tpu.memory_space<vmem>>, vector<1x8x32xf32>
    %697 = vector.shape_cast %696 : vector<1x8x32xf32> to vector<8x32xf32>
    %698 = arith.mulf %687, %679 : vector<8x32xf32>
    %699 = arith.addf %697, %698 : vector<8x32xf32>
    %700 = math.tanh %699 : vector<8x32xf32>
    %cst_422 = arith.constant 1.000000e+00 : f32
    %701 = vector.broadcast %cst_422 : f32 to vector<8x32xf32>
    %702 = arith.subf %701, %695 : vector<8x32xf32>
    %703 = arith.mulf %702, %700 : vector<8x32xf32>
    %704 = arith.mulf %695, %674 : vector<8x32xf32>
    %705 = arith.addf %703, %704 : vector<8x32xf32>
    %c16_423 = arith.constant 16 : index
    %c0_424 = arith.constant 0 : index
    %706 = vector.load %arg12[%c16_423, %c0_424] : memref<64x32xf32, #tpu.memory_space<vmem>>, vector<8x32xf32>
    tpu.vector_store %arg12[%c16_423, %c0_424], %705 {strides = array<i32>} : memref<64x32xf32, #tpu.memory_space<vmem>>, vector<8x32xf32>,
    %cst_425 = arith.constant dense<0.000000e+00> : vector<8x32xf32>
    %707 = tpu.matmul %705, %605, %cst_425 {dimension_numbers = #tpu.dot_dimension_numbers<[1], [0], [0], [1], [0, 0, 1, 1], [], []>} : vector<8x32xf32>, vector<32x32xf32>, vector<8x32xf32> -> vector<8x32xf32>
    %cst_426 = arith.constant dense<0.000000e+00> : vector<8x32xf32>
    %708 = tpu.matmul %705, %607, %cst_426 {dimension_numbers = #tpu.dot_dimension_numbers<[1], [0], [0], [1], [0, 0, 1, 1], [], []>} : vector<8x32xf32>, vector<32x32xf32>, vector<8x32xf32> -> vector<8x32xf32>
    %cst_427 = arith.constant dense<0.000000e+00> : vector<8x32xf32>
    %709 = tpu.matmul %705, %609, %cst_427 {dimension_numbers = #tpu.dot_dimension_numbers<[1], [0], [0], [1], [0, 0, 1, 1], [], []>} : vector<8x32xf32>, vector<32x32xf32>, vector<8x32xf32> -> vector<8x32xf32>
    %710 = arith.addf %709, %613 : vector<8x32xf32>
    %c0_428 = arith.constant 0 : index
    %c24_429 = arith.constant 24 : index
    %c0_430 = arith.constant 0 : index
    %711 = vector.load %arg11[%c0_428, %c24_429, %c0_430] : memref<3x64x32xf32, #tpu.memory_space<vmem>>, vector<1x8x32xf32>
    %712 = vector.shape_cast %711 : vector<1x8x32xf32> to vector<8x32xf32>
    %713 = arith.addf %712, %707 : vector<8x32xf32>
    %714 = arith.negf %713 : vector<8x32xf32>
    %715 = math.exp %714 : vector<8x32xf32>
    %cst_431 = arith.constant 1.000000e+00 : f32
    %716 = vector.broadcast %cst_431 : f32 to vector<8x32xf32>
    %717 = arith.addf %716, %715 : vector<8x32xf32>
    %718 = arith.divf %716, %717 : vector<8x32xf32>
    %c1_432 = arith.constant 1 : index
    %c24_433 = arith.constant 24 : index
    %c0_434 = arith.constant 0 : index
    %719 = vector.load %arg11[%c1_432, %c24_433, %c0_434] : memref<3x64x32xf32, #tpu.memory_space<vmem>>, vector<1x8x32xf32>
    %720 = vector.shape_cast %719 : vector<1x8x32xf32> to vector<8x32xf32>
    %721 = arith.addf %720, %708 : vector<8x32xf32>
    %722 = arith.negf %721 : vector<8x32xf32>
    %723 = math.exp %722 : vector<8x32xf32>
    %cst_435 = arith.constant 1.000000e+00 : f32
    %724 = vector.broadcast %cst_435 : f32 to vector<8x32xf32>
    %725 = arith.addf %724, %723 : vector<8x32xf32>
    %726 = arith.divf %724, %725 : vector<8x32xf32>
    %c2_436 = arith.constant 2 : index
    %c24_437 = arith.constant 24 : index
    %c0_438 = arith.constant 0 : index
    %727 = vector.load %arg11[%c2_436, %c24_437, %c0_438] : memref<3x64x32xf32, #tpu.memory_space<vmem>>, vector<1x8x32xf32>
    %728 = vector.shape_cast %727 : vector<1x8x32xf32> to vector<8x32xf32>
    %729 = arith.mulf %718, %710 : vector<8x32xf32>
    %730 = arith.addf %728, %729 : vector<8x32xf32>
    %731 = math.tanh %730 : vector<8x32xf32>
    %cst_439 = arith.constant 1.000000e+00 : f32
    %732 = vector.broadcast %cst_439 : f32 to vector<8x32xf32>
    %733 = arith.subf %732, %726 : vector<8x32xf32>
    %734 = arith.mulf %733, %731 : vector<8x32xf32>
    %735 = arith.mulf %726, %705 : vector<8x32xf32>
    %736 = arith.addf %734, %735 : vector<8x32xf32>
    %c24_440 = arith.constant 24 : index
    %c0_441 = arith.constant 0 : index
    %737 = vector.load %arg12[%c24_440, %c0_441] : memref<64x32xf32, #tpu.memory_space<vmem>>, vector<8x32xf32>
    tpu.vector_store %arg12[%c24_440, %c0_441], %736 {strides = array<i32>} : memref<64x32xf32, #tpu.memory_space<vmem>>, vector<8x32xf32>,
    %cst_442 = arith.constant dense<0.000000e+00> : vector<8x32xf32>
    %738 = tpu.matmul %736, %605, %cst_442 {dimension_numbers = #tpu.dot_dimension_numbers<[1], [0], [0], [1], [0, 0, 1, 1], [], []>} : vector<8x32xf32>, vector<32x32xf32>, vector<8x32xf32> -> vector<8x32xf32>
    %cst_443 = arith.constant dense<0.000000e+00> : vector<8x32xf32>
    %739 = tpu.matmul %736, %607, %cst_443 {dimension_numbers = #tpu.dot_dimension_numbers<[1], [0], [0], [1], [0, 0, 1, 1], [], []>} : vector<8x32xf32>, vector<32x32xf32>, vector<8x32xf32> -> vector<8x32xf32>
    %cst_444 = arith.constant dense<0.000000e+00> : vector<8x32xf32>
    %740 = tpu.matmul %736, %609, %cst_444 {dimension_numbers = #tpu.dot_dimension_numbers<[1], [0], [0], [1], [0, 0, 1, 1], [], []>} : vector<8x32xf32>, vector<32x32xf32>, vector<8x32xf32> -> vector<8x32xf32>
    %741 = arith.addf %740, %613 : vector<8x32xf32>
    %c0_445 = arith.constant 0 : index
    %c32_446 = arith.constant 32 : index
    %c0_447 = arith.constant 0 : index
    %742 = vector.load %arg11[%c0_445, %c32_446, %c0_447] : memref<3x64x32xf32, #tpu.memory_space<vmem>>, vector<1x8x32xf32>
    %743 = vector.shape_cast %742 : vector<1x8x32xf32> to vector<8x32xf32>
    %744 = arith.addf %743, %738 : vector<8x32xf32>
    %745 = arith.negf %744 : vector<8x32xf32>
    %746 = math.exp %745 : vector<8x32xf32>
    %cst_448 = arith.constant 1.000000e+00 : f32
    %747 = vector.broadcast %cst_448 : f32 to vector<8x32xf32>
    %748 = arith.addf %747, %746 : vector<8x32xf32>
    %749 = arith.divf %747, %748 : vector<8x32xf32>
    %c1_449 = arith.constant 1 : index
    %c32_450 = arith.constant 32 : index
    %c0_451 = arith.constant 0 : index
    %750 = vector.load %arg11[%c1_449, %c32_450, %c0_451] : memref<3x64x32xf32, #tpu.memory_space<vmem>>, vector<1x8x32xf32>
    %751 = vector.shape_cast %750 : vector<1x8x32xf32> to vector<8x32xf32>
    %752 = arith.addf %751, %739 : vector<8x32xf32>
    %753 = arith.negf %752 : vector<8x32xf32>
    %754 = math.exp %753 : vector<8x32xf32>
    %cst_452 = arith.constant 1.000000e+00 : f32
    %755 = vector.broadcast %cst_452 : f32 to vector<8x32xf32>
    %756 = arith.addf %755, %754 : vector<8x32xf32>
    %757 = arith.divf %755, %756 : vector<8x32xf32>
    %c2_453 = arith.constant 2 : index
    %c32_454 = arith.constant 32 : index
    %c0_455 = arith.constant 0 : index
    %758 = vector.load %arg11[%c2_453, %c32_454, %c0_455] : memref<3x64x32xf32, #tpu.memory_space<vmem>>, vector<1x8x32xf32>
    %759 = vector.shape_cast %758 : vector<1x8x32xf32> to vector<8x32xf32>
    %760 = arith.mulf %749, %741 : vector<8x32xf32>
    %761 = arith.addf %759, %760 : vector<8x32xf32>
    %762 = math.tanh %761 : vector<8x32xf32>
    %cst_456 = arith.constant 1.000000e+00 : f32
    %763 = vector.broadcast %cst_456 : f32 to vector<8x32xf32>
    %764 = arith.subf %763, %757 : vector<8x32xf32>
    %765 = arith.mulf %764, %762 : vector<8x32xf32>
    %766 = arith.mulf %757, %736 : vector<8x32xf32>
    %767 = arith.addf %765, %766 : vector<8x32xf32>
    %c32_457 = arith.constant 32 : index
    %c0_458 = arith.constant 0 : index
    %768 = vector.load %arg12[%c32_457, %c0_458] : memref<64x32xf32, #tpu.memory_space<vmem>>, vector<8x32xf32>
    tpu.vector_store %arg12[%c32_457, %c0_458], %767 {strides = array<i32>} : memref<64x32xf32, #tpu.memory_space<vmem>>, vector<8x32xf32>,
    %cst_459 = arith.constant dense<0.000000e+00> : vector<8x32xf32>
    %769 = tpu.matmul %767, %605, %cst_459 {dimension_numbers = #tpu.dot_dimension_numbers<[1], [0], [0], [1], [0, 0, 1, 1], [], []>} : vector<8x32xf32>, vector<32x32xf32>, vector<8x32xf32> -> vector<8x32xf32>
    %cst_460 = arith.constant dense<0.000000e+00> : vector<8x32xf32>
    %770 = tpu.matmul %767, %607, %cst_460 {dimension_numbers = #tpu.dot_dimension_numbers<[1], [0], [0], [1], [0, 0, 1, 1], [], []>} : vector<8x32xf32>, vector<32x32xf32>, vector<8x32xf32> -> vector<8x32xf32>
    %cst_461 = arith.constant dense<0.000000e+00> : vector<8x32xf32>
    %771 = tpu.matmul %767, %609, %cst_461 {dimension_numbers = #tpu.dot_dimension_numbers<[1], [0], [0], [1], [0, 0, 1, 1], [], []>} : vector<8x32xf32>, vector<32x32xf32>, vector<8x32xf32> -> vector<8x32xf32>
    %772 = arith.addf %771, %613 : vector<8x32xf32>
    %c0_462 = arith.constant 0 : index
    %c40_463 = arith.constant 40 : index
    %c0_464 = arith.constant 0 : index
    %773 = vector.load %arg11[%c0_462, %c40_463, %c0_464] : memref<3x64x32xf32, #tpu.memory_space<vmem>>, vector<1x8x32xf32>
    %774 = vector.shape_cast %773 : vector<1x8x32xf32> to vector<8x32xf32>
    %775 = arith.addf %774, %769 : vector<8x32xf32>
    %776 = arith.negf %775 : vector<8x32xf32>
    %777 = math.exp %776 : vector<8x32xf32>
    %cst_465 = arith.constant 1.000000e+00 : f32
    %778 = vector.broadcast %cst_465 : f32 to vector<8x32xf32>
    %779 = arith.addf %778, %777 : vector<8x32xf32>
    %780 = arith.divf %778, %779 : vector<8x32xf32>
    %c1_466 = arith.constant 1 : index
    %c40_467 = arith.constant 40 : index
    %c0_468 = arith.constant 0 : index
    %781 = vector.load %arg11[%c1_466, %c40_467, %c0_468] : memref<3x64x32xf32, #tpu.memory_space<vmem>>, vector<1x8x32xf32>
    %782 = vector.shape_cast %781 : vector<1x8x32xf32> to vector<8x32xf32>
    %783 = arith.addf %782, %770 : vector<8x32xf32>
    %784 = arith.negf %783 : vector<8x32xf32>
    %785 = math.exp %784 : vector<8x32xf32>
    %cst_469 = arith.constant 1.000000e+00 : f32
    %786 = vector.broadcast %cst_469 : f32 to vector<8x32xf32>
    %787 = arith.addf %786, %785 : vector<8x32xf32>
    %788 = arith.divf %786, %787 : vector<8x32xf32>
    %c2_470 = arith.constant 2 : index
    %c40_471 = arith.constant 40 : index
    %c0_472 = arith.constant 0 : index
    %789 = vector.load %arg11[%c2_470, %c40_471, %c0_472] : memref<3x64x32xf32, #tpu.memory_space<vmem>>, vector<1x8x32xf32>
    %790 = vector.shape_cast %789 : vector<1x8x32xf32> to vector<8x32xf32>
    %791 = arith.mulf %780, %772 : vector<8x32xf32>
    %792 = arith.addf %790, %791 : vector<8x32xf32>
    %793 = math.tanh %792 : vector<8x32xf32>
    %cst_473 = arith.constant 1.000000e+00 : f32
    %794 = vector.broadcast %cst_473 : f32 to vector<8x32xf32>
    %795 = arith.subf %794, %788 : vector<8x32xf32>
    %796 = arith.mulf %795, %793 : vector<8x32xf32>
    %797 = arith.mulf %788, %767 : vector<8x32xf32>
    %798 = arith.addf %796, %797 : vector<8x32xf32>
    %c40_474 = arith.constant 40 : index
    %c0_475 = arith.constant 0 : index
    %799 = vector.load %arg12[%c40_474, %c0_475] : memref<64x32xf32, #tpu.memory_space<vmem>>, vector<8x32xf32>
    tpu.vector_store %arg12[%c40_474, %c0_475], %798 {strides = array<i32>} : memref<64x32xf32, #tpu.memory_space<vmem>>, vector<8x32xf32>,
    %cst_476 = arith.constant dense<0.000000e+00> : vector<8x32xf32>
    %800 = tpu.matmul %798, %605, %cst_476 {dimension_numbers = #tpu.dot_dimension_numbers<[1], [0], [0], [1], [0, 0, 1, 1], [], []>} : vector<8x32xf32>, vector<32x32xf32>, vector<8x32xf32> -> vector<8x32xf32>
    %cst_477 = arith.constant dense<0.000000e+00> : vector<8x32xf32>
    %801 = tpu.matmul %798, %607, %cst_477 {dimension_numbers = #tpu.dot_dimension_numbers<[1], [0], [0], [1], [0, 0, 1, 1], [], []>} : vector<8x32xf32>, vector<32x32xf32>, vector<8x32xf32> -> vector<8x32xf32>
    %cst_478 = arith.constant dense<0.000000e+00> : vector<8x32xf32>
    %802 = tpu.matmul %798, %609, %cst_478 {dimension_numbers = #tpu.dot_dimension_numbers<[1], [0], [0], [1], [0, 0, 1, 1], [], []>} : vector<8x32xf32>, vector<32x32xf32>, vector<8x32xf32> -> vector<8x32xf32>
    %803 = arith.addf %802, %613 : vector<8x32xf32>
    %c0_479 = arith.constant 0 : index
    %c48_480 = arith.constant 48 : index
    %c0_481 = arith.constant 0 : index
    %804 = vector.load %arg11[%c0_479, %c48_480, %c0_481] : memref<3x64x32xf32, #tpu.memory_space<vmem>>, vector<1x8x32xf32>
    %805 = vector.shape_cast %804 : vector<1x8x32xf32> to vector<8x32xf32>
    %806 = arith.addf %805, %800 : vector<8x32xf32>
    %807 = arith.negf %806 : vector<8x32xf32>
    %808 = math.exp %807 : vector<8x32xf32>
    %cst_482 = arith.constant 1.000000e+00 : f32
    %809 = vector.broadcast %cst_482 : f32 to vector<8x32xf32>
    %810 = arith.addf %809, %808 : vector<8x32xf32>
    %811 = arith.divf %809, %810 : vector<8x32xf32>
    %c1_483 = arith.constant 1 : index
    %c48_484 = arith.constant 48 : index
    %c0_485 = arith.constant 0 : index
    %812 = vector.load %arg11[%c1_483, %c48_484, %c0_485] : memref<3x64x32xf32, #tpu.memory_space<vmem>>, vector<1x8x32xf32>
    %813 = vector.shape_cast %812 : vector<1x8x32xf32> to vector<8x32xf32>
    %814 = arith.addf %813, %801 : vector<8x32xf32>
    %815 = arith.negf %814 : vector<8x32xf32>
    %816 = math.exp %815 : vector<8x32xf32>
    %cst_486 = arith.constant 1.000000e+00 : f32
    %817 = vector.broadcast %cst_486 : f32 to vector<8x32xf32>
    %818 = arith.addf %817, %816 : vector<8x32xf32>
    %819 = arith.divf %817, %818 : vector<8x32xf32>
    %c2_487 = arith.constant 2 : index
    %c48_488 = arith.constant 48 : index
    %c0_489 = arith.constant 0 : index
    %820 = vector.load %arg11[%c2_487, %c48_488, %c0_489] : memref<3x64x32xf32, #tpu.memory_space<vmem>>, vector<1x8x32xf32>
    %821 = vector.shape_cast %820 : vector<1x8x32xf32> to vector<8x32xf32>
    %822 = arith.mulf %811, %803 : vector<8x32xf32>
    %823 = arith.addf %821, %822 : vector<8x32xf32>
    %824 = math.tanh %823 : vector<8x32xf32>
    %cst_490 = arith.constant 1.000000e+00 : f32
    %825 = vector.broadcast %cst_490 : f32 to vector<8x32xf32>
    %826 = arith.subf %825, %819 : vector<8x32xf32>
    %827 = arith.mulf %826, %824 : vector<8x32xf32>
    %828 = arith.mulf %819, %798 : vector<8x32xf32>
    %829 = arith.addf %827, %828 : vector<8x32xf32>
    %c48_491 = arith.constant 48 : index
    %c0_492 = arith.constant 0 : index
    %830 = vector.load %arg12[%c48_491, %c0_492] : memref<64x32xf32, #tpu.memory_space<vmem>>, vector<8x32xf32>
    tpu.vector_store %arg12[%c48_491, %c0_492], %829 {strides = array<i32>} : memref<64x32xf32, #tpu.memory_space<vmem>>, vector<8x32xf32>,
    %cst_493 = arith.constant dense<0.000000e+00> : vector<8x32xf32>
    %831 = tpu.matmul %829, %605, %cst_493 {dimension_numbers = #tpu.dot_dimension_numbers<[1], [0], [0], [1], [0, 0, 1, 1], [], []>} : vector<8x32xf32>, vector<32x32xf32>, vector<8x32xf32> -> vector<8x32xf32>
    %cst_494 = arith.constant dense<0.000000e+00> : vector<8x32xf32>
    %832 = tpu.matmul %829, %607, %cst_494 {dimension_numbers = #tpu.dot_dimension_numbers<[1], [0], [0], [1], [0, 0, 1, 1], [], []>} : vector<8x32xf32>, vector<32x32xf32>, vector<8x32xf32> -> vector<8x32xf32>
    %cst_495 = arith.constant dense<0.000000e+00> : vector<8x32xf32>
    %833 = tpu.matmul %829, %609, %cst_495 {dimension_numbers = #tpu.dot_dimension_numbers<[1], [0], [0], [1], [0, 0, 1, 1], [], []>} : vector<8x32xf32>, vector<32x32xf32>, vector<8x32xf32> -> vector<8x32xf32>
    %834 = arith.addf %833, %613 : vector<8x32xf32>
    %c0_496 = arith.constant 0 : index
    %c56_497 = arith.constant 56 : index
    %c0_498 = arith.constant 0 : index
    %835 = vector.load %arg11[%c0_496, %c56_497, %c0_498] : memref<3x64x32xf32, #tpu.memory_space<vmem>>, vector<1x8x32xf32>
    %836 = vector.shape_cast %835 : vector<1x8x32xf32> to vector<8x32xf32>
    %837 = arith.addf %836, %831 : vector<8x32xf32>
    %838 = arith.negf %837 : vector<8x32xf32>
    %839 = math.exp %838 : vector<8x32xf32>
    %cst_499 = arith.constant 1.000000e+00 : f32
    %840 = vector.broadcast %cst_499 : f32 to vector<8x32xf32>
    %841 = arith.addf %840, %839 : vector<8x32xf32>
    %842 = arith.divf %840, %841 : vector<8x32xf32>
    %c1_500 = arith.constant 1 : index
    %c56_501 = arith.constant 56 : index
    %c0_502 = arith.constant 0 : index
    %843 = vector.load %arg11[%c1_500, %c56_501, %c0_502] : memref<3x64x32xf32, #tpu.memory_space<vmem>>, vector<1x8x32xf32>
    %844 = vector.shape_cast %843 : vector<1x8x32xf32> to vector<8x32xf32>
    %845 = arith.addf %844, %832 : vector<8x32xf32>
    %846 = arith.negf %845 : vector<8x32xf32>
    %847 = math.exp %846 : vector<8x32xf32>
    %cst_503 = arith.constant 1.000000e+00 : f32
    %848 = vector.broadcast %cst_503 : f32 to vector<8x32xf32>
    %849 = arith.addf %848, %847 : vector<8x32xf32>
    %850 = arith.divf %848, %849 : vector<8x32xf32>
    %c2_504 = arith.constant 2 : index
    %c56_505 = arith.constant 56 : index
    %c0_506 = arith.constant 0 : index
    %851 = vector.load %arg11[%c2_504, %c56_505, %c0_506] : memref<3x64x32xf32, #tpu.memory_space<vmem>>, vector<1x8x32xf32>
    %852 = vector.shape_cast %851 : vector<1x8x32xf32> to vector<8x32xf32>
    %853 = arith.mulf %842, %834 : vector<8x32xf32>
    %854 = arith.addf %852, %853 : vector<8x32xf32>
    %855 = math.tanh %854 : vector<8x32xf32>
    %cst_507 = arith.constant 1.000000e+00 : f32
    %856 = vector.broadcast %cst_507 : f32 to vector<8x32xf32>
    %857 = arith.subf %856, %850 : vector<8x32xf32>
    %858 = arith.mulf %857, %855 : vector<8x32xf32>
    %859 = arith.mulf %850, %829 : vector<8x32xf32>
    %860 = arith.addf %858, %859 : vector<8x32xf32>
    %c56_508 = arith.constant 56 : index
    %c0_509 = arith.constant 0 : index
    %861 = vector.load %arg12[%c56_508, %c0_509] : memref<64x32xf32, #tpu.memory_space<vmem>>, vector<8x32xf32>
    tpu.vector_store %arg12[%c56_508, %c0_509], %860 {strides = array<i32>} : memref<64x32xf32, #tpu.memory_space<vmem>>, vector<8x32xf32>,
    %c0_510 = arith.constant 0 : index
    %c0_511 = arith.constant 0 : index
    %862 = vector.load %arg12[%c0_510, %c0_511] : memref<64x32xf32, #tpu.memory_space<vmem>>, vector<64x32xf32>
    %863 = arith.truncf %862 : vector<64x32xf32> to vector<64x32xbf16>
    %c3_512 = arith.constant 3 : index
    %c0_513 = arith.constant 0 : index
    %c0_514 = arith.constant 0 : index
    %864 = vector.load %arg4[%c3_512, %c0_513, %c0_514] : memref<6x32x32xbf16, #tpu.memory_space<vmem>>, vector<1x32x32xbf16>
    %865 = vector.shape_cast %864 : vector<1x32x32xbf16> to vector<32x32xbf16>
    %cst_515 = arith.constant dense<0.000000e+00> : vector<64x32xf32>
    %866 = tpu.matmul %863, %865, %cst_515 {dimension_numbers = #tpu.dot_dimension_numbers<[1], [0], [0], [1], [0, 0, 1, 1], [], []>} : vector<64x32xbf16>, vector<32x32xbf16>, vector<64x32xf32> -> vector<64x32xf32>
    %c9 = arith.constant 9 : index
    %c0_516 = arith.constant 0 : index
    %c0_517 = arith.constant 0 : index
    %867 = vector.load %arg6[%c9, %c0_516, %c0_517] : memref<12x1x32xf32, #tpu.memory_space<vmem>>, vector<1x1x32xf32>
    %868 = vector.shape_cast %867 : vector<1x1x32xf32> to vector<1x32xf32>
    %869 = vector.broadcast %868 : vector<1x32xf32> to vector<64x32xf32>
    %870 = arith.addf %866, %869 : vector<64x32xf32>
    %c0_518 = arith.constant 0 : index
    %c0_519 = arith.constant 0 : index
    %c0_520 = arith.constant 0 : index
    %871 = vector.load %arg11[%c0_518, %c0_519, %c0_520] : memref<3x64x32xf32, #tpu.memory_space<vmem>>, vector<1x64x32xf32>
    %872 = vector.shape_cast %871 : vector<1x64x32xf32> to vector<64x32xf32>
    %873 = vector.shape_cast %870 : vector<64x32xf32> to vector<1x64x32xf32>
    tpu.vector_store %arg11[%c0_518, %c0_519, %c0_520], %873 {strides = array<i32>} : memref<3x64x32xf32, #tpu.memory_space<vmem>>, vector<1x64x32xf32>,
    %c4_521 = arith.constant 4 : index
    %c0_522 = arith.constant 0 : index
    %c0_523 = arith.constant 0 : index
    %874 = vector.load %arg4[%c4_521, %c0_522, %c0_523] : memref<6x32x32xbf16, #tpu.memory_space<vmem>>, vector<1x32x32xbf16>
    %875 = vector.shape_cast %874 : vector<1x32x32xbf16> to vector<32x32xbf16>
    %cst_524 = arith.constant dense<0.000000e+00> : vector<64x32xf32>
    %876 = tpu.matmul %863, %875, %cst_524 {dimension_numbers = #tpu.dot_dimension_numbers<[1], [0], [0], [1], [0, 0, 1, 1], [], []>} : vector<64x32xbf16>, vector<32x32xbf16>, vector<64x32xf32> -> vector<64x32xf32>
    %c10 = arith.constant 10 : index
    %c0_525 = arith.constant 0 : index
    %c0_526 = arith.constant 0 : index
    %877 = vector.load %arg6[%c10, %c0_525, %c0_526] : memref<12x1x32xf32, #tpu.memory_space<vmem>>, vector<1x1x32xf32>
    %878 = vector.shape_cast %877 : vector<1x1x32xf32> to vector<1x32xf32>
    %879 = vector.broadcast %878 : vector<1x32xf32> to vector<64x32xf32>
    %880 = arith.addf %876, %879 : vector<64x32xf32>
    %c1_527 = arith.constant 1 : index
    %c0_528 = arith.constant 0 : index
    %c0_529 = arith.constant 0 : index
    %881 = vector.load %arg11[%c1_527, %c0_528, %c0_529] : memref<3x64x32xf32, #tpu.memory_space<vmem>>, vector<1x64x32xf32>
    %882 = vector.shape_cast %881 : vector<1x64x32xf32> to vector<64x32xf32>
    %883 = vector.shape_cast %880 : vector<64x32xf32> to vector<1x64x32xf32>
    tpu.vector_store %arg11[%c1_527, %c0_528, %c0_529], %883 {strides = array<i32>} : memref<3x64x32xf32, #tpu.memory_space<vmem>>, vector<1x64x32xf32>,
    %c5_530 = arith.constant 5 : index
    %c0_531 = arith.constant 0 : index
    %c0_532 = arith.constant 0 : index
    %884 = vector.load %arg4[%c5_530, %c0_531, %c0_532] : memref<6x32x32xbf16, #tpu.memory_space<vmem>>, vector<1x32x32xbf16>
    %885 = vector.shape_cast %884 : vector<1x32x32xbf16> to vector<32x32xbf16>
    %cst_533 = arith.constant dense<0.000000e+00> : vector<64x32xf32>
    %886 = tpu.matmul %863, %885, %cst_533 {dimension_numbers = #tpu.dot_dimension_numbers<[1], [0], [0], [1], [0, 0, 1, 1], [], []>} : vector<64x32xbf16>, vector<32x32xbf16>, vector<64x32xf32> -> vector<64x32xf32>
    %c11 = arith.constant 11 : index
    %c0_534 = arith.constant 0 : index
    %c0_535 = arith.constant 0 : index
    %887 = vector.load %arg6[%c11, %c0_534, %c0_535] : memref<12x1x32xf32, #tpu.memory_space<vmem>>, vector<1x1x32xf32>
    %888 = vector.shape_cast %887 : vector<1x1x32xf32> to vector<1x32xf32>
    %889 = vector.broadcast %888 : vector<1x32xf32> to vector<64x32xf32>
    %890 = arith.addf %886, %889 : vector<64x32xf32>
    %c2_536 = arith.constant 2 : index
    %c0_537 = arith.constant 0 : index
    %c0_538 = arith.constant 0 : index
    %891 = vector.load %arg11[%c2_536, %c0_537, %c0_538] : memref<3x64x32xf32, #tpu.memory_space<vmem>>, vector<1x64x32xf32>
    %892 = vector.shape_cast %891 : vector<1x64x32xf32> to vector<64x32xf32>
    %893 = vector.shape_cast %890 : vector<64x32xf32> to vector<1x64x32xf32>
    tpu.vector_store %arg11[%c2_536, %c0_537, %c0_538], %893 {strides = array<i32>} : memref<3x64x32xf32, #tpu.memory_space<vmem>>, vector<1x64x32xf32>,
    %c9_539 = arith.constant 9 : index
    %c0_540 = arith.constant 0 : index
    %c0_541 = arith.constant 0 : index
    %894 = vector.load %arg5[%c9_539, %c0_540, %c0_541] : memref<12x32x32xf32, #tpu.memory_space<vmem>>, vector<1x32x32xf32>
    %895 = vector.shape_cast %894 : vector<1x32x32xf32> to vector<32x32xf32>
    %c10_542 = arith.constant 10 : index
    %c0_543 = arith.constant 0 : index
    %c0_544 = arith.constant 0 : index
    %896 = vector.load %arg5[%c10_542, %c0_543, %c0_544] : memref<12x32x32xf32, #tpu.memory_space<vmem>>, vector<1x32x32xf32>
    %897 = vector.shape_cast %896 : vector<1x32x32xf32> to vector<32x32xf32>
    %c11_545 = arith.constant 11 : index
    %c0_546 = arith.constant 0 : index
    %c0_547 = arith.constant 0 : index
    %898 = vector.load %arg5[%c11_545, %c0_546, %c0_547] : memref<12x32x32xf32, #tpu.memory_space<vmem>>, vector<1x32x32xf32>
    %899 = vector.shape_cast %898 : vector<1x32x32xf32> to vector<32x32xf32>
    %c3_548 = arith.constant 3 : index
    %c0_549 = arith.constant 0 : index
    %c0_550 = arith.constant 0 : index
    %900 = vector.load %arg7[%c3_548, %c0_549, %c0_550] : memref<4x1x32xf32, #tpu.memory_space<vmem>>, vector<1x1x32xf32>
    %901 = vector.shape_cast %900 : vector<1x1x32xf32> to vector<1x32xf32>
    %902 = vector.shape_cast %901 : vector<1x32xf32> to vector<1x32xf32>
    %903 = vector.broadcast %902 : vector<1x32xf32> to vector<8x32xf32>
    %cst_551 = arith.constant dense<0.000000e+00> : vector<8x32xf32>
    %904 = tpu.matmul %572, %895, %cst_551 {dimension_numbers = #tpu.dot_dimension_numbers<[1], [0], [0], [1], [0, 0, 1, 1], [], []>} : vector<8x32xf32>, vector<32x32xf32>, vector<8x32xf32> -> vector<8x32xf32>
    %cst_552 = arith.constant dense<0.000000e+00> : vector<8x32xf32>
    %905 = tpu.matmul %572, %897, %cst_552 {dimension_numbers = #tpu.dot_dimension_numbers<[1], [0], [0], [1], [0, 0, 1, 1], [], []>} : vector<8x32xf32>, vector<32x32xf32>, vector<8x32xf32> -> vector<8x32xf32>
    %cst_553 = arith.constant dense<0.000000e+00> : vector<8x32xf32>
    %906 = tpu.matmul %572, %899, %cst_553 {dimension_numbers = #tpu.dot_dimension_numbers<[1], [0], [0], [1], [0, 0, 1, 1], [], []>} : vector<8x32xf32>, vector<32x32xf32>, vector<8x32xf32> -> vector<8x32xf32>
    %907 = arith.addf %906, %903 : vector<8x32xf32>
    %c0_554 = arith.constant 0 : index
    %c0_555 = arith.constant 0 : index
    %c0_556 = arith.constant 0 : index
    %908 = vector.load %arg11[%c0_554, %c0_555, %c0_556] : memref<3x64x32xf32, #tpu.memory_space<vmem>>, vector<1x8x32xf32>
    %909 = vector.shape_cast %908 : vector<1x8x32xf32> to vector<8x32xf32>
    %910 = arith.addf %909, %904 : vector<8x32xf32>
    %911 = arith.negf %910 : vector<8x32xf32>
    %912 = math.exp %911 : vector<8x32xf32>
    %cst_557 = arith.constant 1.000000e+00 : f32
    %913 = vector.broadcast %cst_557 : f32 to vector<8x32xf32>
    %914 = arith.addf %913, %912 : vector<8x32xf32>
    %915 = arith.divf %913, %914 : vector<8x32xf32>
    %c1_558 = arith.constant 1 : index
    %c0_559 = arith.constant 0 : index
    %c0_560 = arith.constant 0 : index
    %916 = vector.load %arg11[%c1_558, %c0_559, %c0_560] : memref<3x64x32xf32, #tpu.memory_space<vmem>>, vector<1x8x32xf32>
    %917 = vector.shape_cast %916 : vector<1x8x32xf32> to vector<8x32xf32>
    %918 = arith.addf %917, %905 : vector<8x32xf32>
    %919 = arith.negf %918 : vector<8x32xf32>
    %920 = math.exp %919 : vector<8x32xf32>
    %cst_561 = arith.constant 1.000000e+00 : f32
    %921 = vector.broadcast %cst_561 : f32 to vector<8x32xf32>
    %922 = arith.addf %921, %920 : vector<8x32xf32>
    %923 = arith.divf %921, %922 : vector<8x32xf32>
    %c2_562 = arith.constant 2 : index
    %c0_563 = arith.constant 0 : index
    %c0_564 = arith.constant 0 : index
    %924 = vector.load %arg11[%c2_562, %c0_563, %c0_564] : memref<3x64x32xf32, #tpu.memory_space<vmem>>, vector<1x8x32xf32>
    %925 = vector.shape_cast %924 : vector<1x8x32xf32> to vector<8x32xf32>
    %926 = arith.mulf %915, %907 : vector<8x32xf32>
    %927 = arith.addf %925, %926 : vector<8x32xf32>
    %928 = math.tanh %927 : vector<8x32xf32>
    %cst_565 = arith.constant 1.000000e+00 : f32
    %929 = vector.broadcast %cst_565 : f32 to vector<8x32xf32>
    %930 = arith.subf %929, %923 : vector<8x32xf32>
    %931 = arith.mulf %930, %928 : vector<8x32xf32>
    %932 = arith.mulf %923, %572 : vector<8x32xf32>
    %933 = arith.addf %931, %932 : vector<8x32xf32>
    %c0_566 = arith.constant 0 : index
    %c0_567 = arith.constant 0 : index
    %934 = vector.load %arg12[%c0_566, %c0_567] : memref<64x32xf32, #tpu.memory_space<vmem>>, vector<8x32xf32>
    tpu.vector_store %arg12[%c0_566, %c0_567], %933 {strides = array<i32>} : memref<64x32xf32, #tpu.memory_space<vmem>>, vector<8x32xf32>,
    %cst_568 = arith.constant dense<0.000000e+00> : vector<8x32xf32>
    %935 = tpu.matmul %933, %895, %cst_568 {dimension_numbers = #tpu.dot_dimension_numbers<[1], [0], [0], [1], [0, 0, 1, 1], [], []>} : vector<8x32xf32>, vector<32x32xf32>, vector<8x32xf32> -> vector<8x32xf32>
    %cst_569 = arith.constant dense<0.000000e+00> : vector<8x32xf32>
    %936 = tpu.matmul %933, %897, %cst_569 {dimension_numbers = #tpu.dot_dimension_numbers<[1], [0], [0], [1], [0, 0, 1, 1], [], []>} : vector<8x32xf32>, vector<32x32xf32>, vector<8x32xf32> -> vector<8x32xf32>
    %cst_570 = arith.constant dense<0.000000e+00> : vector<8x32xf32>
    %937 = tpu.matmul %933, %899, %cst_570 {dimension_numbers = #tpu.dot_dimension_numbers<[1], [0], [0], [1], [0, 0, 1, 1], [], []>} : vector<8x32xf32>, vector<32x32xf32>, vector<8x32xf32> -> vector<8x32xf32>
    %938 = arith.addf %937, %903 : vector<8x32xf32>
    %c0_571 = arith.constant 0 : index
    %c8_572 = arith.constant 8 : index
    %c0_573 = arith.constant 0 : index
    %939 = vector.load %arg11[%c0_571, %c8_572, %c0_573] : memref<3x64x32xf32, #tpu.memory_space<vmem>>, vector<1x8x32xf32>
    %940 = vector.shape_cast %939 : vector<1x8x32xf32> to vector<8x32xf32>
    %941 = arith.addf %940, %935 : vector<8x32xf32>
    %942 = arith.negf %941 : vector<8x32xf32>
    %943 = math.exp %942 : vector<8x32xf32>
    %cst_574 = arith.constant 1.000000e+00 : f32
    %944 = vector.broadcast %cst_574 : f32 to vector<8x32xf32>
    %945 = arith.addf %944, %943 : vector<8x32xf32>
    %946 = arith.divf %944, %945 : vector<8x32xf32>
    %c1_575 = arith.constant 1 : index
    %c8_576 = arith.constant 8 : index
    %c0_577 = arith.constant 0 : index
    %947 = vector.load %arg11[%c1_575, %c8_576, %c0_577] : memref<3x64x32xf32, #tpu.memory_space<vmem>>, vector<1x8x32xf32>
    %948 = vector.shape_cast %947 : vector<1x8x32xf32> to vector<8x32xf32>
    %949 = arith.addf %948, %936 : vector<8x32xf32>
    %950 = arith.negf %949 : vector<8x32xf32>
    %951 = math.exp %950 : vector<8x32xf32>
    %cst_578 = arith.constant 1.000000e+00 : f32
    %952 = vector.broadcast %cst_578 : f32 to vector<8x32xf32>
    %953 = arith.addf %952, %951 : vector<8x32xf32>
    %954 = arith.divf %952, %953 : vector<8x32xf32>
    %c2_579 = arith.constant 2 : index
    %c8_580 = arith.constant 8 : index
    %c0_581 = arith.constant 0 : index
    %955 = vector.load %arg11[%c2_579, %c8_580, %c0_581] : memref<3x64x32xf32, #tpu.memory_space<vmem>>, vector<1x8x32xf32>
    %956 = vector.shape_cast %955 : vector<1x8x32xf32> to vector<8x32xf32>
    %957 = arith.mulf %946, %938 : vector<8x32xf32>
    %958 = arith.addf %956, %957 : vector<8x32xf32>
    %959 = math.tanh %958 : vector<8x32xf32>
    %cst_582 = arith.constant 1.000000e+00 : f32
    %960 = vector.broadcast %cst_582 : f32 to vector<8x32xf32>
    %961 = arith.subf %960, %954 : vector<8x32xf32>
    %962 = arith.mulf %961, %959 : vector<8x32xf32>
    %963 = arith.mulf %954, %933 : vector<8x32xf32>
    %964 = arith.addf %962, %963 : vector<8x32xf32>
    %c8_583 = arith.constant 8 : index
    %c0_584 = arith.constant 0 : index
    %965 = vector.load %arg12[%c8_583, %c0_584] : memref<64x32xf32, #tpu.memory_space<vmem>>, vector<8x32xf32>
    tpu.vector_store %arg12[%c8_583, %c0_584], %964 {strides = array<i32>} : memref<64x32xf32, #tpu.memory_space<vmem>>, vector<8x32xf32>,
    %cst_585 = arith.constant dense<0.000000e+00> : vector<8x32xf32>
    %966 = tpu.matmul %964, %895, %cst_585 {dimension_numbers = #tpu.dot_dimension_numbers<[1], [0], [0], [1], [0, 0, 1, 1], [], []>} : vector<8x32xf32>, vector<32x32xf32>, vector<8x32xf32> -> vector<8x32xf32>
    %cst_586 = arith.constant dense<0.000000e+00> : vector<8x32xf32>
    %967 = tpu.matmul %964, %897, %cst_586 {dimension_numbers = #tpu.dot_dimension_numbers<[1], [0], [0], [1], [0, 0, 1, 1], [], []>} : vector<8x32xf32>, vector<32x32xf32>, vector<8x32xf32> -> vector<8x32xf32>
    %cst_587 = arith.constant dense<0.000000e+00> : vector<8x32xf32>
    %968 = tpu.matmul %964, %899, %cst_587 {dimension_numbers = #tpu.dot_dimension_numbers<[1], [0], [0], [1], [0, 0, 1, 1], [], []>} : vector<8x32xf32>, vector<32x32xf32>, vector<8x32xf32> -> vector<8x32xf32>
    %969 = arith.addf %968, %903 : vector<8x32xf32>
    %c0_588 = arith.constant 0 : index
    %c16_589 = arith.constant 16 : index
    %c0_590 = arith.constant 0 : index
    %970 = vector.load %arg11[%c0_588, %c16_589, %c0_590] : memref<3x64x32xf32, #tpu.memory_space<vmem>>, vector<1x8x32xf32>
    %971 = vector.shape_cast %970 : vector<1x8x32xf32> to vector<8x32xf32>
    %972 = arith.addf %971, %966 : vector<8x32xf32>
    %973 = arith.negf %972 : vector<8x32xf32>
    %974 = math.exp %973 : vector<8x32xf32>
    %cst_591 = arith.constant 1.000000e+00 : f32
    %975 = vector.broadcast %cst_591 : f32 to vector<8x32xf32>
    %976 = arith.addf %975, %974 : vector<8x32xf32>
    %977 = arith.divf %975, %976 : vector<8x32xf32>
    %c1_592 = arith.constant 1 : index
    %c16_593 = arith.constant 16 : index
    %c0_594 = arith.constant 0 : index
    %978 = vector.load %arg11[%c1_592, %c16_593, %c0_594] : memref<3x64x32xf32, #tpu.memory_space<vmem>>, vector<1x8x32xf32>
    %979 = vector.shape_cast %978 : vector<1x8x32xf32> to vector<8x32xf32>
    %980 = arith.addf %979, %967 : vector<8x32xf32>
    %981 = arith.negf %980 : vector<8x32xf32>
    %982 = math.exp %981 : vector<8x32xf32>
    %cst_595 = arith.constant 1.000000e+00 : f32
    %983 = vector.broadcast %cst_595 : f32 to vector<8x32xf32>
    %984 = arith.addf %983, %982 : vector<8x32xf32>
    %985 = arith.divf %983, %984 : vector<8x32xf32>
    %c2_596 = arith.constant 2 : index
    %c16_597 = arith.constant 16 : index
    %c0_598 = arith.constant 0 : index
    %986 = vector.load %arg11[%c2_596, %c16_597, %c0_598] : memref<3x64x32xf32, #tpu.memory_space<vmem>>, vector<1x8x32xf32>
    %987 = vector.shape_cast %986 : vector<1x8x32xf32> to vector<8x32xf32>
    %988 = arith.mulf %977, %969 : vector<8x32xf32>
    %989 = arith.addf %987, %988 : vector<8x32xf32>
    %990 = math.tanh %989 : vector<8x32xf32>
    %cst_599 = arith.constant 1.000000e+00 : f32
    %991 = vector.broadcast %cst_599 : f32 to vector<8x32xf32>
    %992 = arith.subf %991, %985 : vector<8x32xf32>
    %993 = arith.mulf %992, %990 : vector<8x32xf32>
    %994 = arith.mulf %985, %964 : vector<8x32xf32>
    %995 = arith.addf %993, %994 : vector<8x32xf32>
    %c16_600 = arith.constant 16 : index
    %c0_601 = arith.constant 0 : index
    %996 = vector.load %arg12[%c16_600, %c0_601] : memref<64x32xf32, #tpu.memory_space<vmem>>, vector<8x32xf32>
    tpu.vector_store %arg12[%c16_600, %c0_601], %995 {strides = array<i32>} : memref<64x32xf32, #tpu.memory_space<vmem>>, vector<8x32xf32>,
    %cst_602 = arith.constant dense<0.000000e+00> : vector<8x32xf32>
    %997 = tpu.matmul %995, %895, %cst_602 {dimension_numbers = #tpu.dot_dimension_numbers<[1], [0], [0], [1], [0, 0, 1, 1], [], []>} : vector<8x32xf32>, vector<32x32xf32>, vector<8x32xf32> -> vector<8x32xf32>
    %cst_603 = arith.constant dense<0.000000e+00> : vector<8x32xf32>
    %998 = tpu.matmul %995, %897, %cst_603 {dimension_numbers = #tpu.dot_dimension_numbers<[1], [0], [0], [1], [0, 0, 1, 1], [], []>} : vector<8x32xf32>, vector<32x32xf32>, vector<8x32xf32> -> vector<8x32xf32>
    %cst_604 = arith.constant dense<0.000000e+00> : vector<8x32xf32>
    %999 = tpu.matmul %995, %899, %cst_604 {dimension_numbers = #tpu.dot_dimension_numbers<[1], [0], [0], [1], [0, 0, 1, 1], [], []>} : vector<8x32xf32>, vector<32x32xf32>, vector<8x32xf32> -> vector<8x32xf32>
    %1000 = arith.addf %999, %903 : vector<8x32xf32>
    %c0_605 = arith.constant 0 : index
    %c24_606 = arith.constant 24 : index
    %c0_607 = arith.constant 0 : index
    %1001 = vector.load %arg11[%c0_605, %c24_606, %c0_607] : memref<3x64x32xf32, #tpu.memory_space<vmem>>, vector<1x8x32xf32>
    %1002 = vector.shape_cast %1001 : vector<1x8x32xf32> to vector<8x32xf32>
    %1003 = arith.addf %1002, %997 : vector<8x32xf32>
    %1004 = arith.negf %1003 : vector<8x32xf32>
    %1005 = math.exp %1004 : vector<8x32xf32>
    %cst_608 = arith.constant 1.000000e+00 : f32
    %1006 = vector.broadcast %cst_608 : f32 to vector<8x32xf32>
    %1007 = arith.addf %1006, %1005 : vector<8x32xf32>
    %1008 = arith.divf %1006, %1007 : vector<8x32xf32>
    %c1_609 = arith.constant 1 : index
    %c24_610 = arith.constant 24 : index
    %c0_611 = arith.constant 0 : index
    %1009 = vector.load %arg11[%c1_609, %c24_610, %c0_611] : memref<3x64x32xf32, #tpu.memory_space<vmem>>, vector<1x8x32xf32>
    %1010 = vector.shape_cast %1009 : vector<1x8x32xf32> to vector<8x32xf32>
    %1011 = arith.addf %1010, %998 : vector<8x32xf32>
    %1012 = arith.negf %1011 : vector<8x32xf32>
    %1013 = math.exp %1012 : vector<8x32xf32>
    %cst_612 = arith.constant 1.000000e+00 : f32
    %1014 = vector.broadcast %cst_612 : f32 to vector<8x32xf32>
    %1015 = arith.addf %1014, %1013 : vector<8x32xf32>
    %1016 = arith.divf %1014, %1015 : vector<8x32xf32>
    %c2_613 = arith.constant 2 : index
    %c24_614 = arith.constant 24 : index
    %c0_615 = arith.constant 0 : index
    %1017 = vector.load %arg11[%c2_613, %c24_614, %c0_615] : memref<3x64x32xf32, #tpu.memory_space<vmem>>, vector<1x8x32xf32>
    %1018 = vector.shape_cast %1017 : vector<1x8x32xf32> to vector<8x32xf32>
    %1019 = arith.mulf %1008, %1000 : vector<8x32xf32>
    %1020 = arith.addf %1018, %1019 : vector<8x32xf32>
    %1021 = math.tanh %1020 : vector<8x32xf32>
    %cst_616 = arith.constant 1.000000e+00 : f32
    %1022 = vector.broadcast %cst_616 : f32 to vector<8x32xf32>
    %1023 = arith.subf %1022, %1016 : vector<8x32xf32>
    %1024 = arith.mulf %1023, %1021 : vector<8x32xf32>
    %1025 = arith.mulf %1016, %995 : vector<8x32xf32>
    %1026 = arith.addf %1024, %1025 : vector<8x32xf32>
    %c24_617 = arith.constant 24 : index
    %c0_618 = arith.constant 0 : index
    %1027 = vector.load %arg12[%c24_617, %c0_618] : memref<64x32xf32, #tpu.memory_space<vmem>>, vector<8x32xf32>
    tpu.vector_store %arg12[%c24_617, %c0_618], %1026 {strides = array<i32>} : memref<64x32xf32, #tpu.memory_space<vmem>>, vector<8x32xf32>,
    %cst_619 = arith.constant dense<0.000000e+00> : vector<8x32xf32>
    %1028 = tpu.matmul %1026, %895, %cst_619 {dimension_numbers = #tpu.dot_dimension_numbers<[1], [0], [0], [1], [0, 0, 1, 1], [], []>} : vector<8x32xf32>, vector<32x32xf32>, vector<8x32xf32> -> vector<8x32xf32>
    %cst_620 = arith.constant dense<0.000000e+00> : vector<8x32xf32>
    %1029 = tpu.matmul %1026, %897, %cst_620 {dimension_numbers = #tpu.dot_dimension_numbers<[1], [0], [0], [1], [0, 0, 1, 1], [], []>} : vector<8x32xf32>, vector<32x32xf32>, vector<8x32xf32> -> vector<8x32xf32>
    %cst_621 = arith.constant dense<0.000000e+00> : vector<8x32xf32>
    %1030 = tpu.matmul %1026, %899, %cst_621 {dimension_numbers = #tpu.dot_dimension_numbers<[1], [0], [0], [1], [0, 0, 1, 1], [], []>} : vector<8x32xf32>, vector<32x32xf32>, vector<8x32xf32> -> vector<8x32xf32>
    %1031 = arith.addf %1030, %903 : vector<8x32xf32>
    %c0_622 = arith.constant 0 : index
    %c32_623 = arith.constant 32 : index
    %c0_624 = arith.constant 0 : index
    %1032 = vector.load %arg11[%c0_622, %c32_623, %c0_624] : memref<3x64x32xf32, #tpu.memory_space<vmem>>, vector<1x8x32xf32>
    %1033 = vector.shape_cast %1032 : vector<1x8x32xf32> to vector<8x32xf32>
    %1034 = arith.addf %1033, %1028 : vector<8x32xf32>
    %1035 = arith.negf %1034 : vector<8x32xf32>
    %1036 = math.exp %1035 : vector<8x32xf32>
    %cst_625 = arith.constant 1.000000e+00 : f32
    %1037 = vector.broadcast %cst_625 : f32 to vector<8x32xf32>
    %1038 = arith.addf %1037, %1036 : vector<8x32xf32>
    %1039 = arith.divf %1037, %1038 : vector<8x32xf32>
    %c1_626 = arith.constant 1 : index
    %c32_627 = arith.constant 32 : index
    %c0_628 = arith.constant 0 : index
    %1040 = vector.load %arg11[%c1_626, %c32_627, %c0_628] : memref<3x64x32xf32, #tpu.memory_space<vmem>>, vector<1x8x32xf32>
    %1041 = vector.shape_cast %1040 : vector<1x8x32xf32> to vector<8x32xf32>
    %1042 = arith.addf %1041, %1029 : vector<8x32xf32>
    %1043 = arith.negf %1042 : vector<8x32xf32>
    %1044 = math.exp %1043 : vector<8x32xf32>
    %cst_629 = arith.constant 1.000000e+00 : f32
    %1045 = vector.broadcast %cst_629 : f32 to vector<8x32xf32>
    %1046 = arith.addf %1045, %1044 : vector<8x32xf32>
    %1047 = arith.divf %1045, %1046 : vector<8x32xf32>
    %c2_630 = arith.constant 2 : index
    %c32_631 = arith.constant 32 : index
    %c0_632 = arith.constant 0 : index
    %1048 = vector.load %arg11[%c2_630, %c32_631, %c0_632] : memref<3x64x32xf32, #tpu.memory_space<vmem>>, vector<1x8x32xf32>
    %1049 = vector.shape_cast %1048 : vector<1x8x32xf32> to vector<8x32xf32>
    %1050 = arith.mulf %1039, %1031 : vector<8x32xf32>
    %1051 = arith.addf %1049, %1050 : vector<8x32xf32>
    %1052 = math.tanh %1051 : vector<8x32xf32>
    %cst_633 = arith.constant 1.000000e+00 : f32
    %1053 = vector.broadcast %cst_633 : f32 to vector<8x32xf32>
    %1054 = arith.subf %1053, %1047 : vector<8x32xf32>
    %1055 = arith.mulf %1054, %1052 : vector<8x32xf32>
    %1056 = arith.mulf %1047, %1026 : vector<8x32xf32>
    %1057 = arith.addf %1055, %1056 : vector<8x32xf32>
    %c32_634 = arith.constant 32 : index
    %c0_635 = arith.constant 0 : index
    %1058 = vector.load %arg12[%c32_634, %c0_635] : memref<64x32xf32, #tpu.memory_space<vmem>>, vector<8x32xf32>
    tpu.vector_store %arg12[%c32_634, %c0_635], %1057 {strides = array<i32>} : memref<64x32xf32, #tpu.memory_space<vmem>>, vector<8x32xf32>,
    %cst_636 = arith.constant dense<0.000000e+00> : vector<8x32xf32>
    %1059 = tpu.matmul %1057, %895, %cst_636 {dimension_numbers = #tpu.dot_dimension_numbers<[1], [0], [0], [1], [0, 0, 1, 1], [], []>} : vector<8x32xf32>, vector<32x32xf32>, vector<8x32xf32> -> vector<8x32xf32>
    %cst_637 = arith.constant dense<0.000000e+00> : vector<8x32xf32>
    %1060 = tpu.matmul %1057, %897, %cst_637 {dimension_numbers = #tpu.dot_dimension_numbers<[1], [0], [0], [1], [0, 0, 1, 1], [], []>} : vector<8x32xf32>, vector<32x32xf32>, vector<8x32xf32> -> vector<8x32xf32>
    %cst_638 = arith.constant dense<0.000000e+00> : vector<8x32xf32>
    %1061 = tpu.matmul %1057, %899, %cst_638 {dimension_numbers = #tpu.dot_dimension_numbers<[1], [0], [0], [1], [0, 0, 1, 1], [], []>} : vector<8x32xf32>, vector<32x32xf32>, vector<8x32xf32> -> vector<8x32xf32>
    %1062 = arith.addf %1061, %903 : vector<8x32xf32>
    %c0_639 = arith.constant 0 : index
    %c40_640 = arith.constant 40 : index
    %c0_641 = arith.constant 0 : index
    %1063 = vector.load %arg11[%c0_639, %c40_640, %c0_641] : memref<3x64x32xf32, #tpu.memory_space<vmem>>, vector<1x8x32xf32>
    %1064 = vector.shape_cast %1063 : vector<1x8x32xf32> to vector<8x32xf32>
    %1065 = arith.addf %1064, %1059 : vector<8x32xf32>
    %1066 = arith.negf %1065 : vector<8x32xf32>
    %1067 = math.exp %1066 : vector<8x32xf32>
    %cst_642 = arith.constant 1.000000e+00 : f32
    %1068 = vector.broadcast %cst_642 : f32 to vector<8x32xf32>
    %1069 = arith.addf %1068, %1067 : vector<8x32xf32>
    %1070 = arith.divf %1068, %1069 : vector<8x32xf32>
    %c1_643 = arith.constant 1 : index
    %c40_644 = arith.constant 40 : index
    %c0_645 = arith.constant 0 : index
    %1071 = vector.load %arg11[%c1_643, %c40_644, %c0_645] : memref<3x64x32xf32, #tpu.memory_space<vmem>>, vector<1x8x32xf32>
    %1072 = vector.shape_cast %1071 : vector<1x8x32xf32> to vector<8x32xf32>
    %1073 = arith.addf %1072, %1060 : vector<8x32xf32>
    %1074 = arith.negf %1073 : vector<8x32xf32>
    %1075 = math.exp %1074 : vector<8x32xf32>
    %cst_646 = arith.constant 1.000000e+00 : f32
    %1076 = vector.broadcast %cst_646 : f32 to vector<8x32xf32>
    %1077 = arith.addf %1076, %1075 : vector<8x32xf32>
    %1078 = arith.divf %1076, %1077 : vector<8x32xf32>
    %c2_647 = arith.constant 2 : index
    %c40_648 = arith.constant 40 : index
    %c0_649 = arith.constant 0 : index
    %1079 = vector.load %arg11[%c2_647, %c40_648, %c0_649] : memref<3x64x32xf32, #tpu.memory_space<vmem>>, vector<1x8x32xf32>
    %1080 = vector.shape_cast %1079 : vector<1x8x32xf32> to vector<8x32xf32>
    %1081 = arith.mulf %1070, %1062 : vector<8x32xf32>
    %1082 = arith.addf %1080, %1081 : vector<8x32xf32>
    %1083 = math.tanh %1082 : vector<8x32xf32>
    %cst_650 = arith.constant 1.000000e+00 : f32
    %1084 = vector.broadcast %cst_650 : f32 to vector<8x32xf32>
    %1085 = arith.subf %1084, %1078 : vector<8x32xf32>
    %1086 = arith.mulf %1085, %1083 : vector<8x32xf32>
    %1087 = arith.mulf %1078, %1057 : vector<8x32xf32>
    %1088 = arith.addf %1086, %1087 : vector<8x32xf32>
    %c40_651 = arith.constant 40 : index
    %c0_652 = arith.constant 0 : index
    %1089 = vector.load %arg12[%c40_651, %c0_652] : memref<64x32xf32, #tpu.memory_space<vmem>>, vector<8x32xf32>
    tpu.vector_store %arg12[%c40_651, %c0_652], %1088 {strides = array<i32>} : memref<64x32xf32, #tpu.memory_space<vmem>>, vector<8x32xf32>,
    %cst_653 = arith.constant dense<0.000000e+00> : vector<8x32xf32>
    %1090 = tpu.matmul %1088, %895, %cst_653 {dimension_numbers = #tpu.dot_dimension_numbers<[1], [0], [0], [1], [0, 0, 1, 1], [], []>} : vector<8x32xf32>, vector<32x32xf32>, vector<8x32xf32> -> vector<8x32xf32>
    %cst_654 = arith.constant dense<0.000000e+00> : vector<8x32xf32>
    %1091 = tpu.matmul %1088, %897, %cst_654 {dimension_numbers = #tpu.dot_dimension_numbers<[1], [0], [0], [1], [0, 0, 1, 1], [], []>} : vector<8x32xf32>, vector<32x32xf32>, vector<8x32xf32> -> vector<8x32xf32>
    %cst_655 = arith.constant dense<0.000000e+00> : vector<8x32xf32>
    %1092 = tpu.matmul %1088, %899, %cst_655 {dimension_numbers = #tpu.dot_dimension_numbers<[1], [0], [0], [1], [0, 0, 1, 1], [], []>} : vector<8x32xf32>, vector<32x32xf32>, vector<8x32xf32> -> vector<8x32xf32>
    %1093 = arith.addf %1092, %903 : vector<8x32xf32>
    %c0_656 = arith.constant 0 : index
    %c48_657 = arith.constant 48 : index
    %c0_658 = arith.constant 0 : index
    %1094 = vector.load %arg11[%c0_656, %c48_657, %c0_658] : memref<3x64x32xf32, #tpu.memory_space<vmem>>, vector<1x8x32xf32>
    %1095 = vector.shape_cast %1094 : vector<1x8x32xf32> to vector<8x32xf32>
    %1096 = arith.addf %1095, %1090 : vector<8x32xf32>
    %1097 = arith.negf %1096 : vector<8x32xf32>
    %1098 = math.exp %1097 : vector<8x32xf32>
    %cst_659 = arith.constant 1.000000e+00 : f32
    %1099 = vector.broadcast %cst_659 : f32 to vector<8x32xf32>
    %1100 = arith.addf %1099, %1098 : vector<8x32xf32>
    %1101 = arith.divf %1099, %1100 : vector<8x32xf32>
    %c1_660 = arith.constant 1 : index
    %c48_661 = arith.constant 48 : index
    %c0_662 = arith.constant 0 : index
    %1102 = vector.load %arg11[%c1_660, %c48_661, %c0_662] : memref<3x64x32xf32, #tpu.memory_space<vmem>>, vector<1x8x32xf32>
    %1103 = vector.shape_cast %1102 : vector<1x8x32xf32> to vector<8x32xf32>
    %1104 = arith.addf %1103, %1091 : vector<8x32xf32>
    %1105 = arith.negf %1104 : vector<8x32xf32>
    %1106 = math.exp %1105 : vector<8x32xf32>
    %cst_663 = arith.constant 1.000000e+00 : f32
    %1107 = vector.broadcast %cst_663 : f32 to vector<8x32xf32>
    %1108 = arith.addf %1107, %1106 : vector<8x32xf32>
    %1109 = arith.divf %1107, %1108 : vector<8x32xf32>
    %c2_664 = arith.constant 2 : index
    %c48_665 = arith.constant 48 : index
    %c0_666 = arith.constant 0 : index
    %1110 = vector.load %arg11[%c2_664, %c48_665, %c0_666] : memref<3x64x32xf32, #tpu.memory_space<vmem>>, vector<1x8x32xf32>
    %1111 = vector.shape_cast %1110 : vector<1x8x32xf32> to vector<8x32xf32>
    %1112 = arith.mulf %1101, %1093 : vector<8x32xf32>
    %1113 = arith.addf %1111, %1112 : vector<8x32xf32>
    %1114 = math.tanh %1113 : vector<8x32xf32>
    %cst_667 = arith.constant 1.000000e+00 : f32
    %1115 = vector.broadcast %cst_667 : f32 to vector<8x32xf32>
    %1116 = arith.subf %1115, %1109 : vector<8x32xf32>
    %1117 = arith.mulf %1116, %1114 : vector<8x32xf32>
    %1118 = arith.mulf %1109, %1088 : vector<8x32xf32>
    %1119 = arith.addf %1117, %1118 : vector<8x32xf32>
    %c48_668 = arith.constant 48 : index
    %c0_669 = arith.constant 0 : index
    %1120 = vector.load %arg12[%c48_668, %c0_669] : memref<64x32xf32, #tpu.memory_space<vmem>>, vector<8x32xf32>
    tpu.vector_store %arg12[%c48_668, %c0_669], %1119 {strides = array<i32>} : memref<64x32xf32, #tpu.memory_space<vmem>>, vector<8x32xf32>,
    %cst_670 = arith.constant dense<0.000000e+00> : vector<8x32xf32>
    %1121 = tpu.matmul %1119, %895, %cst_670 {dimension_numbers = #tpu.dot_dimension_numbers<[1], [0], [0], [1], [0, 0, 1, 1], [], []>} : vector<8x32xf32>, vector<32x32xf32>, vector<8x32xf32> -> vector<8x32xf32>
    %cst_671 = arith.constant dense<0.000000e+00> : vector<8x32xf32>
    %1122 = tpu.matmul %1119, %897, %cst_671 {dimension_numbers = #tpu.dot_dimension_numbers<[1], [0], [0], [1], [0, 0, 1, 1], [], []>} : vector<8x32xf32>, vector<32x32xf32>, vector<8x32xf32> -> vector<8x32xf32>
    %cst_672 = arith.constant dense<0.000000e+00> : vector<8x32xf32>
    %1123 = tpu.matmul %1119, %899, %cst_672 {dimension_numbers = #tpu.dot_dimension_numbers<[1], [0], [0], [1], [0, 0, 1, 1], [], []>} : vector<8x32xf32>, vector<32x32xf32>, vector<8x32xf32> -> vector<8x32xf32>
    %1124 = arith.addf %1123, %903 : vector<8x32xf32>
    %c0_673 = arith.constant 0 : index
    %c56_674 = arith.constant 56 : index
    %c0_675 = arith.constant 0 : index
    %1125 = vector.load %arg11[%c0_673, %c56_674, %c0_675] : memref<3x64x32xf32, #tpu.memory_space<vmem>>, vector<1x8x32xf32>
    %1126 = vector.shape_cast %1125 : vector<1x8x32xf32> to vector<8x32xf32>
    %1127 = arith.addf %1126, %1121 : vector<8x32xf32>
    %1128 = arith.negf %1127 : vector<8x32xf32>
    %1129 = math.exp %1128 : vector<8x32xf32>
    %cst_676 = arith.constant 1.000000e+00 : f32
    %1130 = vector.broadcast %cst_676 : f32 to vector<8x32xf32>
    %1131 = arith.addf %1130, %1129 : vector<8x32xf32>
    %1132 = arith.divf %1130, %1131 : vector<8x32xf32>
    %c1_677 = arith.constant 1 : index
    %c56_678 = arith.constant 56 : index
    %c0_679 = arith.constant 0 : index
    %1133 = vector.load %arg11[%c1_677, %c56_678, %c0_679] : memref<3x64x32xf32, #tpu.memory_space<vmem>>, vector<1x8x32xf32>
    %1134 = vector.shape_cast %1133 : vector<1x8x32xf32> to vector<8x32xf32>
    %1135 = arith.addf %1134, %1122 : vector<8x32xf32>
    %1136 = arith.negf %1135 : vector<8x32xf32>
    %1137 = math.exp %1136 : vector<8x32xf32>
    %cst_680 = arith.constant 1.000000e+00 : f32
    %1138 = vector.broadcast %cst_680 : f32 to vector<8x32xf32>
    %1139 = arith.addf %1138, %1137 : vector<8x32xf32>
    %1140 = arith.divf %1138, %1139 : vector<8x32xf32>
    %c2_681 = arith.constant 2 : index
    %c56_682 = arith.constant 56 : index
    %c0_683 = arith.constant 0 : index
    %1141 = vector.load %arg11[%c2_681, %c56_682, %c0_683] : memref<3x64x32xf32, #tpu.memory_space<vmem>>, vector<1x8x32xf32>
    %1142 = vector.shape_cast %1141 : vector<1x8x32xf32> to vector<8x32xf32>
    %1143 = arith.mulf %1132, %1124 : vector<8x32xf32>
    %1144 = arith.addf %1142, %1143 : vector<8x32xf32>
    %1145 = math.tanh %1144 : vector<8x32xf32>
    %cst_684 = arith.constant 1.000000e+00 : f32
    %1146 = vector.broadcast %cst_684 : f32 to vector<8x32xf32>
    %1147 = arith.subf %1146, %1140 : vector<8x32xf32>
    %1148 = arith.mulf %1147, %1145 : vector<8x32xf32>
    %1149 = arith.mulf %1140, %1119 : vector<8x32xf32>
    %1150 = arith.addf %1148, %1149 : vector<8x32xf32>
    %c56_685 = arith.constant 56 : index
    %c0_686 = arith.constant 0 : index
    %1151 = vector.load %arg12[%c56_685, %c0_686] : memref<64x32xf32, #tpu.memory_space<vmem>>, vector<8x32xf32>
    tpu.vector_store %arg12[%c56_685, %c0_686], %1150 {strides = array<i32>} : memref<64x32xf32, #tpu.memory_space<vmem>>, vector<8x32xf32>,
    %c0_687 = arith.constant 0 : index
    %c0_688 = arith.constant 0 : index
    %1152 = vector.load %arg12[%c0_687, %c0_688] : memref<64x32xf32, #tpu.memory_space<vmem>>, vector<64x32xf32>
    %1153 = arith.truncf %1152 : vector<64x32xf32> to vector<64x32xbf16>
    %c0_689 = arith.constant 0 : index
    %c0_690 = arith.constant 0 : index
    %1154 = vector.load %arg8[%c0_689, %c0_690] : memref<32x128xbf16, #tpu.memory_space<vmem>>, vector<32x128xbf16>
    %cst_691 = arith.constant dense<0.000000e+00> : vector<64x128xf32>
    %1155 = tpu.matmul %1153, %1154, %cst_691 {dimension_numbers = #tpu.dot_dimension_numbers<[1], [0], [0], [1], [0, 0, 1, 1], [], []>} : vector<64x32xbf16>, vector<32x128xbf16>, vector<64x128xf32> -> vector<64x128xf32>
    %c0_692 = arith.constant 0 : index
    %c0_693 = arith.constant 0 : index
    %1156 = vector.load %arg9[%c0_692, %c0_693] : memref<1x128xf32, #tpu.memory_space<vmem>>, vector<1x128xf32>
    %1157 = vector.broadcast %1156 : vector<1x128xf32> to vector<64x128xf32>
    %1158 = arith.addf %1155, %1157 : vector<64x128xf32>
    %cst_694 = arith.constant dense<0xFF800000> : vector<64xf32>
    %1159 = vector.multi_reduction <maximumf>, %1158, %cst_694 [1] : vector<64x128xf32> to vector<64xf32>
    %1160 = vector.shape_cast %1159 : vector<64xf32> to vector<64x1xf32>
    %1161 = vector.broadcast %1160 : vector<64x1xf32> to vector<64x128xf32>
    %1162 = arith.subf %1158, %1161 : vector<64x128xf32>
    %1163 = math.exp %1162 : vector<64x128xf32>
    %cst_695 = arith.constant dense<0.000000e+00> : vector<64xf32>
    %1164 = vector.multi_reduction <add>, %1163, %cst_695 [1] : vector<64x128xf32> to vector<64xf32>
    %1165 = vector.shape_cast %1164 : vector<64xf32> to vector<64x1xf32>
    %1166 = math.log %1165 : vector<64x1xf32>
    %1167 = arith.addf %1166, %1160 : vector<64x1xf32>
    %1168 = vector.broadcast %1167 : vector<64x1xf32> to vector<64x128xf32>
    %1169 = arith.subf %1158, %1168 : vector<64x128xf32>
    %c0_696 = arith.constant 0 : index
    %c0_697 = arith.constant 0 : index
    %1170 = vector.load %arg10[%c0_696, %c0_697] : memref<64x128xf32, #tpu.memory_space<vmem>>, vector<64x128xf32>
    tpu.vector_store %arg10[%c0_696, %c0_697], %1169 {strides = array<i32>} : memref<64x128xf32, #tpu.memory_space<vmem>>, vector<64x128xf32>,
    return
  }
  func.func @transform_0(%arg0: i32) -> (i32, i32) {
    %c0_i32 = arith.constant 0 : i32
    %c0_i32_0 = arith.constant 0 : i32
    %c0_i32_1 = arith.constant 0 : i32
    return %c0_i32, %c0_i32_0 : i32, i32
  }
  func.func @transform_1(%arg0: i32) -> (i32, i32) {
    %c0_i32 = arith.constant 0 : i32
    %c0_i32_0 = arith.constant 0 : i32
    %c0_i32_1 = arith.constant 0 : i32
    return %c0_i32, %c0_i32_0 : i32, i32
  }
  func.func @transform_2(%arg0: i32) -> (i32, i32, i32) {
    %c0_i32 = arith.constant 0 : i32
    %c0_i32_0 = arith.constant 0 : i32
    %c0_i32_1 = arith.constant 0 : i32
    %c0_i32_2 = arith.constant 0 : i32
    return %c0_i32, %c0_i32_0, %c0_i32_1 : i32, i32, i32
  }
  func.func @transform_3(%arg0: i32) -> (i32, i32, i32) {
    %c0_i32 = arith.constant 0 : i32
    %c0_i32_0 = arith.constant 0 : i32
    %c0_i32_1 = arith.constant 0 : i32
    %c0_i32_2 = arith.constant 0 : i32
    return %c0_i32, %c0_i32_0, %c0_i32_1 : i32, i32, i32
  }
  func.func @transform_4(%arg0: i32) -> (i32, i32, i32) {
    %c0_i32 = arith.constant 0 : i32
    %c0_i32_0 = arith.constant 0 : i32
    %c0_i32_1 = arith.constant 0 : i32
    %c0_i32_2 = arith.constant 0 : i32
    return %c0_i32, %c0_i32_0, %c0_i32_1 : i32, i32, i32
  }
  func.func @transform_5(%arg0: i32) -> (i32, i32, i32) {
    %c0_i32 = arith.constant 0 : i32
    %c0_i32_0 = arith.constant 0 : i32
    %c0_i32_1 = arith.constant 0 : i32
    %c0_i32_2 = arith.constant 0 : i32
    return %c0_i32, %c0_i32_0, %c0_i32_1 : i32, i32, i32
  }
  func.func @transform_6(%arg0: i32) -> (i32, i32, i32) {
    %c0_i32 = arith.constant 0 : i32
    %c0_i32_0 = arith.constant 0 : i32
    %c0_i32_1 = arith.constant 0 : i32
    %c0_i32_2 = arith.constant 0 : i32
    return %c0_i32, %c0_i32_0, %c0_i32_1 : i32, i32, i32
  }
  func.func @transform_7(%arg0: i32) -> (i32, i32) {
    %c0_i32 = arith.constant 0 : i32
    %c0_i32_0 = arith.constant 0 : i32
    %c0_i32_1 = arith.constant 0 : i32
    return %c0_i32, %c0_i32_0 : i32, i32
  }
  func.func @transform_8(%arg0: i32) -> (i32, i32) {
    %c0_i32 = arith.constant 0 : i32
    %c0_i32_0 = arith.constant 0 : i32
    %c0_i32_1 = arith.constant 0 : i32
    return %c0_i32, %c0_i32_0 : i32, i32
  }
  func.func @transform_9(%arg0: i32) -> (i32, i32) {
    %c0_i32 = arith.constant 0 : i32
    %c0_i32_0 = arith.constant 0 : i32
    %c0_i32_1 = arith.constant 0 : i32
    return %c0_i32, %c0_i32_0 : i32, i32
  }
}

</mosaic_0001>

<bundles_post_ra>
// kernel: tpu_custom_call.1
= control target key start
LH: loop header
LB: loop body
LE: loop exit
PB: predicated region body
PF: predicated region fallthrough
CT: control target
= control target key end

     0   :  { %14 = vsyncpa [#allocation5], 0  ;;  %s13857_s0 = inlined_call_operand.vmem [shape: bf16[64,36], index: 0, kind: input, shape index: {}]   ;;  %s13858_s1 = inlined_call_operand.vmem [shape: bf16[64,36], index: 1, kind: input, shape index: {}]   ;;  %s13859_s2 = inlined_call_operand.vmem [shape: bf16[6,36,32], index: 2, kind: input, shape index: {}]   ;;  %s13860_s3 = inlined_call_operand.vmem [shape: bf16[6,32,32], index: 3, kind: input, shape index: {}]   ;;  %s13861_s4 = inlined_call_operand.hbm [shape: f32[12,32,32], index: 4, kind: input, shape index: {}]   ;;  %s13862_s5 = inlined_call_operand.vmem [shape: f32[12,1,32], index: 5, kind: input, shape index: {}]   ;;  %s13863_s6 = inlined_call_operand.vmem [shape: f32[4,1,32], index: 6, kind: input, shape index: {}]   ;;  %s13864_s7 = inlined_call_operand.vmem [shape: bf16[32,128], index: 7, kind: input, shape index: {}]   ;;  %s13865_s8 = inlined_call_operand.vmem [shape: f32[1,128], index: 8, kind: input, shape index: {}]   ;;  %s13866_s9 = inlined_call_operand.hbm [shape: f32[64,128], index: 9, kind: output, shape index: {}]  }
   0x1   :  { %15 = vsyncpa [#allocation6], 0  ;;  %s12462_s30 = smov [#allocation4]   ;;  %s12414_s13 = scalar_lea.hbm %s13861_s4, 6144 }
   0x2   :  { %s29_s10 = sshll.u32 %s12462_s30, 4  ;;  %p12415_p0 = scmp.ne.s32.totalorder %s13861_s4, %s12414_s13  ;;  %s30_s10 = int_to_ptr.vmem [resolvable:$true] %s29_s10 }
   0x3   :  { %p12418_p1 = scmp.lt.u32.totalorder %s12414_s13, %s13861_s4 }
   0x5   :  { %p12420_p2 = pnand %p12418_p1, %p12415_p0 }
   0x7   :  { %12423 = shalt.err (!%p12420_p2)
}
   0x8   :  { %s12424_s18 = scalar_lea.vmem %s30_s10, 6144  ;;  %p12429_p4 = scmp.lt.s32.totalorder %s30_s10, %s30_s10 }
   0x9   :  { %p12425_p3 = scmp.ne.s32.totalorder %s30_s10, %s12424_s18  ;;  %p12430_p5 = scmp.lt.s32.totalorder %s12424_s18, %s12424_s18 }
   0xb   :  { %p12431_p6 = por %p12430_p5, %p12429_p4 }
   0xd   :  { %p12432_p7 = pnand %p12431_p6, %p12425_p3 }
   0xf   :  { %12435 = shalt.err (!%p12432_p7)
}
  0x10   :  { %s12463_s19 = smov 128   ;;  %s12464_s20 = smov 8  }
  0x11   :  { %35 = dma.hbm_to_vmem [thread:$0]  %s13861_s4, 6144, %s30_s10, [#allocation5], %s12463_s19, %s12463_s19, %s12464_s20  }
  0x12   :  { %12458 = dma.done.wait [#allocation5], 6144  }
  0x13   :  { %12459 = vsyncadd [#allocation5], 4294961152  ;;  %v12022_v0 = vld [vmem:[%s13859_s2 + $0x14] sm:$0xff]   ;;  %v12023_v1 = vld [vmem:[%s13859_s2 + $0x1c] sm:$0xff]   ;;  %vm103_vm0 = vcmask 293888   ;;  %vm116_vm1 = vcmask 1041408  }
  0x14   :  { %10216 = vmatprep.subr.bf16.mxu1 %v12022_v0  ;;  %v12024_v2 = vld [vmem:[%s13859_s2 + $0x24] ss:$0 sps:$4 sm:$0x33]   ;;  %v12029_v6 = vld [vmem:[%s13859_s2 + $0x8] sm:$0xff]   ;;  %v12032_v11 = vld [vmem:[%s13857_s0 + $0x10] sm:$0xff]   ;;  %v12465_v18 = vmov 0.0|0.0  }
  0x15   :  { %v12025_v3 = vld [vmem:[%s13859_s2] sm:$0xff]   ;;  %10217 = vmatpush3.bf16.msra.mxu1 %v12022_v0  ;;  %v224_v5 = vsel %vm116_vm1, %v12024_v2, 0  ;;  %v12028_v7 = vld [vmem:[%s13859_s2 + $0x28] sm:$0xff]   ;;  %v12030_v8 = vld [vmem:[%s13859_s2 + $0x10] ss:$0 sps:$4 sm:$0x33]  }
  0x16   :  { %10218 = vmatprep.subr.bf16.mxu1 %v12023_v1  ;;  %10202 = vmatprep.subr.bf16.mxu0 %v12025_v3  ;;  %v12026_v4 = vld [vmem:[%s13857_s0] sm:$0xff]   ;;  %v12027_v9 = vld [vmem:[%s13857_s0 + $0x8] sm:$0xff]   ;;  %v118_v10 = vsel %vm116_vm1, %v12030_v8, 0  ;;  %v12034_v12 = vld [vmem:[%s13859_s2 + $0x38] ss:$0 sps:$4 sm:$0x33]  }
  0x17   :  { %10203 = vmatpush3.bf16.msra.mxu0 %v12025_v3  ;;  %10222 = vmatprep.mubr.msk.bf16.mxu1 %vm103_vm0, %v12026_v4  ;;  %v12031_v13 = vld [vmem:[%s13859_s2 + $0x30] sm:$0xff]   ;;  %v330_v14 = vsel %vm116_vm1, %v12034_v12, 0  ;;  %v12033_v15 = vld [vmem:[%s13857_s0 + $0x18] sm:$0xff]   ;;  %v406_v16 = vld [vmem:[#allocation4] sm:$0xff]  ;;  %vm12466_vm2 = vmmov 0   ;;  %v12467_v30 = vmov 0.0  }
  0x18   :  { %10208 = vmatprep.mubr.msk.bf16.mxu0 %vm103_vm0, %v12026_v4  ;;  %10204 = vmatprep.subr.bf16.mxu0 %v12029_v6  ;;  %v407_v17 = vld [vmem:[#allocation4 + $0x8] sm:$0xff]  ;;  %v416_v19 = vld [vmem:[#allocation4 + $0x40] sm:$0xff]  ;;  %v408_v21 = vld [vmem:[#allocation4 + $0x10] sm:$0xff]  ;;  %vm185_vm3 = vcmask 261120  }
  0x19   :  { %10219 = vmatpush3.bf16.msra.mxu1 %v12023_v1  ;;  %v417_v20 = vld [vmem:[#allocation4 + $0x48] sm:$0xff]  ;;  %v409_v22 = vld [vmem:[#allocation4 + $0x18] sm:$0xff]  ;;  %v12591_v23 = vpack.c.bf16 %v407_v17, %v406_v16  ;;  %v418_v24 = vld [vmem:[#allocation4 + $0x50] sm:$0xff] }
  0x1a   :  { %12009 = vmatprep.subr.msk.bf16.mxu1 %vm116_vm1, %v12024_v2  ;;  %v419_v25 = vld [vmem:[#allocation4 + $0x58] sm:$0xff]  ;;  %v411_v26 = vld [vmem:[#allocation4 + $0x20] sm:$0xff]  ;;  %v412_v27 = vld [vmem:[#allocation4 + $0x28] sm:$0xff]  ;;  %v12595_v28 = vpack.c.bf16 %v417_v20, %v416_v19  ;;  %v12598_v29 = vpack.c.bf16 %v409_v22, %v408_v21 }
  0x1b   :  { %10205 = vmatpush3.bf16.msra.mxu0 %v12029_v6  ;;  %v12605_v31 = vpack.c.bf16 %v419_v25, %v418_v24  ;;  %v12610_v32 = vpack.c.bf16 %v412_v27, %v411_v26  ;;  %v413_v33 = vld [vmem:[#allocation4 + $0x30] sm:$0xff]  ;;  %v414_v34 = vld [vmem:[#allocation4 + $0x38] sm:$0xff]  ;;  %v9334_v36 = vld [vmem:[%s13862_s5 + $0x1] ss:$0 sm:$0xff] }
  0x1c   :  { %12008 = vmatprep.subr.msk.bf16.mxu0 %vm116_vm1, %v12030_v8  ;;  %v12617_v35 = vpack.c.bf16 %v414_v34, %v413_v33  ;;  %v9316_v40 = vld [vmem:[%s13862_s5] ss:$0 sm:$0xff]  ;;  %v9348_v3 = vld [vmem:[%s13862_s5 + $0x2] ss:$0 sm:$0xff] }
  0x1d   :  { %10221 = vmatpush3.bf16.msra.mxu1 %v224_v5 }
  0x1e   :  { %12002 = vmatprep.subr.bf16.mxu1 %v12028_v7 }
  0x1f   :  { %10207 = vmatpush3.bf16.msra.mxu0 %v118_v10 }
  0x20   :  { %10223 = vmatmul.mubr.msk.bf16.vlgmr.msra.gmra.mrb[0].mxu1 %vm103_vm0, %v12027_v9  ;;  %10230 = vmatprep.subr.bf16.mxu0 %v12028_v7 }
  0x21   :  { %12005 = vmatpush3.bf16.msra.mxu1 %v12028_v7  ;;  %10226 = vmatprep.mubr.msk.bf16.mxu1 %vm103_vm0, %v12032_v11 }
  0x22   :  { %12003 = vmatprep.subr.bf16.mxu1 %v12031_v13  ;;  %10209 = vmatmul.mubr.msk.bf16.vlgmr.msra.gmra.mrb[0].mxu0 %vm103_vm0, %v12027_v9 }
  0x23   :  { %10231 = vmatpush3.bf16.msra.mxu0 %v12028_v7  ;;  %10212 = vmatprep.mubr.msk.bf16.mxu0 %vm103_vm0, %v12032_v11 }
  0x24   :  { %10232 = vmatprep.subr.bf16.mxu0 %v12031_v13 }
  0x25   :  { %12006 = vmatpush3.bf16.msra.mxu1 %v12031_v13 }
  0x26   :  { %12011 = vmatprep.subr.msk.bf16.mxu1 %vm116_vm1, %v12034_v12 }
  0x27   :  { %10233 = vmatpush3.bf16.msra.mxu0 %v12031_v13 }
  0x28   :  { %10227 = vmatmul.mubr.msk.bf16.gmra.mrb[4].mxu1 %vm103_vm0, %v12033_v15  ;;  %12010 = vmatprep.subr.msk.bf16.mxu0 %vm116_vm1, %v12034_v12 }
  0x29   :  { %12007 = vmatpush3.bf16.msra.mxu1 %v330_v14  ;;  %10240 = vmatprep.mubr.msk.bf16.mxu1 %vm103_vm0, %v12032_v11 }
  0x2a   :  { %11426 = vmatprep.subr.bf16.mxu1 %v12465_v18  ;;  %10213 = vmatmul.mubr.msk.bf16.gmra.mrb[4].mxu0 %vm103_vm0, %v12033_v15 }
  0x2b   :  { %10235 = vmatpush3.bf16.msra.mxu0 %v330_v14  ;;  %10236 = vmatprep.mubr.msk.bf16.mxu0 %vm103_vm0, %v12026_v4 }
  0x2c   :  { %11438 = vmatprep.subr.bf16.mxu0 %v12465_v18 }
  0x30   :  { %10241 = vmatmul.mubr.msk.bf16.vlgmr.msra.gmra.mrb[8].mxu1 %vm103_vm0, %v12033_v15 }
  0x31   :  { %11428 = vmatpush3.bf16.msra.mxu1 %v12591_v23  ;;  %10252 = vmatprep.mubr.msk.f32.mxu1 %vm12466_vm2, %v12467_v30 }
  0x32   :  { %11429 = vmatprep.subr.bf16.mxu1 %v12465_v18  ;;  %10237 = vmatmul.mubr.msk.bf16.vlgmr.msra.gmra.mrb[8].mxu0 %vm103_vm0, %v12027_v9 }
  0x33   :  { %11440 = vmatpush3.bf16.msra.mxu0 %v12595_v28  ;;  %10274 = vmatprep.mubr.msk.f32.mxu0 %vm12466_vm2, %v12467_v30 }
  0x34   :  { %11441 = vmatprep.subr.bf16.mxu0 %v12465_v18 }
  0x35   :  { %11431 = vmatpush3.bf16.msra.mxu1 %v12598_v29 }
  0x36   :  { %11432 = vmatprep.subr.bf16.mxu1 %v12465_v18 }
  0x37   :  { %11443 = vmatpush3.bf16.msra.mxu0 %v12605_v31 }
  0x38   :  { %10253 = vmatmul.mubr.f32.vlgmr.msra.gmra.mrb[12].mxu1 %v12467_v30  ;;  %11450 = vmatprep.subr.bf16.mxu0 %v12465_v18 }
  0x39   :  { %11434 = vmatpush3.bf16.msra.mxu1 %v12610_v32  ;;  %10263 = vmatprep.mubr.msk.f32.mxu1 %vm12466_vm2, %v12467_v30 }
  0x3a   :  { %11435 = vmatprep.subr.bf16.mxu1 %v12465_v18  ;;  %10275 = vmatmul.mubr.f32.vlgmr.msra.gmra.mrb[12].mxu0 %v12467_v30 }
  0x3b   :  { %11452 = vmatpush3.bf16.msra.mxu0 %v12610_v32  ;;  %10296 = vmatprep.mubr.msk.f32.mxu0 %vm12466_vm2, %v12467_v30 }
  0x3c   :  { %11453 = vmatprep.subr.bf16.mxu0 %v12465_v18 }
  0x3d   :  { %11437 = vmatpush3.bf16.msra.mxu1 %v12617_v35 }
  0x3e   :  { %11444 = vmatprep.subr.bf16.mxu1 %v12465_v18 }
  0x3f   :  { %11455 = vmatpush3.bf16.msra.mxu0 %v12617_v35 }
  0x40   :  { %10264 = vmatmul.mubr.f32.vlgmr.msra.gmra.mrb[14].mxu1 %v12467_v30  ;;  %11462 = vmatprep.subr.bf16.mxu0 %v12465_v18 }
  0x41   :  { %11446 = vmatpush3.bf16.msra.mxu1 %v12591_v23  ;;  %10285 = vmatprep.mubr.msk.f32.mxu1 %vm12466_vm2, %v12467_v30 }
  0x42   :  { %11447 = vmatprep.subr.bf16.mxu1 %v12465_v18 }
  0x45   :  { %11449 = vmatpush3.bf16.msra.mxu1 %v12598_v29 }
  0x46   :  { %11456 = vmatprep.subr.bf16.mxu1 %v12465_v18 }
  0xf3   :  { %v10224_v37 = vpop.f32.mrb[0].mxu1 }
  0xf4   :  { %v269_v38 = vadd.f32 %v10224_v37, %v9334_v36  ;;  %v260_v39 = vpop.f32.mrb[1].mxu1 }
  0xf5   :  { %v261_v41 = vadd.f32 %v9334_v36, %v260_v39  ;;  %v10225_v42 = vpop.f32.mrb[2].mxu1  ;;  %v10210_v45 = vpop.f32.mrb[0].mxu0 }
  0xf6   :  { %294 = vst.msk [vmem:[#allocation2 + $0x50] sm:$0xff] %vm185_vm3, %v269_v38  ;;  %v272_v43 = vadd.f32 %v10225_v42, %v9334_v36  ;;  %v263_v44 = vpop.f32.mrb[3].mxu1  ;;  %v163_v47 = vadd.f32 %v10210_v45, %v9316_v40  ;;  %v154_v48 = vpop.f32.mrb[1].mxu0  ;;  %v12675_v45 = vld [vmem:[%s13863_s6] ss:$0 sm:$0xff] }
  0xf7   :  { %292 = vst.msk [vmem:[#allocation2 + $0x40] sm:$0xff] %vm185_vm3, %v261_v41  ;;  %v264_v46 = vadd.f32 %v9334_v36, %v263_v44  ;;  %v155_v49 = vadd.f32 %v9316_v40, %v154_v48  ;;  %v10211_v50 = vpop.f32.mrb[2].mxu0 }
  0xf8   :  { %295 = vst.msk [vmem:[#allocation2 + $0x58] sm:$0xff] %vm185_vm3, %v272_v43  ;;  %188 = vst.msk [vmem:[#allocation2 + $0x10] sm:$0xff] %vm185_vm3, %v163_v47  ;;  %v166_v51 = vadd.f32 %v10211_v50, %v9316_v40  ;;  %v157_v52 = vpop.f32.mrb[3].mxu0 }
  0xf9   :  { %293 = vst.msk [vmem:[#allocation2 + $0x48] sm:$0xff] %vm185_vm3, %v264_v46  ;;  %186 = vst.msk [vmem:[#allocation2] sm:$0xff] %vm185_vm3, %v155_v49  ;;  %v158_v53 = vadd.f32 %v9316_v40, %v157_v52 }
  0xfa   :  { %189 = vst.msk [vmem:[#allocation2 + $0x18] sm:$0xff] %vm185_vm3, %v166_v51 }
  0xfb   :  { %v10228_v54 = vpop.f32.mrb[4].mxu1  ;;  %187 = vst.msk [vmem:[#allocation2 + $0x8] sm:$0xff] %vm185_vm3, %v158_v53 }
  0xfc   :  { %v285_v55 = vadd.f32 %v10228_v54, %v9334_v36  ;;  %v276_v56 = vpop.f32.mrb[5].mxu1 }
  0xfd   :  { %v277_v57 = vadd.f32 %v9334_v36, %v276_v56  ;;  %v10229_v58 = vpop.f32.mrb[6].mxu1  ;;  %v10214_v61 = vpop.f32.mrb[4].mxu0 }
  0xfe   :  { %298 = vst.msk [vmem:[#allocation2 + $0x70] sm:$0xff] %vm185_vm3, %v285_v55  ;;  %v288_v59 = vadd.f32 %v10229_v58, %v9334_v36  ;;  %v279_v60 = vpop.f32.mrb[7].mxu1  ;;  %v179_v63 = vadd.f32 %v10214_v61, %v9316_v40  ;;  %v170_v0 = vpop.f32.mrb[5].mxu0  ;;  %v648_v39 = vld [vmem:[#allocation2 + $0x40] sm:$0xff] }
  0xff   :  { %296 = vst.msk [vmem:[#allocation2 + $0x60] sm:$0xff] %vm185_vm3, %v277_v57  ;;  %v280_v62 = vadd.f32 %v9334_v36, %v279_v60  ;;  %v171_v1 = vadd.f32 %v9316_v40, %v170_v0  ;;  %v10215_v2 = vpop.f32.mrb[6].mxu0 }
 0x100   :  { %299 = vst.msk [vmem:[#allocation2 + $0x78] sm:$0xff] %vm185_vm3, %v288_v59  ;;  %192 = vst.msk [vmem:[#allocation2 + $0x30] sm:$0xff] %vm185_vm3, %v179_v63  ;;  %v182_v4 = vadd.f32 %v10215_v2, %v9316_v40  ;;  %v173_v5 = vpop.f32.mrb[7].mxu0  ;;  %v640_v21 = vld [vmem:[#allocation2] sm:$0xff]  ;;  %v886_v2 = vld [vmem:[#allocation2 + $0x48] sm:$0xff] }
 0x101   :  { %297 = vst.msk [vmem:[#allocation2 + $0x68] sm:$0xff] %vm185_vm3, %v280_v62  ;;  %190 = vst.msk [vmem:[#allocation2 + $0x20] sm:$0xff] %vm185_vm3, %v171_v1  ;;  %v174_v6 = vadd.f32 %v9316_v40, %v173_v5 }
 0x102   :  { %193 = vst.msk [vmem:[#allocation2 + $0x38] sm:$0xff] %vm185_vm3, %v182_v4  ;;  %v878_v60 = vld [vmem:[#allocation2 + $0x8] sm:$0xff] }
 0x103   :  { %v10242_v7 = vpop.f32.mrb[8].mxu1  ;;  %191 = vst.msk [vmem:[#allocation2 + $0x28] sm:$0xff] %vm185_vm3, %v174_v6 }
 0x104   :  { %v391_v8 = vadd.f32 %v10242_v7, %v9348_v3  ;;  %v382_v9 = vpop.f32.mrb[9].mxu1 }
 0x105   :  { %v383_v10 = vadd.f32 %v9348_v3, %v382_v9  ;;  %v10243_v11 = vpop.f32.mrb[10].mxu1  ;;  %v10238_v14 = vpop.f32.mrb[8].mxu0 }
 0x106   :  { %404 = vst.msk [vmem:[#allocation2 + $0xb0] sm:$0xff] %vm185_vm3, %v391_v8  ;;  %v394_v12 = vadd.f32 %v10243_v11, %v9348_v3  ;;  %v385_v13 = vpop.f32.mrb[11].mxu1  ;;  %v375_v16 = vadd.f32 %v10238_v14, %v9348_v3  ;;  %v366_v17 = vpop.f32.mrb[9].mxu0 }
 0x107   :  { %402 = vst.msk [vmem:[#allocation2 + $0xa0] sm:$0xff] %vm185_vm3, %v383_v10  ;;  %v386_v15 = vadd.f32 %v9348_v3, %v385_v13  ;;  %v367_v19 = vadd.f32 %v9348_v3, %v366_v17  ;;  %v10239_v20 = vpop.f32.mrb[10].mxu0 }
 0x108   :  { %405 = vst.msk [vmem:[#allocation2 + $0xb8] sm:$0xff] %vm185_vm3, %v394_v12  ;;  %400 = vst.msk [vmem:[#allocation2 + $0x90] sm:$0xff] %vm185_vm3, %v375_v16  ;;  %v378_v22 = vadd.f32 %v10239_v20, %v9348_v3  ;;  %v369_v24 = vpop.f32.mrb[11].mxu0 }
 0x109   :  { %403 = vst.msk [vmem:[#allocation2 + $0xa8] sm:$0xff] %vm185_vm3, %v386_v15  ;;  %398 = vst.msk [vmem:[#allocation2 + $0x80] sm:$0xff] %vm185_vm3, %v367_v19  ;;  %v370_v25 = vadd.f32 %v9348_v3, %v369_v24 }
 0x10a   :  { %401 = vst.msk [vmem:[#allocation2 + $0x98] sm:$0xff] %vm185_vm3, %v378_v22 }
 0x10b   :  { %v496_v26 = vpop.f32.mrb[12].mxu1  ;;  %399 = vst.msk [vmem:[#allocation2 + $0x88] sm:$0xff] %vm185_vm3, %v370_v25  ;;  %v1116_v25 = vld [vmem:[#allocation2 + $0x10] sm:$0xff] }
 0x10c   :  { %v641_v27 = vadd.f32 %v640_v21, %v496_v26  ;;  %v10254_v33 = vpop.f32.mrb[13].mxu1 }
 0x10d   :  { %v636_v36 = vpop.f32.mrb[12].mxu0 }
 0x10e   :  { %v9357_v34 = vmul.f32 -1.442695, %v641_v27  ;;  %v10276_v37 = vpop.f32.mrb[13].mxu0  ;;  %v637_v48 = vadd.f32 %v12675_v45, %v636_v36 }
 0x10f   :  { %v1124_v37 = vld [vmem:[#allocation2 + $0x50] sm:$0xff] }
 0x110   :  { %12062 = vpow2.f32 %v9357_v34  ;;  %v656_v51 = vld [vmem:[#allocation2 + $0x80] sm:$0xff] }
 0x112   :  { %v894_v14 = vld [vmem:[#allocation2 + $0x88] sm:$0xff] }
 0x113   :  { %v566_v38 = vpop.f32.mrb[14].mxu1 }
 0x114   :  { %v649_v40 = vadd.f32 %v648_v39, %v566_v38  ;;  %v10265_v41 = vpop.f32.mrb[15].mxu1 }
 0x116   :  { %v9358_v42 = vmul.f32 -1.442695, %v649_v40 }
 0x118   :  { %12064 = vpow2.f32 %v9358_v42 }
 0x11a   :  { %v12063_v43 = vpop.eup %12062 }
 0x11b   :  { %v645_v44 = vadd.f32 1.0, %v12063_v43 }
 0x11d   :  { %12066 = vrcp.f32 %v645_v44 }
 0x122   :  { %v12065_v46 = vpop.eup %12064 }
 0x123   :  { %v653_v47 = vadd.f32 1.0, %v12065_v46 }
 0x125   :  { %12068 = vrcp.f32 %v653_v47 }
 0x127   :  { %v12067_v49 = vpop.eup %12066 }
 0x128   :  { %v657_v50 = vmul.f32 %v12067_v49, %v637_v48 }
 0x12a   :  { %v658_v52 = vadd.f32 %v657_v50, %v656_v51  ;;  %v1132_v50 = vld [vmem:[#allocation2 + $0x90] sm:$0xff] }
 0x12c   :  { %12070 = vtanh.f32 %v658_v52 }
 0x12f   :  { %v12069_v53 = vpop.eup %12068 }
 0x130   :  { %v660_v54 = vsub.f32 1.0, %v12069_v53  ;;  %v662_v57 = vmul.f32 0.0, %v12069_v53 }
 0x136   :  { %v12071_v55 = vpop.eup %12070 }
 0x137   :  { %v661_v56 = vmul.f32 %v12071_v55, %v660_v54 }
 0x139   :  { %v663_v58 = vadd.f32 %v662_v57, %v661_v56 }
 0x13b   :  { %664 = vst.msk [vmem:[#allocation3] sm:$0xff] %vm185_vm3, %v663_v58  ;;  %10286 = vmatmul.mubr.msk.f32.vlgmr.msra.gmra.mrb[16].mxu1 %vm185_vm3, %v663_v58  ;;  %10297 = vmatmul.mubr.msk.f32.vlgmr.msra.gmra.mrb[14].mxu0 %vm185_vm3, %v663_v58 }
 0x13c   :  { %11458 = vmatpush3.bf16.msra.mxu1 %v12595_v28  ;;  %10307 = vmatprep.mubr.msk.f32.mxu1 %vm12466_vm2, %v12467_v30 }
 0x13d   :  { %11459 = vmatprep.subr.bf16.mxu1 %v12465_v18  ;;  %11464 = vmatpush3.bf16.msra.mxu0 %v12591_v23 }
 0x13e   :  { %11465 = vmatprep.subr.bf16.mxu0 %v12465_v18  ;;  %10318 = vmatprep.mubr.msk.f32.mxu0 %vm12466_vm2, %v12467_v30 }
 0x140   :  { %11461 = vmatpush3.bf16.msra.mxu1 %v12605_v31 }
 0x141   :  { %11468 = vmatprep.subr.bf16.mxu1 %v12465_v18  ;;  %11467 = vmatpush3.bf16.msra.mxu0 %v12598_v29 }
 0x142   :  { %11474 = vmatprep.subr.bf16.mxu0 %v12465_v18 }
 0x143   :  { %10308 = vmatmul.mubr.msk.f32.vlgmr.msra.gmra.mrb[18].mxu1 %vm185_vm3, %v663_v58 }
 0x144   :  { %11470 = vmatpush3.bf16.msra.mxu1 %v12610_v32  ;;  %10329 = vmatprep.mubr.msk.f32.mxu1 %vm12466_vm2, %v12467_v30 }
 0x145   :  { %11471 = vmatprep.subr.bf16.mxu1 %v12465_v18 }
 0x148   :  { %11473 = vmatpush3.bf16.msra.mxu1 %v12617_v35 }
 0x149   :  { %11480 = vmatprep.subr.bf16.mxu1 %v12465_v18 }
 0x20e   :  { %v734_v59 = vpop.f32.mrb[16].mxu1  ;;  %v804_v61 = vpop.f32.mrb[14].mxu0 }
 0x20f   :  { %v879_v62 = vadd.f32 %v878_v60, %v734_v59  ;;  %v10287_v63 = vpop.f32.mrb[17].mxu1  ;;  %v10298_v0 = vpop.f32.mrb[15].mxu0  ;;  %v887_v3 = vadd.f32 %v886_v2, %v804_v61  ;;  %v1354_v59 = vld [vmem:[#allocation2 + $0x18] sm:$0xff] }
 0x211   :  { %v9362_v1 = vmul.f32 -1.442695, %v879_v62  ;;  %v9363_v4 = vmul.f32 -1.442695, %v887_v3 }
 0x213   :  { %12072 = vpow2.f32 %v9362_v1  ;;  %v1362_v1 = vld [vmem:[#allocation2 + $0x58] sm:$0xff] }
 0x214   :  { %12074 = vpow2.f32 %v9363_v4 }
 0x216   :  { %v874_v5 = vpop.f32.mrb[18].mxu1 }
 0x217   :  { %v10309_v6 = vpop.f32.mrb[19].mxu1  ;;  %v875_v11 = vadd.f32 %v12675_v45, %v874_v5 }
 0x21d   :  { %v12073_v7 = vpop.eup %12072 }
 0x21e   :  { %v883_v8 = vadd.f32 1.0, %v12073_v7  ;;  %v12075_v9 = vpop.eup %12074 }
 0x21f   :  { %v891_v10 = vadd.f32 1.0, %v12075_v9 }
 0x220   :  { %12076 = vrcp.f32 %v883_v8 }
 0x221   :  { %12078 = vrcp.f32 %v891_v10 }
 0x22a   :  { %v12077_v12 = vpop.eup %12076 }
 0x22b   :  { %v895_v13 = vmul.f32 %v12077_v12, %v875_v11  ;;  %v12079_v16 = vpop.eup %12078 }
 0x22c   :  { %v898_v17 = vsub.f32 1.0, %v12079_v16  ;;  %v900_v21 = vmul.f32 %v12079_v16, %v663_v58 }
 0x22d   :  { %v896_v15 = vadd.f32 %v895_v13, %v894_v14  ;;  %v1370_v13 = vld [vmem:[#allocation2 + $0x98] sm:$0xff] }
 0x22f   :  { %12080 = vtanh.f32 %v896_v15 }
 0x239   :  { %v12081_v19 = vpop.eup %12080 }
 0x23a   :  { %v899_v20 = vmul.f32 %v12081_v19, %v898_v17 }
 0x23c   :  { %v901_v22 = vadd.f32 %v900_v21, %v899_v20 }
 0x23e   :  { %902 = vst.msk [vmem:[#allocation3 + $0x8] sm:$0xff] %vm185_vm3, %v901_v22  ;;  %10319 = vmatmul.mubr.msk.f32.vlgmr.msra.gmra.mrb[16].mxu0 %vm185_vm3, %v901_v22  ;;  %10330 = vmatmul.mubr.msk.f32.vlgmr.msra.gmra.mrb[20].mxu1 %vm185_vm3, %v901_v22 }
 0x23f   :  { %11476 = vmatpush3.bf16.msra.mxu0 %v12595_v28  ;;  %10340 = vmatprep.mubr.msk.f32.mxu0 %vm12466_vm2, %v12467_v30 }
 0x240   :  { %11477 = vmatprep.subr.bf16.mxu0 %v12465_v18  ;;  %11482 = vmatpush3.bf16.msra.mxu1 %v12591_v23 }
 0x241   :  { %11483 = vmatprep.subr.bf16.mxu1 %v12465_v18  ;;  %10351 = vmatprep.mubr.msk.f32.mxu1 %vm12466_vm2, %v12467_v30 }
 0x243   :  { %11479 = vmatpush3.bf16.msra.mxu0 %v12605_v31 }
 0x244   :  { %11486 = vmatprep.subr.bf16.mxu0 %v12465_v18  ;;  %11485 = vmatpush3.bf16.msra.mxu1 %v12598_v29 }
 0x245   :  { %11492 = vmatprep.subr.bf16.mxu1 %v12465_v18 }
 0x246   :  { %10341 = vmatmul.mubr.msk.f32.vlgmr.msra.gmra.mrb[18].mxu0 %vm185_vm3, %v901_v22 }
 0x247   :  { %11488 = vmatpush3.bf16.msra.mxu0 %v12610_v32  ;;  %10362 = vmatprep.mubr.msk.f32.mxu0 %vm12466_vm2, %v12467_v30 }
 0x248   :  { %11489 = vmatprep.subr.bf16.mxu0 %v12465_v18 }
 0x24b   :  { %11491 = vmatpush3.bf16.msra.mxu0 %v12617_v35 }
 0x24c   :  { %11498 = vmatprep.subr.bf16.mxu0 %v12465_v18 }
 0x311   :  { %v972_v24 = vpop.f32.mrb[16].mxu0  ;;  %v1042_v26 = vpop.f32.mrb[20].mxu1 }
 0x312   :  { %v1117_v27 = vadd.f32 %v1116_v25, %v972_v24  ;;  %v10320_v33 = vpop.f32.mrb[17].mxu0  ;;  %v10331_v34 = vpop.f32.mrb[21].mxu1  ;;  %v1125_v38 = vadd.f32 %v1124_v37, %v1042_v26  ;;  %v1592_v24 = vld [vmem:[#allocation2 + $0x20] sm:$0xff] }
 0x314   :  { %v9367_v36 = vmul.f32 -1.442695, %v1117_v27  ;;  %v9368_v39 = vmul.f32 -1.442695, %v1125_v38 }
 0x316   :  { %12082 = vpow2.f32 %v9367_v36  ;;  %v1600_v36 = vld [vmem:[#allocation2 + $0x60] sm:$0xff] }
 0x317   :  { %12084 = vpow2.f32 %v9368_v39 }
 0x319   :  { %v1112_v40 = vpop.f32.mrb[18].mxu0 }
 0x31a   :  { %v10342_v41 = vpop.f32.mrb[19].mxu0  ;;  %v1113_v47 = vadd.f32 %v12675_v45, %v1112_v40 }
 0x320   :  { %v12083_v42 = vpop.eup %12082 }
 0x321   :  { %v1121_v43 = vadd.f32 1.0, %v12083_v42  ;;  %v12085_v44 = vpop.eup %12084 }
 0x322   :  { %v1129_v46 = vadd.f32 1.0, %v12085_v44 }
 0x323   :  { %12086 = vrcp.f32 %v1121_v43 }
 0x324   :  { %12088 = vrcp.f32 %v1129_v46 }
 0x32d   :  { %v12087_v48 = vpop.eup %12086 }
 0x32e   :  { %v1133_v49 = vmul.f32 %v12087_v48, %v1113_v47  ;;  %v12089_v52 = vpop.eup %12088 }
 0x32f   :  { %v1136_v53 = vsub.f32 1.0, %v12089_v52  ;;  %v1138_v56 = vmul.f32 %v12089_v52, %v901_v22 }
 0x330   :  { %v1134_v51 = vadd.f32 %v1133_v49, %v1132_v50  ;;  %v1608_v49 = vld [vmem:[#allocation2 + $0xa0] sm:$0xff] }
 0x332   :  { %12090 = vtanh.f32 %v1134_v51 }
 0x33c   :  { %v12091_v54 = vpop.eup %12090 }
 0x33d   :  { %v1137_v55 = vmul.f32 %v12091_v54, %v1136_v53 }
 0x33f   :  { %v1139_v57 = vadd.f32 %v1138_v56, %v1137_v55 }
 0x341   :  { %1140 = vst.msk [vmem:[#allocation3 + $0x10] sm:$0xff] %vm185_vm3, %v1139_v57  ;;  %10352 = vmatmul.mubr.msk.f32.vlgmr.msra.gmra.mrb[22].mxu1 %vm185_vm3, %v1139_v57  ;;  %10363 = vmatmul.mubr.msk.f32.vlgmr.msra.gmra.mrb[20].mxu0 %vm185_vm3, %v1139_v57 }
 0x342   :  { %11494 = vmatpush3.bf16.msra.mxu1 %v12595_v28  ;;  %10373 = vmatprep.mubr.msk.f32.mxu1 %vm12466_vm2, %v12467_v30 }
 0x343   :  { %11495 = vmatprep.subr.bf16.mxu1 %v12465_v18  ;;  %11500 = vmatpush3.bf16.msra.mxu0 %v12591_v23 }
 0x344   :  { %11501 = vmatprep.subr.bf16.mxu0 %v12465_v18  ;;  %10384 = vmatprep.mubr.msk.f32.mxu0 %vm12466_vm2, %v12467_v30 }
 0x346   :  { %11497 = vmatpush3.bf16.msra.mxu1 %v12605_v31 }
 0x347   :  { %11504 = vmatprep.subr.bf16.mxu1 %v12465_v18  ;;  %11503 = vmatpush3.bf16.msra.mxu0 %v12598_v29 }
 0x348   :  { %11510 = vmatprep.subr.bf16.mxu0 %v12465_v18 }
 0x349   :  { %10374 = vmatmul.mubr.msk.f32.vlgmr.msra.gmra.mrb[24].mxu1 %vm185_vm3, %v1139_v57 }
 0x34a   :  { %11506 = vmatpush3.bf16.msra.mxu1 %v12610_v32  ;;  %10395 = vmatprep.mubr.msk.f32.mxu1 %vm12466_vm2, %v12467_v30 }
 0x34b   :  { %11507 = vmatprep.subr.bf16.mxu1 %v12465_v18 }
 0x34e   :  { %11509 = vmatpush3.bf16.msra.mxu1 %v12617_v35 }
 0x34f   :  { %11516 = vmatprep.subr.bf16.mxu1 %v12465_v18 }
 0x414   :  { %v1210_v58 = vpop.f32.mrb[22].mxu1  ;;  %v1280_v60 = vpop.f32.mrb[20].mxu0 }
 0x415   :  { %v1355_v61 = vadd.f32 %v1354_v59, %v1210_v58  ;;  %v10353_v62 = vpop.f32.mrb[23].mxu1  ;;  %v10364_v63 = vpop.f32.mrb[21].mxu0  ;;  %v1363_v2 = vadd.f32 %v1362_v1, %v1280_v60  ;;  %v1830_v58 = vld [vmem:[#allocation2 + $0x28] sm:$0xff] }
 0x417   :  { %v9372_v0 = vmul.f32 -1.442695, %v1355_v61  ;;  %v9373_v3 = vmul.f32 -1.442695, %v1363_v2 }
 0x419   :  { %12092 = vpow2.f32 %v9372_v0  ;;  %v1838_v0 = vld [vmem:[#allocation2 + $0x68] sm:$0xff] }
 0x41a   :  { %12094 = vpow2.f32 %v9373_v3 }
 0x41c   :  { %v1350_v4 = vpop.f32.mrb[24].mxu1 }
 0x41d   :  { %v10375_v5 = vpop.f32.mrb[25].mxu1  ;;  %v1351_v10 = vadd.f32 %v12675_v45, %v1350_v4 }
 0x423   :  { %v12093_v6 = vpop.eup %12092 }
 0x424   :  { %v1359_v7 = vadd.f32 1.0, %v12093_v6  ;;  %v12095_v8 = vpop.eup %12094 }
 0x425   :  { %v1367_v9 = vadd.f32 1.0, %v12095_v8 }
 0x426   :  { %12096 = vrcp.f32 %v1359_v7 }
 0x427   :  { %12098 = vrcp.f32 %v1367_v9 }
 0x430   :  { %v12097_v11 = vpop.eup %12096 }
 0x431   :  { %v1371_v12 = vmul.f32 %v12097_v11, %v1351_v10  ;;  %v12099_v15 = vpop.eup %12098 }
 0x432   :  { %v1374_v16 = vsub.f32 1.0, %v12099_v15  ;;  %v1376_v20 = vmul.f32 %v12099_v15, %v1139_v57 }
 0x433   :  { %v1372_v14 = vadd.f32 %v1371_v12, %v1370_v13  ;;  %v1846_v12 = vld [vmem:[#allocation2 + $0xa8] sm:$0xff] }
 0x435   :  { %12100 = vtanh.f32 %v1372_v14 }
 0x43f   :  { %v12101_v17 = vpop.eup %12100 }
 0x440   :  { %v1375_v19 = vmul.f32 %v12101_v17, %v1374_v16 }
 0x442   :  { %v1377_v21 = vadd.f32 %v1376_v20, %v1375_v19 }
 0x444   :  { %1378 = vst.msk [vmem:[#allocation3 + $0x18] sm:$0xff] %vm185_vm3, %v1377_v21  ;;  %10385 = vmatmul.mubr.msk.f32.vlgmr.msra.gmra.mrb[22].mxu0 %vm185_vm3, %v1377_v21  ;;  %10396 = vmatmul.mubr.msk.f32.vlgmr.msra.gmra.mrb[26].mxu1 %vm185_vm3, %v1377_v21 }
 0x445   :  { %11512 = vmatpush3.bf16.msra.mxu0 %v12595_v28  ;;  %10406 = vmatprep.mubr.msk.f32.mxu0 %vm12466_vm2, %v12467_v30 }
 0x446   :  { %11513 = vmatprep.subr.bf16.mxu0 %v12465_v18  ;;  %11518 = vmatpush3.bf16.msra.mxu1 %v12591_v23 }
 0x447   :  { %11519 = vmatprep.subr.bf16.mxu1 %v12465_v18  ;;  %10417 = vmatprep.mubr.msk.f32.mxu1 %vm12466_vm2, %v12467_v30 }
 0x449   :  { %11515 = vmatpush3.bf16.msra.mxu0 %v12605_v31 }
 0x44a   :  { %11522 = vmatprep.subr.bf16.mxu0 %v12465_v18  ;;  %11521 = vmatpush3.bf16.msra.mxu1 %v12598_v29 }
 0x44b   :  { %11528 = vmatprep.subr.bf16.mxu1 %v12465_v18 }
 0x44c   :  { %10407 = vmatmul.mubr.msk.f32.vlgmr.msra.gmra.mrb[24].mxu0 %vm185_vm3, %v1377_v21 }
 0x44d   :  { %11524 = vmatpush3.bf16.msra.mxu0 %v12610_v32  ;;  %10428 = vmatprep.mubr.msk.f32.mxu0 %vm12466_vm2, %v12467_v30 }
 0x44e   :  { %11525 = vmatprep.subr.bf16.mxu0 %v12465_v18 }
 0x451   :  { %11527 = vmatpush3.bf16.msra.mxu0 %v12617_v35 }
 0x452   :  { %11534 = vmatprep.subr.bf16.mxu0 %v12465_v18 }
 0x517   :  { %v1448_v22 = vpop.f32.mrb[22].mxu0  ;;  %v1518_v25 = vpop.f32.mrb[26].mxu1 }
 0x518   :  { %v1593_v26 = vadd.f32 %v1592_v24, %v1448_v22  ;;  %v10386_v27 = vpop.f32.mrb[23].mxu0  ;;  %v10397_v33 = vpop.f32.mrb[27].mxu1  ;;  %v1601_v37 = vadd.f32 %v1600_v36, %v1518_v25 }
 0x51a   :  { %v9377_v34 = vmul.f32 -1.442695, %v1593_v26  ;;  %v9378_v38 = vmul.f32 -1.442695, %v1601_v37 }
 0x51c   :  { %12102 = vpow2.f32 %v9377_v34 }
 0x51d   :  { %12104 = vpow2.f32 %v9378_v38 }
 0x51f   :  { %v1588_v39 = vpop.f32.mrb[24].mxu0 }
 0x520   :  { %v10408_v40 = vpop.f32.mrb[25].mxu0  ;;  %v1589_v46 = vadd.f32 %v12675_v45, %v1588_v39 }
 0x526   :  { %v12103_v41 = vpop.eup %12102 }
 0x527   :  { %v1597_v42 = vadd.f32 1.0, %v12103_v41  ;;  %v12105_v43 = vpop.eup %12104 }
 0x528   :  { %v1605_v44 = vadd.f32 1.0, %v12105_v43 }
 0x529   :  { %12106 = vrcp.f32 %v1597_v42 }
 0x52a   :  { %12108 = vrcp.f32 %v1605_v44  ;;  %v2084_v44 = vld [vmem:[#allocation2 + $0xb0] sm:$0xff] }
 0x533   :  { %v12107_v47 = vpop.eup %12106 }
 0x534   :  { %v1609_v48 = vmul.f32 %v12107_v47, %v1589_v46  ;;  %v12109_v51 = vpop.eup %12108 }
 0x535   :  { %v1612_v52 = vsub.f32 1.0, %v12109_v51  ;;  %v1614_v55 = vmul.f32 %v12109_v51, %v1377_v21 }
 0x536   :  { %v1610_v50 = vadd.f32 %v1609_v48, %v1608_v49 }
 0x538   :  { %12110 = vtanh.f32 %v1610_v50 }
 0x542   :  { %v12111_v53 = vpop.eup %12110 }
 0x543   :  { %v1613_v54 = vmul.f32 %v12111_v53, %v1612_v52  ;;  %v2332_v52 = vld [vmem:[#allocation3 + $0x8] sm:$0xff] }
 0x545   :  { %v1615_v56 = vadd.f32 %v1614_v55, %v1613_v54  ;;  %v2331_v54 = vld [vmem:[#allocation3] sm:$0xff]  ;;  %v12036_v55 = vld [vmem:[%s13860_s3 + $0x8] sm:$0xff]  }
 0x547   :  { %1616 = vst.msk [vmem:[#allocation3 + $0x20] sm:$0xff] %vm185_vm3, %v1615_v56  ;;  %10418 = vmatmul.mubr.msk.f32.vlgmr.msra.gmra.mrb[28].mxu1 %vm185_vm3, %v1615_v56  ;;  %10429 = vmatmul.mubr.msk.f32.vlgmr.msra.gmra.mrb[26].mxu0 %vm185_vm3, %v1615_v56 }
 0x548   :  { %11530 = vmatpush3.bf16.msra.mxu1 %v12595_v28  ;;  %10439 = vmatprep.mubr.msk.f32.mxu1 %vm12466_vm2, %v12467_v30 }
 0x549   :  { %11531 = vmatprep.subr.bf16.mxu1 %v12465_v18  ;;  %11536 = vmatpush3.bf16.msra.mxu0 %v12591_v23 }
 0x54a   :  { %11537 = vmatprep.subr.bf16.mxu0 %v12465_v18  ;;  %10450 = vmatprep.mubr.msk.f32.mxu0 %vm12466_vm2, %v12467_v30 }
 0x54c   :  { %11533 = vmatpush3.bf16.msra.mxu1 %v12605_v31 }
 0x54d   :  { %11540 = vmatprep.subr.bf16.mxu1 %v12465_v18  ;;  %11539 = vmatpush3.bf16.msra.mxu0 %v12598_v29 }
 0x54e   :  { %11546 = vmatprep.subr.bf16.mxu0 %v12465_v18 }
 0x54f   :  { %10440 = vmatmul.mubr.msk.f32.vlgmr.msra.gmra.mrb[30].mxu1 %vm185_vm3, %v1615_v56 }
 0x550   :  { %11542 = vmatpush3.bf16.msra.mxu1 %v12610_v32  ;;  %10461 = vmatprep.mubr.msk.f32.mxu1 %vm12466_vm2, %v12467_v30 }
 0x551   :  { %11543 = vmatprep.subr.bf16.mxu1 %v12465_v18 }
 0x554   :  { %11545 = vmatpush3.bf16.msra.mxu1 %v12617_v35 }
 0x555   :  { %11552 = vmatprep.subr.bf16.mxu1 %v12465_v18 }
 0x61a   :  { %v1686_v57 = vpop.f32.mrb[28].mxu1  ;;  %v1756_v59 = vpop.f32.mrb[26].mxu0 }
 0x61b   :  { %v1831_v60 = vadd.f32 %v1830_v58, %v1686_v57  ;;  %v10419_v61 = vpop.f32.mrb[29].mxu1  ;;  %v10430_v62 = vpop.f32.mrb[27].mxu0  ;;  %v1839_v1 = vadd.f32 %v1838_v0, %v1756_v59  ;;  %v12037_v57 = vld [vmem:[%s13860_s3 + $0x10] sm:$0xff]   ;;  %v2334_v58 = vld [vmem:[#allocation3 + $0x18] sm:$0xff]  ;;  %v2650_v0 = vld [vmem:[#allocation4 + $0x68] sm:$0xff] }
 0x61c   :  { %v2335_v61 = vld [vmem:[#allocation3 + $0x20] sm:$0xff]  ;;  %v12038_v62 = vld [vmem:[%s13860_s3 + $0x18] sm:$0xff]  }
 0x61d   :  { %v9382_v63 = vmul.f32 -1.442695, %v1831_v60  ;;  %v9383_v2 = vmul.f32 -1.442695, %v1839_v1 }
 0x61f   :  { %12112 = vpow2.f32 %v9382_v63 }
 0x620   :  { %12114 = vpow2.f32 %v9383_v2  ;;  %v12039_v2 = vld [vmem:[%s13860_s3 + $0x20] sm:$0xff]  }
 0x622   :  { %v1826_v3 = vpop.f32.mrb[30].mxu1 }
 0x623   :  { %v10441_v4 = vpop.f32.mrb[31].mxu1  ;;  %v1827_v9 = vadd.f32 %v12675_v45, %v1826_v3  ;;  %v2651_v3 = vld [vmem:[#allocation4 + $0x70] sm:$0xff] }
 0x624   :  { %v2652_v4 = vld [vmem:[#allocation4 + $0x78] sm:$0xff] }
 0x629   :  { %v12113_v5 = vpop.eup %12112 }
 0x62a   :  { %v1835_v6 = vadd.f32 1.0, %v12113_v5  ;;  %v12115_v7 = vpop.eup %12114  ;;  %v12040_v5 = vld [vmem:[%s13860_s3 + $0x28] sm:$0xff]  }
 0x62b   :  { %v1843_v8 = vadd.f32 1.0, %v12115_v7 }
 0x62c   :  { %12116 = vrcp.f32 %v1835_v6  ;;  %v12871_v6 = vpack.c.bf16 %v2652_v4, %v2651_v3  ;;  %v2657_v3 = vld [vmem:[#allocation4 + $0x98] sm:$0xff] }
 0x62d   :  { %12118 = vrcp.f32 %v1843_v8  ;;  %v2306_v8 = vld [vmem:[#allocation2 + $0x38] sm:$0xff] }
 0x636   :  { %v12117_v10 = vpop.eup %12116 }
 0x637   :  { %v1847_v11 = vmul.f32 %v12117_v10, %v1827_v9  ;;  %v12119_v14 = vpop.eup %12118 }
 0x638   :  { %v1850_v15 = vsub.f32 1.0, %v12119_v14  ;;  %v1852_v19 = vmul.f32 %v12119_v14, %v1615_v56  ;;  %v12829_v56 = vpack.c.bf16 %v2332_v52, %v2331_v54  ;;  %v2314_v14 = vld [vmem:[#allocation2 + $0x78] sm:$0xff] }
 0x639   :  { %v1848_v13 = vadd.f32 %v1847_v11, %v1846_v12 }
 0x63b   :  { %12120 = vtanh.f32 %v1848_v13 }
 0x645   :  { %v12121_v16 = vpop.eup %12120 }
 0x646   :  { %v1851_v17 = vmul.f32 %v12121_v16, %v1850_v15  ;;  %v12879_v16 = vld [vmem:[%s13862_s5 + $0x3] ss:$0 sm:$0xff] }
 0x648   :  { %v1853_v20 = vadd.f32 %v1852_v19, %v1851_v17 }
 0x64a   :  { %1854 = vst.msk [vmem:[#allocation3 + $0x28] sm:$0xff] %vm185_vm3, %v1853_v20  ;;  %10451 = vmatmul.mubr.msk.f32.vlgmr.msra.gmra.mrb[28].mxu0 %vm185_vm3, %v1853_v20  ;;  %10462 = vmatmul.mubr.msk.f32.vlgmr.msra.gmra.mrb[32].mxu1 %vm185_vm3, %v1853_v20 }
 0x64b   :  { %11548 = vmatpush3.bf16.msra.mxu0 %v12595_v28  ;;  %10472 = vmatprep.mubr.msk.f32.mxu0 %vm12466_vm2, %v12467_v30 }
 0x64c   :  { %11549 = vmatprep.subr.bf16.mxu0 %v12465_v18  ;;  %11554 = vmatpush3.bf16.msra.mxu1 %v12591_v23  ;;  %v12035_v23 = vld [vmem:[%s13860_s3] sm:$0xff]  }
 0x64d   :  { %11555 = vmatprep.subr.bf16.mxu1 %v12465_v18  ;;  %10483 = vmatprep.mubr.msk.f32.mxu1 %vm12466_vm2, %v12467_v30 }
 0x64f   :  { %11551 = vmatpush3.bf16.msra.mxu0 %v12605_v31 }
 0x650   :  { %11558 = vmatprep.subr.bf16.mxu0 %v12465_v18  ;;  %11557 = vmatpush3.bf16.msra.mxu1 %v12598_v29  ;;  %v2068_v29 = vld [vmem:[#allocation2 + $0x30] sm:$0xff] }
 0x651   :  { %11564 = vmatprep.subr.bf16.mxu1 %v12465_v18  ;;  %v2336_v59 = vld [vmem:[#allocation3 + $0x28] sm:$0xff] }
 0x652   :  { %10473 = vmatmul.mubr.msk.f32.vlgmr.msra.gmra.mrb[30].mxu0 %vm185_vm3, %v1853_v20  ;;  %v12846_v63 = vpack.c.bf16 %v2336_v59, %v2335_v61  ;;  %v2655_v61 = vld [vmem:[#allocation4 + $0x88] sm:$0xff] }
 0x653   :  { %11560 = vmatpush3.bf16.msra.mxu0 %v12610_v32  ;;  %10494 = vmatprep.mubr.msk.f32.mxu0 %vm12466_vm2, %v12467_v30  ;;  %v2076_v32 = vld [vmem:[#allocation2 + $0x70] sm:$0xff] }
 0x654   :  { %11561 = vmatprep.subr.bf16.mxu0 %v12465_v18 }
 0x657   :  { %11563 = vmatpush3.bf16.msra.mxu0 %v12617_v35 }
 0x658   :  { %10508 = vmatprep.subr.bf16.mxu0 %v12035_v23 }
 0x71d   :  { %v1924_v21 = vpop.f32.mrb[28].mxu0  ;;  %v1994_v22 = vpop.f32.mrb[32].mxu1 }
 0x71e   :  { %v2069_v24 = vadd.f32 %v2068_v29, %v1924_v21  ;;  %v10452_v25 = vpop.f32.mrb[29].mxu0  ;;  %v10463_v26 = vpop.f32.mrb[33].mxu1  ;;  %v2077_v33 = vadd.f32 %v2076_v32, %v1994_v22  ;;  %v12892_v32 = vld [vmem:[%s13862_s5 + $0x4] ss:$0 sm:$0xff] }
 0x720   :  { %v9387_v27 = vmul.f32 -1.442695, %v2069_v24  ;;  %v9388_v34 = vmul.f32 -1.442695, %v2077_v33 }
 0x722   :  { %12122 = vpow2.f32 %v9387_v27 }
 0x723   :  { %12124 = vpow2.f32 %v9388_v34 }
 0x725   :  { %v2064_v36 = vpop.f32.mrb[30].mxu0 }
 0x726   :  { %v10474_v37 = vpop.f32.mrb[31].mxu0  ;;  %v2065_v41 = vadd.f32 %v12675_v45, %v2064_v36 }
 0x72c   :  { %v12123_v35 = vpop.eup %12122 }
 0x72d   :  { %v2073_v38 = vadd.f32 1.0, %v12123_v35  ;;  %v12125_v39 = vpop.eup %12124 }
 0x72e   :  { %v2081_v40 = vadd.f32 1.0, %v12125_v39 }
 0x72f   :  { %12126 = vrcp.f32 %v2073_v38 }
 0x730   :  { %12128 = vrcp.f32 %v2081_v40 }
 0x739   :  { %v12127_v42 = vpop.eup %12126 }
 0x73a   :  { %v2085_v43 = vmul.f32 %v12127_v42, %v2065_v41  ;;  %v12129_v47 = vpop.eup %12128 }
 0x73b   :  { %v2088_v48 = vsub.f32 1.0, %v12129_v47  ;;  %v2090_v51 = vmul.f32 %v12129_v47, %v1853_v20 }
 0x73c   :  { %v2086_v46 = vadd.f32 %v2085_v43, %v2084_v44 }
 0x73e   :  { %12130 = vtanh.f32 %v2086_v46 }
 0x748   :  { %v12131_v49 = vpop.eup %12130 }
 0x749   :  { %v2089_v50 = vmul.f32 %v12131_v49, %v2088_v48  ;;  %v2322_v49 = vld [vmem:[#allocation2 + $0xb8] sm:$0xff] }
 0x74b   :  { %v12818_v53 = vadd.f32 %v2090_v51, %v2089_v50 }
 0x74d   :  { %2092 = vst.msk [vmem:[#allocation3 + $0x30] sm:$0xff] %vm185_vm3, %v12818_v53  ;;  %10484 = vmatmul.mubr.msk.f32.vlgmr.msra.gmra.mrb[34].mxu1 %vm185_vm3, %v12818_v53  ;;  %10495 = vmatmul.mubr.msk.f32.vlgmr.msra.gmra.mrb[32].mxu0 %vm185_vm3, %v12818_v53 }
 0x74e   :  { %11566 = vmatpush3.bf16.msra.mxu1 %v12595_v28  ;;  %10509 = vmatpush3.bf16.msra.mxu0 %v12035_v23  ;;  %v2333_v28 = vld [vmem:[#allocation3 + $0x10] sm:$0xff] }
 0x74f   :  { %10512 = vmatprep.mubr.msk.bf16.mxu0 %vm185_vm3, %v12829_v56  ;;  %11567 = vmatprep.subr.bf16.mxu1 %v12465_v18  ;;  %v12841_v60 = vpack.c.bf16 %v2334_v58, %v2333_v28 }
 0x750   :  { %10510 = vmatprep.subr.bf16.mxu0 %v12036_v55  ;;  %10505 = vmatprep.mubr.msk.f32.mxu1 %vm12466_vm2, %v12467_v30 }
 0x752   :  { %11569 = vmatpush3.bf16.msra.mxu1 %v12605_v31  ;;  %10511 = vmatpush3.bf16.msra.mxu0 %v12036_v55  ;;  %v2649_v31 = vld [vmem:[#allocation4 + $0x60] sm:$0xff] }
 0x753   :  { %10520 = vmatprep.subr.bf16.mxu1 %v12037_v57  ;;  %v12861_v1 = vpack.c.bf16 %v2650_v0, %v2649_v31  ;;  %10532 = vmatprep.subr.bf16.mxu0 %v12039_v2  ;;  %v2660_v31 = vld [vmem:[#allocation4 + $0xa8] sm:$0xff] }
 0x754   :  { %v2337_v59 = vld [vmem:[#allocation3 + $0x30] sm:$0xff] }
 0x755   :  { %10506 = vmatmul.mubr.msk.f32.vlgmr.msra.gmra.mrb[36].mxu1 %vm185_vm3, %v12818_v53  ;;  %10513 = vmatmul.mubr.msk.bf16.vlgmr.msra.gmra.mrb[36].mxu0 %vm185_vm3, %v12841_v60 }
 0x756   :  { %10516 = vmatprep.mubr.msk.bf16.mxu0 %vm185_vm3, %v12846_v63  ;;  %10521 = vmatpush3.bf16.msra.mxu1 %v12037_v57 }
 0x757   :  { %10524 = vmatprep.mubr.msk.bf16.mxu1 %vm185_vm3, %v12829_v56  ;;  %10522 = vmatprep.subr.bf16.mxu1 %v12038_v62 }
 0x758   :  { %10533 = vmatpush3.bf16.msra.mxu0 %v12039_v2  ;;  %v2656_v2 = vld [vmem:[#allocation4 + $0x90] sm:$0xff] }
 0x759   :  { %10534 = vmatprep.subr.bf16.mxu0 %v12040_v5 }
 0x75a   :  { %10523 = vmatpush3.bf16.msra.mxu1 %v12038_v62  ;;  %v2659_v62 = vld [vmem:[#allocation4 + $0xa0] sm:$0xff] }
 0x75b   :  { %11570 = vmatprep.subr.bf16.mxu1 %v12465_v18  ;;  %v12916_v4 = vpack.c.bf16 %v2660_v31, %v2659_v62 }
 0x75c   :  { %10535 = vmatpush3.bf16.msra.mxu0 %v12040_v5  ;;  %v2661_v5 = vld [vmem:[#allocation4 + $0xb0] sm:$0xff] }
 0x75d   :  { %10525 = vmatmul.mubr.msk.bf16.vlgmr.msra.gmra.mrb[40].mxu1 %vm185_vm3, %v12841_v60  ;;  %11582 = vmatprep.subr.bf16.mxu0 %v12465_v18 }
 0x75e   :  { %10528 = vmatprep.mubr.msk.bf16.mxu1 %vm185_vm3, %v12846_v63  ;;  %11572 = vmatpush3.bf16.msra.mxu1 %v12861_v1 }
 0x75f   :  { %11573 = vmatprep.subr.bf16.mxu1 %v12465_v18 }
 0x762   :  { %11575 = vmatpush3.bf16.msra.mxu1 %v12871_v6 }
 0x763   :  { %11576 = vmatprep.subr.bf16.mxu1 %v12465_v18 }
 0x820   :  { %v2162_v7 = vpop.f32.mrb[34].mxu1  ;;  %v2232_v9 = vpop.f32.mrb[32].mxu0 }
 0x821   :  { %v2307_v10 = vadd.f32 %v2306_v8, %v2162_v7  ;;  %v10485_v11 = vpop.f32.mrb[35].mxu1  ;;  %v10496_v12 = vpop.f32.mrb[33].mxu0  ;;  %v2315_v15 = vadd.f32 %v2314_v14, %v2232_v9  ;;  %v12924_v7 = vpack.c.bf16 %v2657_v3, %v2656_v2 }
 0x823   :  { %v9392_v13 = vmul.f32 -1.442695, %v2307_v10  ;;  %v9393_v17 = vmul.f32 -1.442695, %v2315_v15 }
 0x825   :  { %12132 = vpow2.f32 %v9392_v13 }
 0x826   :  { %12134 = vpow2.f32 %v9393_v17 }
 0x828   :  { %v2302_v19 = vpop.f32.mrb[36].mxu1  ;;  %v10514_v20 = vpop.f32.mrb[36].mxu0 }
 0x829   :  { %v2422_v23 = vadd.f32 %v10514_v20, %v12879_v16  ;;  %v10507_v21 = vpop.f32.mrb[37].mxu1  ;;  %v2413_v29 = vpop.f32.mrb[37].mxu0  ;;  %v2303_v46 = vadd.f32 %v12675_v45, %v2302_v19 }
 0x82a   :  { %v2414_v22 = vadd.f32 %v12879_v16, %v2413_v29  ;;  %v10515_v24 = vpop.f32.mrb[38].mxu0 }
 0x82b   :  { %2446 = vst.msk [vmem:[#allocation2 + $0x10] sm:$0xff] %vm185_vm3, %v2422_v23  ;;  %v2425_v25 = vadd.f32 %v10515_v24, %v12879_v16  ;;  %v2416_v26 = vpop.f32.mrb[39].mxu0  ;;  %v9419_v24 = vld [vmem:[%s13862_s5 + $0x5] ss:$0 sm:$0xff] }
 0x82c   :  { %2444 = vst.msk [vmem:[#allocation2] sm:$0xff] %vm185_vm3, %v2414_v22  ;;  %v2417_v27 = vadd.f32 %v12879_v16, %v2416_v26 }
 0x82d   :  { %2447 = vst.msk [vmem:[#allocation2 + $0x18] sm:$0xff] %vm185_vm3, %v2425_v25 }
 0x82e   :  { %2445 = vst.msk [vmem:[#allocation2 + $0x8] sm:$0xff] %vm185_vm3, %v2417_v27 }
 0x82f   :  { %v12133_v33 = vpop.eup %12132 }
 0x830   :  { %v2311_v34 = vadd.f32 1.0, %v12133_v33  ;;  %v10526_v36 = vpop.f32.mrb[40].mxu1  ;;  %v12135_v43 = vpop.eup %12134 }
 0x831   :  { %v2520_v37 = vadd.f32 %v10526_v36, %v12892_v32  ;;  %v2511_v35 = vpop.f32.mrb[41].mxu1  ;;  %v2319_v44 = vadd.f32 1.0, %v12135_v43 }
 0x832   :  { %12136 = vrcp.f32 %v2311_v34  ;;  %v2512_v38 = vadd.f32 %v12892_v32, %v2511_v35  ;;  %v10527_v39 = vpop.f32.mrb[42].mxu1 }
 0x833   :  { %2544 = vst.msk [vmem:[#allocation2 + $0x50] sm:$0xff] %vm185_vm3, %v2520_v37  ;;  %v2523_v40 = vadd.f32 %v10527_v39, %v12892_v32  ;;  %v2514_v41 = vpop.f32.mrb[43].mxu1  ;;  %12138 = vrcp.f32 %v2319_v44  ;;  %v2881_v27 = vld [vmem:[#allocation2] sm:$0xff] }
 0x834   :  { %2542 = vst.msk [vmem:[#allocation2 + $0x40] sm:$0xff] %vm185_vm3, %v2512_v38  ;;  %v2515_v42 = vadd.f32 %v12892_v32, %v2514_v41 }
 0x835   :  { %2545 = vst.msk [vmem:[#allocation2 + $0x58] sm:$0xff] %vm185_vm3, %v2523_v40 }
 0x836   :  { %2543 = vst.msk [vmem:[#allocation2 + $0x48] sm:$0xff] %vm185_vm3, %v2515_v42 }
 0x83b   :  { %v2889_v42 = vld [vmem:[#allocation2 + $0x40] sm:$0xff] }
 0x83c   :  { %v12137_v47 = vpop.eup %12136 }
 0x83d   :  { %v2323_v48 = vmul.f32 %v12137_v47, %v2303_v46  ;;  %v12139_v51 = vpop.eup %12138 }
 0x83e   :  { %v2326_v52 = vsub.f32 1.0, %v12139_v51  ;;  %v2328_v55 = vmul.f32 %v12139_v51, %v12818_v53  ;;  %v2654_v53 = vld [vmem:[#allocation4 + $0x80] sm:$0xff] }
 0x83f   :  { %v2324_v50 = vadd.f32 %v2323_v48, %v2322_v49  ;;  %v12914_v0 = vpack.c.bf16 %v2655_v61, %v2654_v53  ;;  %v12984_v53 = vld [vmem:[%s13863_s6 + $0x1] ss:$0 sm:$0xff] }
 0x841   :  { %12140 = vtanh.f32 %v2324_v50 }
 0x84b   :  { %v12141_v54 = vpop.eup %12140 }
 0x84c   :  { %v2327_v57 = vmul.f32 %v12141_v54, %v2326_v52 }
 0x84e   :  { %v12904_v58 = vadd.f32 %v2328_v55, %v2327_v57 }
 0x850   :  { %2330 = vst.msk [vmem:[#allocation3 + $0x38] sm:$0xff] %vm185_vm3, %v12904_v58 }
 0x857   :  { %v2338_v28 = vld [vmem:[#allocation3 + $0x38] sm:$0xff] }
 0x858   :  { %v2342_v45 = vpack.c.bf16 %v2338_v28, %v2337_v59 }
 0x85a   :  { %10517 = vmatmul.mubr.msk.bf16.gmra.mrb[40].mxu0 %vm185_vm3, %v2342_v45  ;;  %10529 = vmatmul.mubr.msk.bf16.gmra.mrb[44].mxu1 %vm185_vm3, %v2342_v45 }
 0x85b   :  { %10536 = vmatprep.mubr.msk.bf16.mxu0 %vm185_vm3, %v12829_v56  ;;  %10552 = vmatprep.mubr.msk.f32.mxu1 %vm12466_vm2, %v12467_v30  ;;  %v2662_v56 = vld [vmem:[#allocation4 + $0xb8] sm:$0xff] }
 0x85c   :  { %v12930_v8 = vpack.c.bf16 %v2662_v56, %v2661_v5 }
 0x862   :  { %10537 = vmatmul.mubr.msk.bf16.vlgmr.msra.gmra.mrb[44].mxu0 %vm185_vm3, %v12841_v60  ;;  %10553 = vmatmul.mubr.f32.vlgmr.msra.gmra.mrb[38].mxu1 %v12467_v30 }
 0x863   :  { %11578 = vmatpush3.bf16.msra.mxu1 %v12914_v0  ;;  %10540 = vmatprep.mubr.msk.bf16.mxu0 %vm185_vm3, %v12846_v63 }
 0x864   :  { %11579 = vmatprep.subr.bf16.mxu1 %v12465_v18  ;;  %10563 = vmatprep.mubr.msk.f32.mxu1 %vm12466_vm2, %v12467_v30 }
 0x865   :  { %11584 = vmatpush3.bf16.msra.mxu0 %v12916_v4 }
 0x866   :  { %11585 = vmatprep.subr.bf16.mxu0 %v12465_v18 }
 0x867   :  { %11581 = vmatpush3.bf16.msra.mxu1 %v12924_v7 }
 0x868   :  { %11588 = vmatprep.subr.bf16.mxu1 %v12465_v18 }
 0x869   :  { %11587 = vmatpush3.bf16.msra.mxu0 %v12930_v8 }
 0x86a   :  { %10564 = vmatmul.mubr.f32.vlgmr.msra.gmra.mrb[48].mxu1 %v12467_v30  ;;  %10541 = vmatmul.mubr.msk.bf16.gmra.mrb[48].mxu0 %vm185_vm3, %v2342_v45 }
 0x86b   :  { %10574 = vmatprep.mubr.msk.f32.mxu0 %vm12466_vm2, %v12467_v30  ;;  %11590 = vmatpush3.bf16.msra.mxu1 %v12861_v1 }
 0x86c   :  { %11594 = vmatprep.subr.bf16.mxu0 %v12465_v18  ;;  %11591 = vmatprep.subr.bf16.mxu1 %v12465_v18 }
 0x86d   :  { %10585 = vmatprep.mubr.msk.f32.mxu1 %vm12466_vm2, %v12467_v30 }
 0x86f   :  { %11593 = vmatpush3.bf16.msra.mxu1 %v12871_v6 }
 0x870   :  { %11600 = vmatprep.subr.bf16.mxu1 %v12465_v18 }
 0x872   :  { %10575 = vmatmul.mubr.f32.vlgmr.msra.gmra.mrb[34].mxu0 %v12467_v30 }
 0x873   :  { %11596 = vmatpush3.bf16.msra.mxu0 %v12914_v0  ;;  %10596 = vmatprep.mubr.msk.f32.mxu0 %vm12466_vm2, %v12467_v30 }
 0x874   :  { %11597 = vmatprep.subr.bf16.mxu0 %v12465_v18 }
 0x877   :  { %11599 = vmatpush3.bf16.msra.mxu0 %v12924_v7 }
 0x878   :  { %11606 = vmatprep.subr.bf16.mxu0 %v12465_v18 }
 0x92d   :  { %v10518_v60 = vpop.f32.mrb[40].mxu0  ;;  %v10530_v63 = vpop.f32.mrb[44].mxu1 }
 0x92e   :  { %v2438_v9 = vadd.f32 %v10518_v60, %v12879_v16  ;;  %v2536_v10 = vadd.f32 %v10530_v63, %v12892_v32  ;;  %v2429_v11 = vpop.f32.mrb[41].mxu0  ;;  %v2527_v12 = vpop.f32.mrb[45].mxu1 }
 0x92f   :  { %v2430_v13 = vadd.f32 %v12879_v16, %v2429_v11  ;;  %v2528_v14 = vadd.f32 %v12892_v32, %v2527_v12  ;;  %v10519_v15 = vpop.f32.mrb[42].mxu0  ;;  %v10531_v17 = vpop.f32.mrb[46].mxu1 }
 0x930   :  { %2450 = vst.msk [vmem:[#allocation2 + $0x30] sm:$0xff] %vm185_vm3, %v2438_v9  ;;  %2548 = vst.msk [vmem:[#allocation2 + $0x70] sm:$0xff] %vm185_vm3, %v2536_v10  ;;  %v2441_v19 = vadd.f32 %v10519_v15, %v12879_v16  ;;  %v2539_v20 = vadd.f32 %v10531_v17, %v12892_v32  ;;  %v2432_v23 = vpop.f32.mrb[43].mxu0  ;;  %v2530_v21 = vpop.f32.mrb[47].mxu1 }
 0x931   :  { %2448 = vst.msk [vmem:[#allocation2 + $0x20] sm:$0xff] %vm185_vm3, %v2430_v13  ;;  %2546 = vst.msk [vmem:[#allocation2 + $0x60] sm:$0xff] %vm185_vm3, %v2528_v14  ;;  %v2433_v29 = vadd.f32 %v12879_v16, %v2432_v23  ;;  %v2531_v22 = vadd.f32 %v12892_v32, %v2530_v21  ;;  %v3118_v14 = vld [vmem:[#allocation2 + $0x8] sm:$0xff] }
 0x932   :  { %2451 = vst.msk [vmem:[#allocation2 + $0x38] sm:$0xff] %vm185_vm3, %v2441_v19  ;;  %2549 = vst.msk [vmem:[#allocation2 + $0x78] sm:$0xff] %vm185_vm3, %v2539_v20  ;;  %v3126_v21 = vld [vmem:[#allocation2 + $0x48] sm:$0xff] }
 0x933   :  { %2449 = vst.msk [vmem:[#allocation2 + $0x28] sm:$0xff] %vm185_vm3, %v2433_v29  ;;  %2547 = vst.msk [vmem:[#allocation2 + $0x68] sm:$0xff] %vm185_vm3, %v2531_v22 }
 0x935   :  { %v10538_v25 = vpop.f32.mrb[44].mxu0  ;;  %v2737_v26 = vpop.f32.mrb[38].mxu1 }
 0x936   :  { %v2618_v33 = vadd.f32 %v10538_v25, %v9419_v24  ;;  %v2882_v34 = vadd.f32 %v2881_v27, %v2737_v26  ;;  %v2609_v16 = vpop.f32.mrb[45].mxu0  ;;  %v10554_v36 = vpop.f32.mrb[39].mxu1 }
 0x937   :  { %v2610_v32 = vadd.f32 %v9419_v24, %v2609_v16  ;;  %v10539_v37 = vpop.f32.mrb[46].mxu0 }
 0x938   :  { %2642 = vst.msk [vmem:[#allocation2 + $0x90] sm:$0xff] %vm185_vm3, %v2618_v33  ;;  %v9428_v35 = vmul.f32 -1.442695, %v2882_v34  ;;  %v2621_v38 = vadd.f32 %v10539_v37, %v9419_v24  ;;  %v2612_v39 = vpop.f32.mrb[47].mxu0 }
 0x939   :  { %2640 = vst.msk [vmem:[#allocation2 + $0x80] sm:$0xff] %vm185_vm3, %v2610_v32  ;;  %v2613_v40 = vadd.f32 %v9419_v24, %v2612_v39 }
 0x93a   :  { %12142 = vpow2.f32 %v9428_v35  ;;  %2643 = vst.msk [vmem:[#allocation2 + $0x98] sm:$0xff] %vm185_vm3, %v2621_v38 }
 0x93b   :  { %2641 = vst.msk [vmem:[#allocation2 + $0x88] sm:$0xff] %vm185_vm3, %v2613_v40 }
 0x93d   :  { %v2807_v41 = vpop.f32.mrb[48].mxu1  ;;  %v10542_v43 = vpop.f32.mrb[48].mxu0 }
 0x93e   :  { %v2890_v44 = vadd.f32 %v2889_v42, %v2807_v41  ;;  %v2634_v46 = vadd.f32 %v10542_v43, %v9419_v24  ;;  %v2625_v47 = vpop.f32.mrb[49].mxu0  ;;  %v10565_v48 = vpop.f32.mrb[49].mxu1 }
 0x93f   :  { %v2626_v49 = vadd.f32 %v9419_v24, %v2625_v47  ;;  %v10543_v50 = vpop.f32.mrb[50].mxu0 }
 0x940   :  { %v9429_v51 = vmul.f32 -1.442695, %v2890_v44  ;;  %2646 = vst.msk [vmem:[#allocation2 + $0xb0] sm:$0xff] %vm185_vm3, %v2634_v46  ;;  %v2637_v52 = vadd.f32 %v10543_v50, %v9419_v24  ;;  %v2628_v54 = vpop.f32.mrb[51].mxu0  ;;  %v2897_v5 = vld [vmem:[#allocation2 + $0x80] sm:$0xff]  ;;  %v3355_v46 = vld [vmem:[#allocation2 + $0x10] sm:$0xff] }
 0x941   :  { %2644 = vst.msk [vmem:[#allocation2 + $0xa0] sm:$0xff] %vm185_vm3, %v2626_v49  ;;  %v2629_v55 = vadd.f32 %v9419_v24, %v2628_v54 }
 0x942   :  { %12144 = vpow2.f32 %v9429_v51  ;;  %2647 = vst.msk [vmem:[#allocation2 + $0xb8] sm:$0xff] %vm185_vm3, %v2637_v52  ;;  %v3134_v37 = vld [vmem:[#allocation2 + $0x88] sm:$0xff]  ;;  %v3363_v52 = vld [vmem:[#allocation2 + $0x50] sm:$0xff] }
 0x943   :  { %2645 = vst.msk [vmem:[#allocation2 + $0xa8] sm:$0xff] %vm185_vm3, %v2629_v55 }
 0x944   :  { %v12143_v57 = vpop.eup %12142 }
 0x945   :  { %v2886_v59 = vadd.f32 1.0, %v12143_v57  ;;  %v2877_v28 = vpop.f32.mrb[34].mxu0 }
 0x946   :  { %v10576_v45 = vpop.f32.mrb[35].mxu0  ;;  %v2878_v31 = vadd.f32 %v12984_v53, %v2877_v28 }
 0x947   :  { %12146 = vrcp.f32 %v2886_v59 }
 0x94c   :  { %v12145_v61 = vpop.eup %12144 }
 0x94d   :  { %v2894_v62 = vadd.f32 1.0, %v12145_v61 }
 0x94f   :  { %12148 = vrcp.f32 %v2894_v62 }
 0x951   :  { %v12147_v2 = vpop.eup %12146 }
 0x952   :  { %v2898_v3 = vmul.f32 %v12147_v2, %v2878_v31 }
 0x954   :  { %v2899_v56 = vadd.f32 %v2898_v3, %v2897_v5  ;;  %v3371_v5 = vld [vmem:[#allocation2 + $0x90] sm:$0xff] }
 0x956   :  { %12150 = vtanh.f32 %v2899_v56 }
 0x959   :  { %v12149_v60 = vpop.eup %12148 }
 0x95a   :  { %v2901_v63 = vsub.f32 1.0, %v12149_v60  ;;  %v2903_v11 = vmul.f32 0.0, %v12149_v60 }
 0x960   :  { %v12151_v9 = vpop.eup %12150 }
 0x961   :  { %v2902_v10 = vmul.f32 %v12151_v9, %v2901_v63 }
 0x963   :  { %v2904_v12 = vadd.f32 %v2903_v11, %v2902_v10 }
 0x965   :  { %10586 = vmatmul.mubr.msk.f32.vlgmr.msra.gmra.mrb[50].mxu1 %vm185_vm3, %v2904_v12  ;;  %10597 = vmatmul.mubr.msk.f32.vlgmr.msra.gmra.mrb[52].mxu0 %vm185_vm3, %v2904_v12 }
 0x966   :  { %11602 = vmatpush3.bf16.msra.mxu1 %v12916_v4  ;;  %10607 = vmatprep.mubr.msk.f32.mxu1 %vm12466_vm2, %v12467_v30 }
 0x967   :  { %11603 = vmatprep.subr.bf16.mxu1 %v12465_v18  ;;  %11608 = vmatpush3.bf16.msra.mxu0 %v12861_v1 }
 0x968   :  { %11609 = vmatprep.subr.bf16.mxu0 %v12465_v18  ;;  %10618 = vmatprep.mubr.msk.f32.mxu0 %vm12466_vm2, %v12467_v30 }
 0x96a   :  { %11605 = vmatpush3.bf16.msra.mxu1 %v12930_v8 }
 0x96b   :  { %11612 = vmatprep.subr.bf16.mxu1 %v12465_v18  ;;  %11611 = vmatpush3.bf16.msra.mxu0 %v12871_v6 }
 0x96c   :  { %11618 = vmatprep.subr.bf16.mxu0 %v12465_v18 }
 0x96d   :  { %10608 = vmatmul.mubr.msk.f32.vlgmr.msra.gmra.mrb[52].mxu1 %vm185_vm3, %v2904_v12 }
 0x96e   :  { %11614 = vmatpush3.bf16.msra.mxu1 %v12914_v0  ;;  %10629 = vmatprep.mubr.msk.f32.mxu1 %vm12466_vm2, %v12467_v30 }
 0x96f   :  { %11615 = vmatprep.subr.bf16.mxu1 %v12465_v18 }
 0x972   :  { %11617 = vmatpush3.bf16.msra.mxu1 %v12924_v7 }
 0x973   :  { %11624 = vmatprep.subr.bf16.mxu1 %v12465_v18 }
 0xa38   :  { %v2974_v13 = vpop.f32.mrb[50].mxu1  ;;  %v3044_v15 = vpop.f32.mrb[52].mxu0 }
 0xa39   :  { %v3119_v17 = vadd.f32 %v3118_v14, %v2974_v13  ;;  %v10587_v19 = vpop.f32.mrb[51].mxu1  ;;  %v10598_v20 = vpop.f32.mrb[53].mxu0  ;;  %v3127_v29 = vadd.f32 %v3126_v21, %v3044_v15  ;;  %v3592_v14 = vld [vmem:[#allocation2 + $0x18] sm:$0xff] }
 0xa3a   :  { %v3600_v21 = vld [vmem:[#allocation2 + $0x58] sm:$0xff] }
 0xa3b   :  { %v9433_v23 = vmul.f32 -1.442695, %v3119_v17  ;;  %v9434_v22 = vmul.f32 -1.442695, %v3127_v29 }
 0xa3d   :  { %12152 = vpow2.f32 %v9433_v23 }
 0xa3e   :  { %12154 = vpow2.f32 %v9434_v22 }
 0xa40   :  { %v3114_v24 = vpop.f32.mrb[52].mxu1 }
 0xa41   :  { %v10609_v25 = vpop.f32.mrb[53].mxu1  ;;  %v3115_v16 = vadd.f32 %v12984_v53, %v3114_v24 }
 0xa47   :  { %v12153_v26 = vpop.eup %12152 }
 0xa48   :  { %v3123_v27 = vadd.f32 1.0, %v12153_v26  ;;  %v12155_v33 = vpop.eup %12154 }
 0xa49   :  { %v3131_v34 = vadd.f32 1.0, %v12155_v33 }
 0xa4a   :  { %12156 = vrcp.f32 %v3123_v27 }
 0xa4b   :  { %12158 = vrcp.f32 %v3131_v34 }
 0xa54   :  { %v12157_v36 = vpop.eup %12156 }
 0xa55   :  { %v3135_v32 = vmul.f32 %v12157_v36, %v3115_v16  ;;  %v12159_v38 = vpop.eup %12158 }
 0xa56   :  { %v3138_v39 = vsub.f32 1.0, %v12159_v38  ;;  %v3140_v42 = vmul.f32 %v12159_v38, %v2904_v12 }
 0xa57   :  { %v3136_v35 = vadd.f32 %v3135_v32, %v3134_v37  ;;  %v3608_v37 = vld [vmem:[#allocation2 + $0x98] sm:$0xff] }
 0xa59   :  { %12160 = vtanh.f32 %v3136_v35 }
 0xa63   :  { %v12161_v40 = vpop.eup %12160 }
 0xa64   :  { %v3139_v41 = vmul.f32 %v12161_v40, %v3138_v39 }
 0xa66   :  { %v3141_v43 = vadd.f32 %v3140_v42, %v3139_v41 }
 0xa68   :  { %10619 = vmatmul.mubr.msk.f32.vlgmr.msra.gmra.mrb[54].mxu0 %vm185_vm3, %v3141_v43  ;;  %10630 = vmatmul.mubr.msk.f32.vlgmr.msra.gmra.mrb[54].mxu1 %vm185_vm3, %v3141_v43 }
 0xa69   :  { %11620 = vmatpush3.bf16.msra.mxu0 %v12916_v4  ;;  %10640 = vmatprep.mubr.msk.f32.mxu0 %vm12466_vm2, %v12467_v30 }
 0xa6a   :  { %11621 = vmatprep.subr.bf16.mxu0 %v12465_v18  ;;  %11626 = vmatpush3.bf16.msra.mxu1 %v12861_v1 }
 0xa6b   :  { %11627 = vmatprep.subr.bf16.mxu1 %v12465_v18  ;;  %10651 = vmatprep.mubr.msk.f32.mxu1 %vm12466_vm2, %v12467_v30 }
 0xa6d   :  { %11623 = vmatpush3.bf16.msra.mxu0 %v12930_v8 }
 0xa6e   :  { %11630 = vmatprep.subr.bf16.mxu0 %v12465_v18  ;;  %11629 = vmatpush3.bf16.msra.mxu1 %v12871_v6 }
 0xa6f   :  { %11636 = vmatprep.subr.bf16.mxu1 %v12465_v18 }
 0xa70   :  { %10641 = vmatmul.mubr.msk.f32.vlgmr.msra.gmra.mrb[56].mxu0 %vm185_vm3, %v3141_v43 }
 0xa71   :  { %11632 = vmatpush3.bf16.msra.mxu0 %v12914_v0  ;;  %10662 = vmatprep.mubr.msk.f32.mxu0 %vm12466_vm2, %v12467_v30 }
 0xa72   :  { %11633 = vmatprep.subr.bf16.mxu0 %v12465_v18 }
 0xa75   :  { %11635 = vmatpush3.bf16.msra.mxu0 %v12924_v7 }
 0xa76   :  { %11642 = vmatprep.subr.bf16.mxu0 %v12465_v18 }
 0xb3b   :  { %v3211_v44 = vpop.f32.mrb[54].mxu0  ;;  %v3281_v47 = vpop.f32.mrb[54].mxu1 }
 0xb3c   :  { %v3356_v48 = vadd.f32 %v3355_v46, %v3211_v44  ;;  %v10620_v49 = vpop.f32.mrb[55].mxu0  ;;  %v10631_v50 = vpop.f32.mrb[55].mxu1  ;;  %v3364_v54 = vadd.f32 %v3363_v52, %v3281_v47  ;;  %v3829_v46 = vld [vmem:[#allocation2 + $0x20] sm:$0xff] }
 0xb3d   :  { %v3837_v52 = vld [vmem:[#allocation2 + $0x60] sm:$0xff] }
 0xb3e   :  { %v9438_v51 = vmul.f32 -1.442695, %v3356_v48  ;;  %v9439_v55 = vmul.f32 -1.442695, %v3364_v54 }
 0xb40   :  { %12162 = vpow2.f32 %v9438_v51 }
 0xb41   :  { %12164 = vpow2.f32 %v9439_v55 }
 0xb43   :  { %v3351_v57 = vpop.f32.mrb[56].mxu0 }
 0xb44   :  { %v10642_v59 = vpop.f32.mrb[57].mxu0  ;;  %v3352_v31 = vadd.f32 %v12984_v53, %v3351_v57 }
 0xb4a   :  { %v12163_v28 = vpop.eup %12162 }
 0xb4b   :  { %v3360_v45 = vadd.f32 1.0, %v12163_v28  ;;  %v12165_v61 = vpop.eup %12164 }
 0xb4c   :  { %v3368_v62 = vadd.f32 1.0, %v12165_v61 }
 0xb4d   :  { %12166 = vrcp.f32 %v3360_v45 }
 0xb4e   :  { %12168 = vrcp.f32 %v3368_v62 }
 0xb57   :  { %v12167_v2 = vpop.eup %12166 }
 0xb58   :  { %v3372_v3 = vmul.f32 %v12167_v2, %v3352_v31  ;;  %v12169_v60 = vpop.eup %12168 }
 0xb59   :  { %v3375_v63 = vsub.f32 1.0, %v12169_v60  ;;  %v3377_v11 = vmul.f32 %v12169_v60, %v3141_v43 }
 0xb5a   :  { %v3373_v56 = vadd.f32 %v3372_v3, %v3371_v5  ;;  %v3845_v5 = vld [vmem:[#allocation2 + $0xa0] sm:$0xff] }
 0xb5c   :  { %12170 = vtanh.f32 %v3373_v56 }
 0xb66   :  { %v12171_v9 = vpop.eup %12170 }
 0xb67   :  { %v3376_v10 = vmul.f32 %v12171_v9, %v3375_v63 }
 0xb69   :  { %v3378_v12 = vadd.f32 %v3377_v11, %v3376_v10 }
 0xb6b   :  { %10652 = vmatmul.mubr.msk.f32.vlgmr.msra.gmra.mrb[56].mxu1 %vm185_vm3, %v3378_v12  ;;  %10663 = vmatmul.mubr.msk.f32.vlgmr.msra.gmra.mrb[58].mxu0 %vm185_vm3, %v3378_v12 }
 0xb6c   :  { %11638 = vmatpush3.bf16.msra.mxu1 %v12916_v4  ;;  %10673 = vmatprep.mubr.msk.f32.mxu1 %vm12466_vm2, %v12467_v30 }
 0xb6d   :  { %11639 = vmatprep.subr.bf16.mxu1 %v12465_v18  ;;  %11644 = vmatpush3.bf16.msra.mxu0 %v12861_v1 }
 0xb6e   :  { %11645 = vmatprep.subr.bf16.mxu0 %v12465_v18  ;;  %10684 = vmatprep.mubr.msk.f32.mxu0 %vm12466_vm2, %v12467_v30 }
 0xb70   :  { %11641 = vmatpush3.bf16.msra.mxu1 %v12930_v8 }
 0xb71   :  { %11648 = vmatprep.subr.bf16.mxu1 %v12465_v18  ;;  %11647 = vmatpush3.bf16.msra.mxu0 %v12871_v6 }
 0xb72   :  { %11654 = vmatprep.subr.bf16.mxu0 %v12465_v18 }
 0xb73   :  { %10674 = vmatmul.mubr.msk.f32.vlgmr.msra.gmra.mrb[58].mxu1 %vm185_vm3, %v3378_v12 }
 0xb74   :  { %11650 = vmatpush3.bf16.msra.mxu1 %v12914_v0  ;;  %10695 = vmatprep.mubr.msk.f32.mxu1 %vm12466_vm2, %v12467_v30 }
 0xb75   :  { %11651 = vmatprep.subr.bf16.mxu1 %v12465_v18 }
 0xb78   :  { %11653 = vmatpush3.bf16.msra.mxu1 %v12924_v7 }
 0xb79   :  { %11660 = vmatprep.subr.bf16.mxu1 %v12465_v18 }
 0xc3e   :  { %v3448_v13 = vpop.f32.mrb[56].mxu1  ;;  %v3518_v15 = vpop.f32.mrb[58].mxu0 }
 0xc3f   :  { %v3593_v17 = vadd.f32 %v3592_v14, %v3448_v13  ;;  %v10653_v19 = vpop.f32.mrb[57].mxu1  ;;  %v10664_v20 = vpop.f32.mrb[59].mxu0  ;;  %v3601_v29 = vadd.f32 %v3600_v21, %v3518_v15  ;;  %v4066_v14 = vld [vmem:[#allocation2 + $0x28] sm:$0xff] }
 0xc40   :  { %v4074_v21 = vld [vmem:[#allocation2 + $0x68] sm:$0xff] }
 0xc41   :  { %v9443_v23 = vmul.f32 -1.442695, %v3593_v17  ;;  %v9444_v22 = vmul.f32 -1.442695, %v3601_v29 }
 0xc43   :  { %12172 = vpow2.f32 %v9443_v23 }
 0xc44   :  { %12174 = vpow2.f32 %v9444_v22 }
 0xc46   :  { %v3588_v24 = vpop.f32.mrb[58].mxu1 }
 0xc47   :  { %v10675_v25 = vpop.f32.mrb[59].mxu1  ;;  %v3589_v16 = vadd.f32 %v12984_v53, %v3588_v24 }
 0xc4d   :  { %v12173_v26 = vpop.eup %12172 }
 0xc4e   :  { %v3597_v27 = vadd.f32 1.0, %v12173_v26  ;;  %v12175_v33 = vpop.eup %12174 }
 0xc4f   :  { %v3605_v34 = vadd.f32 1.0, %v12175_v33 }
 0xc50   :  { %12176 = vrcp.f32 %v3597_v27 }
 0xc51   :  { %12178 = vrcp.f32 %v3605_v34 }
 0xc5a   :  { %v12177_v36 = vpop.eup %12176 }
 0xc5b   :  { %v3609_v32 = vmul.f32 %v12177_v36, %v3589_v16  ;;  %v12179_v38 = vpop.eup %12178 }
 0xc5c   :  { %v3612_v39 = vsub.f32 1.0, %v12179_v38  ;;  %v3614_v42 = vmul.f32 %v12179_v38, %v3378_v12 }
 0xc5d   :  { %v3610_v35 = vadd.f32 %v3609_v32, %v3608_v37  ;;  %v4082_v37 = vld [vmem:[#allocation2 + $0xa8] sm:$0xff] }
 0xc5f   :  { %12180 = vtanh.f32 %v3610_v35 }
 0xc69   :  { %v12181_v40 = vpop.eup %12180 }
 0xc6a   :  { %v3613_v41 = vmul.f32 %v12181_v40, %v3612_v39 }
 0xc6c   :  { %v3615_v43 = vadd.f32 %v3614_v42, %v3613_v41 }
 0xc6e   :  { %10685 = vmatmul.mubr.msk.f32.vlgmr.msra.gmra.mrb[60].mxu0 %vm185_vm3, %v3615_v43  ;;  %10696 = vmatmul.mubr.msk.f32.vlgmr.msra.gmra.mrb[60].mxu1 %vm185_vm3, %v3615_v43 }
 0xc6f   :  { %11656 = vmatpush3.bf16.msra.mxu0 %v12916_v4  ;;  %10706 = vmatprep.mubr.msk.f32.mxu0 %vm12466_vm2, %v12467_v30 }
 0xc70   :  { %11657 = vmatprep.subr.bf16.mxu0 %v12465_v18  ;;  %11662 = vmatpush3.bf16.msra.mxu1 %v12861_v1 }
 0xc71   :  { %11663 = vmatprep.subr.bf16.mxu1 %v12465_v18  ;;  %10717 = vmatprep.mubr.msk.f32.mxu1 %vm12466_vm2, %v12467_v30 }
 0xc73   :  { %11659 = vmatpush3.bf16.msra.mxu0 %v12930_v8 }
 0xc74   :  { %11666 = vmatprep.subr.bf16.mxu0 %v12465_v18  ;;  %11665 = vmatpush3.bf16.msra.mxu1 %v12871_v6 }
 0xc75   :  { %11672 = vmatprep.subr.bf16.mxu1 %v12465_v18 }
 0xc76   :  { %10707 = vmatmul.mubr.msk.f32.vlgmr.msra.gmra.mrb[62].mxu0 %vm185_vm3, %v3615_v43 }
 0xc77   :  { %11668 = vmatpush3.bf16.msra.mxu0 %v12914_v0  ;;  %10728 = vmatprep.mubr.msk.f32.mxu0 %vm12466_vm2, %v12467_v30 }
 0xc78   :  { %11669 = vmatprep.subr.bf16.mxu0 %v12465_v18 }
 0xc7b   :  { %11671 = vmatpush3.bf16.msra.mxu0 %v12924_v7 }
 0xc7c   :  { %11678 = vmatprep.subr.bf16.mxu0 %v12465_v18 }
 0xd41   :  { %v3685_v44 = vpop.f32.mrb[60].mxu0  ;;  %v3755_v47 = vpop.f32.mrb[60].mxu1 }
 0xd42   :  { %v3830_v48 = vadd.f32 %v3829_v46, %v3685_v44  ;;  %v10686_v49 = vpop.f32.mrb[61].mxu0  ;;  %v10697_v50 = vpop.f32.mrb[61].mxu1  ;;  %v3838_v54 = vadd.f32 %v3837_v52, %v3755_v47 }
 0xd44   :  { %v9448_v51 = vmul.f32 -1.442695, %v3830_v48  ;;  %v9449_v55 = vmul.f32 -1.442695, %v3838_v54 }
 0xd46   :  { %12182 = vpow2.f32 %v9448_v51 }
 0xd47   :  { %12184 = vpow2.f32 %v9449_v55 }
 0xd49   :  { %v3825_v57 = vpop.f32.mrb[62].mxu0 }
 0xd4a   :  { %v10708_v59 = vpop.f32.mrb[63].mxu0  ;;  %v3826_v31 = vadd.f32 %v12984_v53, %v3825_v57 }
 0xd50   :  { %v12183_v28 = vpop.eup %12182 }
 0xd51   :  { %v3834_v45 = vadd.f32 1.0, %v12183_v28  ;;  %v12185_v61 = vpop.eup %12184 }
 0xd52   :  { %v3842_v62 = vadd.f32 1.0, %v12185_v61 }
 0xd53   :  { %12186 = vrcp.f32 %v3834_v45 }
 0xd54   :  { %12188 = vrcp.f32 %v3842_v62 }
 0xd5d   :  { %v12187_v2 = vpop.eup %12186 }
 0xd5e   :  { %v3846_v3 = vmul.f32 %v12187_v2, %v3826_v31  ;;  %v12189_v60 = vpop.eup %12188  ;;  %v4319_v31 = vld [vmem:[#allocation2 + $0xb0] sm:$0xff] }
 0xd5f   :  { %v3849_v63 = vsub.f32 1.0, %v12189_v60  ;;  %v3851_v11 = vmul.f32 %v12189_v60, %v3615_v43 }
 0xd60   :  { %v3847_v56 = vadd.f32 %v3846_v3, %v3845_v5 }
 0xd62   :  { %12190 = vtanh.f32 %v3847_v56 }
 0xd6c   :  { %v12191_v9 = vpop.eup %12190 }
 0xd6d   :  { %v3850_v10 = vmul.f32 %v12191_v9, %v3849_v63 }
 0xd6f   :  { %v3852_v12 = vadd.f32 %v3851_v11, %v3850_v10  ;;  %v12042_v10 = vld [vmem:[%s13859_s2 + $0x44] sm:$0xff]  }
 0xd70   :  { %v12045_v11 = vld [vmem:[%s13858_s1] sm:$0xff]  }
 0xd71   :  { %10718 = vmatmul.mubr.msk.f32.vlgmr.msra.gmra.mrb[62].mxu1 %vm185_vm3, %v3852_v12  ;;  %10729 = vmatmul.mubr.msk.f32.vlgmr.msra.gmra.mrb[64].mxu0 %vm185_vm3, %v3852_v12 }
 0xd72   :  { %11674 = vmatpush3.bf16.msra.mxu1 %v12916_v4  ;;  %10739 = vmatprep.mubr.msk.f32.mxu1 %vm12466_vm2, %v12467_v30 }
 0xd73   :  { %11675 = vmatprep.subr.bf16.mxu1 %v12465_v18  ;;  %11680 = vmatpush3.bf16.msra.mxu0 %v12861_v1 }
 0xd74   :  { %11681 = vmatprep.subr.bf16.mxu0 %v12465_v18  ;;  %10750 = vmatprep.mubr.msk.f32.mxu0 %vm12466_vm2, %v12467_v30 }
 0xd76   :  { %11677 = vmatpush3.bf16.msra.mxu1 %v12930_v8 }
 0xd77   :  { %11684 = vmatprep.subr.bf16.mxu1 %v12465_v18  ;;  %11683 = vmatpush3.bf16.msra.mxu0 %v12871_v6 }
 0xd78   :  { %11690 = vmatprep.subr.bf16.mxu0 %v12465_v18 }
 0xd79   :  { %10740 = vmatmul.mubr.msk.f32.vlgmr.msra.gmra.mrb[64].mxu1 %vm185_vm3, %v3852_v12 }
 0xd7a   :  { %11686 = vmatpush3.bf16.msra.mxu1 %v12914_v0  ;;  %10761 = vmatprep.mubr.msk.f32.mxu1 %vm12466_vm2, %v12467_v30 }
 0xd7b   :  { %11687 = vmatprep.subr.bf16.mxu1 %v12465_v18 }
 0xd7e   :  { %11689 = vmatpush3.bf16.msra.mxu1 %v12924_v7 }
 0xd7f   :  { %11696 = vmatprep.subr.bf16.mxu1 %v12465_v18 }
 0xe44   :  { %v3922_v13 = vpop.f32.mrb[62].mxu1  ;;  %v3992_v15 = vpop.f32.mrb[64].mxu0 }
 0xe45   :  { %v4067_v17 = vadd.f32 %v4066_v14, %v3922_v13  ;;  %v10719_v19 = vpop.f32.mrb[63].mxu1  ;;  %v10730_v20 = vpop.f32.mrb[65].mxu0  ;;  %v4075_v29 = vadd.f32 %v4074_v21, %v3992_v15  ;;  %v12044_v13 = vld [vmem:[%s13859_s2 + $0x50] sm:$0xff]   ;;  %v12047_v14 = vld [vmem:[%s13859_s2 + $0x58] sm:$0xff]   ;;  %v12049_v15 = vld [vmem:[%s13859_s2 + $0x64] sm:$0xff]  }
 0xe46   :  { %v12050_v19 = vld [vmem:[%s13858_s1 + $0x10] sm:$0xff]   ;;  %v4920_v21 = vld [vmem:[#allocation4 + $0xc0] sm:$0xff] }
 0xe47   :  { %v9453_v23 = vmul.f32 -1.442695, %v4067_v17  ;;  %v9454_v22 = vmul.f32 -1.442695, %v4075_v29  ;;  %v12052_v20 = vld [vmem:[%s13859_s2 + $0x6c] sm:$0xff]  }
 0xe48   :  { %v12048_v17 = vld [vmem:[%s13859_s2 + $0x60] ss:$0 sps:$4 sm:$0x33]   ;;  %v4921_v29 = vld [vmem:[#allocation4 + $0xc8] sm:$0xff] }
 0xe49   :  { %12192 = vpow2.f32 %v9453_v23  ;;  %v4739_v23 = vsel %vm116_vm1, %v12048_v17, 0 }
 0xe4a   :  { %12194 = vpow2.f32 %v9454_v22  ;;  %v12053_v22 = vld [vmem:[%s13859_s2 + $0x74] ss:$0 sps:$4 sm:$0x33]  }
 0xe4c   :  { %v4062_v24 = vpop.f32.mrb[64].mxu1 }
 0xe4d   :  { %v10741_v25 = vpop.f32.mrb[65].mxu1  ;;  %v4063_v16 = vadd.f32 %v12984_v53, %v4062_v24  ;;  %v12051_v24 = vld [vmem:[%s13858_s1 + $0x18] sm:$0xff]  }
 0xe4e   :  { %v13178_v25 = vpack.c.bf16 %v4921_v29, %v4920_v21 }
 0xe53   :  { %v12193_v26 = vpop.eup %12192 }
 0xe54   :  { %v4071_v27 = vadd.f32 1.0, %v12193_v26  ;;  %v12195_v33 = vpop.eup %12194  ;;  %v4844_v26 = vsel %vm116_vm1, %v12053_v22, 0 }
 0xe55   :  { %v4079_v34 = vadd.f32 1.0, %v12195_v33  ;;  %v4923_v33 = vld [vmem:[#allocation4 + $0xd8] sm:$0xff] }
 0xe56   :  { %12196 = vrcp.f32 %v4071_v27  ;;  %v4922_v27 = vld [vmem:[#allocation4 + $0xd0] sm:$0xff] }
 0xe57   :  { %12198 = vrcp.f32 %v4079_v34  ;;  %v13186_v34 = vpack.c.bf16 %v4923_v33, %v4922_v27 }
 0xe60   :  { %v12197_v36 = vpop.eup %12196 }
 0xe61   :  { %v4083_v32 = vmul.f32 %v12197_v36, %v4063_v16  ;;  %v12199_v38 = vpop.eup %12198  ;;  %v4930_v16 = vld [vmem:[#allocation4 + $0x100] sm:$0xff]  ;;  %v4931_v36 = vld [vmem:[#allocation4 + $0x108] sm:$0xff] }
 0xe62   :  { %v4086_v39 = vsub.f32 1.0, %v12199_v38  ;;  %v4088_v42 = vmul.f32 %v12199_v38, %v3852_v12  ;;  %v12043_v12 = vld [vmem:[%s13859_s2 + $0x4c] ss:$0 sps:$4 sm:$0x33]   ;;  %v4925_v38 = vld [vmem:[#allocation4 + $0xe0] sm:$0xff] }
 0xe63   :  { %v4084_v35 = vadd.f32 %v4083_v32, %v4082_v37  ;;  %v13194_v32 = vpack.c.bf16 %v4931_v36, %v4930_v16  ;;  %v4932_v37 = vld [vmem:[#allocation4 + $0x110] sm:$0xff] }
 0xe65   :  { %12200 = vtanh.f32 %v4084_v35  ;;  %v4933_v35 = vld [vmem:[#allocation4 + $0x118] sm:$0xff] }
 0xe6f   :  { %v12201_v40 = vpop.eup %12200 }
 0xe70   :  { %v4087_v41 = vmul.f32 %v12201_v40, %v4086_v39  ;;  %v4926_v39 = vld [vmem:[#allocation4 + $0xe8] sm:$0xff]  ;;  %v13202_v40 = vpack.c.bf16 %v4933_v35, %v4932_v37 }
 0xe72   :  { %v4089_v43 = vadd.f32 %v4088_v42, %v4087_v41  ;;  %v13205_v41 = vpack.c.bf16 %v4926_v39, %v4925_v38  ;;  %v4927_v42 = vld [vmem:[#allocation4 + $0xf0] sm:$0xff] }
 0xe74   :  { %10751 = vmatmul.mubr.msk.f32.vlgmr.msra.gmra.mrb[66].mxu0 %vm185_vm3, %v4089_v43  ;;  %10762 = vmatmul.mubr.msk.f32.vlgmr.msra.gmra.mrb[66].mxu1 %vm185_vm3, %v4089_v43 }
 0xe75   :  { %11692 = vmatpush3.bf16.msra.mxu0 %v12916_v4  ;;  %10772 = vmatprep.mubr.msk.f32.mxu0 %vm12466_vm2, %v12467_v30 }
 0xe76   :  { %11693 = vmatprep.subr.bf16.mxu0 %v12465_v18  ;;  %11698 = vmatpush3.bf16.msra.mxu1 %v12861_v1  ;;  %v12041_v1 = vld [vmem:[%s13859_s2 + $0x3c] sm:$0xff]  }
 0xe77   :  { %11699 = vmatprep.subr.bf16.mxu1 %v12465_v18  ;;  %10783 = vmatprep.mubr.msk.f32.mxu1 %vm12466_vm2, %v12467_v30 }
 0xe79   :  { %11695 = vmatpush3.bf16.msra.mxu0 %v12930_v8 }
 0xe7a   :  { %11702 = vmatprep.subr.bf16.mxu0 %v12465_v18  ;;  %11701 = vmatpush3.bf16.msra.mxu1 %v12871_v6  ;;  %v4303_v6 = vld [vmem:[#allocation2 + $0x30] sm:$0xff] }
 0xe7b   :  { %11708 = vmatprep.subr.bf16.mxu1 %v12465_v18 }
 0xe7c   :  { %10773 = vmatmul.mubr.msk.f32.vlgmr.msra.gmra.mrb[68].mxu0 %vm185_vm3, %v4089_v43 }
 0xe7d   :  { %11704 = vmatpush3.bf16.msra.mxu0 %v12914_v0  ;;  %10794 = vmatprep.mubr.msk.f32.mxu0 %vm12466_vm2, %v12467_v30  ;;  %v4311_v0 = vld [vmem:[#allocation2 + $0x70] sm:$0xff] }
 0xe7e   :  { %11705 = vmatprep.subr.bf16.mxu0 %v12465_v18 }
 0xe81   :  { %11707 = vmatpush3.bf16.msra.mxu0 %v12924_v7 }
 0xe82   :  { %10808 = vmatprep.subr.bf16.mxu0 %v12041_v1 }
 0xf47   :  { %v4159_v44 = vpop.f32.mrb[66].mxu0  ;;  %v4229_v46 = vpop.f32.mrb[66].mxu1 }
 0xf48   :  { %v4304_v47 = vadd.f32 %v4303_v6, %v4159_v44  ;;  %v10752_v48 = vpop.f32.mrb[67].mxu0  ;;  %v10763_v49 = vpop.f32.mrb[67].mxu1  ;;  %v4312_v51 = vadd.f32 %v4311_v0, %v4229_v46  ;;  %v4540_v6 = vld [vmem:[#allocation2 + $0x38] sm:$0xff] }
 0xf4a   :  { %v9458_v50 = vmul.f32 -1.442695, %v4304_v47  ;;  %v9459_v52 = vmul.f32 -1.442695, %v4312_v51  ;;  %v4548_v47 = vld [vmem:[#allocation2 + $0x78] sm:$0xff] }
 0xf4c   :  { %12202 = vpow2.f32 %v9458_v50 }
 0xf4d   :  { %12204 = vpow2.f32 %v9459_v52 }
 0xf4f   :  { %v4299_v54 = vpop.f32.mrb[68].mxu0 }
 0xf50   :  { %v10774_v55 = vpop.f32.mrb[69].mxu0  ;;  %v4300_v45 = vadd.f32 %v12984_v53, %v4299_v54 }
 0xf56   :  { %v12203_v7 = vpop.eup %12202 }
 0xf57   :  { %v4308_v57 = vadd.f32 1.0, %v12203_v7  ;;  %v12205_v59 = vpop.eup %12204  ;;  %v9471_v7 = vld [vmem:[%s13862_s5 + $0x6] ss:$0 sm:$0xff] }
 0xf58   :  { %v4316_v28 = vadd.f32 1.0, %v12205_v59 }
 0xf59   :  { %12206 = vrcp.f32 %v4308_v57 }
 0xf5a   :  { %12208 = vrcp.f32 %v4316_v28 }
 0xf63   :  { %v12207_v61 = vpop.eup %12206 }
 0xf64   :  { %v4320_v62 = vmul.f32 %v12207_v61, %v4300_v45  ;;  %v12209_v3 = vpop.eup %12208 }
 0xf65   :  { %v4323_v5 = vsub.f32 1.0, %v12209_v3  ;;  %v4325_v63 = vmul.f32 %v12209_v3, %v4089_v43  ;;  %v4928_v43 = vld [vmem:[#allocation4 + $0xf8] sm:$0xff] }
 0xf66   :  { %v4321_v2 = vadd.f32 %v4320_v62, %v4319_v31 }
 0xf68   :  { %12210 = vtanh.f32 %v4321_v2 }
 0xf72   :  { %v12211_v56 = vpop.eup %12210 }
 0xf73   :  { %v4324_v60 = vmul.f32 %v12211_v56, %v4323_v5  ;;  %v9489_v56 = vld [vmem:[%s13862_s5 + $0x7] ss:$0 sm:$0xff] }
 0xf75   :  { %v13121_v9 = vadd.f32 %v4325_v63, %v4324_v60 }
 0xf77   :  { %10784 = vmatmul.mubr.msk.f32.vlgmr.msra.gmra.mrb[68].mxu1 %vm185_vm3, %v13121_v9  ;;  %10795 = vmatmul.mubr.msk.f32.vlgmr.msra.gmra.mrb[70].mxu0 %vm185_vm3, %v13121_v9 }
 0xf78   :  { %11710 = vmatpush3.bf16.msra.mxu1 %v12916_v4  ;;  %10809 = vmatpush3.bf16.msra.mxu0 %v12041_v1  ;;  %v4634_v4 = vsel %vm116_vm1, %v12043_v12, 0  ;;  %v13213_v1 = vpack.c.bf16 %v4928_v43, %v4927_v42  ;;  %v4556_v43 = vld [vmem:[#allocation2 + $0xb8] sm:$0xff] }
 0xf79   :  { %11711 = vmatprep.subr.bf16.mxu1 %v12465_v18  ;;  %10810 = vmatprep.subr.bf16.mxu0 %v12042_v10 }
 0xf7a   :  { %10805 = vmatprep.mubr.msk.f32.mxu1 %vm12466_vm2, %v12467_v30  ;;  %10814 = vmatprep.mubr.msk.bf16.mxu0 %vm103_vm0, %v12045_v11 }
 0xf7c   :  { %11713 = vmatpush3.bf16.msra.mxu1 %v12930_v8  ;;  %10811 = vmatpush3.bf16.msra.mxu0 %v12042_v10  ;;  %v12046_v8 = vld [vmem:[%s13858_s1 + $0x8] sm:$0xff]  }
 0xf7d   :  { %12012 = vmatprep.subr.msk.bf16.mxu0 %vm116_vm1, %v12043_v12  ;;  %10822 = vmatprep.subr.bf16.mxu1 %v12044_v13 }
 0xf7f   :  { %10806 = vmatmul.mubr.msk.f32.vlgmr.msra.gmra.mrb[70].mxu1 %vm185_vm3, %v13121_v9 }
 0xf80   :  { %10813 = vmatpush3.bf16.msra.mxu0 %v4634_v4  ;;  %10823 = vmatpush3.bf16.msra.mxu1 %v12044_v13 }
 0xf81   :  { %10824 = vmatprep.subr.bf16.mxu1 %v12047_v14  ;;  %10836 = vmatprep.subr.bf16.mxu0 %v12049_v15 }
 0xf82   :  { %10828 = vmatprep.mubr.msk.bf16.mxu1 %vm103_vm0, %v12045_v11 }
 0xf83   :  { %10815 = vmatmul.mubr.msk.bf16.vlgmr.msra.gmra.mrb[72].mxu0 %vm103_vm0, %v12046_v8 }
 0xf84   :  { %10825 = vmatpush3.bf16.msra.mxu1 %v12047_v14  ;;  %10837 = vmatpush3.bf16.msra.mxu0 %v12049_v15 }
 0xf85   :  { %12013 = vmatprep.subr.msk.bf16.mxu1 %vm116_vm1, %v12048_v17  ;;  %10818 = vmatprep.mubr.msk.bf16.mxu0 %vm103_vm0, %v12050_v19 }
 0xf86   :  { %10838 = vmatprep.subr.bf16.mxu0 %v12052_v20 }
 0xf88   :  { %10827 = vmatpush3.bf16.msra.mxu1 %v4739_v23  ;;  %10839 = vmatpush3.bf16.msra.mxu0 %v12052_v20 }
 0xf89   :  { %11714 = vmatprep.subr.bf16.mxu1 %v12465_v18  ;;  %12014 = vmatprep.subr.msk.bf16.mxu0 %vm116_vm1, %v12053_v22 }
 0xf8b   :  { %10819 = vmatmul.mubr.msk.bf16.gmra.mrb[76].mxu0 %vm103_vm0, %v12051_v24  ;;  %10829 = vmatmul.mubr.msk.bf16.vlgmr.msra.gmra.mrb[72].mxu1 %vm103_vm0, %v12046_v8 }
 0xf8c   :  { %11716 = vmatpush3.bf16.msra.mxu1 %v13178_v25  ;;  %10841 = vmatpush3.bf16.msra.mxu0 %v4844_v26  ;;  %v9503_v26 = vld [vmem:[%s13862_s5 + $0x8] ss:$0 sm:$0xff] }
 0xf8d   :  { %10832 = vmatprep.mubr.msk.bf16.mxu1 %vm103_vm0, %v12050_v19  ;;  %10842 = vmatprep.mubr.msk.bf16.mxu0 %vm103_vm0, %v12045_v11 }
 0xf8e   :  { %11717 = vmatprep.subr.bf16.mxu1 %v12465_v18  ;;  %11726 = vmatprep.subr.bf16.mxu0 %v12465_v18 }
 0xf90   :  { %11719 = vmatpush3.bf16.msra.mxu1 %v13186_v34 }
 0xf91   :  { %11720 = vmatprep.subr.bf16.mxu1 %v12465_v18 }
 0xf93   :  { %10833 = vmatmul.mubr.msk.bf16.gmra.mrb[76].mxu1 %vm103_vm0, %v12051_v24  ;;  %10843 = vmatmul.mubr.msk.bf16.vlgmr.msra.gmra.mrb[80].mxu0 %vm103_vm0, %v12046_v8 }
 0xf94   :  { %10846 = vmatprep.mubr.msk.bf16.mxu0 %vm103_vm0, %v12050_v19  ;;  %10858 = vmatprep.mubr.msk.f32.mxu1 %vm12466_vm2, %v12467_v30 }
 0xf95   :  { %11728 = vmatpush3.bf16.msra.mxu0 %v13194_v32 }
 0xf96   :  { %11729 = vmatprep.subr.bf16.mxu0 %v12465_v18 }
 0xf99   :  { %11731 = vmatpush3.bf16.msra.mxu0 %v13202_v40 }
 0xf9a   :  { %11738 = vmatprep.subr.bf16.mxu0 %v12465_v18 }
 0xf9b   :  { %10847 = vmatmul.mubr.msk.bf16.gmra.mrb[84].mxu0 %vm103_vm0, %v12051_v24  ;;  %10859 = vmatmul.mubr.msk.f32.vlgmr.msra.gmra.mrb[80].mxu1 %vm185_vm3, %v12904_v58 }
 0xf9c   :  { %11722 = vmatpush3.bf16.msra.mxu1 %v13205_v41  ;;  %10869 = vmatprep.mubr.msk.f32.mxu1 %vm12466_vm2, %v12467_v30 }
 0xf9d   :  { %11723 = vmatprep.subr.bf16.mxu1 %v12465_v18  ;;  %10880 = vmatprep.mubr.msk.f32.mxu0 %vm12466_vm2, %v12467_v30 }
 0xfa0   :  { %11725 = vmatpush3.bf16.msra.mxu1 %v13213_v1 }
 0xfa1   :  { %11732 = vmatprep.subr.bf16.mxu1 %v12465_v18 }
 0xfa3   :  { %10870 = vmatmul.mubr.msk.f32.vlgmr.msra.gmra.mrb[82].mxu1 %vm185_vm3, %v12904_v58  ;;  %10881 = vmatmul.mubr.msk.f32.vlgmr.msra.gmra.mrb[88].mxu0 %vm185_vm3, %v12904_v58 }
 0xfa4   :  { %11734 = vmatpush3.bf16.msra.mxu1 %v13178_v25  ;;  %11740 = vmatpush3.bf16.msra.mxu0 %v13205_v41 }
 0xfa5   :  { %11735 = vmatprep.subr.bf16.mxu1 %v12465_v18  ;;  %11741 = vmatprep.subr.bf16.mxu0 %v12465_v18 }
 0xfa6   :  { %10891 = vmatprep.mubr.msk.f32.mxu1 %vm12466_vm2, %v12467_v30  ;;  %10902 = vmatprep.mubr.msk.f32.mxu0 %vm12466_vm2, %v12467_v30 }
 0xfa8   :  { %11737 = vmatpush3.bf16.msra.mxu1 %v13186_v34  ;;  %11743 = vmatpush3.bf16.msra.mxu0 %v13213_v1 }
 0xfa9   :  { %11744 = vmatprep.subr.bf16.mxu1 %v12465_v18  ;;  %11750 = vmatprep.subr.bf16.mxu0 %v12465_v18 }
0x104a   :  { %v4396_v44 = vpop.f32.mrb[68].mxu1  ;;  %v4466_v46 = vpop.f32.mrb[70].mxu0 }
0x104b   :  { %v4541_v48 = vadd.f32 %v4540_v6, %v4396_v44  ;;  %v4549_v49 = vadd.f32 %v4548_v47, %v4466_v46  ;;  %v10785_v50 = vpop.f32.mrb[69].mxu1  ;;  %v10796_v0 = vpop.f32.mrb[71].mxu0 }
0x104d   :  { %v9463_v51 = vmul.f32 -1.442695, %v4541_v48  ;;  %v9464_v52 = vmul.f32 -1.442695, %v4549_v49 }
0x104f   :  { %12212 = vpow2.f32 %v9463_v51 }
0x1050   :  { %12214 = vpow2.f32 %v9464_v52 }
0x1052   :  { %v4536_v54 = vpop.f32.mrb[70].mxu1 }
0x1053   :  { %v10807_v55 = vpop.f32.mrb[71].mxu1  ;;  %v4537_v27 = vadd.f32 %v12984_v53, %v4536_v54 }
0x1056   :  { %v10816_v57 = vpop.f32.mrb[72].mxu0 }
0x1057   :  { %v4679_v59 = vadd.f32 %v10816_v57, %v9471_v7  ;;  %v4670_v28 = vpop.f32.mrb[73].mxu0 }
0x1058   :  { %v4671_v45 = vadd.f32 %v9471_v7, %v4670_v28  ;;  %v10817_v61 = vpop.f32.mrb[74].mxu0 }
0x1059   :  { %v12213_v62 = vpop.eup %12212  ;;  %4703 = vst.msk [vmem:[#allocation2 + $0x10] sm:$0xff] %vm185_vm3, %v4679_v59  ;;  %v4682_v31 = vadd.f32 %v10817_v61, %v9471_v7  ;;  %v4673_v2 = vpop.f32.mrb[75].mxu0 }
0x105a   :  { %v4545_v3 = vadd.f32 1.0, %v12213_v62  ;;  %4701 = vst.msk [vmem:[#allocation2] sm:$0xff] %vm185_vm3, %v4671_v45  ;;  %v4674_v5 = vadd.f32 %v9471_v7, %v4673_v2  ;;  %v12215_v4 = vpop.eup %12214 }
0x105b   :  { %4704 = vst.msk [vmem:[#allocation2 + $0x18] sm:$0xff] %vm185_vm3, %v4682_v31  ;;  %v4553_v24 = vadd.f32 1.0, %v12215_v4 }
0x105c   :  { %12216 = vrcp.f32 %v4545_v3  ;;  %4702 = vst.msk [vmem:[#allocation2 + $0x8] sm:$0xff] %vm185_vm3, %v4674_v5 }
0x105d   :  { %12218 = vrcp.f32 %v4553_v24 }
0x105e   :  { %v10830_v60 = vpop.f32.mrb[72].mxu1  ;;  %v10820_v63 = vpop.f32.mrb[76].mxu0 }
0x105f   :  { %v4784_v10 = vadd.f32 %v10830_v60, %v9489_v56  ;;  %v4775_v11 = vpop.f32.mrb[73].mxu1  ;;  %v4695_v12 = vadd.f32 %v10820_v63, %v9471_v7  ;;  %v4686_v13 = vpop.f32.mrb[77].mxu0 }
0x1060   :  { %v4776_v14 = vadd.f32 %v9489_v56, %v4775_v11  ;;  %v10831_v15 = vpop.f32.mrb[74].mxu1  ;;  %v4687_v8 = vadd.f32 %v9471_v7, %v4686_v13  ;;  %v10821_v17 = vpop.f32.mrb[78].mxu0 }
0x1061   :  { %4808 = vst.msk [vmem:[#allocation2 + $0x50] sm:$0xff] %vm185_vm3, %v4784_v10  ;;  %v4787_v19 = vadd.f32 %v10831_v15, %v9489_v56  ;;  %v4778_v20 = vpop.f32.mrb[75].mxu1  ;;  %4707 = vst.msk [vmem:[#allocation2 + $0x30] sm:$0xff] %vm185_vm3, %v4695_v12  ;;  %v4698_v23 = vadd.f32 %v10821_v17, %v9471_v7  ;;  %v4689_v21 = vpop.f32.mrb[79].mxu0  ;;  %v5155_v54 = vld [vmem:[#allocation2] sm:$0xff] }
0x1062   :  { %4806 = vst.msk [vmem:[#allocation2 + $0x40] sm:$0xff] %vm185_vm3, %v4776_v14  ;;  %v4779_v29 = vadd.f32 %v9489_v56, %v4778_v20  ;;  %4705 = vst.msk [vmem:[#allocation2 + $0x20] sm:$0xff] %vm185_vm3, %v4687_v8  ;;  %v4690_v22 = vadd.f32 %v9471_v7, %v4689_v21 }
0x1063   :  { %4809 = vst.msk [vmem:[#allocation2 + $0x58] sm:$0xff] %vm185_vm3, %v4787_v19  ;;  %4708 = vst.msk [vmem:[#allocation2 + $0x38] sm:$0xff] %vm185_vm3, %v4698_v23 }
0x1064   :  { %4807 = vst.msk [vmem:[#allocation2 + $0x48] sm:$0xff] %vm185_vm3, %v4779_v29  ;;  %4706 = vst.msk [vmem:[#allocation2 + $0x28] sm:$0xff] %vm185_vm3, %v4690_v22  ;;  %v13278_v29 = vld [vmem:[%s13863_s6 + $0x2] ss:$0 sm:$0xff] }
0x1066   :  { %v12217_v33 = vpop.eup %12216  ;;  %v10834_v16 = vpop.f32.mrb[76].mxu1 }
0x1067   :  { %v10844_v36 = vpop.f32.mrb[80].mxu0  ;;  %v4557_v37 = vmul.f32 %v12217_v33, %v4537_v27  ;;  %v4800_v35 = vadd.f32 %v10834_v16, %v9489_v56  ;;  %v4791_v38 = vpop.f32.mrb[77].mxu1 }
0x1068   :  { %v4889_v39 = vadd.f32 %v10844_v36, %v9503_v26  ;;  %v4880_v42 = vpop.f32.mrb[81].mxu0  ;;  %v4792_v44 = vadd.f32 %v9489_v56, %v4791_v38  ;;  %v10835_v6 = vpop.f32.mrb[78].mxu1 }
0x1069   :  { %v4881_v46 = vadd.f32 %v9503_v26, %v4880_v42  ;;  %v10845_v47 = vpop.f32.mrb[82].mxu0  ;;  %v4558_v48 = vadd.f32 %v4557_v37, %v4556_v43  ;;  %4812 = vst.msk [vmem:[#allocation2 + $0x70] sm:$0xff] %vm185_vm3, %v4800_v35  ;;  %v4803_v49 = vadd.f32 %v10835_v6, %v9489_v56  ;;  %v4794_v50 = vpop.f32.mrb[79].mxu1  ;;  %v5163_v13 = vld [vmem:[#allocation2 + $0x40] sm:$0xff]  ;;  %v5393_v42 = vld [vmem:[#allocation2 + $0x8] sm:$0xff] }
0x106a   :  { %4913 = vst.msk [vmem:[#allocation2 + $0x90] sm:$0xff] %vm185_vm3, %v4889_v39  ;;  %v4892_v53 = vadd.f32 %v10845_v47, %v9503_v26  ;;  %v4883_v0 = vpop.f32.mrb[83].mxu0  ;;  %4810 = vst.msk [vmem:[#allocation2 + $0x60] sm:$0xff] %vm185_vm3, %v4792_v44  ;;  %v4795_v51 = vadd.f32 %v9489_v56, %v4794_v50  ;;  %v12219_v31 = vpop.eup %12218 }
0x106b   :  { %4911 = vst.msk [vmem:[#allocation2 + $0x80] sm:$0xff] %vm185_vm3, %v4881_v46  ;;  %v4884_v52 = vadd.f32 %v9503_v26, %v4883_v0  ;;  %12220 = vtanh.f32 %v4558_v48  ;;  %4813 = vst.msk [vmem:[#allocation2 + $0x78] sm:$0xff] %vm185_vm3, %v4803_v49  ;;  %v4560_v60 = vsub.f32 1.0, %v12219_v31  ;;  %v4562_v10 = vmul.f32 %v12219_v31, %v13121_v9  ;;  %v5401_v48 = vld [vmem:[#allocation2 + $0x48] sm:$0xff] }
0x106c   :  { %4914 = vst.msk [vmem:[#allocation2 + $0x98] sm:$0xff] %vm185_vm3, %v4892_v53  ;;  %4811 = vst.msk [vmem:[#allocation2 + $0x68] sm:$0xff] %vm185_vm3, %v4795_v51 }
0x106d   :  { %4912 = vst.msk [vmem:[#allocation2 + $0x88] sm:$0xff] %vm185_vm3, %v4884_v52 }
0x106e   :  { %v5011_v55 = vpop.f32.mrb[80].mxu1  ;;  %v10848_v7 = vpop.f32.mrb[84].mxu0 }
0x106f   :  { %v5156_v57 = vadd.f32 %v5155_v54, %v5011_v55  ;;  %v10860_v59 = vpop.f32.mrb[81].mxu1  ;;  %v4905_v28 = vadd.f32 %v10848_v7, %v9503_v26  ;;  %v4896_v45 = vpop.f32.mrb[85].mxu0 }
0x1070   :  { %v4897_v61 = vadd.f32 %v9503_v26, %v4896_v45  ;;  %v10849_v62 = vpop.f32.mrb[86].mxu0 }
0x1071   :  { %v9516_v2 = vmul.f32 -1.442695, %v5156_v57  ;;  %4917 = vst.msk [vmem:[#allocation2 + $0xb0] sm:$0xff] %vm185_vm3, %v4905_v28  ;;  %v4908_v3 = vadd.f32 %v10849_v62, %v9503_v26  ;;  %v4899_v5 = vpop.f32.mrb[87].mxu0 }
0x1072   :  { %4915 = vst.msk [vmem:[#allocation2 + $0xa0] sm:$0xff] %vm185_vm3, %v4897_v61  ;;  %v4900_v56 = vadd.f32 %v9503_v26, %v4899_v5  ;;  %v5171_v27 = vld [vmem:[#allocation2 + $0x80] sm:$0xff] }
0x1073   :  { %12222 = vpow2.f32 %v9516_v2  ;;  %4918 = vst.msk [vmem:[#allocation2 + $0xb8] sm:$0xff] %vm185_vm3, %v4908_v3 }
0x1074   :  { %4916 = vst.msk [vmem:[#allocation2 + $0xa8] sm:$0xff] %vm185_vm3, %v4900_v56  ;;  %v5409_v28 = vld [vmem:[#allocation2 + $0x88] sm:$0xff] }
0x1075   :  { %v12221_v63 = vpop.eup %12220 }
0x1076   :  { %v4561_v11 = vmul.f32 %v12221_v63, %v4560_v60  ;;  %v5081_v12 = vpop.f32.mrb[82].mxu1  ;;  %v5151_v4 = vpop.f32.mrb[88].mxu0  ;;  %v5631_v60 = vld [vmem:[#allocation2 + $0x10] sm:$0xff] }
0x1077   :  { %v5164_v14 = vadd.f32 %v5163_v13, %v5081_v12  ;;  %v10871_v15 = vpop.f32.mrb[83].mxu1  ;;  %v10882_v8 = vpop.f32.mrb[89].mxu0  ;;  %v5152_v22 = vadd.f32 %v13278_v29, %v5151_v4  ;;  %v5639_v4 = vld [vmem:[#allocation2 + $0x50] sm:$0xff] }
0x1078   :  { %v13273_v17 = vadd.f32 %v4562_v10, %v4561_v11 }
0x1079   :  { %v9517_v19 = vmul.f32 -1.442695, %v5164_v14 }
0x107b   :  { %12224 = vpow2.f32 %v9517_v19 }
0x107d   :  { %v12223_v20 = vpop.eup %12222 }
0x107e   :  { %v5160_v23 = vadd.f32 1.0, %v12223_v20 }
0x1080   :  { %12226 = vrcp.f32 %v5160_v23 }
0x1085   :  { %v12225_v21 = vpop.eup %12224 }
0x1086   :  { %v5168_v9 = vadd.f32 1.0, %v12225_v21 }
0x1088   :  { %12228 = vrcp.f32 %v5168_v9 }
0x108a   :  { %v12227_v24 = vpop.eup %12226 }
0x108b   :  { %v5172_v26 = vmul.f32 %v12227_v24, %v5152_v22 }
0x108d   :  { %v5173_v33 = vadd.f32 %v5172_v26, %v5171_v27  ;;  %v5647_v27 = vld [vmem:[#allocation2 + $0x90] sm:$0xff] }
0x108f   :  { %12230 = vtanh.f32 %v5173_v33 }
0x1092   :  { %v12229_v16 = vpop.eup %12228 }
0x1093   :  { %v5175_v36 = vsub.f32 1.0, %v12229_v16  ;;  %v5177_v38 = vmul.f32 %v12229_v16, %v12904_v58 }
0x1099   :  { %v12231_v37 = vpop.eup %12230 }
0x109a   :  { %v5176_v35 = vmul.f32 %v12231_v37, %v5175_v36 }
0x109c   :  { %v5178_v39 = vadd.f32 %v5177_v38, %v5176_v35 }
0x109e   :  { %5179 = vst.msk [vmem:[#allocation3] sm:$0xff] %vm185_vm3, %v5178_v39  ;;  %10892 = vmatmul.mubr.msk.f32.vlgmr.msra.gmra.mrb[84].mxu1 %vm185_vm3, %v5178_v39  ;;  %10903 = vmatmul.mubr.msk.f32.vlgmr.msra.gmra.mrb[90].mxu0 %vm185_vm3, %v5178_v39 }
0x109f   :  { %11746 = vmatpush3.bf16.msra.mxu1 %v13194_v32  ;;  %10913 = vmatprep.mubr.msk.f32.mxu1 %vm12466_vm2, %v12467_v30 }
0x10a0   :  { %11747 = vmatprep.subr.bf16.mxu1 %v12465_v18  ;;  %11752 = vmatpush3.bf16.msra.mxu0 %v13178_v25 }
0x10a1   :  { %11753 = vmatprep.subr.bf16.mxu0 %v12465_v18  ;;  %10924 = vmatprep.mubr.msk.f32.mxu0 %vm12466_vm2, %v12467_v30 }
0x10a3   :  { %11749 = vmatpush3.bf16.msra.mxu1 %v13202_v40 }
0x10a4   :  { %11756 = vmatprep.subr.bf16.mxu1 %v12465_v18  ;;  %11755 = vmatpush3.bf16.msra.mxu0 %v13186_v34 }
0x10a5   :  { %11762 = vmatprep.subr.bf16.mxu0 %v12465_v18 }
0x10a6   :  { %10914 = vmatmul.mubr.msk.f32.vlgmr.msra.gmra.mrb[86].mxu1 %vm185_vm3, %v5178_v39 }
0x10a7   :  { %11758 = vmatpush3.bf16.msra.mxu1 %v13205_v41  ;;  %10935 = vmatprep.mubr.msk.f32.mxu1 %vm12466_vm2, %v12467_v30 }
0x10a8   :  { %11759 = vmatprep.subr.bf16.mxu1 %v12465_v18 }
0x10ab   :  { %11761 = vmatpush3.bf16.msra.mxu1 %v13213_v1 }
0x10ac   :  { %11768 = vmatprep.subr.bf16.mxu1 %v12465_v18 }
0x1171   :  { %v5249_v58 = vpop.f32.mrb[84].mxu1  ;;  %v5319_v43 = vpop.f32.mrb[90].mxu0 }
0x1172   :  { %v5394_v44 = vadd.f32 %v5393_v42, %v5249_v58  ;;  %v10893_v6 = vpop.f32.mrb[85].mxu1  ;;  %v10904_v46 = vpop.f32.mrb[91].mxu0  ;;  %v5402_v49 = vadd.f32 %v5401_v48, %v5319_v43  ;;  %v5869_v42 = vld [vmem:[#allocation2 + $0x18] sm:$0xff] }
0x1173   :  { %v5877_v48 = vld [vmem:[#allocation2 + $0x58] sm:$0xff] }
0x1174   :  { %v9521_v47 = vmul.f32 -1.442695, %v5394_v44  ;;  %v9522_v50 = vmul.f32 -1.442695, %v5402_v49 }
0x1176   :  { %12232 = vpow2.f32 %v9521_v47 }
0x1177   :  { %12234 = vpow2.f32 %v9522_v50 }
0x1179   :  { %v5389_v53 = vpop.f32.mrb[86].mxu1 }
0x117a   :  { %v10915_v0 = vpop.f32.mrb[87].mxu1  ;;  %v5390_v7 = vadd.f32 %v13278_v29, %v5389_v53 }
0x1180   :  { %v12233_v51 = vpop.eup %12232 }
0x1181   :  { %v5398_v52 = vadd.f32 1.0, %v12233_v51  ;;  %v12235_v54 = vpop.eup %12234 }
0x1182   :  { %v5406_v55 = vadd.f32 1.0, %v12235_v54 }
0x1183   :  { %12236 = vrcp.f32 %v5398_v52 }
0x1184   :  { %12238 = vrcp.f32 %v5406_v55 }
0x118d   :  { %v12237_v57 = vpop.eup %12236 }
0x118e   :  { %v5410_v59 = vmul.f32 %v12237_v57, %v5390_v7  ;;  %v12239_v61 = vpop.eup %12238 }
0x118f   :  { %v5413_v62 = vsub.f32 1.0, %v12239_v61  ;;  %v5415_v3 = vmul.f32 %v12239_v61, %v5178_v39 }
0x1190   :  { %v5411_v45 = vadd.f32 %v5410_v59, %v5409_v28  ;;  %v5885_v28 = vld [vmem:[#allocation2 + $0x98] sm:$0xff] }
0x1192   :  { %12240 = vtanh.f32 %v5411_v45 }
0x119c   :  { %v12241_v31 = vpop.eup %12240 }
0x119d   :  { %v5414_v2 = vmul.f32 %v12241_v31, %v5413_v62 }
0x119f   :  { %v5416_v5 = vadd.f32 %v5415_v3, %v5414_v2 }
0x11a1   :  { %5417 = vst.msk [vmem:[#allocation3 + $0x8] sm:$0xff] %vm185_vm3, %v5416_v5  ;;  %10925 = vmatmul.mubr.msk.f32.vlgmr.msra.gmra.mrb[92].mxu0 %vm185_vm3, %v5416_v5  ;;  %10936 = vmatmul.mubr.msk.f32.vlgmr.msra.gmra.mrb[88].mxu1 %vm185_vm3, %v5416_v5 }
0x11a2   :  { %11764 = vmatpush3.bf16.msra.mxu0 %v13194_v32  ;;  %10946 = vmatprep.mubr.msk.f32.mxu0 %vm12466_vm2, %v12467_v30 }
0x11a3   :  { %11765 = vmatprep.subr.bf16.mxu0 %v12465_v18  ;;  %11770 = vmatpush3.bf16.msra.mxu1 %v13178_v25 }
0x11a4   :  { %11771 = vmatprep.subr.bf16.mxu1 %v12465_v18  ;;  %10957 = vmatprep.mubr.msk.f32.mxu1 %vm12466_vm2, %v12467_v30 }
0x11a6   :  { %11767 = vmatpush3.bf16.msra.mxu0 %v13202_v40 }
0x11a7   :  { %11774 = vmatprep.subr.bf16.mxu0 %v12465_v18  ;;  %11773 = vmatpush3.bf16.msra.mxu1 %v13186_v34 }
0x11a8   :  { %11780 = vmatprep.subr.bf16.mxu1 %v12465_v18 }
0x11a9   :  { %10947 = vmatmul.mubr.msk.f32.vlgmr.msra.gmra.mrb[94].mxu0 %vm185_vm3, %v5416_v5 }
0x11aa   :  { %11776 = vmatpush3.bf16.msra.mxu0 %v13205_v41  ;;  %10968 = vmatprep.mubr.msk.f32.mxu0 %vm12466_vm2, %v12467_v30 }
0x11ab   :  { %11777 = vmatprep.subr.bf16.mxu0 %v12465_v18 }
0x11ae   :  { %11779 = vmatpush3.bf16.msra.mxu0 %v13213_v1 }
0x11af   :  { %11786 = vmatprep.subr.bf16.mxu0 %v12465_v18 }
0x1274   :  { %v5487_v56 = vpop.f32.mrb[92].mxu0  ;;  %v5557_v63 = vpop.f32.mrb[88].mxu1 }
0x1275   :  { %v5632_v10 = vadd.f32 %v5631_v60, %v5487_v56  ;;  %v10926_v11 = vpop.f32.mrb[93].mxu0  ;;  %v10937_v12 = vpop.f32.mrb[89].mxu1  ;;  %v5640_v14 = vadd.f32 %v5639_v4, %v5557_v63  ;;  %v6107_v60 = vld [vmem:[#allocation2 + $0x20] sm:$0xff] }
0x1276   :  { %v6115_v4 = vld [vmem:[#allocation2 + $0x60] sm:$0xff] }
0x1277   :  { %v9526_v13 = vmul.f32 -1.442695, %v5632_v10  ;;  %v9527_v15 = vmul.f32 -1.442695, %v5640_v14 }
0x1279   :  { %12242 = vpow2.f32 %v9526_v13 }
0x127a   :  { %12244 = vpow2.f32 %v9527_v15 }
0x127c   :  { %v5627_v8 = vpop.f32.mrb[94].mxu0 }
0x127d   :  { %v10948_v19 = vpop.f32.mrb[95].mxu0  ;;  %v5628_v22 = vadd.f32 %v13278_v29, %v5627_v8 }
0x1283   :  { %v12243_v20 = vpop.eup %12242 }
0x1284   :  { %v5636_v23 = vadd.f32 1.0, %v12243_v20  ;;  %v12245_v21 = vpop.eup %12244 }
0x1285   :  { %v5644_v9 = vadd.f32 1.0, %v12245_v21 }
0x1286   :  { %12246 = vrcp.f32 %v5636_v23 }
0x1287   :  { %12248 = vrcp.f32 %v5644_v9 }
0x1290   :  { %v12247_v24 = vpop.eup %12246 }
0x1291   :  { %v5648_v26 = vmul.f32 %v12247_v24, %v5628_v22  ;;  %v12249_v16 = vpop.eup %12248 }
0x1292   :  { %v5651_v36 = vsub.f32 1.0, %v12249_v16  ;;  %v5653_v38 = vmul.f32 %v12249_v16, %v5416_v5 }
0x1293   :  { %v5649_v33 = vadd.f32 %v5648_v26, %v5647_v27  ;;  %v6123_v27 = vld [vmem:[#allocation2 + $0xa0] sm:$0xff] }
0x1295   :  { %12250 = vtanh.f32 %v5649_v33 }
0x129f   :  { %v12251_v37 = vpop.eup %12250 }
0x12a0   :  { %v5652_v35 = vmul.f32 %v12251_v37, %v5651_v36 }
0x12a2   :  { %v5654_v39 = vadd.f32 %v5653_v38, %v5652_v35 }
0x12a4   :  { %5655 = vst.msk [vmem:[#allocation3 + $0x10] sm:$0xff] %vm185_vm3, %v5654_v39  ;;  %10958 = vmatmul.mubr.msk.f32.vlgmr.msra.gmra.mrb[90].mxu1 %vm185_vm3, %v5654_v39  ;;  %10969 = vmatmul.mubr.msk.f32.vlgmr.msra.gmra.mrb[96].mxu0 %vm185_vm3, %v5654_v39 }
0x12a5   :  { %11782 = vmatpush3.bf16.msra.mxu1 %v13194_v32  ;;  %10979 = vmatprep.mubr.msk.f32.mxu1 %vm12466_vm2, %v12467_v30 }
0x12a6   :  { %11783 = vmatprep.subr.bf16.mxu1 %v12465_v18  ;;  %11788 = vmatpush3.bf16.msra.mxu0 %v13178_v25 }
0x12a7   :  { %11789 = vmatprep.subr.bf16.mxu0 %v12465_v18  ;;  %10990 = vmatprep.mubr.msk.f32.mxu0 %vm12466_vm2, %v12467_v30 }
0x12a9   :  { %11785 = vmatpush3.bf16.msra.mxu1 %v13202_v40 }
0x12aa   :  { %11792 = vmatprep.subr.bf16.mxu1 %v12465_v18  ;;  %11791 = vmatpush3.bf16.msra.mxu0 %v13186_v34 }
0x12ab   :  { %11798 = vmatprep.subr.bf16.mxu0 %v12465_v18 }
0x12ac   :  { %10980 = vmatmul.mubr.msk.f32.vlgmr.msra.gmra.mrb[92].mxu1 %vm185_vm3, %v5654_v39 }
0x12ad   :  { %11794 = vmatpush3.bf16.msra.mxu1 %v13205_v41  ;;  %11001 = vmatprep.mubr.msk.f32.mxu1 %vm12466_vm2, %v12467_v30 }
0x12ae   :  { %11795 = vmatprep.subr.bf16.mxu1 %v12465_v18 }
0x12b1   :  { %11797 = vmatpush3.bf16.msra.mxu1 %v13213_v1 }
0x12b2   :  { %11804 = vmatprep.subr.bf16.mxu1 %v12465_v18 }
0x1377   :  { %v5725_v58 = vpop.f32.mrb[90].mxu1  ;;  %v5795_v43 = vpop.f32.mrb[96].mxu0 }
0x1378   :  { %v5870_v44 = vadd.f32 %v5869_v42, %v5725_v58  ;;  %v10959_v6 = vpop.f32.mrb[91].mxu1  ;;  %v10970_v46 = vpop.f32.mrb[97].mxu0  ;;  %v5878_v49 = vadd.f32 %v5877_v48, %v5795_v43  ;;  %v6345_v42 = vld [vmem:[#allocation2 + $0x28] sm:$0xff] }
0x1379   :  { %v6353_v48 = vld [vmem:[#allocation2 + $0x68] sm:$0xff] }
0x137a   :  { %v9531_v47 = vmul.f32 -1.442695, %v5870_v44  ;;  %v9532_v50 = vmul.f32 -1.442695, %v5878_v49 }
0x137c   :  { %12252 = vpow2.f32 %v9531_v47 }
0x137d   :  { %12254 = vpow2.f32 %v9532_v50 }
0x137f   :  { %v5865_v53 = vpop.f32.mrb[92].mxu1 }
0x1380   :  { %v10981_v0 = vpop.f32.mrb[93].mxu1  ;;  %v5866_v7 = vadd.f32 %v13278_v29, %v5865_v53 }
0x1386   :  { %v12253_v51 = vpop.eup %12252 }
0x1387   :  { %v5874_v52 = vadd.f32 1.0, %v12253_v51  ;;  %v12255_v54 = vpop.eup %12254 }
0x1388   :  { %v5882_v55 = vadd.f32 1.0, %v12255_v54 }
0x1389   :  { %12256 = vrcp.f32 %v5874_v52 }
0x138a   :  { %12258 = vrcp.f32 %v5882_v55 }
0x1393   :  { %v12257_v57 = vpop.eup %12256 }
0x1394   :  { %v5886_v59 = vmul.f32 %v12257_v57, %v5866_v7  ;;  %v12259_v61 = vpop.eup %12258 }
0x1395   :  { %v5889_v62 = vsub.f32 1.0, %v12259_v61  ;;  %v5891_v3 = vmul.f32 %v12259_v61, %v5654_v39 }
0x1396   :  { %v5887_v45 = vadd.f32 %v5886_v59, %v5885_v28  ;;  %v6361_v28 = vld [vmem:[#allocation2 + $0xa8] sm:$0xff] }
0x1398   :  { %12260 = vtanh.f32 %v5887_v45 }
0x13a2   :  { %v12261_v31 = vpop.eup %12260 }
0x13a3   :  { %v5890_v2 = vmul.f32 %v12261_v31, %v5889_v62 }
0x13a5   :  { %v5892_v5 = vadd.f32 %v5891_v3, %v5890_v2 }
0x13a7   :  { %5893 = vst.msk [vmem:[#allocation3 + $0x18] sm:$0xff] %vm185_vm3, %v5892_v5  ;;  %10991 = vmatmul.mubr.msk.f32.vlgmr.msra.gmra.mrb[98].mxu0 %vm185_vm3, %v5892_v5  ;;  %11002 = vmatmul.mubr.msk.f32.vlgmr.msra.gmra.mrb[94].mxu1 %vm185_vm3, %v5892_v5 }
0x13a8   :  { %11800 = vmatpush3.bf16.msra.mxu0 %v13194_v32  ;;  %11012 = vmatprep.mubr.msk.f32.mxu0 %vm12466_vm2, %v12467_v30 }
0x13a9   :  { %11801 = vmatprep.subr.bf16.mxu0 %v12465_v18  ;;  %11806 = vmatpush3.bf16.msra.mxu1 %v13178_v25 }
0x13aa   :  { %11807 = vmatprep.subr.bf16.mxu1 %v12465_v18  ;;  %11023 = vmatprep.mubr.msk.f32.mxu1 %vm12466_vm2, %v12467_v30 }
0x13ac   :  { %11803 = vmatpush3.bf16.msra.mxu0 %v13202_v40 }
0x13ad   :  { %11810 = vmatprep.subr.bf16.mxu0 %v12465_v18  ;;  %11809 = vmatpush3.bf16.msra.mxu1 %v13186_v34 }
0x13ae   :  { %11816 = vmatprep.subr.bf16.mxu1 %v12465_v18 }
0x13af   :  { %11013 = vmatmul.mubr.msk.f32.vlgmr.msra.gmra.mrb[100].mxu0 %vm185_vm3, %v5892_v5 }
0x13b0   :  { %11812 = vmatpush3.bf16.msra.mxu0 %v13205_v41  ;;  %11034 = vmatprep.mubr.msk.f32.mxu0 %vm12466_vm2, %v12467_v30 }
0x13b1   :  { %11813 = vmatprep.subr.bf16.mxu0 %v12465_v18 }
0x13b4   :  { %11815 = vmatpush3.bf16.msra.mxu0 %v13213_v1 }
0x13b5   :  { %11822 = vmatprep.subr.bf16.mxu0 %v12465_v18 }
0x147a   :  { %v5963_v56 = vpop.f32.mrb[98].mxu0  ;;  %v6033_v63 = vpop.f32.mrb[94].mxu1 }
0x147b   :  { %v6108_v10 = vadd.f32 %v6107_v60, %v5963_v56  ;;  %v10992_v11 = vpop.f32.mrb[99].mxu0  ;;  %v11003_v12 = vpop.f32.mrb[95].mxu1  ;;  %v6116_v14 = vadd.f32 %v6115_v4, %v6033_v63 }
0x147d   :  { %v9536_v13 = vmul.f32 -1.442695, %v6108_v10  ;;  %v9537_v15 = vmul.f32 -1.442695, %v6116_v14 }
0x147f   :  { %12262 = vpow2.f32 %v9536_v13 }
0x1480   :  { %12264 = vpow2.f32 %v9537_v15 }
0x1482   :  { %v6103_v8 = vpop.f32.mrb[100].mxu0 }
0x1483   :  { %v11014_v19 = vpop.f32.mrb[101].mxu0  ;;  %v6104_v22 = vadd.f32 %v13278_v29, %v6103_v8 }
0x1489   :  { %v12263_v20 = vpop.eup %12262 }
0x148a   :  { %v6112_v23 = vadd.f32 1.0, %v12263_v20  ;;  %v12265_v21 = vpop.eup %12264 }
0x148b   :  { %v6120_v9 = vadd.f32 1.0, %v12265_v21 }
0x148c   :  { %12266 = vrcp.f32 %v6112_v23 }
0x148d   :  { %12268 = vrcp.f32 %v6120_v9 }
0x1496   :  { %v12267_v24 = vpop.eup %12266 }
0x1497   :  { %v6124_v26 = vmul.f32 %v12267_v24, %v6104_v22  ;;  %v12269_v16 = vpop.eup %12268  ;;  %v6599_v22 = vld [vmem:[#allocation2 + $0xb0] sm:$0xff] }
0x1498   :  { %v6127_v36 = vsub.f32 1.0, %v12269_v16  ;;  %v6129_v38 = vmul.f32 %v12269_v16, %v5892_v5 }
0x1499   :  { %v6125_v33 = vadd.f32 %v6124_v26, %v6123_v27 }
0x149b   :  { %12270 = vtanh.f32 %v6125_v33 }
0x14a5   :  { %v12271_v37 = vpop.eup %12270 }
0x14a6   :  { %v6128_v35 = vmul.f32 %v12271_v37, %v6127_v36  ;;  %v6847_v37 = vld [vmem:[#allocation3 + $0x8] sm:$0xff] }
0x14a8   :  { %v6130_v39 = vadd.f32 %v6129_v38, %v6128_v35  ;;  %v6846_v38 = vld [vmem:[#allocation3] sm:$0xff] }
0x14aa   :  { %6131 = vst.msk [vmem:[#allocation3 + $0x20] sm:$0xff] %vm185_vm3, %v6130_v39  ;;  %11024 = vmatmul.mubr.msk.f32.vlgmr.msra.gmra.mrb[96].mxu1 %vm185_vm3, %v6130_v39  ;;  %11035 = vmatmul.mubr.msk.f32.vlgmr.msra.gmra.mrb[102].mxu0 %vm185_vm3, %v6130_v39 }
0x14ab   :  { %11818 = vmatpush3.bf16.msra.mxu1 %v13194_v32  ;;  %11045 = vmatprep.mubr.msk.f32.mxu1 %vm12466_vm2, %v12467_v30 }
0x14ac   :  { %11819 = vmatprep.subr.bf16.mxu1 %v12465_v18  ;;  %11824 = vmatpush3.bf16.msra.mxu0 %v13178_v25 }
0x14ad   :  { %11825 = vmatprep.subr.bf16.mxu0 %v12465_v18  ;;  %11056 = vmatprep.mubr.msk.f32.mxu0 %vm12466_vm2, %v12467_v30 }
0x14af   :  { %11821 = vmatpush3.bf16.msra.mxu1 %v13202_v40 }
0x14b0   :  { %11828 = vmatprep.subr.bf16.mxu1 %v12465_v18  ;;  %11827 = vmatpush3.bf16.msra.mxu0 %v13186_v34 }
0x14b1   :  { %11834 = vmatprep.subr.bf16.mxu0 %v12465_v18 }
0x14b2   :  { %11046 = vmatmul.mubr.msk.f32.vlgmr.msra.gmra.mrb[98].mxu1 %vm185_vm3, %v6130_v39 }
0x14b3   :  { %11830 = vmatpush3.bf16.msra.mxu1 %v13205_v41  ;;  %11067 = vmatprep.mubr.msk.f32.mxu1 %vm12466_vm2, %v12467_v30 }
0x14b4   :  { %11831 = vmatprep.subr.bf16.mxu1 %v12465_v18 }
0x14b7   :  { %11833 = vmatpush3.bf16.msra.mxu1 %v13213_v1 }
0x14b8   :  { %11840 = vmatprep.subr.bf16.mxu1 %v12465_v18 }
0x157d   :  { %v6201_v58 = vpop.f32.mrb[96].mxu1  ;;  %v6271_v43 = vpop.f32.mrb[102].mxu0 }
0x157e   :  { %v6346_v44 = vadd.f32 %v6345_v42, %v6201_v58  ;;  %v11025_v6 = vpop.f32.mrb[97].mxu1  ;;  %v11036_v46 = vpop.f32.mrb[103].mxu0  ;;  %v6354_v49 = vadd.f32 %v6353_v48, %v6271_v43  ;;  %v13433_v58 = vpack.c.bf16 %v6847_v37, %v6846_v38  ;;  %v12056_v42 = vld [vmem:[%s13860_s3 + $0x40] sm:$0xff]   ;;  %v6849_v43 = vld [vmem:[#allocation3 + $0x18] sm:$0xff] }
0x157f   :  { %v6850_v46 = vld [vmem:[#allocation3 + $0x20] sm:$0xff] }
0x1580   :  { %v9541_v47 = vmul.f32 -1.442695, %v6346_v44  ;;  %v9542_v50 = vmul.f32 -1.442695, %v6354_v49  ;;  %v7166_v49 = vld [vmem:[#allocation4 + $0x128] sm:$0xff] }
0x1582   :  { %12272 = vpow2.f32 %v9541_v47  ;;  %v12057_v47 = vld [vmem:[%s13860_s3 + $0x48] sm:$0xff]  }
0x1583   :  { %12274 = vpow2.f32 %v9542_v50 }
0x1585   :  { %v6341_v53 = vpop.f32.mrb[98].mxu1 }
0x1586   :  { %v11047_v0 = vpop.f32.mrb[99].mxu1  ;;  %v6342_v7 = vadd.f32 %v13278_v29, %v6341_v53  ;;  %v12058_v53 = vld [vmem:[%s13860_s3 + $0x50] sm:$0xff]  }
0x1587   :  { %v7167_v0 = vld [vmem:[#allocation4 + $0x130] sm:$0xff] }
0x158c   :  { %v12273_v51 = vpop.eup %12272 }
0x158d   :  { %v6350_v52 = vadd.f32 1.0, %v12273_v51  ;;  %v12275_v54 = vpop.eup %12274  ;;  %v7168_v51 = vld [vmem:[#allocation4 + $0x138] sm:$0xff] }
0x158e   :  { %v6358_v55 = vadd.f32 1.0, %v12275_v54  ;;  %v13475_v54 = vpack.c.bf16 %v7168_v51, %v7167_v0  ;;  %v7172_v0 = vld [vmem:[#allocation4 + $0x150] sm:$0xff]  ;;  %v7173_v51 = vld [vmem:[#allocation4 + $0x158] sm:$0xff] }
0x158f   :  { %12276 = vrcp.f32 %v6350_v52  ;;  %v12059_v52 = vld [vmem:[%s13860_s3 + $0x58] sm:$0xff]  }
0x1590   :  { %12278 = vrcp.f32 %v6358_v55 }
0x1599   :  { %v12277_v57 = vpop.eup %12276 }
0x159a   :  { %v6362_v59 = vmul.f32 %v12277_v57, %v6342_v7  ;;  %v12279_v61 = vpop.eup %12278  ;;  %v6821_v7 = vld [vmem:[#allocation2 + $0x38] sm:$0xff] }
0x159b   :  { %v6365_v62 = vsub.f32 1.0, %v12279_v61  ;;  %v6367_v3 = vmul.f32 %v12279_v61, %v6130_v39  ;;  %v12055_v39 = vld [vmem:[%s13860_s3 + $0x38] sm:$0xff]  }
0x159c   :  { %v6363_v45 = vadd.f32 %v6362_v59, %v6361_v28 }
0x159e   :  { %12280 = vtanh.f32 %v6363_v45 }
0x15a8   :  { %v12281_v31 = vpop.eup %12280 }
0x15a9   :  { %v6366_v2 = vmul.f32 %v12281_v31, %v6365_v62  ;;  %v6829_v62 = vld [vmem:[#allocation2 + $0x78] sm:$0xff] }
0x15ab   :  { %v6368_v5 = vadd.f32 %v6367_v3, %v6366_v2  ;;  %v13483_v2 = vld [vmem:[%s13862_s5 + $0x9] ss:$0 sm:$0xff] }
0x15ad   :  { %6369 = vst.msk [vmem:[#allocation3 + $0x28] sm:$0xff] %vm185_vm3, %v6368_v5  ;;  %11057 = vmatmul.mubr.msk.f32.vlgmr.msra.gmra.mrb[104].mxu0 %vm185_vm3, %v6368_v5  ;;  %11068 = vmatmul.mubr.msk.f32.vlgmr.msra.gmra.mrb[100].mxu1 %vm185_vm3, %v6368_v5 }
0x15ae   :  { %11836 = vmatpush3.bf16.msra.mxu0 %v13194_v32  ;;  %11078 = vmatprep.mubr.msk.f32.mxu0 %vm12466_vm2, %v12467_v30 }
0x15af   :  { %11837 = vmatprep.subr.bf16.mxu0 %v12465_v18  ;;  %11842 = vmatpush3.bf16.msra.mxu1 %v13178_v25  ;;  %v12054_v25 = vld [vmem:[%s13860_s3 + $0x30] sm:$0xff]  }
0x15b0   :  { %11843 = vmatprep.subr.bf16.mxu1 %v12465_v18  ;;  %11089 = vmatprep.mubr.msk.f32.mxu1 %vm12466_vm2, %v12467_v30 }
0x15b2   :  { %11839 = vmatpush3.bf16.msra.mxu0 %v13202_v40 }
0x15b3   :  { %11846 = vmatprep.subr.bf16.mxu0 %v12465_v18  ;;  %11845 = vmatpush3.bf16.msra.mxu1 %v13186_v34  ;;  %v6583_v34 = vld [vmem:[#allocation2 + $0x30] sm:$0xff] }
0x15b4   :  { %11852 = vmatprep.subr.bf16.mxu1 %v12465_v18  ;;  %v6851_v44 = vld [vmem:[#allocation3 + $0x28] sm:$0xff] }
0x15b5   :  { %11079 = vmatmul.mubr.msk.f32.vlgmr.msra.gmra.mrb[106].mxu0 %vm185_vm3, %v6368_v5  ;;  %v13450_v48 = vpack.c.bf16 %v6851_v44, %v6850_v46 }
0x15b6   :  { %11848 = vmatpush3.bf16.msra.mxu0 %v13205_v41  ;;  %11100 = vmatprep.mubr.msk.f32.mxu0 %vm12466_vm2, %v12467_v30  ;;  %v6591_v41 = vld [vmem:[#allocation2 + $0x70] sm:$0xff] }
0x15b7   :  { %11849 = vmatprep.subr.bf16.mxu0 %v12465_v18 }
0x15ba   :  { %11851 = vmatpush3.bf16.msra.mxu0 %v13213_v1 }
0x15bb   :  { %11114 = vmatprep.subr.bf16.mxu0 %v12054_v25 }
0x1680   :  { %v6439_v56 = vpop.f32.mrb[104].mxu0  ;;  %v6509_v60 = vpop.f32.mrb[100].mxu1 }
0x1681   :  { %v6584_v63 = vadd.f32 %v6583_v34, %v6439_v56  ;;  %v11058_v10 = vpop.f32.mrb[105].mxu0  ;;  %v11069_v11 = vpop.f32.mrb[101].mxu1  ;;  %v6592_v13 = vadd.f32 %v6591_v41, %v6509_v60 }
0x1683   :  { %v9546_v12 = vmul.f32 -1.442695, %v6584_v63  ;;  %v9547_v4 = vmul.f32 -1.442695, %v6592_v13  ;;  %v13496_v13 = vld [vmem:[%s13862_s5 + $0xa] ss:$0 sm:$0xff] }
0x1685   :  { %12282 = vpow2.f32 %v9546_v12 }
0x1686   :  { %12284 = vpow2.f32 %v9547_v4 }
0x1688   :  { %v6579_v14 = vpop.f32.mrb[106].mxu0 }
0x1689   :  { %v11080_v15 = vpop.f32.mrb[107].mxu0  ;;  %v6580_v23 = vadd.f32 %v13278_v29, %v6579_v14 }
0x168f   :  { %v12283_v1 = vpop.eup %12282 }
0x1690   :  { %v6588_v8 = vadd.f32 1.0, %v12283_v1  ;;  %v12285_v19 = vpop.eup %12284 }
0x1691   :  { %v6596_v20 = vadd.f32 1.0, %v12285_v19 }
0x1692   :  { %12286 = vrcp.f32 %v6588_v8 }
0x1693   :  { %12288 = vrcp.f32 %v6596_v20 }
0x169c   :  { %v12287_v21 = vpop.eup %12286 }
0x169d   :  { %v6600_v9 = vmul.f32 %v12287_v21, %v6580_v23  ;;  %v12289_v26 = vpop.eup %12288 }
0x169e   :  { %v6603_v27 = vsub.f32 1.0, %v12289_v26  ;;  %v6605_v36 = vmul.f32 %v12289_v26, %v6368_v5 }
0x169f   :  { %v6601_v24 = vadd.f32 %v6600_v9, %v6599_v22 }
0x16a1   :  { %12290 = vtanh.f32 %v6601_v24 }
0x16ab   :  { %v12291_v33 = vpop.eup %12290 }
0x16ac   :  { %v6604_v16 = vmul.f32 %v12291_v33, %v6603_v27 }
0x16ae   :  { %v13422_v35 = vadd.f32 %v6605_v36, %v6604_v16  ;;  %v6837_v16 = vld [vmem:[#allocation2 + $0xb8] sm:$0xff] }
0x16b0   :  { %6607 = vst.msk [vmem:[#allocation3 + $0x30] sm:$0xff] %vm185_vm3, %v13422_v35  ;;  %11090 = vmatmul.mubr.msk.f32.vlgmr.msra.gmra.mrb[102].mxu1 %vm185_vm3, %v13422_v35  ;;  %11101 = vmatmul.mubr.msk.f32.vlgmr.msra.gmra.mrb[108].mxu0 %vm185_vm3, %v13422_v35 }
0x16b1   :  { %11854 = vmatpush3.bf16.msra.mxu1 %v13194_v32  ;;  %11115 = vmatpush3.bf16.msra.mxu0 %v12054_v25  ;;  %v6848_v32 = vld [vmem:[#allocation3 + $0x10] sm:$0xff] }
0x16b2   :  { %11118 = vmatprep.mubr.msk.bf16.mxu0 %vm185_vm3, %v13433_v58  ;;  %11855 = vmatprep.subr.bf16.mxu1 %v12465_v18  ;;  %v13445_v6 = vpack.c.bf16 %v6849_v43, %v6848_v32 }
0x16b3   :  { %11116 = vmatprep.subr.bf16.mxu0 %v12055_v39  ;;  %11111 = vmatprep.mubr.msk.f32.mxu1 %vm12466_vm2, %v12467_v30 }
0x16b5   :  { %11857 = vmatpush3.bf16.msra.mxu1 %v13202_v40  ;;  %11117 = vmatpush3.bf16.msra.mxu0 %v12055_v39  ;;  %v7165_v40 = vld [vmem:[#allocation4 + $0x120] sm:$0xff] }
0x16b6   :  { %11126 = vmatprep.subr.bf16.mxu1 %v12056_v42  ;;  %v13465_v50 = vpack.c.bf16 %v7166_v49, %v7165_v40  ;;  %11138 = vmatprep.subr.bf16.mxu0 %v12058_v53  ;;  %v7171_v40 = vld [vmem:[#allocation4 + $0x148] sm:$0xff] }
0x16b7   :  { %v6852_v32 = vld [vmem:[#allocation3 + $0x30] sm:$0xff]  ;;  %v7176_v49 = vld [vmem:[#allocation4 + $0x168] sm:$0xff] }
0x16b8   :  { %11112 = vmatmul.mubr.msk.f32.vlgmr.msra.gmra.mrb[104].mxu1 %vm185_vm3, %v13422_v35  ;;  %11119 = vmatmul.mubr.msk.bf16.vlgmr.msra.gmra.mrb[112].mxu0 %vm185_vm3, %v13445_v6 }
0x16b9   :  { %11122 = vmatprep.mubr.msk.bf16.mxu0 %vm185_vm3, %v13450_v48  ;;  %11127 = vmatpush3.bf16.msra.mxu1 %v12056_v42 }
0x16ba   :  { %11130 = vmatprep.mubr.msk.bf16.mxu1 %vm185_vm3, %v13433_v58  ;;  %11128 = vmatprep.subr.bf16.mxu1 %v12057_v47 }
0x16bb   :  { %11139 = vmatpush3.bf16.msra.mxu0 %v12058_v53 }
0x16bc   :  { %11140 = vmatprep.subr.bf16.mxu0 %v12059_v52 }
0x16bd   :  { %11129 = vmatpush3.bf16.msra.mxu1 %v12057_v47 }
0x16be   :  { %11858 = vmatprep.subr.bf16.mxu1 %v12465_v18 }
0x16bf   :  { %11141 = vmatpush3.bf16.msra.mxu0 %v12059_v52 }
0x16c0   :  { %11131 = vmatmul.mubr.msk.bf16.vlgmr.msra.gmra.mrb[108].mxu1 %vm185_vm3, %v13445_v6  ;;  %11870 = vmatprep.subr.bf16.mxu0 %v12465_v18 }
0x16c1   :  { %11134 = vmatprep.mubr.msk.bf16.mxu1 %vm185_vm3, %v13450_v48  ;;  %11860 = vmatpush3.bf16.msra.mxu1 %v13465_v50 }
0x16c2   :  { %11861 = vmatprep.subr.bf16.mxu1 %v12465_v18 }
0x16c5   :  { %11863 = vmatpush3.bf16.msra.mxu1 %v13475_v54 }
0x16c6   :  { %11864 = vmatprep.subr.bf16.mxu1 %v12465_v18 }
0x1783   :  { %v6677_v55 = vpop.f32.mrb[102].mxu1  ;;  %v6747_v57 = vpop.f32.mrb[108].mxu0 }
0x1784   :  { %v6822_v59 = vadd.f32 %v6821_v7, %v6677_v55  ;;  %v11091_v28 = vpop.f32.mrb[103].mxu1  ;;  %v11102_v45 = vpop.f32.mrb[109].mxu0  ;;  %v6830_v31 = vadd.f32 %v6829_v62, %v6747_v57  ;;  %v7178_v55 = vld [vmem:[#allocation4 + $0x178] sm:$0xff]  ;;  %v13526_v7 = vpack.c.bf16 %v7173_v51, %v7172_v0 }
0x1786   :  { %v9551_v61 = vmul.f32 -1.442695, %v6822_v59  ;;  %v9552_v3 = vmul.f32 -1.442695, %v6830_v31 }
0x1788   :  { %12292 = vpow2.f32 %v9551_v61 }
0x1789   :  { %12294 = vpow2.f32 %v9552_v3 }
0x178b   :  { %v6817_v5 = vpop.f32.mrb[104].mxu1  ;;  %v11120_v25 = vpop.f32.mrb[112].mxu0 }
0x178c   :  { %v6938_v56 = vadd.f32 %v11120_v25, %v13483_v2  ;;  %v11113_v34 = vpop.f32.mrb[105].mxu1  ;;  %v6929_v60 = vpop.f32.mrb[113].mxu0  ;;  %v6818_v26 = vadd.f32 %v13278_v29, %v6817_v5  ;;  %v7170_v29 = vld [vmem:[#allocation4 + $0x140] sm:$0xff] }
0x178d   :  { %v6930_v63 = vadd.f32 %v13483_v2, %v6929_v60  ;;  %v11121_v10 = vpop.f32.mrb[114].mxu0  ;;  %v13515_v53 = vpack.c.bf16 %v7171_v40, %v7170_v29  ;;  %v13588_v40 = vld [vmem:[%s13863_s6 + $0x3] ss:$0 sm:$0xff] }
0x178e   :  { %6962 = vst.msk [vmem:[#allocation2 + $0x10] sm:$0xff] %vm185_vm3, %v6938_v56  ;;  %v6941_v11 = vadd.f32 %v11121_v10, %v13483_v2  ;;  %v6932_v12 = vpop.f32.mrb[115].mxu0 }
0x178f   :  { %6960 = vst.msk [vmem:[#allocation2] sm:$0xff] %vm185_vm3, %v6930_v63  ;;  %v6933_v41 = vadd.f32 %v13483_v2, %v6932_v12 }
0x1790   :  { %6963 = vst.msk [vmem:[#allocation2 + $0x18] sm:$0xff] %vm185_vm3, %v6941_v11  ;;  %v9582_v11 = vld [vmem:[%s13862_s5 + $0xb] ss:$0 sm:$0xff] }
0x1791   :  { %6961 = vst.msk [vmem:[#allocation2 + $0x8] sm:$0xff] %vm185_vm3, %v6933_v41 }
0x1792   :  { %v12293_v4 = vpop.eup %12292 }
0x1793   :  { %v6826_v14 = vadd.f32 1.0, %v12293_v4  ;;  %v11132_v15 = vpop.f32.mrb[108].mxu1  ;;  %v12295_v22 = vpop.eup %12294 }
0x1794   :  { %v7036_v1 = vadd.f32 %v11132_v15, %v13496_v13  ;;  %v7027_v8 = vpop.f32.mrb[109].mxu1  ;;  %v6834_v24 = vadd.f32 1.0, %v12295_v22 }
0x1795   :  { %12296 = vrcp.f32 %v6826_v14  ;;  %v7028_v19 = vadd.f32 %v13496_v13, %v7027_v8  ;;  %v11133_v20 = vpop.f32.mrb[110].mxu1 }
0x1796   :  { %7060 = vst.msk [vmem:[#allocation2 + $0x50] sm:$0xff] %vm185_vm3, %v7036_v1  ;;  %v7039_v23 = vadd.f32 %v11133_v20, %v13496_v13  ;;  %v7030_v21 = vpop.f32.mrb[111].mxu1  ;;  %12298 = vrcp.f32 %v6834_v24  ;;  %v7400_v4 = vld [vmem:[#allocation2] sm:$0xff] }
0x1797   :  { %7058 = vst.msk [vmem:[#allocation2 + $0x40] sm:$0xff] %vm185_vm3, %v7028_v19  ;;  %v7031_v9 = vadd.f32 %v13496_v13, %v7030_v21 }
0x1798   :  { %7061 = vst.msk [vmem:[#allocation2 + $0x58] sm:$0xff] %vm185_vm3, %v7039_v23 }
0x1799   :  { %7059 = vst.msk [vmem:[#allocation2 + $0x48] sm:$0xff] %vm185_vm3, %v7031_v9 }
0x179e   :  { %v7408_v22 = vld [vmem:[#allocation2 + $0x40] sm:$0xff] }
0x179f   :  { %v12297_v27 = vpop.eup %12296 }
0x17a0   :  { %v6838_v33 = vmul.f32 %v12297_v27, %v6818_v26  ;;  %v12299_v37 = vpop.eup %12298 }
0x17a1   :  { %v6841_v38 = vsub.f32 1.0, %v12299_v37  ;;  %v6843_v42 = vmul.f32 %v12299_v37, %v13422_v35  ;;  %v7175_v35 = vld [vmem:[#allocation4 + $0x160] sm:$0xff] }
0x17a2   :  { %v6839_v36 = vadd.f32 %v6838_v33, %v6837_v16  ;;  %v13517_v52 = vpack.c.bf16 %v7176_v49, %v7175_v35 }
0x17a4   :  { %12300 = vtanh.f32 %v6839_v36 }
0x17ae   :  { %v12301_v39 = vpop.eup %12300 }
0x17af   :  { %v6842_v43 = vmul.f32 %v12301_v39, %v6841_v38 }
0x17b1   :  { %v6844_v44 = vadd.f32 %v6843_v42, %v6842_v43 }
0x17b3   :  { %6845 = vst.msk [vmem:[#allocation3 + $0x38] sm:$0xff] %vm185_vm3, %v6844_v44 }
0x17ba   :  { %v6853_v46 = vld [vmem:[#allocation3 + $0x38] sm:$0xff] }
0x17bb   :  { %v6857_v47 = vpack.c.bf16 %v6853_v46, %v6852_v32 }
0x17bd   :  { %11123 = vmatmul.mubr.msk.bf16.gmra.mrb[116].mxu0 %vm185_vm3, %v6857_v47  ;;  %11135 = vmatmul.mubr.msk.bf16.gmra.mrb[112].mxu1 %vm185_vm3, %v6857_v47 }
0x17be   :  { %11142 = vmatprep.mubr.msk.bf16.mxu0 %vm185_vm3, %v13433_v58  ;;  %11158 = vmatprep.mubr.msk.f32.mxu1 %vm12466_vm2, %v12467_v30  ;;  %v7177_v58 = vld [vmem:[#allocation4 + $0x170] sm:$0xff] }
0x17c5   :  { %11143 = vmatmul.mubr.msk.bf16.vlgmr.msra.gmra.mrb[120].mxu0 %vm185_vm3, %v13445_v6  ;;  %11159 = vmatmul.mubr.msk.f32.vlgmr.msra.gmra.mrb[106].mxu1 %vm185_vm3, %v13273_v17  ;;  %v13532_v6 = vpack.c.bf16 %v7178_v55, %v7177_v58 }
0x17c6   :  { %11866 = vmatpush3.bf16.msra.mxu1 %v13515_v53  ;;  %11146 = vmatprep.mubr.msk.bf16.mxu0 %vm185_vm3, %v13450_v48 }
0x17c7   :  { %11867 = vmatprep.subr.bf16.mxu1 %v12465_v18  ;;  %11169 = vmatprep.mubr.msk.f32.mxu1 %vm12466_vm2, %v12467_v30 }
0x17c8   :  { %11872 = vmatpush3.bf16.msra.mxu0 %v13517_v52 }
0x17c9   :  { %11873 = vmatprep.subr.bf16.mxu0 %v12465_v18 }
0x17ca   :  { %11869 = vmatpush3.bf16.msra.mxu1 %v13526_v7 }
0x17cb   :  { %11876 = vmatprep.subr.bf16.mxu1 %v12465_v18 }
0x17cc   :  { %11875 = vmatpush3.bf16.msra.mxu0 %v13532_v6 }
0x17cd   :  { %11170 = vmatmul.mubr.msk.f32.vlgmr.msra.gmra.mrb[116].mxu1 %vm185_vm3, %v13273_v17  ;;  %11147 = vmatmul.mubr.msk.bf16.gmra.mrb[124].mxu0 %vm185_vm3, %v6857_v47 }
0x17ce   :  { %11180 = vmatprep.mubr.msk.f32.mxu0 %vm12466_vm2, %v12467_v30  ;;  %11878 = vmatpush3.bf16.msra.mxu1 %v13465_v50 }
0x17cf   :  { %11882 = vmatprep.subr.bf16.mxu0 %v12465_v18  ;;  %11879 = vmatprep.subr.bf16.mxu1 %v12465_v18 }
0x17d0   :  { %11191 = vmatprep.mubr.msk.f32.mxu1 %vm12466_vm2, %v12467_v30 }
0x17d2   :  { %11881 = vmatpush3.bf16.msra.mxu1 %v13475_v54 }
0x17d3   :  { %11888 = vmatprep.subr.bf16.mxu1 %v12465_v18 }
0x17d5   :  { %11181 = vmatmul.mubr.msk.f32.vlgmr.msra.gmra.mrb[110].mxu0 %vm185_vm3, %v13273_v17 }
0x17d6   :  { %11884 = vmatpush3.bf16.msra.mxu0 %v13515_v53  ;;  %11202 = vmatprep.mubr.msk.f32.mxu0 %vm12466_vm2, %v12467_v30 }
0x17d7   :  { %11885 = vmatprep.subr.bf16.mxu0 %v12465_v18 }
0x17da   :  { %11887 = vmatpush3.bf16.msra.mxu0 %v13526_v7 }
0x17db   :  { %11894 = vmatprep.subr.bf16.mxu0 %v12465_v18 }
0x1890   :  { %v11124_v48 = vpop.f32.mrb[116].mxu0  ;;  %v11136_v57 = vpop.f32.mrb[112].mxu1 }
0x1891   :  { %v6954_v59 = vadd.f32 %v11124_v48, %v13483_v2  ;;  %v7052_v28 = vadd.f32 %v11136_v57, %v13496_v13  ;;  %v6945_v45 = vpop.f32.mrb[117].mxu0  ;;  %v7043_v61 = vpop.f32.mrb[113].mxu1 }
0x1892   :  { %v6946_v62 = vadd.f32 %v13483_v2, %v6945_v45  ;;  %v7044_v31 = vadd.f32 %v13496_v13, %v7043_v61  ;;  %v11125_v3 = vpop.f32.mrb[118].mxu0  ;;  %v11137_v5 = vpop.f32.mrb[114].mxu1 }
0x1893   :  { %6966 = vst.msk [vmem:[#allocation2 + $0x30] sm:$0xff] %vm185_vm3, %v6954_v59  ;;  %7064 = vst.msk [vmem:[#allocation2 + $0x70] sm:$0xff] %vm185_vm3, %v7052_v28  ;;  %v6957_v25 = vadd.f32 %v11125_v3, %v13483_v2  ;;  %v7055_v56 = vadd.f32 %v11137_v5, %v13496_v13  ;;  %v6948_v34 = vpop.f32.mrb[119].mxu0  ;;  %v7046_v60 = vpop.f32.mrb[115].mxu1 }
0x1894   :  { %6964 = vst.msk [vmem:[#allocation2 + $0x20] sm:$0xff] %vm185_vm3, %v6946_v62  ;;  %7062 = vst.msk [vmem:[#allocation2 + $0x60] sm:$0xff] %vm185_vm3, %v7044_v31  ;;  %v6949_v63 = vadd.f32 %v13483_v2, %v6948_v34  ;;  %v7047_v10 = vadd.f32 %v13496_v13, %v7046_v60  ;;  %v7638_v62 = vld [vmem:[#allocation2 + $0x8] sm:$0xff] }
0x1895   :  { %6967 = vst.msk [vmem:[#allocation2 + $0x38] sm:$0xff] %vm185_vm3, %v6957_v25  ;;  %7065 = vst.msk [vmem:[#allocation2 + $0x78] sm:$0xff] %vm185_vm3, %v7055_v56  ;;  %v7646_v34 = vld [vmem:[#allocation2 + $0x48] sm:$0xff] }
0x1896   :  { %6965 = vst.msk [vmem:[#allocation2 + $0x28] sm:$0xff] %vm185_vm3, %v6949_v63  ;;  %7063 = vst.msk [vmem:[#allocation2 + $0x68] sm:$0xff] %vm185_vm3, %v7047_v10 }
0x1898   :  { %v11144_v12 = vpop.f32.mrb[120].mxu0  ;;  %v7256_v41 = vpop.f32.mrb[106].mxu1 }
0x1899   :  { %v7134_v14 = vadd.f32 %v11144_v12, %v9582_v11  ;;  %v7401_v15 = vadd.f32 %v7400_v4, %v7256_v41  ;;  %v7125_v2 = vpop.f32.mrb[121].mxu0  ;;  %v11160_v1 = vpop.f32.mrb[107].mxu1 }
0x189a   :  { %v7126_v13 = vadd.f32 %v9582_v11, %v7125_v2  ;;  %v11145_v8 = vpop.f32.mrb[122].mxu0 }
0x189b   :  { %7158 = vst.msk [vmem:[#allocation2 + $0x90] sm:$0xff] %vm185_vm3, %v7134_v14  ;;  %v9594_v19 = vmul.f32 -1.442695, %v7401_v15  ;;  %v7137_v20 = vadd.f32 %v11145_v8, %v9582_v11  ;;  %v7128_v23 = vpop.f32.mrb[123].mxu0 }
0x189c   :  { %7156 = vst.msk [vmem:[#allocation2 + $0x80] sm:$0xff] %vm185_vm3, %v7126_v13  ;;  %v7129_v21 = vadd.f32 %v9582_v11, %v7128_v23 }
0x189d   :  { %12302 = vpow2.f32 %v9594_v19  ;;  %7159 = vst.msk [vmem:[#allocation2 + $0x98] sm:$0xff] %vm185_vm3, %v7137_v20 }
0x189e   :  { %7157 = vst.msk [vmem:[#allocation2 + $0x88] sm:$0xff] %vm185_vm3, %v7129_v21 }
0x18a0   :  { %v7326_v9 = vpop.f32.mrb[116].mxu1  ;;  %v11148_v24 = vpop.f32.mrb[124].mxu0 }
0x18a1   :  { %v7409_v26 = vadd.f32 %v7408_v22, %v7326_v9  ;;  %v7150_v27 = vadd.f32 %v11148_v24, %v9582_v11  ;;  %v11171_v33 = vpop.f32.mrb[117].mxu1  ;;  %v7141_v16 = vpop.f32.mrb[125].mxu0 }
0x18a2   :  { %v7142_v36 = vadd.f32 %v9582_v11, %v7141_v16  ;;  %v11149_v37 = vpop.f32.mrb[126].mxu0 }
0x18a3   :  { %v9595_v38 = vmul.f32 -1.442695, %v7409_v26  ;;  %7162 = vst.msk [vmem:[#allocation2 + $0xb0] sm:$0xff] %vm185_vm3, %v7150_v27  ;;  %v7153_v39 = vadd.f32 %v11149_v37, %v9582_v11  ;;  %v7144_v42 = vpop.f32.mrb[127].mxu0  ;;  %v7416_v58 = vld [vmem:[#allocation2 + $0x80] sm:$0xff]  ;;  %v7876_v26 = vld [vmem:[#allocation2 + $0x10] sm:$0xff] }
0x18a4   :  { %7160 = vst.msk [vmem:[#allocation2 + $0xa0] sm:$0xff] %vm185_vm3, %v7142_v36  ;;  %v7145_v43 = vadd.f32 %v9582_v11, %v7144_v42 }
0x18a5   :  { %12304 = vpow2.f32 %v9595_v38  ;;  %7163 = vst.msk [vmem:[#allocation2 + $0xb8] sm:$0xff] %vm185_vm3, %v7153_v39  ;;  %v7654_v13 = vld [vmem:[#allocation2 + $0x88] sm:$0xff]  ;;  %v7884_v38 = vld [vmem:[#allocation2 + $0x50] sm:$0xff] }
0x18a6   :  { %7161 = vst.msk [vmem:[#allocation2 + $0xa8] sm:$0xff] %vm185_vm3, %v7145_v43 }
0x18a7   :  { %v12303_v44 = vpop.eup %12302 }
0x18a8   :  { %v7405_v32 = vadd.f32 1.0, %v12303_v44  ;;  %v7396_v46 = vpop.f32.mrb[110].mxu0 }
0x18a9   :  { %v11182_v47 = vpop.f32.mrb[111].mxu0  ;;  %v7397_v49 = vadd.f32 %v13588_v40, %v7396_v46 }
0x18aa   :  { %12306 = vrcp.f32 %v7405_v32 }
0x18af   :  { %v12305_v29 = vpop.eup %12304 }
0x18b0   :  { %v7413_v35 = vadd.f32 1.0, %v12305_v29 }
0x18b2   :  { %12308 = vrcp.f32 %v7413_v35 }
0x18b4   :  { %v12307_v0 = vpop.eup %12306 }
0x18b5   :  { %v7417_v51 = vmul.f32 %v12307_v0, %v7397_v49 }
0x18b7   :  { %v7418_v55 = vadd.f32 %v7417_v51, %v7416_v58  ;;  %v7892_v51 = vld [vmem:[#allocation2 + $0x90] sm:$0xff] }
0x18b9   :  { %12310 = vtanh.f32 %v7418_v55 }
0x18bc   :  { %v12309_v48 = vpop.eup %12308 }
0x18bd   :  { %v7420_v57 = vsub.f32 1.0, %v12309_v48  ;;  %v7422_v45 = vmul.f32 %v12309_v48, %v13273_v17 }
0x18c3   :  { %v12311_v59 = vpop.eup %12310 }
0x18c4   :  { %v7421_v28 = vmul.f32 %v12311_v59, %v7420_v57 }
0x18c6   :  { %v7423_v61 = vadd.f32 %v7422_v45, %v7421_v28 }
0x18c8   :  { %7424 = vst.msk [vmem:[#allocation3] sm:$0xff] %vm185_vm3, %v7423_v61  ;;  %11192 = vmatmul.mubr.msk.f32.vlgmr.msra.gmra.mrb[118].mxu1 %vm185_vm3, %v7423_v61  ;;  %11203 = vmatmul.mubr.msk.f32.vlgmr.msra.gmra.mrb[128].mxu0 %vm185_vm3, %v7423_v61 }
0x18c9   :  { %11890 = vmatpush3.bf16.msra.mxu1 %v13517_v52  ;;  %11213 = vmatprep.mubr.msk.f32.mxu1 %vm12466_vm2, %v12467_v30 }
0x18ca   :  { %11891 = vmatprep.subr.bf16.mxu1 %v12465_v18  ;;  %11896 = vmatpush3.bf16.msra.mxu0 %v13465_v50 }
0x18cb   :  { %11897 = vmatprep.subr.bf16.mxu0 %v12465_v18  ;;  %11224 = vmatprep.mubr.msk.f32.mxu0 %vm12466_vm2, %v12467_v30 }
0x18cd   :  { %11893 = vmatpush3.bf16.msra.mxu1 %v13532_v6 }
0x18ce   :  { %11900 = vmatprep.subr.bf16.mxu1 %v12465_v18  ;;  %11899 = vmatpush3.bf16.msra.mxu0 %v13475_v54 }
0x18cf   :  { %11906 = vmatprep.subr.bf16.mxu0 %v12465_v18 }
0x18d0   :  { %11214 = vmatmul.mubr.msk.f32.vlgmr.msra.gmra.mrb[120].mxu1 %vm185_vm3, %v7423_v61 }
0x18d1   :  { %11902 = vmatpush3.bf16.msra.mxu1 %v13515_v53  ;;  %11235 = vmatprep.mubr.msk.f32.mxu1 %vm12466_vm2, %v12467_v30 }
0x18d2   :  { %11903 = vmatprep.subr.bf16.mxu1 %v12465_v18 }
0x18d5   :  { %11905 = vmatpush3.bf16.msra.mxu1 %v13526_v7 }
0x18d6   :  { %11912 = vmatprep.subr.bf16.mxu1 %v12465_v18 }
0x199b   :  { %v7494_v17 = vpop.f32.mrb[118].mxu1  ;;  %v7564_v31 = vpop.f32.mrb[128].mxu0 }
0x199c   :  { %v7639_v3 = vadd.f32 %v7638_v62, %v7494_v17  ;;  %v11193_v5 = vpop.f32.mrb[119].mxu1  ;;  %v11204_v25 = vpop.f32.mrb[129].mxu0  ;;  %v7647_v60 = vadd.f32 %v7646_v34, %v7564_v31  ;;  %v8114_v17 = vld [vmem:[#allocation2 + $0x18] sm:$0xff] }
0x199e   :  { %v9599_v56 = vmul.f32 -1.442695, %v7639_v3  ;;  %v9600_v63 = vmul.f32 -1.442695, %v7647_v60 }
0x19a0   :  { %12312 = vpow2.f32 %v9599_v56  ;;  %v8122_v56 = vld [vmem:[#allocation2 + $0x58] sm:$0xff] }
0x19a1   :  { %12314 = vpow2.f32 %v9600_v63 }
0x19a3   :  { %v7634_v10 = vpop.f32.mrb[120].mxu1 }
0x19a4   :  { %v11215_v11 = vpop.f32.mrb[121].mxu1  ;;  %v7635_v15 = vadd.f32 %v13588_v40, %v7634_v10 }
0x19aa   :  { %v12313_v12 = vpop.eup %12312 }
0x19ab   :  { %v7643_v41 = vadd.f32 1.0, %v12313_v12  ;;  %v12315_v4 = vpop.eup %12314 }
0x19ac   :  { %v7651_v14 = vadd.f32 1.0, %v12315_v4 }
0x19ad   :  { %12316 = vrcp.f32 %v7643_v41 }
0x19ae   :  { %12318 = vrcp.f32 %v7651_v14 }
0x19b7   :  { %v12317_v2 = vpop.eup %12316 }
0x19b8   :  { %v7655_v1 = vmul.f32 %v12317_v2, %v7635_v15  ;;  %v12319_v19 = vpop.eup %12318 }
0x19b9   :  { %v7658_v20 = vsub.f32 1.0, %v12319_v19  ;;  %v7660_v9 = vmul.f32 %v12319_v19, %v7423_v61 }
0x19ba   :  { %v7656_v8 = vadd.f32 %v7655_v1, %v7654_v13  ;;  %v8130_v1 = vld [vmem:[#allocation2 + $0x98] sm:$0xff] }
0x19bc   :  { %12320 = vtanh.f32 %v7656_v8 }
0x19c6   :  { %v12321_v23 = vpop.eup %12320 }
0x19c7   :  { %v7659_v21 = vmul.f32 %v12321_v23, %v7658_v20 }
0x19c9   :  { %v7661_v22 = vadd.f32 %v7660_v9, %v7659_v21 }
0x19cb   :  { %7662 = vst.msk [vmem:[#allocation3 + $0x8] sm:$0xff] %vm185_vm3, %v7661_v22  ;;  %11225 = vmatmul.mubr.msk.f32.vlgmr.msra.gmra.mrb[130].mxu0 %vm185_vm3, %v7661_v22  ;;  %11236 = vmatmul.mubr.msk.f32.vlgmr.msra.gmra.mrb[122].mxu1 %vm185_vm3, %v7661_v22 }
0x19cc   :  { %11908 = vmatpush3.bf16.msra.mxu0 %v13517_v52  ;;  %11246 = vmatprep.mubr.msk.f32.mxu0 %vm12466_vm2, %v12467_v30 }
0x19cd   :  { %11909 = vmatprep.subr.bf16.mxu0 %v12465_v18  ;;  %11914 = vmatpush3.bf16.msra.mxu1 %v13465_v50 }
0x19ce   :  { %11915 = vmatprep.subr.bf16.mxu1 %v12465_v18  ;;  %11257 = vmatprep.mubr.msk.f32.mxu1 %vm12466_vm2, %v12467_v30 }
0x19d0   :  { %11911 = vmatpush3.bf16.msra.mxu0 %v13532_v6 }
0x19d1   :  { %11918 = vmatprep.subr.bf16.mxu0 %v12465_v18  ;;  %11917 = vmatpush3.bf16.msra.mxu1 %v13475_v54 }
0x19d2   :  { %11924 = vmatprep.subr.bf16.mxu1 %v12465_v18 }
0x19d3   :  { %11247 = vmatmul.mubr.msk.f32.vlgmr.msra.gmra.mrb[132].mxu0 %vm185_vm3, %v7661_v22 }
0x19d4   :  { %11920 = vmatpush3.bf16.msra.mxu0 %v13515_v53  ;;  %11268 = vmatprep.mubr.msk.f32.mxu0 %vm12466_vm2, %v12467_v30 }
0x19d5   :  { %11921 = vmatprep.subr.bf16.mxu0 %v12465_v18 }
0x19d8   :  { %11923 = vmatpush3.bf16.msra.mxu0 %v13526_v7 }
0x19d9   :  { %11930 = vmatprep.subr.bf16.mxu0 %v12465_v18 }
0x1a9e   :  { %v7732_v24 = vpop.f32.mrb[130].mxu0  ;;  %v7802_v27 = vpop.f32.mrb[122].mxu1 }
0x1a9f   :  { %v7877_v33 = vadd.f32 %v7876_v26, %v7732_v24  ;;  %v11226_v16 = vpop.f32.mrb[131].mxu0  ;;  %v11237_v36 = vpop.f32.mrb[123].mxu1  ;;  %v7885_v39 = vadd.f32 %v7884_v38, %v7802_v27  ;;  %v8352_v24 = vld [vmem:[#allocation2 + $0x20] sm:$0xff] }
0x1aa1   :  { %v9604_v37 = vmul.f32 -1.442695, %v7877_v33  ;;  %v9605_v42 = vmul.f32 -1.442695, %v7885_v39 }
0x1aa3   :  { %12322 = vpow2.f32 %v9604_v37  ;;  %v8360_v37 = vld [vmem:[#allocation2 + $0x60] sm:$0xff] }
0x1aa4   :  { %12324 = vpow2.f32 %v9605_v42 }
0x1aa6   :  { %v7872_v43 = vpop.f32.mrb[132].mxu0 }
0x1aa7   :  { %v11248_v44 = vpop.f32.mrb[133].mxu0  ;;  %v7873_v35 = vadd.f32 %v13588_v40, %v7872_v43 }
0x1aad   :  { %v12323_v32 = vpop.eup %12322 }
0x1aae   :  { %v7881_v46 = vadd.f32 1.0, %v12323_v32  ;;  %v12325_v47 = vpop.eup %12324 }
0x1aaf   :  { %v7889_v29 = vadd.f32 1.0, %v12325_v47 }
0x1ab0   :  { %12326 = vrcp.f32 %v7881_v46 }
0x1ab1   :  { %12328 = vrcp.f32 %v7889_v29 }
0x1aba   :  { %v12327_v49 = vpop.eup %12326 }
0x1abb   :  { %v7893_v0 = vmul.f32 %v12327_v49, %v7873_v35  ;;  %v12329_v55 = vpop.eup %12328 }
0x1abc   :  { %v7896_v48 = vsub.f32 1.0, %v12329_v55  ;;  %v7898_v28 = vmul.f32 %v12329_v55, %v7661_v22 }
0x1abd   :  { %v7894_v58 = vadd.f32 %v7893_v0, %v7892_v51  ;;  %v8368_v0 = vld [vmem:[#allocation2 + $0xa0] sm:$0xff] }
0x1abf   :  { %12330 = vtanh.f32 %v7894_v58 }
0x1ac9   :  { %v12331_v57 = vpop.eup %12330 }
0x1aca   :  { %v7897_v59 = vmul.f32 %v12331_v57, %v7896_v48 }
0x1acc   :  { %v7899_v45 = vadd.f32 %v7898_v28, %v7897_v59 }
0x1ace   :  { %7900 = vst.msk [vmem:[#allocation3 + $0x10] sm:$0xff] %vm185_vm3, %v7899_v45  ;;  %11258 = vmatmul.mubr.msk.f32.vlgmr.msra.gmra.mrb[124].mxu1 %vm185_vm3, %v7899_v45  ;;  %11269 = vmatmul.mubr.msk.f32.vlgmr.msra.gmra.mrb[134].mxu0 %vm185_vm3, %v7899_v45 }
0x1acf   :  { %11926 = vmatpush3.bf16.msra.mxu1 %v13517_v52  ;;  %11279 = vmatprep.mubr.msk.f32.mxu1 %vm12466_vm2, %v12467_v30 }
0x1ad0   :  { %11927 = vmatprep.subr.bf16.mxu1 %v12465_v18  ;;  %11932 = vmatpush3.bf16.msra.mxu0 %v13465_v50 }
0x1ad1   :  { %11933 = vmatprep.subr.bf16.mxu0 %v12465_v18  ;;  %11290 = vmatprep.mubr.msk.f32.mxu0 %vm12466_vm2, %v12467_v30 }
0x1ad3   :  { %11929 = vmatpush3.bf16.msra.mxu1 %v13532_v6 }
0x1ad4   :  { %11936 = vmatprep.subr.bf16.mxu1 %v12465_v18  ;;  %11935 = vmatpush3.bf16.msra.mxu0 %v13475_v54 }
0x1ad5   :  { %11942 = vmatprep.subr.bf16.mxu0 %v12465_v18 }
0x1ad6   :  { %11280 = vmatmul.mubr.msk.f32.vlgmr.msra.gmra.mrb[126].mxu1 %vm185_vm3, %v7899_v45 }
0x1ad7   :  { %11938 = vmatpush3.bf16.msra.mxu1 %v13515_v53  ;;  %11301 = vmatprep.mubr.msk.f32.mxu1 %vm12466_vm2, %v12467_v30 }
0x1ad8   :  { %11939 = vmatprep.subr.bf16.mxu1 %v12465_v18 }
0x1adb   :  { %11941 = vmatpush3.bf16.msra.mxu1 %v13526_v7 }
0x1adc   :  { %11948 = vmatprep.subr.bf16.mxu1 %v12465_v18 }
0x1ba1   :  { %v7970_v61 = vpop.f32.mrb[124].mxu1  ;;  %v8040_v62 = vpop.f32.mrb[134].mxu0 }
0x1ba2   :  { %v8115_v31 = vadd.f32 %v8114_v17, %v7970_v61  ;;  %v11259_v3 = vpop.f32.mrb[125].mxu1  ;;  %v11270_v5 = vpop.f32.mrb[135].mxu0  ;;  %v8123_v34 = vadd.f32 %v8122_v56, %v8040_v62  ;;  %v8590_v61 = vld [vmem:[#allocation2 + $0x28] sm:$0xff] }
0x1ba4   :  { %v9609_v25 = vmul.f32 -1.442695, %v8115_v31  ;;  %v9610_v60 = vmul.f32 -1.442695, %v8123_v34 }
0x1ba6   :  { %12332 = vpow2.f32 %v9609_v25  ;;  %v8598_v25 = vld [vmem:[#allocation2 + $0x68] sm:$0xff] }
0x1ba7   :  { %12334 = vpow2.f32 %v9610_v60 }
0x1ba9   :  { %v8110_v63 = vpop.f32.mrb[126].mxu1 }
0x1baa   :  { %v11281_v10 = vpop.f32.mrb[127].mxu1  ;;  %v8111_v14 = vadd.f32 %v13588_v40, %v8110_v63 }
0x1bb0   :  { %v12333_v11 = vpop.eup %12332 }
0x1bb1   :  { %v8119_v12 = vadd.f32 1.0, %v12333_v11  ;;  %v12335_v41 = vpop.eup %12334 }
0x1bb2   :  { %v8127_v4 = vadd.f32 1.0, %v12335_v41 }
0x1bb3   :  { %12336 = vrcp.f32 %v8119_v12 }
0x1bb4   :  { %12338 = vrcp.f32 %v8127_v4 }
0x1bbd   :  { %v12337_v15 = vpop.eup %12336 }
0x1bbe   :  { %v8131_v2 = vmul.f32 %v12337_v15, %v8111_v14  ;;  %v12339_v8 = vpop.eup %12338 }
0x1bbf   :  { %v8134_v19 = vsub.f32 1.0, %v12339_v8  ;;  %v8136_v21 = vmul.f32 %v12339_v8, %v7899_v45 }
0x1bc0   :  { %v8132_v13 = vadd.f32 %v8131_v2, %v8130_v1  ;;  %v8606_v2 = vld [vmem:[#allocation2 + $0xa8] sm:$0xff] }
0x1bc2   :  { %12340 = vtanh.f32 %v8132_v13 }
0x1bcc   :  { %v12341_v20 = vpop.eup %12340 }
0x1bcd   :  { %v8135_v23 = vmul.f32 %v12341_v20, %v8134_v19 }
0x1bcf   :  { %v8137_v9 = vadd.f32 %v8136_v21, %v8135_v23 }
0x1bd1   :  { %8138 = vst.msk [vmem:[#allocation3 + $0x18] sm:$0xff] %vm185_vm3, %v8137_v9  ;;  %11291 = vmatmul.mubr.msk.f32.vlgmr.msra.gmra.mrb[136].mxu0 %vm185_vm3, %v8137_v9  ;;  %11302 = vmatmul.mubr.msk.f32.vlgmr.msra.gmra.mrb[128].mxu1 %vm185_vm3, %v8137_v9 }
0x1bd2   :  { %11944 = vmatpush3.bf16.msra.mxu0 %v13517_v52  ;;  %11312 = vmatprep.mubr.msk.f32.mxu0 %vm12466_vm2, %v12467_v30 }
0x1bd3   :  { %11945 = vmatprep.subr.bf16.mxu0 %v12465_v18  ;;  %11950 = vmatpush3.bf16.msra.mxu1 %v13465_v50 }
0x1bd4   :  { %11951 = vmatprep.subr.bf16.mxu1 %v12465_v18  ;;  %11323 = vmatprep.mubr.msk.f32.mxu1 %vm12466_vm2, %v12467_v30 }
0x1bd6   :  { %11947 = vmatpush3.bf16.msra.mxu0 %v13532_v6 }
0x1bd7   :  { %11954 = vmatprep.subr.bf16.mxu0 %v12465_v18  ;;  %11953 = vmatpush3.bf16.msra.mxu1 %v13475_v54 }
0x1bd8   :  { %11960 = vmatprep.subr.bf16.mxu1 %v12465_v18 }
0x1bd9   :  { %11313 = vmatmul.mubr.msk.f32.vlgmr.msra.gmra.mrb[138].mxu0 %vm185_vm3, %v8137_v9 }
0x1bda   :  { %11956 = vmatpush3.bf16.msra.mxu0 %v13515_v53  ;;  %11334 = vmatprep.mubr.msk.f32.mxu0 %vm12466_vm2, %v12467_v30 }
0x1bdb   :  { %11957 = vmatprep.subr.bf16.mxu0 %v12465_v18 }
0x1bde   :  { %11959 = vmatpush3.bf16.msra.mxu0 %v13526_v7 }
0x1bdf   :  { %11966 = vmatprep.subr.bf16.mxu0 %v12465_v18 }
0x1ca4   :  { %v8208_v22 = vpop.f32.mrb[136].mxu0  ;;  %v8278_v26 = vpop.f32.mrb[128].mxu1 }
0x1ca5   :  { %v8353_v27 = vadd.f32 %v8352_v24, %v8208_v22  ;;  %v11292_v33 = vpop.f32.mrb[137].mxu0  ;;  %v11303_v16 = vpop.f32.mrb[129].mxu1  ;;  %v8361_v38 = vadd.f32 %v8360_v37, %v8278_v26 }
0x1ca7   :  { %v9614_v36 = vmul.f32 -1.442695, %v8353_v27  ;;  %v9615_v39 = vmul.f32 -1.442695, %v8361_v38 }
0x1ca9   :  { %12342 = vpow2.f32 %v9614_v36 }
0x1caa   :  { %12344 = vpow2.f32 %v9615_v39 }
0x1cac   :  { %v8348_v42 = vpop.f32.mrb[138].mxu0 }
0x1cad   :  { %v11314_v43 = vpop.f32.mrb[139].mxu0  ;;  %v8349_v29 = vadd.f32 %v13588_v40, %v8348_v42 }
0x1cb3   :  { %v12343_v44 = vpop.eup %12342 }
0x1cb4   :  { %v8357_v32 = vadd.f32 1.0, %v12343_v44  ;;  %v12345_v46 = vpop.eup %12344 }
0x1cb5   :  { %v8365_v47 = vadd.f32 1.0, %v12345_v46 }
0x1cb6   :  { %12346 = vrcp.f32 %v8357_v32 }
0x1cb7   :  { %12348 = vrcp.f32 %v8365_v47  ;;  %v8844_v47 = vld [vmem:[#allocation2 + $0xb0] sm:$0xff] }
0x1cc0   :  { %v12347_v35 = vpop.eup %12346 }
0x1cc1   :  { %v8369_v49 = vmul.f32 %v12347_v35, %v8349_v29  ;;  %v12349_v58 = vpop.eup %12348 }
0x1cc2   :  { %v8372_v55 = vsub.f32 1.0, %v12349_v58  ;;  %v8374_v59 = vmul.f32 %v12349_v58, %v8137_v9 }
0x1cc3   :  { %v8370_v51 = vadd.f32 %v8369_v49, %v8368_v0 }
0x1cc5   :  { %12350 = vtanh.f32 %v8370_v51 }
0x1ccf   :  { %v12351_v48 = vpop.eup %12350 }
0x1cd0   :  { %v8373_v57 = vmul.f32 %v12351_v48, %v8372_v55  ;;  %v9092_v55 = vld [vmem:[#allocation3 + $0x8] sm:$0xff] }
0x1cd2   :  { %v8375_v28 = vadd.f32 %v8374_v59, %v8373_v57  ;;  %v9091_v57 = vld [vmem:[#allocation3] sm:$0xff]  ;;  %v12061_v59 = vld [vmem:[%s13864_s7 + $0x8] sm:$0xff]  }
0x1cd4   :  { %8376 = vst.msk [vmem:[#allocation3 + $0x20] sm:$0xff] %vm185_vm3, %v8375_v28  ;;  %11324 = vmatmul.mubr.msk.f32.vlgmr.msra.gmra.mrb[130].mxu1 %vm185_vm3, %v8375_v28  ;;  %11335 = vmatmul.mubr.msk.f32.vlgmr.msra.gmra.mrb[140].mxu0 %vm185_vm3, %v8375_v28 }
0x1cd5   :  { %11962 = vmatpush3.bf16.msra.mxu1 %v13517_v52  ;;  %11345 = vmatprep.mubr.msk.f32.mxu1 %vm12466_vm2, %v12467_v30 }
0x1cd6   :  { %11963 = vmatprep.subr.bf16.mxu1 %v12465_v18  ;;  %11968 = vmatpush3.bf16.msra.mxu0 %v13465_v50 }
0x1cd7   :  { %11969 = vmatprep.subr.bf16.mxu0 %v12465_v18  ;;  %11356 = vmatprep.mubr.msk.f32.mxu0 %vm12466_vm2, %v12467_v30 }
0x1cd9   :  { %11965 = vmatpush3.bf16.msra.mxu1 %v13532_v6 }
0x1cda   :  { %11972 = vmatprep.subr.bf16.mxu1 %v12465_v18  ;;  %11971 = vmatpush3.bf16.msra.mxu0 %v13475_v54 }
0x1cdb   :  { %11978 = vmatprep.subr.bf16.mxu0 %v12465_v18 }
0x1cdc   :  { %11346 = vmatmul.mubr.msk.f32.vlgmr.msra.gmra.mrb[132].mxu1 %vm185_vm3, %v8375_v28 }
0x1cdd   :  { %11974 = vmatpush3.bf16.msra.mxu1 %v13515_v53  ;;  %11367 = vmatprep.mubr.msk.f32.mxu1 %vm12466_vm2, %v12467_v30 }
0x1cde   :  { %11975 = vmatprep.subr.bf16.mxu1 %v12465_v18 }
0x1ce1   :  { %11977 = vmatpush3.bf16.msra.mxu1 %v13526_v7 }
0x1ce2   :  { %11984 = vmatprep.subr.bf16.mxu1 %v12465_v18 }
0x1da7   :  { %v8446_v45 = vpop.f32.mrb[130].mxu1  ;;  %v8516_v17 = vpop.f32.mrb[140].mxu0 }
0x1da8   :  { %v8591_v62 = vadd.f32 %v8590_v61, %v8446_v45  ;;  %v11325_v31 = vpop.f32.mrb[131].mxu1  ;;  %v11336_v3 = vpop.f32.mrb[141].mxu0  ;;  %v8599_v56 = vadd.f32 %v8598_v25, %v8516_v17  ;;  %v9094_v45 = vld [vmem:[#allocation3 + $0x18] sm:$0xff]  ;;  %v9093_v17 = vld [vmem:[#allocation3 + $0x10] sm:$0xff] }
0x1da9   :  { %v9095_v31 = vld [vmem:[#allocation3 + $0x20] sm:$0xff] }
0x1daa   :  { %v9619_v5 = vmul.f32 -1.442695, %v8591_v62  ;;  %v9620_v34 = vmul.f32 -1.442695, %v8599_v56  ;;  %v9100_v62 = vpack.c.bf16 %v9094_v45, %v9093_v17 }
0x1dac   :  { %12352 = vpow2.f32 %v9619_v5 }
0x1dad   :  { %12354 = vpow2.f32 %v9620_v34 }
0x1daf   :  { %v8586_v60 = vpop.f32.mrb[132].mxu1 }
0x1db0   :  { %v11347_v63 = vpop.f32.mrb[133].mxu1  ;;  %v8587_v4 = vadd.f32 %v13588_v40, %v8586_v60 }
0x1db1   :  { %v13756_v63 = vld [vmem:[%s13865_s8] ss:$0 sm:$0xff]  ;;  %s12468_s8 = smov [#allocation7]  }
0x1db2   :  { %s9304_s25 = sshll.u32 %s12468_s8, 4  ;;  %s9305_s25 = int_to_ptr.vmem [resolvable:$true] %s9304_s25 }
0x1db3   :  { %s12436_s26 = scalar_lea.vmem %s9305_s25, 1024  ;;  %p12441_p9 = scmp.lt.s32.totalorder %s9305_s25, %s9305_s25 }
0x1db4   :  { %p12437_p8 = scmp.ne.s32.totalorder %s9305_s25, %s12436_s26  ;;  %p12442_p10 = scmp.lt.s32.totalorder %s12436_s26, %s12436_s26 }
0x1db6   :  { %v12353_v10 = vpop.eup %12352  ;;  %p12443_p11 = por %p12442_p10, %p12441_p9 }
0x1db7   :  { %v8595_v11 = vadd.f32 1.0, %v12353_v10  ;;  %v12355_v12 = vpop.eup %12354 }
0x1db8   :  { %v8603_v41 = vadd.f32 1.0, %v12355_v12  ;;  %p12444_p12 = pnand %p12443_p11, %p12437_p8 }
0x1db9   :  { %12356 = vrcp.f32 %v8595_v11 }
0x1dba   :  { %12358 = vrcp.f32 %v8603_v41 }
0x1dc3   :  { %v12357_v14 = vpop.eup %12356 }
0x1dc4   :  { %v8607_v15 = vmul.f32 %v12357_v14, %v8587_v4  ;;  %v12359_v13 = vpop.eup %12358 }
0x1dc5   :  { %v8610_v8 = vsub.f32 1.0, %v12359_v13  ;;  %v8612_v23 = vmul.f32 %v12359_v13, %v8375_v28  ;;  %v9099_v28 = vpack.c.bf16 %v9092_v55, %v9091_v57 }
0x1dc6   :  { %v8608_v1 = vadd.f32 %v8607_v15, %v8606_v2 }
0x1dc8   :  { %12360 = vtanh.f32 %v8608_v1 }
0x1dd2   :  { %v12361_v19 = vpop.eup %12360 }
0x1dd3   :  { %v8611_v20 = vmul.f32 %v12361_v19, %v8610_v8 }
0x1dd5   :  { %v8613_v21 = vadd.f32 %v8612_v23, %v8611_v20 }
0x1dd7   :  { %8614 = vst.msk [vmem:[#allocation3 + $0x28] sm:$0xff] %vm185_vm3, %v8613_v21  ;;  %11357 = vmatmul.mubr.msk.f32.vlgmr.msra.gmra.mrb[142].mxu0 %vm185_vm3, %v8613_v21  ;;  %11368 = vmatmul.mubr.msk.f32.vlgmr.msra.gmra.mrb[134].mxu1 %vm185_vm3, %v8613_v21 }
0x1dd8   :  { %11980 = vmatpush3.bf16.msra.mxu0 %v13517_v52  ;;  %11378 = vmatprep.mubr.msk.f32.mxu0 %vm12466_vm2, %v12467_v30 }
0x1dd9   :  { %11981 = vmatprep.subr.bf16.mxu0 %v12465_v18  ;;  %11986 = vmatpush3.bf16.msra.mxu1 %v13465_v50  ;;  %v12060_v50 = vld [vmem:[%s13864_s7] sm:$0xff]  }
0x1dda   :  { %11987 = vmatprep.subr.bf16.mxu1 %v12465_v18  ;;  %11389 = vmatprep.mubr.msk.f32.mxu1 %vm12466_vm2, %v12467_v30 }
0x1ddc   :  { %11983 = vmatpush3.bf16.msra.mxu0 %v13532_v6 }
0x1ddd   :  { %11990 = vmatprep.subr.bf16.mxu0 %v12465_v18  ;;  %11989 = vmatpush3.bf16.msra.mxu1 %v13475_v54  ;;  %v8828_v54 = vld [vmem:[#allocation2 + $0x30] sm:$0xff] }
0x1dde   :  { %11996 = vmatprep.subr.bf16.mxu1 %v12465_v18  ;;  %v9096_v61 = vld [vmem:[#allocation3 + $0x28] sm:$0xff] }
0x1ddf   :  { %11379 = vmatmul.mubr.msk.f32.vlgmr.msra.gmra.mrb[144].mxu0 %vm185_vm3, %v8613_v21  ;;  %v9101_v3 = vpack.c.bf16 %v9096_v61, %v9095_v31 }
0x1de0   :  { %11992 = vmatpush3.bf16.msra.mxu0 %v13515_v53  ;;  %11400 = vmatprep.mubr.msk.f32.mxu0 %vm12466_vm2, %v12467_v30  ;;  %v8836_v53 = vld [vmem:[#allocation2 + $0x70] sm:$0xff] }
0x1de1   :  { %11993 = vmatprep.subr.bf16.mxu0 %v12465_v18 }
0x1de4   :  { %11995 = vmatpush3.bf16.msra.mxu0 %v13526_v7 }
0x1de5   :  { %11414 = vmatprep.subr.bf16.mxu0 %v12060_v50 }
0x1eaa   :  { %v8684_v9 = vpop.f32.mrb[142].mxu0  ;;  %v8754_v22 = vpop.f32.mrb[134].mxu1 }
0x1eab   :  { %v8829_v24 = vadd.f32 %v8828_v54, %v8684_v9  ;;  %v11358_v26 = vpop.f32.mrb[143].mxu0  ;;  %v11369_v27 = vpop.f32.mrb[135].mxu1  ;;  %v8837_v16 = vadd.f32 %v8836_v53, %v8754_v22  ;;  %v9082_v22 = vld [vmem:[#allocation2 + $0xb8] sm:$0xff] }
0x1ead   :  { %v9624_v33 = vmul.f32 -1.442695, %v8829_v24  ;;  %v9625_v36 = vmul.f32 -1.442695, %v8837_v16 }
0x1eaf   :  { %12362 = vpow2.f32 %v9624_v33 }
0x1eb0   :  { %12364 = vpow2.f32 %v9625_v36 }
0x1eb2   :  { %v8824_v37 = vpop.f32.mrb[144].mxu0 }
0x1eb3   :  { %v11380_v38 = vpop.f32.mrb[145].mxu0  ;;  %v8825_v44 = vadd.f32 %v13588_v40, %v8824_v37 }
0x1eb9   :  { %v12363_v7 = vpop.eup %12362 }
0x1eba   :  { %v8833_v39 = vadd.f32 1.0, %v12363_v7  ;;  %v12365_v42 = vpop.eup %12364 }
0x1ebb   :  { %v8841_v43 = vadd.f32 1.0, %v12365_v42 }
0x1ebc   :  { %12366 = vrcp.f32 %v8833_v39 }
0x1ebd   :  { %12368 = vrcp.f32 %v8841_v43 }
0x1ec6   :  { %v12367_v32 = vpop.eup %12366 }
0x1ec7   :  { %v8845_v46 = vmul.f32 %v12367_v32, %v8825_v44  ;;  %v12369_v35 = vpop.eup %12368 }
0x1ec8   :  { %v8848_v49 = vsub.f32 1.0, %v12369_v35  ;;  %v8850_v58 = vmul.f32 %v12369_v35, %v8613_v21 }
0x1ec9   :  { %v8846_v29 = vadd.f32 %v8845_v46, %v8844_v47 }
0x1ecb   :  { %12370 = vtanh.f32 %v8846_v29 }
0x1ed5   :  { %v12371_v0 = vpop.eup %12370 }
0x1ed6   :  { %v8849_v51 = vmul.f32 %v12371_v0, %v8848_v49 }
0x1ed8   :  { %v13732_v48 = vadd.f32 %v8850_v58, %v8849_v51 }
0x1eda   :  { %8852 = vst.msk [vmem:[#allocation3 + $0x30] sm:$0xff] %vm185_vm3, %v13732_v48  ;;  %11390 = vmatmul.mubr.msk.f32.vlgmr.msra.gmra.mrb[136].mxu1 %vm185_vm3, %v13732_v48  ;;  %11401 = vmatmul.mubr.msk.f32.vlgmr.msra.gmra.mrb[146].mxu0 %vm185_vm3, %v13732_v48 }
0x1edb   :  { %11998 = vmatpush3.bf16.msra.mxu1 %v13517_v52  ;;  %11415 = vmatpush3.bf16.msra.mxu0 %v12060_v50  ;;  %v9066_v52 = vld [vmem:[#allocation2 + $0x38] sm:$0xff] }
0x1edc   :  { %11418 = vmatprep.mubr.msk.bf16.mxu0 %vm185_vm3, %v9099_v28  ;;  %11999 = vmatprep.subr.bf16.mxu1 %v12465_v18 }
0x1edd   :  { %11416 = vmatprep.subr.bf16.mxu0 %v12061_v59  ;;  %11411 = vmatprep.mubr.msk.f32.mxu1 %vm12466_vm2, %v12467_v30 }
0x1edf   :  { %12001 = vmatpush3.bf16.msra.mxu1 %v13532_v6  ;;  %11417 = vmatpush3.bf16.msra.mxu0 %v12061_v59  ;;  %v9074_v6 = vld [vmem:[#allocation2 + $0x78] sm:$0xff] }
0x1ee1   :  { %v9097_v37 = vld [vmem:[#allocation3 + $0x30] sm:$0xff] }
0x1ee2   :  { %11412 = vmatmul.mubr.msk.f32.vlgmr.msra.gmra.mrb[138].mxu1 %vm185_vm3, %v13732_v48  ;;  %11419 = vmatmul.mubr.msk.bf16.vlgmr.msra.gmra.mrb[148].mxu0 %vm185_vm3, %v9100_v62 }
0x1ee3   :  { %11422 = vmatprep.mubr.msk.bf16.mxu0 %vm185_vm3, %v9101_v3 }
0x1fad   :  { %v8922_v18 = vpop.f32.mrb[136].mxu1  ;;  %v8992_v5 = vpop.f32.mrb[146].mxu0 }
0x1fae   :  { %v9067_v30 = vadd.f32 %v9066_v52, %v8922_v18  ;;  %v11391_v25 = vpop.f32.mrb[137].mxu1  ;;  %v11402_v56 = vpop.f32.mrb[147].mxu0  ;;  %v9075_v60 = vadd.f32 %v9074_v6, %v8992_v5 }
0x1fb0   :  { %v9629_v34 = vmul.f32 -1.442695, %v9067_v30  ;;  %v9630_v10 = vmul.f32 -1.442695, %v9075_v60 }
0x1fb2   :  { %12372 = vpow2.f32 %v9629_v34 }
0x1fb3   :  { %12374 = vpow2.f32 %v9630_v10 }
0x1fb5   :  { %v9062_v11 = vpop.f32.mrb[138].mxu1  ;;  %v11420_v12 = vpop.f32.mrb[148].mxu0 }
0x1fb6   :  { %v13759_v41 = vadd.f32 %v11420_v12, %v13756_v63  ;;  %v11413_v4 = vpop.f32.mrb[139].mxu1  ;;  %v9172_v14 = vpop.f32.mrb[149].mxu0  ;;  %v9063_v50 = vadd.f32 %v13588_v40, %v9062_v11 }
0x1fb7   :  { %v13762_v15 = vadd.f32 %v13756_v63, %v9172_v14  ;;  %v11421_v2 = vpop.f32.mrb[150].mxu0 }
0x1fb8   :  { %9207 = vmax.xlane.f32.xlu1 %v13759_v41  ;;  %v9175_v1 = vpop.f32.mrb[151].mxu0  ;;  %v13767_v13 = vadd.f32 %v11421_v2, %v13756_v63 }
0x1fb9   :  { %9203 = vmax.xlane.f32.xlu0 %v13762_v15  ;;  %v13770_v8 = vadd.f32 %v13756_v63, %v9175_v1 }
0x1fbc   :  { %v12373_v19 = vpop.eup %12372  ;;  %9209 = vmax.xlane.f32.xlu1 %v13767_v13 }
0x1fbd   :  { %v9071_v20 = vadd.f32 1.0, %v12373_v19  ;;  %9205 = vmax.xlane.f32.xlu0 %v13770_v8  ;;  %v12375_v23 = vpop.eup %12374 }
0x1fbe   :  { %v9079_v21 = vadd.f32 1.0, %v12375_v23 }
0x1fbf   :  { %12376 = vrcp.f32 %v9071_v20 }
0x1fc0   :  { %12378 = vrcp.f32 %v9079_v21 }
0x1fc9   :  { %v12377_v9 = vpop.eup %12376 }
0x1fca   :  { %v9083_v54 = vmul.f32 %v12377_v9, %v9063_v50  ;;  %v12379_v26 = vpop.eup %12378 }
0x1fcb   :  { %v9086_v27 = vsub.f32 1.0, %v12379_v26  ;;  %v9088_v53 = vmul.f32 %v12379_v26, %v13732_v48 }
0x1fcc   :  { %v9084_v24 = vadd.f32 %v9083_v54, %v9082_v22 }
0x1fce   :  { %12380 = vtanh.f32 %v9084_v24 }
0x1fd8   :  { %v12381_v33 = vpop.eup %12380 }
0x1fd9   :  { %v9087_v16 = vmul.f32 %v12381_v33, %v9086_v27 }
0x1fdb   :  { %v9089_v36 = vadd.f32 %v9088_v53, %v9087_v16 }
0x1fdd   :  { %9090 = vst.msk [vmem:[#allocation3 + $0x38] sm:$0xff] %vm185_vm3, %v9089_v36 }
0x1fe4   :  { %v9098_v38 = vld [vmem:[#allocation3 + $0x38] sm:$0xff] }
0x1fe5   :  { %v9102_v7 = vpack.c.bf16 %v9098_v38, %v9097_v37 }
0x1fe7   :  { %11423 = vmatmul.mubr.msk.bf16.gmra.mrb[152].mxu0 %vm185_vm3, %v9102_v7 }
0x2045   :  { %v13780_v39 = vpop.xlane.xlu1 %9207 }
0x2046   :  { %v13778_v40 = vpop.xlane.xlu0 %9203  ;;  %v9221_v46 = vsub.f32 %v13759_v41, %v13780_v39 }
0x2047   :  { %v9219_v43 = vsub.f32 %v13762_v15, %v13778_v40 }
0x2048   :  { %v9231_v0 = vmul.f32 1.442695, %v9221_v46 }
0x2049   :  { %v13788_v32 = vpop.xlane.xlu1 %9209  ;;  %v9227_v47 = vmul.f32 1.442695, %v9219_v43 }
0x204a   :  { %v13782_v42 = vpop.xlane.xlu0 %9205  ;;  %v9222_v29 = vsub.f32 %v13767_v13, %v13788_v32 }
0x204b   :  { %v9220_v44 = vsub.f32 %v13770_v8, %v13782_v42  ;;  %12382 = vpow2.f32 %v9227_v47 }
0x204c   :  { %v9233_v48 = vmul.f32 1.442695, %v9222_v29 }
0x204d   :  { %v9229_v35 = vmul.f32 1.442695, %v9220_v44 }
0x204f   :  { %12384 = vpow2.f32 %v9229_v35 }
0x2050   :  { %12386 = vpow2.f32 %v9231_v0 }
0x2051   :  { %12388 = vpow2.f32 %v9233_v48 }
0x2055   :  { %v12383_v61 = vpop.eup %12382 }
0x2059   :  { %v12385_v17 = vpop.eup %12384 }
0x205a   :  { %v12387_v62 = vpop.eup %12386 }
0x205b   :  { %v12389_v31 = vpop.eup %12388 }
0x20ba   :  { %v11424_v49 = vpop.f32.mrb[152].mxu0 }
0x20bb   :  { %v9188_v51 = vpop.f32.mrb[153].mxu0  ;;  %v13802_v28 = vadd.f32 %v11424_v49, %v13756_v63 }
0x20bc   :  { %v13795_v58 = vadd.f32 %v13756_v63, %v9188_v51  ;;  %v11425_v55 = vpop.f32.mrb[154].mxu0 }
0x20bd   :  { %v9191_v57 = vpop.f32.mrb[155].mxu0  ;;  %v13806_v45 = vadd.f32 %v11425_v55, %v13756_v63 }
0x20be   :  { %v13798_v59 = vadd.f32 %v13756_v63, %v9191_v57  ;;  %9211 = vmax.xlane.f32.xlu0 %v13795_v58 }
0x20c0   :  { %9213 = vmax.xlane.f32.xlu1 %v13798_v59 }
0x20c2   :  { %9215 = vmax.xlane.f32.xlu0 %v13802_v28 }
0x20c4   :  { %9217 = vmax.xlane.f32.xlu1 %v13806_v45 }
0x20c6   :  { %9243 = vadd.xlane.f32.xlu0 %v12383_v61 }
0x20c8   :  { %9245 = vadd.xlane.f32.xlu1 %v12385_v17 }
0x20ca   :  { %9247 = vadd.xlane.f32.xlu0 %v12387_v62 }
0x20cc   :  { %9249 = vadd.xlane.f32.xlu1 %v12389_v31 }
0x214b   :  { %v13810_v3 = vpop.xlane.xlu0 %9211 }
0x214c   :  { %v9223_v18 = vsub.f32 %v13795_v58, %v13810_v3 }
0x214d   :  { %v13814_v52 = vpop.xlane.xlu1 %9213 }
0x214e   :  { %v9235_v5 = vmul.f32 1.442695, %v9223_v18  ;;  %v9224_v30 = vsub.f32 %v13798_v59, %v13814_v52 }
0x214f   :  { %v13818_v25 = vpop.xlane.xlu0 %9215 }
0x2150   :  { %12390 = vpow2.f32 %v9235_v5  ;;  %v9237_v56 = vmul.f32 1.442695, %v9224_v30  ;;  %v9225_v34 = vsub.f32 %v13802_v28, %v13818_v25 }
0x2151   :  { %v13822_v6 = vpop.xlane.xlu1 %9217 }
0x2152   :  { %12392 = vpow2.f32 %v9237_v56  ;;  %v9239_v60 = vmul.f32 1.442695, %v9225_v34  ;;  %v9226_v63 = vsub.f32 %v13806_v45, %v13822_v6 }
0x2153   :  { %v9244_v10 = vpop.xlane.xlu0 %9243 }
0x2154   :  { %12394 = vpow2.f32 %v9239_v60  ;;  %v9241_v11 = vmul.f32 1.442695, %v9226_v63 }
0x2155   :  { %12396 = vlog2.f32 %v9244_v10  ;;  %v9246_v12 = vpop.xlane.xlu1 %9245 }
0x2156   :  { %12398 = vpow2.f32 %v9241_v11 }
0x2157   :  { %12400 = vlog2.f32 %v9246_v12  ;;  %v9248_v4 = vpop.xlane.xlu0 %9247 }
0x2158   :  { %12402 = vlog2.f32 %v9248_v4 }
0x2159   :  { %v9250_v14 = vpop.xlane.xlu1 %9249 }
0x215a   :  { %v12391_v2 = vpop.eup %12390  ;;  %12404 = vlog2.f32 %v9250_v14 }
0x215b   :  { %9251 = vadd.xlane.f32.xlu0 %v12391_v2 }
0x215c   :  { %v12393_v1 = vpop.eup %12392 }
0x215d   :  { %9253 = vadd.xlane.f32.xlu1 %v12393_v1 }
0x215e   :  { %v12395_v19 = vpop.eup %12394 }
0x215f   :  { %v12397_v20 = vpop.eup %12396  ;;  %9255 = vadd.xlane.f32.xlu0 %v12395_v19 }
0x2160   :  { %v12399_v23 = vpop.eup %12398  ;;  %v9260_v21 = vmul.f32 0.6931472, %v12397_v20 }
0x2161   :  { %v12401_v50 = vpop.eup %12400  ;;  %9257 = vadd.xlane.f32.xlu1 %v12399_v23 }
0x2162   :  { %v12403_v9 = vpop.eup %12402  ;;  %v9275_v54 = vadd.f32 %v9260_v21, %v13778_v40  ;;  %v9262_v22 = vmul.f32 0.6931472, %v12401_v50 }
0x2163   :  { %v9264_v24 = vmul.f32 0.6931472, %v12403_v9 }
0x2164   :  { %v12405_v26 = vpop.eup %12404  ;;  %v9283_v27 = vsub.f32 %v13762_v15, %v9275_v54  ;;  %v9276_v33 = vadd.f32 %v9262_v22, %v13782_v42 }
0x2165   :  { %v9277_v53 = vadd.f32 %v9264_v24, %v13780_v39  ;;  %v9266_v16 = vmul.f32 0.6931472, %v12405_v26 }
0x2166   :  { %9291 = vst [vmem:[#allocation7] sm:$0xff] %v9283_v27  ;;  %v9284_v36 = vsub.f32 %v13770_v8, %v9276_v33 }
0x2167   :  { %v9285_v37 = vsub.f32 %v13759_v41, %v9277_v53  ;;  %v9278_v38 = vadd.f32 %v9266_v16, %v13788_v32 }
0x2168   :  { %9292 = vst [vmem:[#allocation7 + $0x8] sm:$0xff] %v9284_v36 }
0x2169   :  { %9293 = vst [vmem:[#allocation7 + $0x10] sm:$0xff] %v9285_v37  ;;  %v9286_v7 = vsub.f32 %v13767_v13, %v9278_v38 }
0x216b   :  { %9294 = vst [vmem:[#allocation7 + $0x18] sm:$0xff] %v9286_v7 }
0x21e8   :  { %v9252_v40 = vpop.xlane.xlu0 %9251 }
0x21e9   :  { %12406 = vlog2.f32 %v9252_v40 }
0x21ea   :  { %v9254_v15 = vpop.xlane.xlu1 %9253 }
0x21eb   :  { %12408 = vlog2.f32 %v9254_v15 }
0x21ec   :  { %v9256_v42 = vpop.xlane.xlu0 %9255 }
0x21ed   :  { %12410 = vlog2.f32 %v9256_v42 }
0x21ee   :  { %v9258_v39 = vpop.xlane.xlu1 %9257 }
0x21ef   :  { %12412 = vlog2.f32 %v9258_v39 }
0x21f3   :  { %v12407_v43 = vpop.eup %12406 }
0x21f4   :  { %v9268_v44 = vmul.f32 0.6931472, %v12407_v43 }
0x21f5   :  { %v12409_v8 = vpop.eup %12408 }
0x21f6   :  { %v9279_v41 = vadd.f32 %v9268_v44, %v13810_v3  ;;  %v9270_v46 = vmul.f32 0.6931472, %v12409_v8 }
0x21f7   :  { %v12411_v32 = vpop.eup %12410 }
0x21f8   :  { %v9287_v47 = vsub.f32 %v13795_v58, %v9279_v41  ;;  %v9280_v13 = vadd.f32 %v9270_v46, %v13814_v52  ;;  %v9272_v29 = vmul.f32 0.6931472, %v12411_v32 }
0x21f9   :  { %v12413_v35 = vpop.eup %12412 }
0x21fa   :  { %9295 = vst [vmem:[#allocation7 + $0x20] sm:$0xff] %v9287_v47  ;;  %v9288_v49 = vsub.f32 %v13798_v59, %v9280_v13  ;;  %v9281_v0 = vadd.f32 %v9272_v29, %v13818_v25  ;;  %v9274_v51 = vmul.f32 0.6931472, %v12413_v35 }
0x21fc   :  { %9296 = vst [vmem:[#allocation7 + $0x28] sm:$0xff] %v9288_v49  ;;  %v9289_v55 = vsub.f32 %v13802_v28, %v9281_v0  ;;  %v9282_v48 = vadd.f32 %v9274_v51, %v13822_v6 }
0x21fe   :  { %9297 = vst [vmem:[#allocation7 + $0x30] sm:$0xff] %v9289_v55  ;;  %v9290_v58 = vsub.f32 %v13806_v45, %v9282_v48 }
0x2200   :  { %9298 = vst [vmem:[#allocation7 + $0x38] sm:$0xff] %v9290_v58 }
0x2201   :  { %12447 = shalt.err (!%p12444_p12)
}
0x2202   :  { %s12448_s0 = scalar_lea.hbm %s13866_s9, 1024 }
0x2203   :  { %p12449_p13 = scmp.ne.s32.totalorder %s13866_s9, %s12448_s0  ;;  %p12452_p0 = scmp.lt.u32.totalorder %s12448_s0, %s13866_s9 }
0x2205   :  { %p12454_p1 = pnand %p12452_p0, %p12449_p13 }
0x2207   :  { %12457 = shalt.err (!%p12454_p1)
}
0x2208   :  { %9310 = dma.vmem_to_hbm [thread:$0]  %s9305_s25, 1024, %s13866_s9, [#allocation6], %s12463_s19, %s12463_s19, %s12464_s20  }
0x2209   :  { %12460 = dma.done.wait [#allocation6], 1024  }
0x220a   :  { %12461 = vsyncadd [#allocation6], 4294966272 }
0x220b   :  { %9314 = vsyncpa [#allocation5], 1 }
0x220c   :  { %9315 = vsyncpa [#allocation6], 1 }

</bundles_post_ra>
